<compile_context>
chip_gen: v5e
topology: v5e:2x2
jax: 0.10.0
libtpu: 0.0.40
codegen_flags: <defaults>
</compile_context>

<pallas_src>
import functools

import jax
import jax.numpy as jnp
from jax.experimental import pallas as pl
from jax.experimental.pallas import tpu as pltpu

H1 = 512   # encoder hidden
H2 = 256   # code size


def _sigmoid(x):
    # 1 / (1 + exp(-x)) with the reciprocal on the EUP approx path (free slot).
    return pl.reciprocal(1.0 + jnp.exp(-x), approx=True)


def ae_forward_kernel(x_ref,
                      w1_ref, b1_ref,
                      w2_ref, b2_ref,
                      w3_ref, b3_ref,
                      w4_ref, b4_ref,
                      out_ref):
    """Fused 4-layer MLP autoencoder forward for one batch tile.

    Matmul inputs stay in the compute dtype (bf16 by default); accumulation
    and bias-add / activations are f32, then re-cast for the next MXU op.
    """
    x = x_ref[...]                      # (tile, D) compute dtype — no upcast
    cd = x.dtype

    # encoder hidden: relu(x @ W1 + b1)
    a1 = jnp.dot(x, w1_ref[...], preferred_element_type=jnp.float32) + b1_ref[...]
    a1 = jnp.maximum(a1, 0.0).astype(cd)

    # encoder output (code): sigmoid(a1 @ W2 + b2)
    a2 = jnp.dot(a1, w2_ref[...], preferred_element_type=jnp.float32) + b2_ref[...]
    code = _sigmoid(a2).astype(cd)

    # decoder hidden: relu(code @ W3 + b3)
    a3 = jnp.dot(code, w3_ref[...], preferred_element_type=jnp.float32) + b3_ref[...]
    a3 = jnp.maximum(a3, 0.0).astype(cd)

    # decoder output: sigmoid(a3 @ W4 + b4)
    a4 = jnp.dot(a3, w4_ref[...], preferred_element_type=jnp.float32) + b4_ref[...]
    out_ref[...] = _sigmoid(a4).astype(out_ref.dtype)


def _default_batch_tile(B: int) -> int:
    """Full-height MXU tiles, keeping >=2 grid steps when the batch allows it."""
    if B >= 512:
        return 256
    if B >= 256:
        return 128
    # Small batches: single tile, rounded up to a sublane multiple.
    return max(8, ((B + 7) // 8) * 8)


@functools.partial(jax.jit, static_argnames=("batch_tile", "compute_dtype"))
def ae_forward(x, params, batch_tile=None, compute_dtype=jnp.bfloat16):
    """Run the fused AE forward as a single pallas_call, tiled over batch."""
    B, D = x.shape
    w1, b1, w2, b2, w3, b3, w4, b4 = params

    if batch_tile is None:
        batch_tile = _default_batch_tile(B)

    # Pad batch up to a multiple of the tile; padded rows are discarded.
    B_pad = pl.cdiv(B, batch_tile) * batch_tile
    x_in = x if B_pad == B else jnp.pad(x, ((0, B_pad - B), (0, 0)))

    # bf16 (or requested) compute dtype for MXU inputs; f32 biases.
    xc = x_in.astype(compute_dtype)
    w1c, w2c, w3c, w4c = (w.astype(compute_dtype) for w in (w1, w2, w3, w4))
    b1f, b2f, b3f, b4f = (b.astype(jnp.float32) for b in (b1, b2, b3, b4))

    out_dtype = x.dtype
    out_itemsize = jnp.dtype(out_dtype).itemsize

    # Advisory cost estimate for XLA's scheduler.
    flops = 2 * B_pad * (D * H1 + H1 * H2 + H2 * H1 + H1 * D)
    transcendentals = B_pad * (H2 + D)  # one exp per sigmoid element
    _nbytes = lambda a: a.size * jnp.dtype(a.dtype).itemsize
    bytes_accessed = (
        _nbytes(xc) + B_pad * D * out_itemsize
        + _nbytes(w1c) + _nbytes(w2c) + _nbytes(w3c) + _nbytes(w4c)
        + _nbytes(b1f) + _nbytes(b2f) + _nbytes(b3f) + _nbytes(b4f)
    )

    # Weights/biases: constant index map -> DMA'd once, stay VMEM-resident.
    # (Single-buffering them would save ~1 MiB; not worth the risk here.)
    full = lambda shape: pl.BlockSpec(shape, lambda i: (0, 0))

    out = pl.pallas_call(
        ae_forward_kernel,
        out_shape=jax.ShapeDtypeStruct((B_pad, D), out_dtype),
        grid_spec=pltpu.PrefetchScalarGridSpec(
            num_scalar_prefetch=0,
            grid=(B_pad // batch_tile,),
            in_specs=[
                pl.BlockSpec((batch_tile, D), lambda i: (i, 0)),   # x tile
                full((D, H1)),  full((1, H1)),                     # W1, b1
                full((H1, H2)), full((1, H2)),                     # W2, b2
                full((H2, H1)), full((1, H1)),                     # W3, b3
                full((H1, D)),  full((1, D)),                      # W4, b4
            ],
            out_specs=pl.BlockSpec((batch_tile, D), lambda i: (i, 0)),
        ),
        compiler_params=pltpu.CompilerParams(
            dimension_semantics=("parallel",),
        ),
        cost_estimate=pl.CostEstimate(
            flops=flops,
            transcendentals=transcendentals,
            bytes_accessed=bytes_accessed,
        ),
    )(xc, w1c, b1f, w2c, b2f, w3c, b3f, w4c, b4f)

    return out if B_pad == B else out[:B]


def init_ae_params(key, input_shape):
    """Deterministic init mimicking nn.Linear's U(-1/sqrt(fan_in), 1/sqrt(fan_in)).

    Returns weights already transposed to (in, out) layout.
    """
    dims = [(input_shape, H1), (H1, H2), (H2, H1), (H1, input_shape)]
    params = []
    for (fan_in, fan_out) in dims:
        key, kw, kb = jax.random.split(key, 3)
        bound = 1.0 / jnp.sqrt(fan_in)
        w = jax.random.uniform(kw, (fan_in, fan_out), jnp.float32, -bound, bound)
        b = jax.random.uniform(kb, (1, fan_out), jnp.float32, -bound, bound)
        params += [w, b]
    return tuple(params)


def ae_forward_ref(x, params, compute_dtype=jnp.bfloat16):
    """Pure-JAX reference applying the same dtype casts as the kernel."""
    w1, b1, w2, b2, w3, b3, w4, b4 = params
    cd = compute_dtype
    dot = lambda a, w: jnp.dot(a.astype(cd), w.astype(cd),
                               preferred_element_type=jnp.float32)
    a = jnp.maximum(dot(x, w1) + b1, 0.0)
    c = jax.nn.sigmoid(dot(a, w2) + b2)
    a = jnp.maximum(dot(c, w3) + b3, 0.0)
    return jax.nn.sigmoid(dot(a, w4) + b4).astype(x.dtype)


if __name__ == "__main__":
    key = jax.random.PRNGKey(0)
    k_param, k_x1, k_x2 = jax.random.split(key, 3)

    INPUT_SHAPE = 256  # kwargs['input_shape']
    params = init_ae_params(k_param, INPUT_SHAPE)

    # Main check: multi-tile grid (default tile = 256 -> 2 parallel steps).
    BATCH = 512
    x = jax.random.normal(k_x1, (BATCH, INPUT_SHAPE), jnp.float32)
    out = jax.block_until_ready(ae_forward(x, params))
    ref = ae_forward_ref(x, params)
    assert out.shape == (BATCH, INPUT_SHAPE)
    assert jnp.allclose(out, ref, atol=5e-3, rtol=0), "mismatch vs reference"

    # Secondary check: small, non-tile-multiple batch exercises padding path.
    x2 = jax.random.normal(k_x2, (10, INPUT_SHAPE), jnp.float32)
    out2 = jax.block_until_ready(ae_forward(x2, params))
    ref2 = ae_forward_ref(x2, params)
    assert out2.shape == (10, INPUT_SHAPE)
    assert jnp.allclose(out2, ref2, atol=5e-3, rtol=0), "mismatch (padded batch)"

    print("KERNEL_OK")
</pallas_src>

<mosaic_0001>
module attributes {stable_mosaic.version = 11 : i64} {
  func.func @ae_forward_kernel(%arg0: i32, %arg1: memref<256x256xbf16, #tpu.memory_space<vmem>>, %arg2: memref<256x512xbf16, #tpu.memory_space<vmem>>, %arg3: memref<1x512xf32, #tpu.memory_space<vmem>>, %arg4: memref<512x256xbf16, #tpu.memory_space<vmem>>, %arg5: memref<1x256xf32, #tpu.memory_space<vmem>>, %arg6: memref<256x512xbf16, #tpu.memory_space<vmem>>, %arg7: memref<1x512xf32, #tpu.memory_space<vmem>>, %arg8: memref<512x256xbf16, #tpu.memory_space<vmem>>, %arg9: memref<1x256xf32, #tpu.memory_space<vmem>>, %arg10: memref<256x256xf32, #tpu.memory_space<vmem>>) attributes {dimension_semantics = [#tpu.dimension_semantics<parallel>], iteration_bounds = array<i64: 2>, scalar_prefetch = 0 : i64, scratch_operands = 0 : i64, tpu.core_type = #tpu.core_type<tc>, window_params = [{transform_indices = @transform_0, window_bounds = array<i64: 256, 256>}, {pipeline_mode = #tpu.pipeline_mode<synchronous>, transform_indices = @transform_1, window_bounds = array<i64: 256, 512>}, {pipeline_mode = #tpu.pipeline_mode<synchronous>, transform_indices = @transform_2, window_bounds = array<i64: 1, 512>}, {pipeline_mode = #tpu.pipeline_mode<synchronous>, transform_indices = @transform_3, window_bounds = array<i64: 512, 256>}, {pipeline_mode = #tpu.pipeline_mode<synchronous>, transform_indices = @transform_4, window_bounds = array<i64: 1, 256>}, {pipeline_mode = #tpu.pipeline_mode<synchronous>, transform_indices = @transform_5, window_bounds = array<i64: 256, 512>}, {pipeline_mode = #tpu.pipeline_mode<synchronous>, transform_indices = @transform_6, window_bounds = array<i64: 1, 512>}, {pipeline_mode = #tpu.pipeline_mode<synchronous>, transform_indices = @transform_7, window_bounds = array<i64: 512, 256>}, {pipeline_mode = #tpu.pipeline_mode<synchronous>, transform_indices = @transform_8, window_bounds = array<i64: 1, 256>}, {transform_indices = @transform_9, window_bounds = array<i64: 256, 256>}]} {
    %c0 = arith.constant 0 : index
    %c0_0 = arith.constant 0 : index
    %0 = vector.load %arg1[%c0, %c0_0] : memref<256x256xbf16, #tpu.memory_space<vmem>>, vector<256x256xbf16>
    %c0_1 = arith.constant 0 : index
    %c0_2 = arith.constant 0 : index
    %1 = vector.load %arg2[%c0_1, %c0_2] : memref<256x512xbf16, #tpu.memory_space<vmem>>, vector<256x512xbf16>
    %cst = arith.constant dense<0.000000e+00> : vector<256x512xf32>
    %2 = tpu.matmul %0, %1, %cst {dimension_numbers = #tpu.dot_dimension_numbers<[1], [0], [0], [1], [0, 0, 1, 1], [], []>} : vector<256x256xbf16>, vector<256x512xbf16>, vector<256x512xf32> -> vector<256x512xf32>
    %c0_3 = arith.constant 0 : index
    %c0_4 = arith.constant 0 : index
    %3 = vector.load %arg3[%c0_3, %c0_4] : memref<1x512xf32, #tpu.memory_space<vmem>>, vector<1x512xf32>
    %4 = vector.broadcast %3 : vector<1x512xf32> to vector<256x512xf32>
    %5 = arith.addf %2, %4 : vector<256x512xf32>
    %cst_5 = arith.constant 0.000000e+00 : f32
    %6 = vector.broadcast %cst_5 : f32 to vector<256x512xf32>
    %7 = arith.maximumf %5, %6 : vector<256x512xf32>
    %8 = arith.truncf %7 : vector<256x512xf32> to vector<256x512xbf16>
    %c0_6 = arith.constant 0 : index
    %c0_7 = arith.constant 0 : index
    %9 = vector.load %arg4[%c0_6, %c0_7] : memref<512x256xbf16, #tpu.memory_space<vmem>>, vector<512x256xbf16>
    %cst_8 = arith.constant dense<0.000000e+00> : vector<256x256xf32>
    %10 = tpu.matmul %8, %9, %cst_8 {dimension_numbers = #tpu.dot_dimension_numbers<[1], [0], [0], [1], [0, 0, 1, 1], [], []>} : vector<256x512xbf16>, vector<512x256xbf16>, vector<256x256xf32> -> vector<256x256xf32>
    %c0_9 = arith.constant 0 : index
    %c0_10 = arith.constant 0 : index
    %11 = vector.load %arg5[%c0_9, %c0_10] : memref<1x256xf32, #tpu.memory_space<vmem>>, vector<1x256xf32>
    %12 = vector.broadcast %11 : vector<1x256xf32> to vector<256x256xf32>
    %13 = arith.addf %10, %12 : vector<256x256xf32>
    %cst_11 = arith.constant 0.000000e+00 : f32
    %14 = vector.broadcast %cst_11 : f32 to vector<256x256xf32>
    %15 = arith.subf %14, %13 : vector<256x256xf32>
    %16 = math.exp %15 : vector<256x256xf32>
    %cst_12 = arith.constant 1.000000e+00 : f32
    %17 = vector.broadcast %cst_12 : f32 to vector<256x256xf32>
    %18 = arith.addf %17, %16 : vector<256x256xf32>
    %19 = tpu.reciprocal %18 {approx = true} : vector<256x256xf32> -> vector<256x256xf32>
    %20 = arith.truncf %19 : vector<256x256xf32> to vector<256x256xbf16>
    %c0_13 = arith.constant 0 : index
    %c0_14 = arith.constant 0 : index
    %21 = vector.load %arg6[%c0_13, %c0_14] : memref<256x512xbf16, #tpu.memory_space<vmem>>, vector<256x512xbf16>
    %cst_15 = arith.constant dense<0.000000e+00> : vector<256x512xf32>
    %22 = tpu.matmul %20, %21, %cst_15 {dimension_numbers = #tpu.dot_dimension_numbers<[1], [0], [0], [1], [0, 0, 1, 1], [], []>} : vector<256x256xbf16>, vector<256x512xbf16>, vector<256x512xf32> -> vector<256x512xf32>
    %c0_16 = arith.constant 0 : index
    %c0_17 = arith.constant 0 : index
    %23 = vector.load %arg7[%c0_16, %c0_17] : memref<1x512xf32, #tpu.memory_space<vmem>>, vector<1x512xf32>
    %24 = vector.broadcast %23 : vector<1x512xf32> to vector<256x512xf32>
    %25 = arith.addf %22, %24 : vector<256x512xf32>
    %cst_18 = arith.constant 0.000000e+00 : f32
    %26 = vector.broadcast %cst_18 : f32 to vector<256x512xf32>
    %27 = arith.maximumf %25, %26 : vector<256x512xf32>
    %28 = arith.truncf %27 : vector<256x512xf32> to vector<256x512xbf16>
    %c0_19 = arith.constant 0 : index
    %c0_20 = arith.constant 0 : index
    %29 = vector.load %arg8[%c0_19, %c0_20] : memref<512x256xbf16, #tpu.memory_space<vmem>>, vector<512x256xbf16>
    %cst_21 = arith.constant dense<0.000000e+00> : vector<256x256xf32>
    %30 = tpu.matmul %28, %29, %cst_21 {dimension_numbers = #tpu.dot_dimension_numbers<[1], [0], [0], [1], [0, 0, 1, 1], [], []>} : vector<256x512xbf16>, vector<512x256xbf16>, vector<256x256xf32> -> vector<256x256xf32>
    %c0_22 = arith.constant 0 : index
    %c0_23 = arith.constant 0 : index
    %31 = vector.load %arg9[%c0_22, %c0_23] : memref<1x256xf32, #tpu.memory_space<vmem>>, vector<1x256xf32>
    %32 = vector.broadcast %31 : vector<1x256xf32> to vector<256x256xf32>
    %33 = arith.addf %30, %32 : vector<256x256xf32>
    %cst_24 = arith.constant 0.000000e+00 : f32
    %34 = vector.broadcast %cst_24 : f32 to vector<256x256xf32>
    %35 = arith.subf %34, %33 : vector<256x256xf32>
    %36 = math.exp %35 : vector<256x256xf32>
    %cst_25 = arith.constant 1.000000e+00 : f32
    %37 = vector.broadcast %cst_25 : f32 to vector<256x256xf32>
    %38 = arith.addf %37, %36 : vector<256x256xf32>
    %39 = tpu.reciprocal %38 {approx = true} : vector<256x256xf32> -> vector<256x256xf32>
    %c0_26 = arith.constant 0 : index
    %c0_27 = arith.constant 0 : index
    %40 = vector.load %arg10[%c0_26, %c0_27] : memref<256x256xf32, #tpu.memory_space<vmem>>, vector<256x256xf32>
    tpu.vector_store %arg10[%c0_26, %c0_27], %39 {strides = array<i32>} : memref<256x256xf32, #tpu.memory_space<vmem>>, vector<256x256xf32>,
    return
  }
  func.func @transform_0(%arg0: i32) -> (i32, i32) {
    %c0_i32 = arith.constant 0 : i32
    %c0_i32_0 = arith.constant 0 : i32
    return %arg0, %c0_i32 : i32, i32
  }
  func.func @transform_1(%arg0: i32) -> (i32, i32) {
    %c0_i32 = arith.constant 0 : i32
    %c0_i32_0 = arith.constant 0 : i32
    %c0_i32_1 = arith.constant 0 : i32
    return %c0_i32, %c0_i32_0 : i32, i32
  }
  func.func @transform_2(%arg0: i32) -> (i32, i32) {
    %c0_i32 = arith.constant 0 : i32
    %c0_i32_0 = arith.constant 0 : i32
    %c0_i32_1 = arith.constant 0 : i32
    return %c0_i32, %c0_i32_0 : i32, i32
  }
  func.func @transform_3(%arg0: i32) -> (i32, i32) {
    %c0_i32 = arith.constant 0 : i32
    %c0_i32_0 = arith.constant 0 : i32
    %c0_i32_1 = arith.constant 0 : i32
    return %c0_i32, %c0_i32_0 : i32, i32
  }
  func.func @transform_4(%arg0: i32) -> (i32, i32) {
    %c0_i32 = arith.constant 0 : i32
    %c0_i32_0 = arith.constant 0 : i32
    %c0_i32_1 = arith.constant 0 : i32
    return %c0_i32, %c0_i32_0 : i32, i32
  }
  func.func @transform_5(%arg0: i32) -> (i32, i32) {
    %c0_i32 = arith.constant 0 : i32
    %c0_i32_0 = arith.constant 0 : i32
    %c0_i32_1 = arith.constant 0 : i32
    return %c0_i32, %c0_i32_0 : i32, i32
  }
  func.func @transform_6(%arg0: i32) -> (i32, i32) {
    %c0_i32 = arith.constant 0 : i32
    %c0_i32_0 = arith.constant 0 : i32
    %c0_i32_1 = arith.constant 0 : i32
    return %c0_i32, %c0_i32_0 : i32, i32
  }
  func.func @transform_7(%arg0: i32) -> (i32, i32) {
    %c0_i32 = arith.constant 0 : i32
    %c0_i32_0 = arith.constant 0 : i32
    %c0_i32_1 = arith.constant 0 : i32
    return %c0_i32, %c0_i32_0 : i32, i32
  }
  func.func @transform_8(%arg0: i32) -> (i32, i32) {
    %c0_i32 = arith.constant 0 : i32
    %c0_i32_0 = arith.constant 0 : i32
    %c0_i32_1 = arith.constant 0 : i32
    return %c0_i32, %c0_i32_0 : i32, i32
  }
  func.func @transform_9(%arg0: i32) -> (i32, i32) {
    %c0_i32 = arith.constant 0 : i32
    %c0_i32_0 = arith.constant 0 : i32
    return %arg0, %c0_i32 : i32, i32
  }
}

</mosaic_0001>

<bundles_post_ra>
// kernel: ae_forward.1
= control target key start
LH: loop header
LB: loop body
LE: loop exit
PB: predicated region body
PF: predicated region fallthrough
CT: control target
= control target key end

     0   :  { %14 = vsyncpa [#allocation3], 0  ;;  %s11359_s0 = inlined_call_operand.vmem [shape: bf16[512,256], index: 0, kind: input, shape index: {}]   ;;  %s11360_s1 = inlined_call_operand.vmem [shape: bf16[256,512], index: 1, kind: input, shape index: {}]   ;;  %s11361_s2 = inlined_call_operand.vmem [shape: f32[1,512], index: 2, kind: input, shape index: {}]   ;;  %s11362_s3 = inlined_call_operand.vmem [shape: bf16[512,256], index: 3, kind: input, shape index: {}]   ;;  %s11363_s4 = inlined_call_operand.vmem [shape: f32[1,256], index: 4, kind: input, shape index: {}]   ;;  %s11364_s5 = inlined_call_operand.vmem [shape: bf16[256,512], index: 5, kind: input, shape index: {}]   ;;  %s11365_s6 = inlined_call_operand.vmem [shape: f32[1,512], index: 6, kind: input, shape index: {}]   ;;  %s11366_s7 = inlined_call_operand.vmem [shape: bf16[512,256], index: 7, kind: input, shape index: {}]   ;;  %s11367_s8 = inlined_call_operand.vmem [shape: f32[1,256], index: 8, kind: input, shape index: {}]   ;;  %s11368_s9 = inlined_call_operand.hbm [shape: f32[512,256], index: 9, kind: output, shape index: {}]  }
   0x1   :  { %16 = vsyncpa [#allocation3 + $0x1], 0  ;;  %s8274_s30 = smov 0   ;;  %s8276_s10 = smov 0  }
   0x2   :  { %s8278_s11 = smov 0   ;;  %s8280_s12 = smov 0  }
   0x3 LB: > { %s8295_s13 = sadd.s32 4294967295, %s8220_s12   ;;  %s6144_s14 = sadd.s32 4294967294, %s8220_s12   ;;  %s8220_s12 = sphi %s8280_s12, %s11534_s12   ;;  %s8216_s11 = sphi %s8278_s11, %s11533_s11   ;;  %s8212_s10 = sphi %s8276_s10, %s11532_s10   ;;  %s8208_s30 = sphi %s8274_s30, %s11531_s30  }
   0x4   : > { %s8299_s15 = sadd.s32 1, %s8220_s12   ;;  %s223_s16 = sadd.s32 1, %s8216_s11 }
   0x5   : > { %s220_s17 = ssub.s32 %s8220_s12, %s8299_s15  ;;  %p233_p0 = scmp.ne.s32.totalorder %s8216_s11, %s8212_s10 }
   0x6   : > { %p221_p1 = scmp.eq.s32.totalorder %s220_s17, 0  ;;  %p234_p2 = scmp.eq.s32.totalorder %s8295_s13, 1 }
   0x7   : > { %p239_p3 = scmp.ne.s32.totalorder %s8212_s10, %s8208_s30  ;;  %p240_p4 = scmp.eq.s32.totalorder %s6144_s14, 1 }
   0x8   : > { %s8310_s18 = scalar_select %p221_p1, %s8216_s11, %s223_s16  }
   0x9   : > { %p8312_p5 = por %p234_p2, %p233_p0  ;;  %p8316_p6 = por %p240_p4, %p239_p3 }
   0xa   : > { %11419 = sst [smem:[#allocation5_spill]] %s8310_s18  ;;  %p6147_p7 = scmp.ge.s32.totalorder %s8220_s12, 1 }
   0xb   : > { %p292_p8 = scmp.lt.s32.totalorder %s8220_s12, 3 }
   0xd   : > { %p293_p9 = pnand %p6147_p7, %p292_p8 }
   0xf   : > { %296 = sbr.rel (%p293_p9) target bundleno = 2255 (0x8cf), region = 56 }
  0x14   : > { %v6394_v0 = vld [vmem:[%s11360_s1 + $0xe0] sm:$0xf]  ;;  %v7373_v1 = vld [vmem:[%s11360_s1 + $0xec] sm:$0xf0]  ;;  %v7371_v5 = vld [vmem:[%s11360_s1 + $0xe4] sm:$0xf] }
  0x15   : > { %v6522_v2 = vld [vmem:[%s11360_s1 + $0x1e0] sm:$0xf]  ;;  %v6395_v3 = vor.u32 %v7373_v1, %v6394_v0  ;;  %v7405_v4 = vld [vmem:[%s11360_s1 + $0x1ec] sm:$0xf0]  ;;  %v6396_v6 = vld [vmem:[%s11360_s1 + $0xf0] sm:$0xf0] }
  0x16   : > { %v6523_v7 = vor.u32 %v7405_v4, %v6522_v2  ;;  %v6399_v8 = vor.u32 %v7371_v5, %v6396_v6  ;;  %v7403_v9 = vld [vmem:[%s11360_s1 + $0x1e4] sm:$0xf]  ;;  %v6524_v10 = vld [vmem:[%s11360_s1 + $0x1f0] sm:$0xf0]  ;;  %v6378_v11 = vld [vmem:[%s11360_s1 + $0xc0] sm:$0xf] }
  0x17   : > { %923 = vmatpush.bf16.msra.mxu0 %v6395_v3  ;;  %v6527_v12 = vor.u32 %v7403_v9, %v6524_v10  ;;  %v7369_v13 = vld [vmem:[%s11360_s1 + $0xcc] sm:$0xf0]  ;;  %v6506_v14 = vld [vmem:[%s11360_s1 + $0x1c0] sm:$0xf]  ;;  %v7367_v18 = vld [vmem:[%s11360_s1 + $0xc4] sm:$0xf] }
  0x18   : > { %v7401_v15 = vld [vmem:[%s11360_s1 + $0x1cc] sm:$0xf0]  ;;  %1012 = vmatpush.bf16.msra.mxu1 %v6523_v7  ;;  %1101 = vmatpush.bf16.msra.mxu2 %v6399_v8  ;;  %v6379_v16 = vor.u32 %v7369_v13, %v6378_v11  ;;  %v6380_v19 = vld [vmem:[%s11360_s1 + $0xd0] sm:$0xf0]  ;;  %v7399_v20 = vld [vmem:[%s11360_s1 + $0x1c4] sm:$0xf] }
  0x19   : > { %v6507_v17 = vor.u32 %v7401_v15, %v6506_v14  ;;  %1190 = vmatpush.bf16.msra.mxu3 %v6527_v12  ;;  %v6383_v21 = vor.u32 %v7367_v18, %v6380_v19  ;;  %v6508_v22 = vld [vmem:[%s11360_s1 + $0x1d0] sm:$0xf0]  ;;  %v6362_v23 = vld [vmem:[%s11360_s1 + $0xa0] sm:$0xf]  ;;  %v7365_v24 = vld [vmem:[%s11360_s1 + $0xac] sm:$0xf0] }
  0x1a   : > { %v6511_v25 = vor.u32 %v7399_v20, %v6508_v22  ;;  %v6490_v26 = vld [vmem:[%s11360_s1 + $0x1a0] sm:$0xf]  ;;  %v7397_v27 = vld [vmem:[%s11360_s1 + $0x1ac] sm:$0xf0]  ;;  %v7363_v28 = vld [vmem:[%s11360_s1 + $0xa4] sm:$0xf]  ;;  %v6363_v29 = vor.u32 %v7365_v24, %v6362_v23 }
  0x1b   : > { %924 = vmatpush.bf16.msra.mxu0 %v6379_v16  ;;  %v6364_v30 = vld [vmem:[%s11360_s1 + $0xb0] sm:$0xf0]  ;;  %v7395_v31 = vld [vmem:[%s11360_s1 + $0x1a4] sm:$0xf]  ;;  %v6491_v33 = vor.u32 %v7397_v27, %v6490_v26  ;;  %v6346_v35 = vld [vmem:[%s11360_s1 + $0x80] sm:$0xf] }
  0x1c   : > { %v6492_v32 = vld [vmem:[%s11360_s1 + $0x1b0] sm:$0xf0]  ;;  %1013 = vmatpush.bf16.msra.mxu1 %v6507_v17  ;;  %1102 = vmatpush.bf16.msra.mxu2 %v6383_v21  ;;  %v6367_v34 = vor.u32 %v7363_v28, %v6364_v30  ;;  %v7361_v36 = vld [vmem:[%s11360_s1 + $0x8c] sm:$0xf0]  ;;  %v6474_v37 = vld [vmem:[%s11360_s1 + $0x180] sm:$0xf] }
  0x1d   : > { %1191 = vmatpush.bf16.msra.mxu3 %v6511_v25  ;;  %v6495_v38 = vor.u32 %v7395_v31, %v6492_v32  ;;  %v7393_v39 = vld [vmem:[%s11360_s1 + $0x18c] sm:$0xf0]  ;;  %v7359_v40 = vld [vmem:[%s11360_s1 + $0x84] sm:$0xf]  ;;  %v6348_v41 = vld [vmem:[%s11360_s1 + $0x90] sm:$0xf0]  ;;  %v6347_v44 = vor.u32 %v7361_v36, %v6346_v35 }
  0x1e   : > { %v7391_v42 = vld [vmem:[%s11360_s1 + $0x184] sm:$0xf]  ;;  %v6476_v43 = vld [vmem:[%s11360_s1 + $0x190] sm:$0xf0]  ;;  %v6475_v45 = vor.u32 %v7393_v39, %v6474_v37  ;;  %v6351_v46 = vor.u32 %v7359_v40, %v6348_v41  ;;  %v6330_v47 = vld [vmem:[%s11360_s1 + $0x60] sm:$0xf] }
  0x1f   : > { %925 = vmatpush.bf16.msra.mxu0 %v6363_v29  ;;  %v7357_v48 = vld [vmem:[%s11360_s1 + $0x6c] sm:$0xf0]  ;;  %v6458_v49 = vld [vmem:[%s11360_s1 + $0x160] sm:$0xf]  ;;  %v6479_v50 = vor.u32 %v7391_v42, %v6476_v43  ;;  %v7355_v52 = vld [vmem:[%s11360_s1 + $0x64] sm:$0xf] }
  0x20   : > { %1014 = vmatpush.bf16.msra.mxu1 %v6491_v33  ;;  %1103 = vmatpush.bf16.msra.mxu2 %v6367_v34  ;;  %v7389_v51 = vld [vmem:[%s11360_s1 + $0x16c] sm:$0xf0]  ;;  %v6332_v53 = vld [vmem:[%s11360_s1 + $0x70] sm:$0xf0]  ;;  %v7387_v54 = vld [vmem:[%s11360_s1 + $0x164] sm:$0xf]  ;;  %v6331_v56 = vor.u32 %v7357_v48, %v6330_v47 }
  0x21   : > { %1192 = vmatpush.bf16.msra.mxu3 %v6495_v38  ;;  %v6460_v55 = vld [vmem:[%s11360_s1 + $0x170] sm:$0xf0]  ;;  %v6459_v57 = vor.u32 %v7389_v51, %v6458_v49  ;;  %v6335_v58 = vor.u32 %v7355_v52, %v6332_v53  ;;  %v6314_v59 = vld [vmem:[%s11360_s1 + $0x40] sm:$0xf]  ;;  %v7353_v60 = vld [vmem:[%s11360_s1 + $0x4c] sm:$0xf0] }
  0x22   : > { %v6442_v61 = vld [vmem:[%s11360_s1 + $0x140] sm:$0xf]  ;;  %v6463_v62 = vor.u32 %v7387_v54, %v6460_v55  ;;  %v7385_v63 = vld [vmem:[%s11360_s1 + $0x14c] sm:$0xf0]  ;;  %v7351_v0 = vld [vmem:[%s11360_s1 + $0x44] sm:$0xf]  ;;  %v6315_v4 = vor.u32 %v7353_v60, %v6314_v59 }
  0x23   : > { %926 = vmatpush.bf16.msra.mxu0 %v6347_v44  ;;  %v6316_v1 = vld [vmem:[%s11360_s1 + $0x50] sm:$0xf0]  ;;  %v7383_v2 = vld [vmem:[%s11360_s1 + $0x144] sm:$0xf]  ;;  %v6298_v5 = vld [vmem:[%s11360_s1 + $0x20] sm:$0xf]  ;;  %v6443_v6 = vor.u32 %v7385_v63, %v6442_v61 }
  0x24   : > { %1015 = vmatpush.bf16.msra.mxu1 %v6475_v45  ;;  %1104 = vmatpush.bf16.msra.mxu2 %v6351_v46  ;;  %v6444_v3 = vld [vmem:[%s11360_s1 + $0x150] sm:$0xf0]  ;;  %v6319_v7 = vor.u32 %v7351_v0, %v6316_v1  ;;  %v7349_v8 = vld [vmem:[%s11360_s1 + $0x2c] sm:$0xf0]  ;;  %v6426_v9 = vld [vmem:[%s11360_s1 + $0x120] sm:$0xf] }
  0x25   : > { %1193 = vmatpush.bf16.msra.mxu3 %v6479_v50  ;;  %v7381_v10 = vld [vmem:[%s11360_s1 + $0x12c] sm:$0xf0]  ;;  %v6447_v11 = vor.u32 %v7383_v2, %v6444_v3  ;;  %v7347_v12 = vld [vmem:[%s11360_s1 + $0x24] sm:$0xf]  ;;  %v6300_v13 = vld [vmem:[%s11360_s1 + $0x30] sm:$0xf0]  ;;  %v6299_v16 = vor.u32 %v7349_v8, %v6298_v5 }
  0x26   : > { %s6149_s21 = sshll.u32 %s8295_s13, 5  ;;  %v7379_v14 = vld [vmem:[%s11360_s1 + $0x124] sm:$0xf]  ;;  %v6428_v15 = vld [vmem:[%s11360_s1 + $0x130] sm:$0xf0]  ;;  %v6427_v20 = vor.u32 %v7381_v10, %v6426_v9  ;;  %v6303_v21 = vor.u32 %v7347_v12, %v6300_v13  ;;  %s326_s24 = sand.u32 1, %s8212_s10  }
  0x27   : > { %927 = vmatpush.bf16.msra.mxu0 %v6331_v56  ;;  %p330_p10 = scmp.lt.s32.totalorder %s6149_s21, 63  ;;  %v6282_v17 = vld [vmem:[%s11360_s1] sm:$0xf]  ;;  %v7345_v18 = vld [vmem:[%s11360_s1 + $0xc] sm:$0xf0]  ;;  %v6431_v24 = vor.u32 %v7379_v14, %v6428_v15  ;;  %s6148_s25 = sshll.u32 %s326_s24, 9 }
  0x28   : > { %1016 = vmatpush.bf16.msra.mxu1 %v6459_v57  ;;  %1105 = vmatpush.bf16.msra.mxu2 %v6335_v58  ;;  %v6410_v19 = vld [vmem:[%s11360_s1 + $0x100] sm:$0xf]  ;;  %v7377_v22 = vld [vmem:[%s11360_s1 + $0x10c] sm:$0xf0]  ;;  %v7343_v23 = vld [vmem:[%s11360_s1 + $0x4] sm:$0xf]  ;;  %v6283_v30 = vor.u32 %v7345_v18, %v6282_v17 }
  0x29   : > { %1194 = vmatpush.bf16.msra.mxu3 %v6463_v62  ;;  %s11536_s21 = smov (!%p330_p10, %s6149_s21), 63  ;;  %v6284_v25 = vld [vmem:[%s11360_s1 + $0x10] sm:$0xf0]  ;;  %v7375_v26 = vld [vmem:[%s11360_s1 + $0x104] sm:$0xf]  ;;  %v6411_v33 = vor.u32 %v7377_v22, %v6410_v19  ;;  %s11052_s26 = scalar_lea.vmem [#allocation2], %s6148_s25 }
  0x2a   : > { %v6412_v27 = vld [vmem:[%s11360_s1 + $0x110] sm:$0xf0]  ;;  %s7310_s16 = sshll.u32 %s11536_s21, 3  ;;  %v7372_v28 = vld [vmem:[%s11360_s1 + $0xec] sm:$0xf]  ;;  %v6287_v34 = vor.u32 %v7343_v23, %v6284_v25  ;;  %s6066_s28 = scalar_lea.sflag [#allocation3], %s326_s24 }
  0x2b   : > { %928 = vmatpush.bf16.msra.mxu0 %v6315_v4  ;;  %v6404_v29 = vld [vmem:[%s11360_s1 + $0xf8] sm:$0xf0]  ;;  %s8524_s27 = scalar_lea.vmem %s11359_s0, %s7310_s16  ;;  %v7404_v31 = vld [vmem:[%s11360_s1 + $0x1ec] sm:$0xf]  ;;  %v6415_v38 = vor.u32 %v7375_v26, %v6412_v27  ;;  %v6402_v41 = vld [vmem:[%s11360_s1 + $0xe8] sm:$0xf] }
  0x2c   : > { %1017 = vmatpush.bf16.msra.mxu1 %v6443_v6  ;;  %1106 = vmatpush.bf16.msra.mxu2 %v6319_v7  ;;  %v6532_v32 = vld [vmem:[%s11360_s1 + $0x1f8] sm:$0xf0]  ;;  %v6154_v35 = vld [vmem:[%s8524_s27] sm:$0xf]  ;;  %v7312_v36 = vld [vmem:[%s8524_s27 + $0x4] sm:$0xf0]  ;;  %v6407_v40 = vor.u32 %v7372_v28, %v6404_v29 }
  0x2d   : > { %1195 = vmatpush.bf16.msra.mxu3 %v6447_v11  ;;  %v7311_v37 = vld [vmem:[%s8524_s27 + $0x4] sm:$0xf]  ;;  %v6156_v39 = vld [vmem:[%s8524_s27 + $0x8] sm:$0xf0]  ;;  %v7374_v42 = vld [vmem:[%s11360_s1 + $0xf4] sm:$0xf0]  ;;  %v8542_v43 = vor.u32 %v7312_v36, %v6154_v35  ;;  %v6535_v44 = vor.u32 %v7404_v31, %v6532_v32 }
  0x2e   : > { %v6530_v45 = vld [vmem:[%s11360_s1 + $0x1e8] sm:$0xf]  ;;  %v7406_v46 = vld [vmem:[%s11360_s1 + $0x1f4] sm:$0xf0]  ;;  %v8550_v47 = vor.u32 %v7311_v37, %v6156_v39  ;;  %v6403_v48 = vor.u32 %v7374_v42, %v6402_v41  ;;  %v7368_v50 = vld [vmem:[%s11360_s1 + $0xcc] sm:$0xf] }
  0x2f   : > { %929 = vmatpush.bf16.msra.mxu0 %v6299_v16  ;;  %v6531_v49 = vor.u32 %v7406_v46, %v6530_v45  ;;  %v6388_v51 = vld [vmem:[%s11360_s1 + $0xd8] sm:$0xf0]  ;;  %v6386_v52 = vld [vmem:[%s11360_s1 + $0xc8] sm:$0xf]  ;;  %v7370_v54 = vld [vmem:[%s11360_s1 + $0xd4] sm:$0xf0] }
  0x30   : > { %1018 = vmatpush.bf16.msra.mxu1 %v6427_v20  ;;  %1107 = vmatpush.bf16.msra.mxu2 %v6303_v21  ;;  %v6391_v53 = vor.u32 %v7368_v50, %v6388_v51  ;;  %v7400_v55 = vld [vmem:[%s11360_s1 + $0x1cc] sm:$0xf]  ;;  %v6516_v56 = vld [vmem:[%s11360_s1 + $0x1d8] sm:$0xf0]  ;;  %v6387_v57 = vor.u32 %v7370_v54, %v6386_v52  ;;  %v6514_v59 = vld [vmem:[%s11360_s1 + $0x1c8] sm:$0xf] }
  0x31   : > { %1196 = vmatpush.bf16.msra.mxu3 %v6431_v24  ;;  %v6519_v58 = vor.u32 %v7400_v55, %v6516_v56  ;;  %v7402_v60 = vld [vmem:[%s11360_s1 + $0x1d4] sm:$0xf0]  ;;  %v6162_v62 = vld [vmem:[%s8524_s27 + $0x10] sm:$0xf]  ;;  %v7313_v0 = vld [vmem:[%s8524_s27 + $0x14] sm:$0xf] }
  0x32   : > { %v6515_v61 = vor.u32 %v7402_v60, %v6514_v59  ;;  %v7314_v63 = vld [vmem:[%s8524_s27 + $0x14] sm:$0xf0]  ;;  %v6164_v1 = vld [vmem:[%s8524_s27 + $0x18] sm:$0xf0]  ;;  %v6170_v4 = vld [vmem:[%s8524_s27 + $0x20] sm:$0xf] }
  0x33   : > { %930 = vmatpush.bf16.msra.mxu0 %v6283_v30  ;;  %v8584_v2 = vor.u32 %v7314_v63, %v6162_v62  ;;  %v8586_v3 = vor.u32 %v7313_v0, %v6164_v1  ;;  %v7316_v5 = vld [vmem:[%s8524_s27 + $0x24] sm:$0xf0]  ;;  %v7315_v6 = vld [vmem:[%s8524_s27 + $0x24] sm:$0xf]  ;;  %v6172_v7 = vld [vmem:[%s8524_s27 + $0x28] sm:$0xf0] }
  0x34   : > { %1019 = vmatpush.bf16.msra.mxu1 %v6411_v33  ;;  %1108 = vmatpush.bf16.msra.mxu2 %v6287_v34  ;;  %v8596_v8 = vor.u32 %v7316_v5, %v6170_v4  ;;  %v8598_v9 = vor.u32 %v7315_v6, %v6172_v7  ;;  %v7364_v10 = vld [vmem:[%s11360_s1 + $0xac] sm:$0xf]  ;;  %v6372_v11 = vld [vmem:[%s11360_s1 + $0xb8] sm:$0xf0]  ;;  %v6370_v12 = vld [vmem:[%s11360_s1 + $0xa8] sm:$0xf] }
  0x35   : > { %1197 = vmatpush.bf16.msra.mxu3 %v6415_v38  ;;  %v6375_v13 = vor.u32 %v7364_v10, %v6372_v11  ;;  %v7366_v14 = vld [vmem:[%s11360_s1 + $0xb4] sm:$0xf0]  ;;  %v7396_v15 = vld [vmem:[%s11360_s1 + $0x1ac] sm:$0xf]  ;;  %v6500_v16 = vld [vmem:[%s11360_s1 + $0x1b8] sm:$0xf0] }
  0x36   : > { %931 = vmatmul.bf16.vlgmr.msra.gmra.mxu0 %v8542_v43  ;;  %v6371_v17 = vor.u32 %v7366_v14, %v6370_v12  ;;  %v6503_v18 = vor.u32 %v7396_v15, %v6500_v16  ;;  %v6498_v19 = vld [vmem:[%s11360_s1 + $0x1a8] sm:$0xf]  ;;  %v7398_v20 = vld [vmem:[%s11360_s1 + $0x1b4] sm:$0xf0]  ;;  %v6178_v22 = vld [vmem:[%s8524_s27 + $0x30] sm:$0xf] }
  0x37   : > { %1020 = vmatmul.bf16.vlgmr.msra.gmra.mxu1 %v8550_v47  ;;  %1109 = vmatmul.bf16.vlgmr.msra.gmra.mxu2 %v8542_v43  ;;  %v6499_v21 = vor.u32 %v7398_v20, %v6498_v19  ;;  %v7318_v23 = vld [vmem:[%s8524_s27 + $0x34] sm:$0xf0]  ;;  %v7317_v24 = vld [vmem:[%s8524_s27 + $0x34] sm:$0xf]  ;;  %v6180_v25 = vld [vmem:[%s8524_s27 + $0x38] sm:$0xf0] }
  0x38   : > { %1457 = vmatpush.bf16.msrb.mxu2 %v6407_v40  ;;  %1198 = vmatmul.bf16.vlgmr.msra.gmra.mxu3 %v8550_v47  ;;  %v8632_v26 = vor.u32 %v7318_v23, %v6178_v22  ;;  %v8634_v27 = vor.u32 %v7317_v24, %v6180_v25  ;;  %v6186_v28 = vld [vmem:[%s8524_s27 + $0x40] sm:$0xf]  ;;  %v7320_v29 = vld [vmem:[%s8524_s27 + $0x44] sm:$0xf0]  ;;  %v7319_v30 = vld [vmem:[%s8524_s27 + $0x44] sm:$0xf] }
  0x39   : > { %1546 = vmatpush.bf16.msrb.mxu3 %v6535_v44  ;;  %1279 = vmatpush.bf16.msrb.mxu0 %v6403_v48  ;;  %v6188_v31 = vld [vmem:[%s8524_s27 + $0x48] sm:$0xf0]  ;;  %v8644_v32 = vor.u32 %v7320_v29, %v6186_v28  ;;  %v6356_v35 = vld [vmem:[%s11360_s1 + $0x98] sm:$0xf0]  ;;  %v6354_v36 = vld [vmem:[%s11360_s1 + $0x88] sm:$0xf] }
  0x3a   : > { %1368 = vmatpush.bf16.msrb.mxu1 %v6531_v49  ;;  %v8646_v33 = vor.u32 %v7319_v30, %v6188_v31  ;;  %v7360_v34 = vld [vmem:[%s11360_s1 + $0x8c] sm:$0xf]  ;;  %v7362_v38 = vld [vmem:[%s11360_s1 + $0x94] sm:$0xf0]  ;;  %v6484_v40 = vld [vmem:[%s11360_s1 + $0x198] sm:$0xf0] }
  0x3b   : > { %v6359_v37 = vor.u32 %v7360_v34, %v6356_v35  ;;  %v7392_v39 = vld [vmem:[%s11360_s1 + $0x18c] sm:$0xf]  ;;  %v6355_v41 = vor.u32 %v7362_v38, %v6354_v36  ;;  %v6482_v44 = vld [vmem:[%s11360_s1 + $0x188] sm:$0xf]  ;;  %v7394_v45 = vld [vmem:[%s11360_s1 + $0x194] sm:$0xf0] }
  0x3c   : > { %1458 = vmatpush.bf16.msrb.mxu2 %v6391_v53  ;;  %v6487_v42 = vor.u32 %v7392_v39, %v6484_v40  ;;  %v6483_v46 = vor.u32 %v7394_v45, %v6482_v44  ;;  %v6194_v48 = vld [vmem:[%s8524_s27 + $0x50] sm:$0xf]  ;;  %v7322_v49 = vld [vmem:[%s8524_s27 + $0x54] sm:$0xf0]  ;;  %v7321_v50 = vld [vmem:[%s8524_s27 + $0x54] sm:$0xf] }
  0x3d   : > { %1280 = vmatpush.bf16.msrb.mxu0 %v6387_v57  ;;  %1547 = vmatpush.bf16.msrb.mxu3 %v6519_v58  ;;  %v6196_v51 = vld [vmem:[%s8524_s27 + $0x58] sm:$0xf0]  ;;  %v8680_v52 = vor.u32 %v7322_v49, %v6194_v48  ;;  %v6202_v54 = vld [vmem:[%s8524_s27 + $0x60] sm:$0xf]  ;;  %v7324_v55 = vld [vmem:[%s8524_s27 + $0x64] sm:$0xf0] }
  0x3e   : > { %1369 = vmatpush.bf16.msrb.mxu1 %v6515_v61  ;;  %v8682_v53 = vor.u32 %v7321_v50, %v6196_v51  ;;  %v7323_v56 = vld [vmem:[%s8524_s27 + $0x64] sm:$0xf]  ;;  %v6204_v57 = vld [vmem:[%s8524_s27 + $0x68] sm:$0xf0]  ;;  %v8692_v58 = vor.u32 %v7324_v55, %v6202_v54  ;;  %v6340_v61 = vld [vmem:[%s11360_s1 + $0x78] sm:$0xf0] }
  0x3f   : > { %v8694_v59 = vor.u32 %v7323_v56, %v6204_v57  ;;  %v7356_v60 = vld [vmem:[%s11360_s1 + $0x6c] sm:$0xf]  ;;  %v6338_v62 = vld [vmem:[%s11360_s1 + $0x68] sm:$0xf]  ;;  %v7358_v0 = vld [vmem:[%s11360_s1 + $0x74] sm:$0xf0] }
  0x40   : > { %1459 = vmatpush.bf16.msrb.mxu2 %v6375_v13  ;;  %v6343_v63 = vor.u32 %v7356_v60, %v6340_v61  ;;  %v7388_v1 = vld [vmem:[%s11360_s1 + $0x16c] sm:$0xf]  ;;  %v6468_v4 = vld [vmem:[%s11360_s1 + $0x178] sm:$0xf0]  ;;  %v6339_v5 = vor.u32 %v7358_v0, %v6338_v62  ;;  %v6210_v7 = vld [vmem:[%s8524_s27 + $0x70] sm:$0xf] }
  0x41   : > { %1281 = vmatpush.bf16.msrb.mxu0 %v6371_v17  ;;  %1548 = vmatpush.bf16.msrb.mxu3 %v6503_v18  ;;  %v6471_v6 = vor.u32 %v7388_v1, %v6468_v4  ;;  %v7326_v10 = vld [vmem:[%s8524_s27 + $0x74] sm:$0xf0]  ;;  %v6466_v11 = vld [vmem:[%s11360_s1 + $0x168] sm:$0xf]  ;;  %v7325_v13 = vld [vmem:[%s8524_s27 + $0x74] sm:$0xf] }
  0x42   : > { %1370 = vmatpush.bf16.msrb.mxu1 %v6499_v21  ;;  %v7390_v12 = vld [vmem:[%s11360_s1 + $0x174] sm:$0xf0]  ;;  %v6212_v14 = vld [vmem:[%s8524_s27 + $0x78] sm:$0xf0]  ;;  %v8728_v16 = vor.u32 %v7326_v10, %v6210_v7  ;;  %v433_v18 = vld [vmem:[%s11361_s2] sm:$0xf] }
  0x43   : > { %v6467_v15 = vor.u32 %v7390_v12, %v6466_v11  ;;  %v8730_v17 = vor.u32 %v7325_v13, %v6212_v14  ;;  %v6218_v19 = vld [vmem:[%s8524_s27 + $0x80] sm:$0xf]  ;;  %v7328_v20 = vld [vmem:[%s8524_s27 + $0x84] sm:$0xf0]  ;;  %v8741_v21 = vperm.slane %v433_v18, 0  ;;  %v8753_v34 = vperm.slane %v433_v18, 1 }
  0x44   : > { %1460 = vmatpush.bf16.msrb.mxu2 %v6359_v37  ;;  %v7327_v22 = vld [vmem:[%s8524_s27 + $0x84] sm:$0xf]  ;;  %v6220_v23 = vld [vmem:[%s8524_s27 + $0x88] sm:$0xf0]  ;;  %v8745_v24 = vor.u32 %v7328_v20, %v6218_v19  ;;  %v6324_v36 = vld [vmem:[%s11360_s1 + $0x58] sm:$0xf0] }
  0x45   : > { %1282 = vmatpush.bf16.msrb.mxu0 %v6355_v41  ;;  %1549 = vmatpush.bf16.msrb.mxu3 %v6487_v42  ;;  %v8747_v28 = vor.u32 %v7327_v22, %v6220_v23  ;;  %v7352_v35 = vld [vmem:[%s11360_s1 + $0x4c] sm:$0xf]  ;;  %v6322_v38 = vld [vmem:[%s11360_s1 + $0x48] sm:$0xf]  ;;  %v7354_v39 = vld [vmem:[%s11360_s1 + $0x54] sm:$0xf0] }
  0x46   : > { %936 = vmatmul.bf16.gmra.mxu0 %v8584_v2  ;;  %1371 = vmatpush.bf16.msrb.mxu1 %v6483_v46  ;;  %v6327_v37 = vor.u32 %v7352_v35, %v6324_v36  ;;  %v7384_v40 = vld [vmem:[%s11360_s1 + $0x14c] sm:$0xf]  ;;  %v6323_v42 = vor.u32 %v7354_v39, %v6322_v38  ;;  %v6452_v44 = vld [vmem:[%s11360_s1 + $0x158] sm:$0xf0]  ;;  %v6226_v56 = vld [vmem:[%s8524_s27 + $0x90] sm:$0xf] }
  0x47   : > { %1025 = vmatmul.bf16.gmra.mxu1 %v8586_v3  ;;  %1114 = vmatmul.bf16.gmra.mxu2 %v8584_v2  ;;  %v6455_v49 = vor.u32 %v7384_v40, %v6452_v44  ;;  %v7330_v57 = vld [vmem:[%s8524_s27 + $0x94] sm:$0xf0]  ;;  %v6450_v60 = vld [vmem:[%s11360_s1 + $0x148] sm:$0xf]  ;;  %v7329_v0 = vld [vmem:[%s8524_s27 + $0x94] sm:$0xf] }
  0x48   : > { %1203 = vmatmul.bf16.gmra.mxu3 %v8586_v3  ;;  %1461 = vmatpush.bf16.msrb.mxu2 %v6343_v63  ;;  %v7386_v61 = vld [vmem:[%s11360_s1 + $0x154] sm:$0xf0]  ;;  %v6228_v1 = vld [vmem:[%s8524_s27 + $0x98] sm:$0xf0]  ;;  %v8788_v7 = vor.u32 %v7330_v57, %v6226_v56  ;;  %v6234_v39 = vld [vmem:[%s8524_s27 + $0xa0] sm:$0xf] }
  0x49   : > { %1283 = vmatpush.bf16.msrb.mxu0 %v6339_v5  ;;  %1550 = vmatpush.bf16.msrb.mxu3 %v6471_v6  ;;  %v6451_v4 = vor.u32 %v7386_v61, %v6450_v60  ;;  %v8791_v13 = vor.u32 %v7329_v0, %v6228_v1  ;;  %v7332_v40 = vld [vmem:[%s8524_s27 + $0xa4] sm:$0xf0]  ;;  %v7331_v44 = vld [vmem:[%s8524_s27 + $0xa4] sm:$0xf]  ;;  %v7348_v0 = vld [vmem:[%s11360_s1 + $0x2c] sm:$0xf] }
  0x4a   : > { %1372 = vmatpush.bf16.msrb.mxu1 %v6467_v15  ;;  %v6308_v1 = vld [vmem:[%s11360_s1 + $0x38] sm:$0xf0]  ;;  %s7600_s16 = sshll.u32 %s8295_s13, 9  ;;  %s8178_s14 = scalar_lea.hbm %s11368_s9, 1024 }
  0x4b   : > { %s6078_s23 = scalar_lea.hbm %s11368_s9, %s7600_s16 }
  0x4c   : > { %1462 = vmatpush.bf16.msrb.mxu2 %v6327_v37  ;;  %s6081_s25 = sshll.u32 %s6078_s23, 4  ;;  %s6082_s25 = int_to_ptr.hbm [resolvable:$true] %s6081_s25 }
  0x4d   : > { %1284 = vmatpush.bf16.msrb.mxu0 %v6323_v42  ;;  %1551 = vmatpush.bf16.msrb.mxu3 %v6455_v49  ;;  %s8172_s21 = sshra.s32 %s6082_s25, 4  ;;  %s8173_s21 = int_to_ptr.hbm [resolvable:$true] %s8172_s21 }
  0x4e   : > { %1373 = vmatpush.bf16.msrb.mxu1 %v6451_v4  ;;  %v6311_v4 = vor.u32 %v7348_v0, %v6308_v1  ;;  %s8174_s13 = scalar_lea.hbm %s8173_s21, 512  ;;  %p8179_p0 = scmp.lt.s32.totalorder %s8173_s21, %s11368_s9 }
  0x4f   : > { %p8175_p11 = scmp.ne.s32.totalorder %s8173_s21, %s8174_s13  ;;  %p8180_p1 = scmp.lt.s32.totalorder %s8178_s14, %s8174_s13 }
  0x50   : > { %1463 = vmatpush.bf16.msrb.mxu2 %v6311_v4 }
  0x51   : > { %p8176_p12 = pnand %p8175_p11, %p8312_p5  ;;  %p8181_p2 = por %p8180_p1, %p8179_p0 }
  0x53   : > { %p8177_p13 = pneg %p8176_p12 }
  0x55   : > { %p8182_p3 = pnand %p8181_p2, %p8177_p13 }
  0x56   : > { %941 = vmatmul.bf16.gmra.mxu0 %v8596_v8 }
  0x57   : > { %1030 = vmatmul.bf16.gmra.mxu1 %v8598_v9  ;;  %1119 = vmatmul.bf16.gmra.mxu2 %v8596_v8 }
  0x58   : > { %1208 = vmatmul.bf16.gmra.mxu3 %v8598_v9 }
  0x66   : > { %946 = vmatmul.bf16.gmra.mxu0 %v8632_v26 }
  0x67   : > { %1035 = vmatmul.bf16.gmra.mxu1 %v8634_v27  ;;  %1124 = vmatmul.bf16.gmra.mxu2 %v8632_v26 }
  0x68   : > { %1213 = vmatmul.bf16.gmra.mxu3 %v8634_v27 }
  0x76   : > { %951 = vmatmul.bf16.gmra.mxu0 %v8644_v32 }
  0x77   : > { %1040 = vmatmul.bf16.gmra.mxu1 %v8646_v33  ;;  %1129 = vmatmul.bf16.gmra.mxu2 %v8644_v32 }
  0x78   : > { %1218 = vmatmul.bf16.gmra.mxu3 %v8646_v33 }
  0x86   : > { %956 = vmatmul.bf16.gmra.mxu0 %v8680_v52 }
  0x87   : > { %1045 = vmatmul.bf16.gmra.mxu1 %v8682_v53  ;;  %1134 = vmatmul.bf16.gmra.mxu2 %v8680_v52 }
  0x88   : > { %1223 = vmatmul.bf16.gmra.mxu3 %v8682_v53 }
  0x96   : > { %961 = vmatmul.bf16.gmra.mxu0 %v8692_v58 }
  0x97   : > { %1050 = vmatmul.bf16.gmra.mxu1 %v8694_v59  ;;  %1139 = vmatmul.bf16.gmra.mxu2 %v8692_v58 }
  0x98   : > { %1228 = vmatmul.bf16.gmra.mxu3 %v8694_v59 }
  0xa6   : > { %966 = vmatmul.bf16.gmra.mxu0 %v8728_v16 }
  0xa7   : > { %1055 = vmatmul.bf16.gmra.mxu1 %v8730_v17  ;;  %1144 = vmatmul.bf16.gmra.mxu2 %v8728_v16 }
  0xa8   : > { %1233 = vmatmul.bf16.gmra.mxu3 %v8730_v17 }
  0xb3   : > { %v932_v25 = vpop.f32.mrf.mxu0 }
  0xb4   : > { %v933_v29 = vadd.f32 %v932_v25, %v8741_v21  ;;  %v1021_v30 = vpop.f32.mrf.mxu1 }
  0xb6   : > { %v1022_v31 = vadd.f32 %v1021_v30, %v933_v29  ;;  %971 = vmatmul.bf16.gmra.mxu0 %v8745_v24 }
  0xb7   : > { %1060 = vmatmul.bf16.gmra.mxu1 %v8747_v28  ;;  %1149 = vmatmul.bf16.gmra.mxu2 %v8745_v24 }
  0xb8   : > { %1238 = vmatmul.bf16.gmra.mxu3 %v8747_v28  ;;  %v1635_v62 = vmax.f32 %v1022_v31, 0.0 }
  0xba   : > { %v1110_v41 = vpop.f32.mrf.mxu2 }
  0xbb   : > { %v1111_v45 = vadd.f32 %v1110_v41, %v8753_v34  ;;  %v1199_v46 = vpop.f32.mrf.mxu3  ;;  %v934_v48 = vpop.f32.mrf.mxu0 }
  0xbc   : > { %v935_v50 = vadd.f32 %v934_v48, %v8741_v21  ;;  %v1023_v51 = vpop.f32.mrf.mxu1  ;;  %v8806_v48 = vor.u32 %v7332_v40, %v6234_v39  ;;  %v7382_v39 = vld [vmem:[%s11360_s1 + $0x134] sm:$0xf0] }
  0xbd   : > { %v1200_v54 = vadd.f32 %v1199_v46, %v1111_v45  ;;  %v6236_v45 = vld [vmem:[%s8524_s27 + $0xa8] sm:$0xf0] }
  0xbe   : > { %v1024_v55 = vadd.f32 %v1023_v51, %v935_v50 }
  0xbf   : > { %v1636_v20 = vmax.f32 %v1200_v54, 0.0 }
  0xc0   : > { %v1639_v63 = vmax.f32 %v1024_v55, 0.0  ;;  %v8811_v55 = vor.u32 %v7331_v44, %v6236_v45  ;;  %v6244_v44 = vld [vmem:[%s8524_s27 + $0xb8] sm:$0xf0] }
  0xc2   : > { %v8786_v5 = vpack.c.bf16 %v1639_v63, %v1635_v62  ;;  %v1112_v6 = vpop.f32.mrf.mxu2 }
  0xc3   : > { %v1113_v10 = vadd.f32 %v1112_v6, %v8753_v34  ;;  %v1201_v11 = vpop.f32.mrf.mxu3  ;;  %v937_v12 = vpop.f32.mrf.mxu0  ;;  %v6306_v6 = vld [vmem:[%s11360_s1 + $0x28] sm:$0xf] }
  0xc4   : > { %v938_v14 = vadd.f32 %v937_v12, %v8741_v21  ;;  %v1026_v15 = vpop.f32.mrf.mxu1 }
  0xc5   : > { %v1202_v18 = vadd.f32 %v1201_v11, %v1113_v10  ;;  %v7350_v10 = vld [vmem:[%s11360_s1 + $0x34] sm:$0xf0]  ;;  %v7380_v11 = vld [vmem:[%s11360_s1 + $0x12c] sm:$0xf] }
  0xc6   : > { %v1027_v19 = vadd.f32 %v1026_v15, %v938_v14  ;;  %976 = vmatmul.bf16.gmra.mxu0 %v8788_v7  ;;  %v6307_v15 = vor.u32 %v7350_v10, %v6306_v6 }
  0xc7   : > { %v1640_v22 = vmax.f32 %v1202_v18, 0.0  ;;  %1065 = vmatmul.bf16.gmra.mxu1 %v8791_v13  ;;  %1154 = vmatmul.bf16.gmra.mxu2 %v8788_v7  ;;  %v6436_v18 = vld [vmem:[%s11360_s1 + $0x138] sm:$0xf0] }
  0xc8   : > { %1243 = vmatmul.bf16.gmra.mxu3 %v8791_v13  ;;  %v1643_v41 = vmax.f32 %v1027_v19, 0.0  ;;  %1285 = vmatpush.bf16.msrb.mxu0 %v6307_v15 }
  0xc9   : > { %v8798_v23 = vpack.c.bf16 %v1640_v22, %v1636_v20 }
  0xca   : > { %v1115_v25 = vpop.f32.mrf.mxu2 }
  0xcb   : > { %v1116_v29 = vadd.f32 %v1115_v25, %v8753_v34  ;;  %v1204_v30 = vpop.f32.mrf.mxu3  ;;  %v939_v31 = vpop.f32.mrf.mxu0  ;;  %v6439_v25 = vor.u32 %v7380_v11, %v6436_v18 }
  0xcc   : > { %v940_v35 = vadd.f32 %v939_v31, %v8741_v21  ;;  %v1028_v36 = vpop.f32.mrf.mxu1 }
  0xcd   : > { %v1205_v37 = vadd.f32 %v1204_v30, %v1116_v29  ;;  %1552 = vmatpush.bf16.msrb.mxu3 %v6439_v25  ;;  %v6250_v25 = vld [vmem:[%s8524_s27 + $0xc0] sm:$0xf] }
  0xce   : > { %v1029_v38 = vadd.f32 %v1028_v36, %v940_v35  ;;  %v6242_v36 = vld [vmem:[%s8524_s27 + $0xb0] sm:$0xf] }
  0xcf   : > { %v1644_v62 = vmax.f32 %v1205_v37, 0.0  ;;  %v7334_v37 = vld [vmem:[%s8524_s27 + $0xb4] sm:$0xf0] }
  0xd0   : > { %v1647_v42 = vmax.f32 %v1029_v38, 0.0  ;;  %v6434_v38 = vld [vmem:[%s11360_s1 + $0x128] sm:$0xf] }
  0xd1   : > { %v6435_v45 = vor.u32 %v7382_v39, %v6434_v38 }
  0xd2   : > { %v1117_v46 = vpop.f32.mrf.mxu2  ;;  %v8808_v49 = vpack.c.bf16 %v1647_v42, %v1643_v41  ;;  %v7333_v42 = vld [vmem:[%s8524_s27 + $0xb4] sm:$0xf] }
  0xd3   : > { %v1118_v50 = vadd.f32 %v1117_v46, %v8753_v34  ;;  %v1206_v51 = vpop.f32.mrf.mxu3  ;;  %v942_v54 = vpop.f32.mrf.mxu0  ;;  %1374 = vmatpush.bf16.msrb.mxu1 %v6435_v45 }
  0xd4   : > { %v943_v56 = vadd.f32 %v942_v54, %v8741_v21  ;;  %v1031_v57 = vpop.f32.mrf.mxu1 }
  0xd5   : > { %v1207_v60 = vadd.f32 %v1206_v51, %v1118_v50  ;;  %v8850_v50 = vor.u32 %v7334_v37, %v6242_v36  ;;  %v6252_v36 = vld [vmem:[%s8524_s27 + $0xc8] sm:$0xf0] }
  0xd6   : > { %v1032_v61 = vadd.f32 %v1031_v57, %v943_v56  ;;  %981 = vmatmul.bf16.gmra.mxu0 %v8806_v48 }
  0xd7   : > { %v1648_v63 = vmax.f32 %v1207_v60, 0.0  ;;  %1070 = vmatmul.bf16.gmra.mxu1 %v8811_v55  ;;  %1159 = vmatmul.bf16.gmra.mxu2 %v8806_v48  ;;  %v8855_v60 = vor.u32 %v7333_v42, %v6244_v44 }
  0xd8   : > { %1248 = vmatmul.bf16.gmra.mxu3 %v8811_v55  ;;  %v1651_v40 = vmax.f32 %v1032_v61, 0.0 }
  0xd9   : > { %v8833_v12 = vpack.c.bf16 %v1648_v63, %v1644_v62 }
  0xda   : > { %v1120_v14 = vpop.f32.mrf.mxu2 }
  0xdb   : > { %11422 = vst [vmem:[#allocation6_spill] sm:$0xff] %v8833_v12  ;;  %v1121_v19 = vadd.f32 %v1120_v14, %v8753_v34  ;;  %v1209_v20 = vpop.f32.mrf.mxu3  ;;  %v944_v22 = vpop.f32.mrf.mxu0 }
  0xdc   : > { %v945_v29 = vadd.f32 %v944_v22, %v8741_v21  ;;  %v1033_v30 = vpop.f32.mrf.mxu1 }
  0xdd   : > { %v1210_v31 = vadd.f32 %v1209_v20, %v1121_v19 }
  0xde   : > { %v1034_v35 = vadd.f32 %v1033_v30, %v945_v29  ;;  %v7336_v29 = vld [vmem:[%s8524_s27 + $0xc4] sm:$0xf0] }
  0xdf   : > { %v1652_v1 = vmax.f32 %v1210_v31, 0.0  ;;  %v8870_v38 = vor.u32 %v7336_v29, %v6250_v25 }
  0xe0   : > { %v1655_v41 = vmax.f32 %v1034_v35, 0.0  ;;  %v7335_v35 = vld [vmem:[%s8524_s27 + $0xc4] sm:$0xf] }
  0xe1   : > { %v8875_v44 = vor.u32 %v7335_v35, %v6252_v36  ;;  %v6258_v36 = vld [vmem:[%s8524_s27 + $0xd0] sm:$0xf] }
  0xe2   : > { %v1122_v46 = vpop.f32.mrf.mxu2  ;;  %v8852_v51 = vpack.c.bf16 %v1655_v41, %v1651_v40 }
  0xe3   : > { %v1123_v54 = vadd.f32 %v1122_v46, %v8753_v34  ;;  %v1211_v56 = vpop.f32.mrf.mxu3  ;;  %v947_v57 = vpop.f32.mrf.mxu0 }
  0xe4   : > { %v948_v62 = vadd.f32 %v947_v57, %v8741_v21  ;;  %v1036_v63 = vpop.f32.mrf.mxu1 }
  0xe5   : > { %v1212_v61 = vadd.f32 %v1211_v56, %v1123_v54 }
  0xe6   : > { %v1037_v0 = vadd.f32 %v1036_v63, %v948_v62  ;;  %986 = vmatmul.bf16.gmra.mxu0 %v8850_v50  ;;  %v7344_v63 = vld [vmem:[%s11360_s1 + $0xc] sm:$0xf] }
  0xe7   : > { %v1656_v4 = vmax.f32 %v1212_v61, 0.0  ;;  %1075 = vmatmul.bf16.gmra.mxu1 %v8855_v60  ;;  %1164 = vmatmul.bf16.gmra.mxu2 %v8850_v50  ;;  %v6292_v61 = vld [vmem:[%s11360_s1 + $0x18] sm:$0xf0] }
  0xe8   : > { %1253 = vmatmul.bf16.gmra.mxu3 %v8855_v60  ;;  %v1659_v30 = vmax.f32 %v1037_v0, 0.0  ;;  %v6295_v0 = vor.u32 %v7344_v63, %v6292_v61 }
  0xe9   : > { %v8862_v6 = vpack.c.bf16 %v1656_v4, %v1652_v1  ;;  %v6290_v1 = vld [vmem:[%s11360_s1 + $0x8] sm:$0xf]  ;;  %v7346_v4 = vld [vmem:[%s11360_s1 + $0x14] sm:$0xf0] }
  0xea   : > { %v1125_v10 = vpop.f32.mrf.mxu2  ;;  %1464 = vmatpush.bf16.msrb.mxu2 %v6295_v0 }
  0xeb   : > { %v1126_v11 = vadd.f32 %v1125_v10, %v8753_v34  ;;  %v1214_v14 = vpop.f32.mrf.mxu3  ;;  %v949_v15 = vpop.f32.mrf.mxu0  ;;  %v7376_v10 = vld [vmem:[%s11360_s1 + $0x10c] sm:$0xf] }
  0xec   : > { %v950_v18 = vadd.f32 %v949_v15, %v8741_v21  ;;  %v1038_v19 = vpop.f32.mrf.mxu1  ;;  %v6291_v15 = vor.u32 %v7346_v4, %v6290_v1 }
  0xed   : > { %v1215_v20 = vadd.f32 %v1214_v14, %v1126_v11 }
  0xee   : > { %v1039_v22 = vadd.f32 %v1038_v19, %v950_v18  ;;  %v6420_v18 = vld [vmem:[%s11360_s1 + $0x118] sm:$0xf0]  ;;  %1286 = vmatpush.bf16.msrb.mxu0 %v6291_v15 }
  0xef   : > { %v1660_v57 = vmax.f32 %v1215_v20, 0.0  ;;  %v6423_v25 = vor.u32 %v7376_v10, %v6420_v18 }
  0xf0   : > { %v1663_v31 = vmax.f32 %v1039_v22, 0.0 }
  0xf1   : > { %1553 = vmatpush.bf16.msrb.mxu3 %v6423_v25 }
  0xf2   : > { %v1127_v37 = vpop.f32.mrf.mxu2  ;;  %v8872_v39 = vpack.c.bf16 %v1663_v31, %v1659_v30 }
  0xf3   : > { %v1128_v40 = vadd.f32 %v1127_v37, %v8753_v34  ;;  %v1216_v41 = vpop.f32.mrf.mxu3  ;;  %v952_v42 = vpop.f32.mrf.mxu0  ;;  %v7338_v37 = vld [vmem:[%s8524_s27 + $0xd4] sm:$0xf0] }
  0xf4   : > { %v953_v45 = vadd.f32 %v952_v42, %v8741_v21  ;;  %v1041_v46 = vpop.f32.mrf.mxu1  ;;  %v8914_v63 = vor.u32 %v7338_v37, %v6258_v36 }
  0xf5   : > { %v1217_v54 = vadd.f32 %v1216_v41, %v1128_v40  ;;  %v6418_v40 = vld [vmem:[%s11360_s1 + $0x108] sm:$0xf]  ;;  %v7378_v41 = vld [vmem:[%s11360_s1 + $0x114] sm:$0xf0] }
  0xf6   : > { %v1042_v56 = vadd.f32 %v1041_v46, %v953_v45  ;;  %991 = vmatmul.bf16.gmra.mxu0 %v8870_v38  ;;  %v7337_v46 = vld [vmem:[%s8524_s27 + $0xd4] sm:$0xf] }
  0xf7   : > { %v1664_v62 = vmax.f32 %v1217_v54, 0.0  ;;  %1080 = vmatmul.bf16.gmra.mxu1 %v8875_v44  ;;  %1169 = vmatmul.bf16.gmra.mxu2 %v8870_v38  ;;  %v6260_v54 = vld [vmem:[%s8524_s27 + $0xd8] sm:$0xf0] }
  0xf8   : > { %1258 = vmatmul.bf16.gmra.mxu3 %v8875_v44  ;;  %v1667_v42 = vmax.f32 %v1042_v56, 0.0  ;;  %v8919_v10 = vor.u32 %v7337_v46, %v6260_v54  ;;  %v7339_v54 = vld [vmem:[%s8524_s27 + $0xe4] sm:$0xf] }
  0xf9   : > { %v8897_v11 = vpack.c.bf16 %v1664_v62, %v1660_v57  ;;  %v6419_v57 = vor.u32 %v7378_v41, %v6418_v40  ;;  %v6266_v41 = vld [vmem:[%s8524_s27 + $0xe0] sm:$0xf] }
  0xfa   : > { %v1130_v14 = vpop.f32.mrf.mxu2 }
  0xfb   : > { %11423 = vst [vmem:[#allocation7_spill] sm:$0xff] %v8897_v11  ;;  %v1131_v19 = vadd.f32 %v1130_v14, %v8753_v34  ;;  %v1219_v20 = vpop.f32.mrf.mxu3  ;;  %v954_v22 = vpop.f32.mrf.mxu0  ;;  %1375 = vmatpush.bf16.msrb.mxu1 %v6419_v57  ;;  %v6268_v57 = vld [vmem:[%s8524_s27 + $0xe8] sm:$0xf0] }
  0xfc   : > { %v955_v29 = vadd.f32 %v954_v22, %v8741_v21  ;;  %v1043_v30 = vpop.f32.mrf.mxu1 }
  0xfd   : > { %v1220_v31 = vadd.f32 %v1219_v20, %v1131_v19 }
  0xfe   : > { %v1044_v35 = vadd.f32 %v1043_v30, %v955_v29 }
  0xff   : > { %v1668_v19 = vmax.f32 %v1220_v31, 0.0 }
 0x100   : > { %v1671_v45 = vmax.f32 %v1044_v35, 0.0 }
 0x102   : > { %v1132_v62 = vpop.f32.mrf.mxu2  ;;  %v8916_v61 = vpack.c.bf16 %v1671_v45, %v1667_v42  ;;  %v7340_v42 = vld [vmem:[%s8524_s27 + $0xe4] sm:$0xf0] }
 0x103   : > { %v1133_v0 = vadd.f32 %v1132_v62, %v8753_v34  ;;  %v1221_v1 = vpop.f32.mrf.mxu3  ;;  %v957_v4 = vpop.f32.mrf.mxu0 }
 0x104   : > { %v958_v14 = vadd.f32 %v957_v4, %v8741_v21  ;;  %v1046_v15 = vpop.f32.mrf.mxu1 }
 0x105   : > { %v1222_v56 = vadd.f32 %v1221_v1, %v1133_v0  ;;  %v8934_v0 = vor.u32 %v7340_v42, %v6266_v41  ;;  %v6786_v41 = vld [vmem:[%s11362_s3 + $0x1f0] sm:$0xf] }
 0x106   : > { %v1047_v18 = vadd.f32 %v1046_v15, %v958_v14  ;;  %996 = vmatmul.bf16.gmra.mxu0 %v8914_v63 }
 0x107   : > { %v1672_v20 = vmax.f32 %v1222_v56, 0.0  ;;  %1085 = vmatmul.bf16.gmra.mxu1 %v8919_v10  ;;  %1174 = vmatmul.bf16.gmra.mxu2 %v8914_v63  ;;  %v8939_v56 = vor.u32 %v7339_v54, %v6268_v57  ;;  %v7470_v54 = vld [vmem:[%s11362_s3 + $0x1f4] sm:$0xf0] }
 0x108   : > { %1263 = vmatmul.bf16.gmra.mxu3 %v8919_v10  ;;  %v1675_v45 = vmax.f32 %v1047_v18, 0.0 }
 0x109   : > { %v8926_v22 = vpack.c.bf16 %v1672_v20, %v1668_v19 }
 0x10a   : > { %v1135_v25 = vpop.f32.mrf.mxu2 }
 0x10b   : > { %11424 = vst [vmem:[#allocation8_spill] sm:$0xff] %v8926_v22  ;;  %v1136_v29 = vadd.f32 %v1135_v25, %v8753_v34  ;;  %v1224_v30 = vpop.f32.mrf.mxu3  ;;  %v959_v35 = vpop.f32.mrf.mxu0 }
 0x10c   : > { %v960_v36 = vadd.f32 %v959_v35, %v8741_v21  ;;  %v1048_v37 = vpop.f32.mrf.mxu1  ;;  %v6722_v35 = vld [vmem:[%s11362_s3 + $0x170] sm:$0xf] }
 0x10d   : > { %v1225_v31 = vadd.f32 %v1224_v30, %v1136_v29 }
 0x10e   : > { %v1049_v40 = vadd.f32 %v1048_v37, %v960_v36  ;;  %v7454_v36 = vld [vmem:[%s11362_s3 + $0x174] sm:$0xf0] }
 0x10f   : > { %v1676_v18 = vmax.f32 %v1225_v31, 0.0  ;;  %v6723_v37 = vor.u32 %v7454_v36, %v6722_v35  ;;  %v6594_v31 = vld [vmem:[%s11362_s3 + $0x70] sm:$0xf]  ;;  %v7438_v36 = vld [vmem:[%s11362_s3 + $0xf4] sm:$0xf0] }
 0x110   : > { %v1679_v46 = vmax.f32 %v1049_v40, 0.0  ;;  %v7422_v40 = vld [vmem:[%s11362_s3 + $0x74] sm:$0xf0]  ;;  %v6658_v35 = vld [vmem:[%s11362_s3 + $0xf0] sm:$0xf] }
 0x111   : > { %2395 = vmatpush.bf16.msra.mxu2 %v6723_v37 }
 0x112   : > { %v1137_v62 = vpop.f32.mrf.mxu2  ;;  %v8936_v1 = vpack.c.bf16 %v1679_v46, %v1675_v45  ;;  %v6595_v46 = vor.u32 %v7422_v40, %v6594_v31  ;;  %v7341_v40 = vld [vmem:[%s8524_s27 + $0xf4] sm:$0xf] }
 0x113   : > { %v1138_v4 = vadd.f32 %v1137_v62, %v8753_v34  ;;  %v1226_v14 = vpop.f32.mrf.mxu3  ;;  %v962_v15 = vpop.f32.mrf.mxu0 }
 0x114   : > { %11425 = vst [vmem:[#allocation9_spill] sm:$0xff] %v8936_v1  ;;  %v963_v19 = vadd.f32 %v962_v15, %v8741_v21  ;;  %v1051_v20 = vpop.f32.mrf.mxu1  ;;  %2217 = vmatpush.bf16.msra.mxu0 %v6595_v46 }
 0x115   : > { %v1227_v25 = vadd.f32 %v1226_v14, %v1138_v4  ;;  %v6787_v14 = vor.u32 %v7470_v54, %v6786_v41  ;;  %v6276_v41 = vld [vmem:[%s8524_s27 + $0xf8] sm:$0xf0] }
 0x116   : > { %v1052_v29 = vadd.f32 %v1051_v20, %v963_v19  ;;  %1001 = vmatmul.bf16.gmra.mxu0 %v8934_v0 }
 0x117   : > { %v1680_v30 = vmax.f32 %v1227_v25, 0.0  ;;  %1090 = vmatmul.bf16.gmra.mxu1 %v8939_v56  ;;  %1179 = vmatmul.bf16.gmra.mxu2 %v8934_v0 }
 0x118   : > { %1268 = vmatmul.bf16.gmra.mxu3 %v8939_v56  ;;  %v1683_v31 = vmax.f32 %v1052_v29, 0.0 }
 0x119   : > { %v8961_v42 = vpack.c.bf16 %v1680_v30, %v1676_v18  ;;  %2484 = vmatpush.bf16.msra.mxu3 %v6787_v14  ;;  %v6274_v18 = vld [vmem:[%s8524_s27 + $0xf0] sm:$0xf]  ;;  %v7342_v30 = vld [vmem:[%s8524_s27 + $0xf4] sm:$0xf0]  ;;  %s6079_s27 = sshll.u32 %s11052_s26, 4  ;;  %s6080_s27 = int_to_ptr.vmem [resolvable:$true] %s6079_s27 }
 0x11a   : > { %v1140_v45 = vpop.f32.mrf.mxu2  ;;  %v8978_v46 = vor.u32 %v7342_v30, %v6274_v18 }
 0x11b   : > { %11426 = vst [vmem:[#allocation10_spill] sm:$0xff] %v8961_v42  ;;  %v1141_v57 = vadd.f32 %v1140_v45, %v8753_v34  ;;  %v1229_v62 = vpop.f32.mrf.mxu3  ;;  %v964_v4 = vpop.f32.mrf.mxu0  ;;  %v6659_v45 = vor.u32 %v7438_v36, %v6658_v35 }
 0x11c   : > { %v965_v15 = vadd.f32 %v964_v4, %v8741_v21  ;;  %v1053_v19 = vpop.f32.mrf.mxu1 }
 0x11d   : > { %v1230_v20 = vadd.f32 %v1229_v62, %v1141_v57  ;;  %2306 = vmatpush.bf16.msra.mxu1 %v6659_v45 }
 0x11e   : > { %v1054_v25 = vadd.f32 %v1053_v19, %v965_v15  ;;  %v8983_v15 = vor.u32 %v7341_v40, %v6276_v41 }
 0x11f   : > { %v1684_v35 = vmax.f32 %v1230_v20, 0.0 }
 0x120   : > { %v1687_v37 = vmax.f32 %v1054_v25, 0.0 }
 0x122   : > { %v1142_v54 = vpop.f32.mrf.mxu2  ;;  %v8980_v57 = vpack.c.bf16 %v1687_v37, %v1683_v31 }
 0x123   : > { %v1143_v62 = vadd.f32 %v1142_v54, %v8753_v34  ;;  %v1231_v4 = vpop.f32.mrf.mxu3  ;;  %v967_v14 = vpop.f32.mrf.mxu0 }
 0x124   : > { %11427 = vst [vmem:[#allocation11_spill] sm:$0xff] %v8980_v57  ;;  %v968_v19 = vadd.f32 %v967_v14, %v8741_v21  ;;  %v1056_v42 = vpop.f32.mrf.mxu1 }
 0x125   : > { %v1232_v29 = vadd.f32 %v1231_v4, %v1143_v62 }
 0x126   : > { %v1057_v25 = vadd.f32 %v1056_v42, %v968_v19  ;;  %1006 = vmatmul.bf16.gmra.mxu0 %v8978_v46 }
 0x127   : > { %v1688_v36 = vmax.f32 %v1232_v29, 0.0  ;;  %1095 = vmatmul.bf16.gmra.mxu1 %v8983_v15  ;;  %1184 = vmatmul.bf16.gmra.mxu2 %v8978_v46 }
 0x128   : > { %1273 = vmatmul.bf16.gmra.mxu3 %v8983_v15  ;;  %v1691_v20 = vmax.f32 %v1057_v25, 0.0  ;;  %v6714_v25 = vld [vmem:[%s11362_s3 + $0x160] sm:$0xf] }
 0x129   : > { %v8990_v18 = vpack.c.bf16 %v1688_v36, %v1684_v35 }
 0x12a   : > { %v1145_v30 = vpop.f32.mrf.mxu2 }
 0x12b   : > { %11428 = vst [vmem:[#allocation12_spill] sm:$0xff] %v8990_v18  ;;  %v1146_v31 = vadd.f32 %v1145_v30, %v8753_v34  ;;  %v1234_v37 = vpop.f32.mrf.mxu3  ;;  %v969_v40 = vpop.f32.mrf.mxu0 }
 0x12c   : > { %v970_v41 = vadd.f32 %v969_v40, %v8741_v21  ;;  %v1058_v42 = vpop.f32.mrf.mxu1 }
 0x12d   : > { %v1235_v45 = vadd.f32 %v1234_v37, %v1146_v31  ;;  %v7452_v31 = vld [vmem:[%s11362_s3 + $0x164] sm:$0xf0] }
 0x12e   : > { %v1059_v54 = vadd.f32 %v1058_v42, %v970_v41  ;;  %v6715_v37 = vor.u32 %v7452_v31, %v6714_v25  ;;  %v7420_v41 = vld [vmem:[%s11362_s3 + $0x64] sm:$0xf0] }
 0x12f   : > { %v1692_v40 = vmax.f32 %v1235_v45, 0.0 }
 0x130   : > { %v1695_v62 = vmax.f32 %v1059_v54, 0.0  ;;  %v7468_v54 = vld [vmem:[%s11362_s3 + $0x1e4] sm:$0xf0]  ;;  %2396 = vmatpush.bf16.msra.mxu2 %v6715_v37 }
 0x132   : > { %v1147_v4 = vpop.f32.mrf.mxu2  ;;  %v8994_v14 = vpack.c.bf16 %v1695_v62, %v1691_v20 }
 0x133   : > { %v1148_v19 = vadd.f32 %v1147_v4, %v8753_v34  ;;  %v1236_v29 = vpop.f32.mrf.mxu3  ;;  %v972_v35 = vpop.f32.mrf.mxu0 }
 0x134   : > { %v973_v36 = vadd.f32 %v972_v35, %v8741_v21  ;;  %v1061_v18 = vpop.f32.mrf.mxu1 }
 0x135   : > { %v1237_v30 = vadd.f32 %v1236_v29, %v1148_v19 }
 0x136   : > { %v1062_v57 = vadd.f32 %v1061_v18, %v973_v36  ;;  %1287 = vmatmul.bf16.vlgmr.msrb.gmra.mxu0 %v8542_v43  ;;  %v6586_v18 = vld [vmem:[%s11362_s3 + $0x60] sm:$0xf] }
 0x137   : > { %v1696_v1 = vmax.f32 %v1237_v30, 0.0  ;;  %1376 = vmatmul.bf16.vlgmr.msrb.gmra.mxu1 %v8550_v47  ;;  %1465 = vmatmul.bf16.vlgmr.msrb.gmra.mxu2 %v8542_v43  ;;  %v6778_v43 = vld [vmem:[%s11362_s3 + $0x1e0] sm:$0xf]  ;;  %v6587_v45 = vor.u32 %v7420_v41, %v6586_v18 }
 0x138   : > { %1554 = vmatmul.bf16.vlgmr.msrb.gmra.mxu3 %v8550_v47  ;;  %v6779_v19 = vor.u32 %v7468_v54, %v6778_v43  ;;  %v6650_v30 = vld [vmem:[%s11362_s3 + $0xe0] sm:$0xf]  ;;  %v1699_v25 = vmax.f32 %v1062_v57, 0.0 }
 0x139   : > { %v9017_v47 = vpack.c.bf16 %v1696_v1, %v1692_v40  ;;  %2218 = vmatpush.bf16.msra.mxu0 %v6587_v45  ;;  %v7436_v40 = vld [vmem:[%s11362_s3 + $0xe4] sm:$0xf0] }
 0x13a   : > { %v1150_v42 = vpop.f32.mrf.mxu2  ;;  %2485 = vmatpush.bf16.msra.mxu3 %v6779_v19  ;;  %v6651_v18 = vor.u32 %v7436_v40, %v6650_v30 }
 0x13b   : > { %v1151_v20 = vadd.f32 %v1150_v42, %v8753_v34  ;;  %v1239_v62 = vpop.f32.mrf.mxu3  ;;  %v974_v4 = vpop.f32.mrf.mxu0 }
 0x13c   : > { %v975_v29 = vadd.f32 %v974_v4, %v8741_v21  ;;  %v1063_v35 = vpop.f32.mrf.mxu1  ;;  %2307 = vmatpush.bf16.msra.mxu1 %v6651_v18 }
 0x13d   : > { %v1240_v36 = vadd.f32 %v1239_v62, %v1151_v20 }
 0x13e   : > { %v1064_v1 = vadd.f32 %v1063_v35, %v975_v29 }
 0x13f   : > { %v1700_v19 = vmax.f32 %v1240_v36, 0.0 }
 0x140   : > { %v1703_v31 = vmax.f32 %v1064_v1, 0.0 }
 0x142   : > { %v1152_v37 = vpop.f32.mrf.mxu2  ;;  %v9030_v41 = vpack.c.bf16 %v1703_v31, %v1699_v25 }
 0x143   : > { %v1153_v43 = vadd.f32 %v1152_v37, %v8753_v34  ;;  %v1241_v42 = vpop.f32.mrf.mxu3  ;;  %v977_v45 = vpop.f32.mrf.mxu0 }
 0x144   : > { %v978_v54 = vadd.f32 %v977_v45, %v8741_v21  ;;  %v1066_v20 = vpop.f32.mrf.mxu1 }
 0x145   : > { %v1242_v62 = vadd.f32 %v1241_v42, %v1153_v43 }
 0x146   : > { %v1067_v4 = vadd.f32 %v1066_v20, %v978_v54  ;;  %1292 = vmatmul.bf16.gmra.mxu0 %v8584_v2 }
 0x147   : > { %v1704_v29 = vmax.f32 %v1242_v62, 0.0  ;;  %1381 = vmatmul.bf16.gmra.mxu1 %v8586_v3  ;;  %1470 = vmatmul.bf16.gmra.mxu2 %v8584_v2 }
 0x148   : > { %1559 = vmatmul.bf16.gmra.mxu3 %v8586_v3  ;;  %v1707_v36 = vmax.f32 %v1067_v4, 0.0  ;;  %v6706_v4 = vld [vmem:[%s11362_s3 + $0x150] sm:$0xf] }
 0x149   : > { %v9038_v57 = vpack.c.bf16 %v1704_v29, %v1700_v19 }
 0x14a   : > { %v1155_v35 = vpop.f32.mrf.mxu2 }
 0x14b   : > { %v1156_v1 = vadd.f32 %v1155_v35, %v8753_v34  ;;  %v1244_v30 = vpop.f32.mrf.mxu3  ;;  %v979_v40 = vpop.f32.mrf.mxu0 }
 0x14c   : > { %v980_v25 = vadd.f32 %v979_v40, %v8741_v21  ;;  %v1068_v31 = vpop.f32.mrf.mxu1 }
 0x14d   : > { %v1245_v18 = vadd.f32 %v1244_v30, %v1156_v1  ;;  %v7450_v1 = vld [vmem:[%s11362_s3 + $0x154] sm:$0xf0] }
 0x14e   : > { %v1069_v37 = vadd.f32 %v1068_v31, %v980_v25  ;;  %v6707_v30 = vor.u32 %v7450_v1, %v6706_v4  ;;  %v6578_v25 = vld [vmem:[%s11362_s3 + $0x50] sm:$0xf]  ;;  %v7418_v31 = vld [vmem:[%s11362_s3 + $0x54] sm:$0xf0] }
 0x14f   : > { %v1708_v35 = vmax.f32 %v1245_v18, 0.0 }
 0x150   : > { %v1711_v43 = vmax.f32 %v1069_v37, 0.0  ;;  %v6579_v37 = vor.u32 %v7418_v31, %v6578_v25  ;;  %2397 = vmatpush.bf16.msra.mxu2 %v6707_v30 }
 0x152   : > { %v1157_v42 = vpop.f32.mrf.mxu2  ;;  %v9042_v45 = vpack.c.bf16 %v1711_v43, %v1707_v36  ;;  %v7466_v36 = vld [vmem:[%s11362_s3 + $0x1d4] sm:$0xf0]  ;;  %2219 = vmatpush.bf16.msra.mxu0 %v6579_v37 }
 0x153   : > { %v1158_v2 = vadd.f32 %v1157_v42, %v8753_v34  ;;  %v1246_v3 = vpop.f32.mrf.mxu3  ;;  %v982_v54 = vpop.f32.mrf.mxu0 }
 0x154   : > { %v983_v20 = vadd.f32 %v982_v54, %v8741_v21  ;;  %v1071_v62 = vpop.f32.mrf.mxu1 }
 0x155   : > { %v1247_v19 = vadd.f32 %v1246_v3, %v1158_v2 }
 0x156   : > { %v1072_v29 = vadd.f32 %v1071_v62, %v983_v20  ;;  %1297 = vmatmul.bf16.gmra.mxu0 %v8596_v8 }
 0x157   : > { %v1712_v40 = vmax.f32 %v1247_v19, 0.0  ;;  %1386 = vmatmul.bf16.gmra.mxu1 %v8598_v9  ;;  %1475 = vmatmul.bf16.gmra.mxu2 %v8596_v8  ;;  %v6770_v8 = vld [vmem:[%s11362_s3 + $0x1d0] sm:$0xf] }
 0x158   : > { %1564 = vmatmul.bf16.gmra.mxu3 %v8598_v9  ;;  %v6771_v3 = vor.u32 %v7466_v36, %v6770_v8  ;;  %v1715_v4 = vmax.f32 %v1072_v29, 0.0 }
 0x159   : > { %v9065_v9 = vpack.c.bf16 %v1712_v40, %v1708_v35  ;;  %v6642_v35 = vld [vmem:[%s11362_s3 + $0xd0] sm:$0xf]  ;;  %v7434_v40 = vld [vmem:[%s11362_s3 + $0xd4] sm:$0xf0] }
 0x15a   : > { %v1160_v18 = vpop.f32.mrf.mxu2  ;;  %2486 = vmatpush.bf16.msra.mxu3 %v6771_v3  ;;  %v6643_v25 = vor.u32 %v7434_v40, %v6642_v35 }
 0x15b   : > { %11429 = vst [vmem:[#allocation13_spill] sm:$0xff] %v9065_v9  ;;  %v1161_v43 = vadd.f32 %v1160_v18, %v8753_v34  ;;  %v1249_v42 = vpop.f32.mrf.mxu3  ;;  %v984_v2 = vpop.f32.mrf.mxu0 }
 0x15c   : > { %v985_v54 = vadd.f32 %v984_v2, %v8741_v21  ;;  %v1073_v20 = vpop.f32.mrf.mxu1  ;;  %2308 = vmatpush.bf16.msra.mxu1 %v6643_v25 }
 0x15d   : > { %v1250_v62 = vadd.f32 %v1249_v42, %v1161_v43 }
 0x15e   : > { %v1074_v19 = vadd.f32 %v1073_v20, %v985_v54 }
 0x15f   : > { %v1716_v3 = vmax.f32 %v1250_v62, 0.0 }
 0x160   : > { %v1719_v1 = vmax.f32 %v1074_v19, 0.0 }
 0x162   : > { %v1162_v30 = vpop.f32.mrf.mxu2  ;;  %v9078_v31 = vpack.c.bf16 %v1719_v1, %v1715_v4 }
 0x163   : > { %v1163_v8 = vadd.f32 %v1162_v30, %v8753_v34  ;;  %v1251_v18 = vpop.f32.mrf.mxu3  ;;  %v987_v37 = vpop.f32.mrf.mxu0 }
 0x164   : > { %v988_v36 = vadd.f32 %v987_v37, %v8741_v21  ;;  %v1076_v43 = vpop.f32.mrf.mxu1 }
 0x165   : > { %v1252_v42 = vadd.f32 %v1251_v18, %v1163_v8 }
 0x166   : > { %v1077_v2 = vadd.f32 %v1076_v43, %v988_v36  ;;  %1302 = vmatmul.bf16.gmra.mxu0 %v8632_v26 }
 0x167   : > { %v1720_v54 = vmax.f32 %v1252_v42, 0.0  ;;  %1391 = vmatmul.bf16.gmra.mxu1 %v8634_v27  ;;  %1480 = vmatmul.bf16.gmra.mxu2 %v8632_v26 }
 0x168   : > { %1569 = vmatmul.bf16.gmra.mxu3 %v8634_v27  ;;  %v1723_v62 = vmax.f32 %v1077_v2, 0.0  ;;  %v6698_v2 = vld [vmem:[%s11362_s3 + $0x140] sm:$0xf] }
 0x169   : > { %v9086_v29 = vpack.c.bf16 %v1720_v54, %v1716_v3 }
 0x16a   : > { %v1165_v20 = vpop.f32.mrf.mxu2 }
 0x16b   : > { %v1166_v19 = vadd.f32 %v1165_v20, %v8753_v34  ;;  %v1254_v35 = vpop.f32.mrf.mxu3  ;;  %v989_v40 = vpop.f32.mrf.mxu0 }
 0x16c   : > { %v990_v4 = vadd.f32 %v989_v40, %v8741_v21  ;;  %v1078_v1 = vpop.f32.mrf.mxu1 }
 0x16d   : > { %v1255_v25 = vadd.f32 %v1254_v35, %v1166_v19  ;;  %v7448_v19 = vld [vmem:[%s11362_s3 + $0x144] sm:$0xf0] }
 0x16e   : > { %v1079_v30 = vadd.f32 %v1078_v1, %v990_v4  ;;  %v6699_v35 = vor.u32 %v7448_v19, %v6698_v2  ;;  %v6570_v4 = vld [vmem:[%s11362_s3 + $0x40] sm:$0xf]  ;;  %v7416_v1 = vld [vmem:[%s11362_s3 + $0x44] sm:$0xf0] }
 0x16f   : > { %v1724_v20 = vmax.f32 %v1255_v25, 0.0 }
 0x170   : > { %v1727_v8 = vmax.f32 %v1079_v30, 0.0  ;;  %v6571_v30 = vor.u32 %v7416_v1, %v6570_v4  ;;  %2398 = vmatpush.bf16.msra.mxu2 %v6699_v35 }
 0x172   : > { %v1167_v18 = vpop.f32.mrf.mxu2  ;;  %v9090_v37 = vpack.c.bf16 %v1727_v8, %v1723_v62  ;;  %v7464_v62 = vld [vmem:[%s11362_s3 + $0x1c4] sm:$0xf0]  ;;  %2220 = vmatpush.bf16.msra.mxu0 %v6571_v30 }
 0x173   : > { %v1168_v26 = vadd.f32 %v1167_v18, %v8753_v34  ;;  %v1256_v27 = vpop.f32.mrf.mxu3  ;;  %v992_v36 = vpop.f32.mrf.mxu0 }
 0x174   : > { %v993_v43 = vadd.f32 %v992_v36, %v8741_v21  ;;  %v1081_v42 = vpop.f32.mrf.mxu1 }
 0x175   : > { %v1257_v3 = vadd.f32 %v1256_v27, %v1168_v26 }
 0x176   : > { %v1082_v54 = vadd.f32 %v1081_v42, %v993_v43  ;;  %1307 = vmatmul.bf16.gmra.mxu0 %v8644_v32 }
 0x177   : > { %v1728_v40 = vmax.f32 %v1257_v3, 0.0  ;;  %1396 = vmatmul.bf16.gmra.mxu1 %v8646_v33  ;;  %1485 = vmatmul.bf16.gmra.mxu2 %v8644_v32  ;;  %v6762_v32 = vld [vmem:[%s11362_s3 + $0x1c0] sm:$0xf] }
 0x178   : > { %1574 = vmatmul.bf16.gmra.mxu3 %v8646_v33  ;;  %v6763_v27 = vor.u32 %v7464_v62, %v6762_v32  ;;  %v1731_v2 = vmax.f32 %v1082_v54, 0.0 }
 0x179   : > { %v9113_v33 = vpack.c.bf16 %v1728_v40, %v1724_v20  ;;  %v6634_v20 = vld [vmem:[%s11362_s3 + $0xc0] sm:$0xf]  ;;  %v7432_v40 = vld [vmem:[%s11362_s3 + $0xc4] sm:$0xf0] }
 0x17a   : > { %v1170_v25 = vpop.f32.mrf.mxu2  ;;  %2487 = vmatpush.bf16.msra.mxu3 %v6763_v27  ;;  %v6635_v4 = vor.u32 %v7432_v40, %v6634_v20 }
 0x17b   : > { %v1171_v8 = vadd.f32 %v1170_v25, %v8753_v34  ;;  %v1259_v18 = vpop.f32.mrf.mxu3  ;;  %v994_v26 = vpop.f32.mrf.mxu0 }
 0x17c   : > { %v995_v36 = vadd.f32 %v994_v26, %v8741_v21  ;;  %v1083_v43 = vpop.f32.mrf.mxu1  ;;  %2309 = vmatpush.bf16.msra.mxu1 %v6635_v4 }
 0x17d   : > { %v1260_v42 = vadd.f32 %v1259_v18, %v1171_v8 }
 0x17e   : > { %v1084_v3 = vadd.f32 %v1083_v43, %v995_v36 }
 0x17f   : > { %v1732_v27 = vmax.f32 %v1260_v42, 0.0 }
 0x180   : > { %v1735_v19 = vmax.f32 %v1084_v3, 0.0 }
 0x182   : > { %v1172_v35 = vpop.f32.mrf.mxu2  ;;  %v9126_v1 = vpack.c.bf16 %v1735_v19, %v1731_v2 }
 0x183   : > { %v1173_v32 = vadd.f32 %v1172_v35, %v8753_v34  ;;  %v1261_v25 = vpop.f32.mrf.mxu3  ;;  %v997_v30 = vpop.f32.mrf.mxu0 }
 0x184   : > { %v998_v62 = vadd.f32 %v997_v30, %v8741_v21  ;;  %v1086_v8 = vpop.f32.mrf.mxu1 }
 0x185   : > { %v1262_v18 = vadd.f32 %v1261_v25, %v1173_v32 }
 0x186   : > { %v1087_v26 = vadd.f32 %v1086_v8, %v998_v62  ;;  %1312 = vmatmul.bf16.gmra.mxu0 %v8680_v52 }
 0x187   : > { %v1736_v36 = vmax.f32 %v1262_v18, 0.0  ;;  %1401 = vmatmul.bf16.gmra.mxu1 %v8682_v53  ;;  %1490 = vmatmul.bf16.gmra.mxu2 %v8680_v52 }
 0x188   : > { %1579 = vmatmul.bf16.gmra.mxu3 %v8682_v53  ;;  %v1739_v42 = vmax.f32 %v1087_v26, 0.0  ;;  %v6690_v26 = vld [vmem:[%s11362_s3 + $0x130] sm:$0xf] }
 0x189   : > { %v9134_v54 = vpack.c.bf16 %v1736_v36, %v1732_v27 }
 0x18a   : > { %v1175_v43 = vpop.f32.mrf.mxu2 }
 0x18b   : > { %v1176_v3 = vadd.f32 %v1175_v43, %v8753_v34  ;;  %v1264_v20 = vpop.f32.mrf.mxu3  ;;  %v999_v40 = vpop.f32.mrf.mxu0 }
 0x18c   : > { %v1000_v2 = vadd.f32 %v999_v40, %v8741_v21  ;;  %v1088_v19 = vpop.f32.mrf.mxu1 }
 0x18d   : > { %v1265_v4 = vadd.f32 %v1264_v20, %v1176_v3  ;;  %v7446_v3 = vld [vmem:[%s11362_s3 + $0x134] sm:$0xf0] }
 0x18e   : > { %v1089_v35 = vadd.f32 %v1088_v19, %v1000_v2  ;;  %v6691_v20 = vor.u32 %v7446_v3, %v6690_v26  ;;  %v6562_v2 = vld [vmem:[%s11362_s3 + $0x30] sm:$0xf]  ;;  %v7414_v19 = vld [vmem:[%s11362_s3 + $0x34] sm:$0xf0] }
 0x18f   : > { %v1740_v43 = vmax.f32 %v1265_v4, 0.0 }
 0x190   : > { %v1743_v32 = vmax.f32 %v1089_v35, 0.0  ;;  %v6563_v35 = vor.u32 %v7414_v19, %v6562_v2  ;;  %2399 = vmatpush.bf16.msra.mxu2 %v6691_v20 }
 0x192   : > { %v1177_v25 = vpop.f32.mrf.mxu2  ;;  %v9138_v30 = vpack.c.bf16 %v1743_v32, %v1739_v42  ;;  %v7462_v42 = vld [vmem:[%s11362_s3 + $0x1b4] sm:$0xf0]  ;;  %2221 = vmatpush.bf16.msra.mxu0 %v6563_v35 }
 0x193   : > { %v1178_v52 = vadd.f32 %v1177_v25, %v8753_v34  ;;  %v1266_v53 = vpop.f32.mrf.mxu3  ;;  %v1002_v62 = vpop.f32.mrf.mxu0 }
 0x194   : > { %v1003_v8 = vadd.f32 %v1002_v62, %v8741_v21  ;;  %v1091_v18 = vpop.f32.mrf.mxu1 }
 0x195   : > { %v1267_v27 = vadd.f32 %v1266_v53, %v1178_v52 }
 0x196   : > { %v1092_v36 = vadd.f32 %v1091_v18, %v1003_v8  ;;  %1317 = vmatmul.bf16.gmra.mxu0 %v8692_v58 }
 0x197   : > { %v1744_v40 = vmax.f32 %v1267_v27, 0.0  ;;  %1406 = vmatmul.bf16.gmra.mxu1 %v8694_v59  ;;  %1495 = vmatmul.bf16.gmra.mxu2 %v8692_v58  ;;  %v6754_v58 = vld [vmem:[%s11362_s3 + $0x1b0] sm:$0xf] }
 0x198   : > { %1584 = vmatmul.bf16.gmra.mxu3 %v8694_v59  ;;  %v6755_v53 = vor.u32 %v7462_v42, %v6754_v58  ;;  %v1747_v26 = vmax.f32 %v1092_v36, 0.0 }
 0x199   : > { %v9161_v59 = vpack.c.bf16 %v1744_v40, %v1740_v43  ;;  %v6626_v43 = vld [vmem:[%s11362_s3 + $0xb0] sm:$0xf]  ;;  %v7430_v40 = vld [vmem:[%s11362_s3 + $0xb4] sm:$0xf0] }
 0x19a   : > { %v1180_v4 = vpop.f32.mrf.mxu2  ;;  %2488 = vmatpush.bf16.msra.mxu3 %v6755_v53  ;;  %v6627_v2 = vor.u32 %v7430_v40, %v6626_v43 }
 0x19b   : > { %v1181_v32 = vadd.f32 %v1180_v4, %v8753_v34  ;;  %v1269_v25 = vpop.f32.mrf.mxu3  ;;  %v1004_v52 = vpop.f32.mrf.mxu0 }
 0x19c   : > { %v1005_v62 = vadd.f32 %v1004_v52, %v8741_v21  ;;  %v1093_v8 = vpop.f32.mrf.mxu1  ;;  %2310 = vmatpush.bf16.msra.mxu1 %v6627_v2 }
 0x19d   : > { %v1270_v18 = vadd.f32 %v1269_v25, %v1181_v32 }
 0x19e   : > { %v1094_v27 = vadd.f32 %v1093_v8, %v1005_v62 }
 0x19f   : > { %v1748_v53 = vmax.f32 %v1270_v18, 0.0 }
 0x1a0   : > { %v1751_v3 = vmax.f32 %v1094_v27, 0.0 }
 0x1a2   : > { %v1182_v20 = vpop.f32.mrf.mxu2  ;;  %v9174_v19 = vpack.c.bf16 %v1751_v3, %v1747_v26 }
 0x1a3   : > { %v1183_v58 = vadd.f32 %v1182_v20, %v8753_v34  ;;  %v1271_v4 = vpop.f32.mrf.mxu3  ;;  %v1007_v35 = vpop.f32.mrf.mxu0 }
 0x1a4   : > { %v1008_v42 = vadd.f32 %v1007_v35, %v8741_v21  ;;  %v1096_v32 = vpop.f32.mrf.mxu1 }
 0x1a5   : > { %v1272_v25 = vadd.f32 %v1271_v4, %v1183_v58 }
 0x1a6   : > { %v1097_v52 = vadd.f32 %v1096_v32, %v1008_v42  ;;  %1322 = vmatmul.bf16.gmra.mxu0 %v8728_v16 }
 0x1a7   : > { %v1752_v62 = vmax.f32 %v1272_v25, 0.0  ;;  %1411 = vmatmul.bf16.gmra.mxu1 %v8730_v17  ;;  %1500 = vmatmul.bf16.gmra.mxu2 %v8728_v16  ;;  %v8154_v16 = vld [vmem:[%s11361_s2] sm:$0xf] }
 0x1a8   : > { %1589 = vmatmul.bf16.gmra.mxu3 %v8730_v17  ;;  %v1755_v18 = vmax.f32 %v1097_v52, 0.0  ;;  %v9189_v4 = vperm.slane %v8154_v16, 2 }
 0x1a9   : > { %v9182_v36 = vpack.c.bf16 %v1752_v62, %v1748_v53 }
 0x1aa   : > { %v1185_v8 = vpop.f32.mrf.mxu2 }
 0x1ab   : > { %v1186_v27 = vadd.f32 %v1185_v8, %v8753_v34  ;;  %v1274_v43 = vpop.f32.mrf.mxu3  ;;  %v1009_v40 = vpop.f32.mrf.mxu0 }
 0x1ac   : > { %v1010_v26 = vadd.f32 %v1009_v40, %v8741_v21  ;;  %v1098_v3 = vpop.f32.mrf.mxu1  ;;  %v7444_v40 = vld [vmem:[%s11362_s3 + $0x124] sm:$0xf0] }
 0x1ad   : > { %v1275_v2 = vadd.f32 %v1274_v43, %v1186_v27  ;;  %v9198_v43 = vperm.slane %v8154_v16, 3 }
 0x1ae   : > { %v1099_v20 = vadd.f32 %v1098_v3, %v1010_v26  ;;  %v6554_v3 = vld [vmem:[%s11362_s3 + $0x20] sm:$0xf] }
 0x1af   : > { %v1756_v52 = vmax.f32 %v1275_v2, 0.0 }
 0x1b0   : > { %v1759_v58 = vmax.f32 %v1099_v20, 0.0 }
 0x1b2   : > { %v1187_v17 = vpop.f32.mrf.mxu2  ;;  %v9191_v35 = vpack.c.bf16 %v1759_v58, %v1755_v18  ;;  %v7460_v58 = vld [vmem:[%s11362_s3 + $0x1a4] sm:$0xf0] }
 0x1b3   : > { %v1188_v42 = vadd.f32 %v1187_v17, %v8753_v34  ;;  %v1276_v32 = vpop.f32.mrf.mxu3  ;;  %v1288_v25 = vpop.f32.mrf.mxu0  ;;  %v6682_v34 = vld [vmem:[%s11362_s3 + $0x120] sm:$0xf] }
 0x1b4   : > { %v1289_v21 = vadd.f32 %v1288_v25, %v9189_v4  ;;  %v1377_v53 = vpop.f32.mrf.mxu1  ;;  %v6683_v26 = vor.u32 %v7444_v40, %v6682_v34 }
 0x1b5   : > { %v1277_v62 = vadd.f32 %v1276_v32, %v1188_v42 }
 0x1b6   : > { %v1378_v8 = vadd.f32 %v1377_v53, %v1289_v21  ;;  %1327 = vmatmul.bf16.gmra.mxu0 %v8745_v24  ;;  %2400 = vmatpush.bf16.msra.mxu2 %v6683_v26 }
 0x1b7   : > { %v1760_v27 = vmax.f32 %v1277_v62, 0.0  ;;  %1416 = vmatmul.bf16.gmra.mxu1 %v8747_v28  ;;  %1505 = vmatmul.bf16.gmra.mxu2 %v8745_v24  ;;  %v7412_v24 = vld [vmem:[%s11362_s3 + $0x24] sm:$0xf0] }
 0x1b8   : > { %1594 = vmatmul.bf16.gmra.mxu3 %v8747_v28  ;;  %v6746_v28 = vld [vmem:[%s11362_s3 + $0x1a0] sm:$0xf]  ;;  %v6555_v18 = vor.u32 %v7412_v24, %v6554_v3  ;;  %v1637_v34 = vmax.f32 %v1378_v8, 0.0 }
 0x1b9   : > { %v9216_v2 = vpack.c.bf16 %v1760_v27, %v1756_v52  ;;  %v6747_v32 = vor.u32 %v7460_v58, %v6746_v28  ;;  %v6618_v52 = vld [vmem:[%s11362_s3 + $0xa0] sm:$0xf]  ;;  %v7428_v27 = vld [vmem:[%s11362_s3 + $0xa4] sm:$0xf0] }
 0x1ba   : > { %v1466_v20 = vpop.f32.mrf.mxu2  ;;  %2222 = vmatpush.bf16.msra.mxu0 %v6555_v18  ;;  %v6619_v3 = vor.u32 %v7428_v27, %v6618_v52 }
 0x1bb   : > { %v1467_v16 = vadd.f32 %v1466_v20, %v9198_v43  ;;  %v1555_v17 = vpop.f32.mrf.mxu3  ;;  %v1290_v42 = vpop.f32.mrf.mxu0  ;;  %2489 = vmatpush.bf16.msra.mxu3 %v6747_v32 }
 0x1bc   : > { %v1291_v25 = vadd.f32 %v1290_v42, %v9189_v4  ;;  %v1379_v21 = vpop.f32.mrf.mxu1  ;;  %2311 = vmatpush.bf16.msra.mxu1 %v6619_v3 }
 0x1bd   : > { %v1556_v53 = vadd.f32 %v1555_v17, %v1467_v16 }
 0x1be   : > { %v1380_v62 = vadd.f32 %v1379_v21, %v1291_v25 }
 0x1bf   : > { %v1638_v32 = vmax.f32 %v1556_v53, 0.0 }
 0x1c0   : > { %v1641_v40 = vmax.f32 %v1380_v62, 0.0 }
 0x1c2   : > { %v9229_v26 = vpack.c.bf16 %v1641_v40, %v1637_v34  ;;  %v1468_v24 = vpop.f32.mrf.mxu2 }
 0x1c3   : > { %v1469_v28 = vadd.f32 %v1468_v24, %v9198_v43  ;;  %v1557_v20 = vpop.f32.mrf.mxu3  ;;  %v1293_v18 = vpop.f32.mrf.mxu0 }
 0x1c4   : > { %v1294_v58 = vadd.f32 %v1293_v18, %v9189_v4  ;;  %v1382_v16 = vpop.f32.mrf.mxu1 }
 0x1c5   : > { %v1558_v17 = vadd.f32 %v1557_v20, %v1469_v28 }
 0x1c6   : > { %v1383_v42 = vadd.f32 %v1382_v16, %v1294_v58  ;;  %1332 = vmatmul.bf16.gmra.mxu0 %v8788_v7 }
 0x1c7   : > { %v1642_v25 = vmax.f32 %v1558_v17, 0.0  ;;  %1421 = vmatmul.bf16.gmra.mxu1 %v8791_v13  ;;  %1510 = vmatmul.bf16.gmra.mxu2 %v8788_v7 }
 0x1c8   : > { %1599 = vmatmul.bf16.gmra.mxu3 %v8791_v13  ;;  %v1645_v53 = vmax.f32 %v1383_v42, 0.0  ;;  %v6674_v42 = vld [vmem:[%s11362_s3 + $0x110] sm:$0xf] }
 0x1c9   : > { %v9237_v8 = vpack.c.bf16 %v1642_v25, %v1638_v32 }
 0x1ca   : > { %v1471_v21 = vpop.f32.mrf.mxu2 }
 0x1cb   : > { %11430 = vst [vmem:[#allocation14_spill] sm:$0xff] %v9237_v8  ;;  %v1472_v62 = vadd.f32 %v1471_v21, %v9198_v43  ;;  %v1560_v52 = vpop.f32.mrf.mxu3  ;;  %v1295_v27 = vpop.f32.mrf.mxu0 }
 0x1cc   : > { %v1296_v34 = vadd.f32 %v1295_v27, %v9189_v4  ;;  %v1384_v40 = vpop.f32.mrf.mxu1 }
 0x1cd   : > { %v1561_v3 = vadd.f32 %v1560_v52, %v1472_v62  ;;  %v7442_v62 = vld [vmem:[%s11362_s3 + $0x114] sm:$0xf0] }
 0x1ce   : > { %v1385_v24 = vadd.f32 %v1384_v40, %v1296_v34  ;;  %v6675_v52 = vor.u32 %v7442_v62, %v6674_v42  ;;  %v6546_v34 = vld [vmem:[%s11362_s3 + $0x10] sm:$0xf]  ;;  %v7410_v40 = vld [vmem:[%s11362_s3 + $0x14] sm:$0xf0] }
 0x1cf   : > { %v1646_v21 = vmax.f32 %v1561_v3, 0.0 }
 0x1d0   : > { %v1649_v28 = vmax.f32 %v1385_v24, 0.0  ;;  %v6547_v24 = vor.u32 %v7410_v40, %v6546_v34  ;;  %2401 = vmatpush.bf16.msra.mxu2 %v6675_v52 }
 0x1d2   : > { %v1473_v20 = vpop.f32.mrf.mxu2  ;;  %v9241_v18 = vpack.c.bf16 %v1649_v28, %v1645_v53  ;;  %v7458_v53 = vld [vmem:[%s11362_s3 + $0x194] sm:$0xf0]  ;;  %2223 = vmatpush.bf16.msra.mxu0 %v6547_v24 }
 0x1d3   : > { %v1474_v7 = vadd.f32 %v1473_v20, %v9198_v43  ;;  %v1562_v13 = vpop.f32.mrf.mxu3  ;;  %v1298_v58 = vpop.f32.mrf.mxu0 }
 0x1d4   : > { %11431 = vst [vmem:[#allocation15_spill] sm:$0xff] %v9241_v18  ;;  %v1299_v16 = vadd.f32 %v1298_v58, %v9189_v4  ;;  %v1387_v17 = vpop.f32.mrf.mxu1 }
 0x1d5   : > { %v1563_v32 = vadd.f32 %v1562_v13, %v1474_v7 }
 0x1d6   : > { %v1388_v25 = vadd.f32 %v1387_v17, %v1299_v16  ;;  %1337 = vmatmul.bf16.gmra.mxu0 %v8806_v48 }
 0x1d7   : > { %v1650_v27 = vmax.f32 %v1563_v32, 0.0  ;;  %1426 = vmatmul.bf16.gmra.mxu1 %v8811_v55  ;;  %1515 = vmatmul.bf16.gmra.mxu2 %v8806_v48  ;;  %v6738_v48 = vld [vmem:[%s11362_s3 + $0x190] sm:$0xf] }
 0x1d8   : > { %1604 = vmatmul.bf16.gmra.mxu3 %v8811_v55  ;;  %v6739_v13 = vor.u32 %v7458_v53, %v6738_v48  ;;  %v1653_v42 = vmax.f32 %v1388_v25, 0.0 }
 0x1d9   : > { %v9264_v55 = vpack.c.bf16 %v1650_v27, %v1646_v21  ;;  %v6610_v21 = vld [vmem:[%s11362_s3 + $0x90] sm:$0xf]  ;;  %v7426_v27 = vld [vmem:[%s11362_s3 + $0x94] sm:$0xf0] }
 0x1da   : > { %v1476_v3 = vpop.f32.mrf.mxu2  ;;  %2490 = vmatpush.bf16.msra.mxu3 %v6739_v13  ;;  %v6611_v34 = vor.u32 %v7426_v27, %v6610_v21 }
 0x1db   : > { %11432 = vst [vmem:[#allocation16_spill] sm:$0xff] %v9264_v55  ;;  %v1477_v28 = vadd.f32 %v1476_v3, %v9198_v43  ;;  %v1565_v20 = vpop.f32.mrf.mxu3  ;;  %v1300_v7 = vpop.f32.mrf.mxu0 }
 0x1dc   : > { %v1301_v58 = vadd.f32 %v1300_v7, %v9189_v4  ;;  %v1389_v16 = vpop.f32.mrf.mxu1  ;;  %2312 = vmatpush.bf16.msra.mxu1 %v6611_v34 }
 0x1dd   : > { %v1566_v17 = vadd.f32 %v1565_v20, %v1477_v28 }
 0x1de   : > { %v1390_v32 = vadd.f32 %v1389_v16, %v1301_v58 }
 0x1df   : > { %v1654_v13 = vmax.f32 %v1566_v17, 0.0 }
 0x1e0   : > { %v1657_v62 = vmax.f32 %v1390_v32, 0.0 }
 0x1e2   : > { %v1478_v52 = vpop.f32.mrf.mxu2  ;;  %v9277_v40 = vpack.c.bf16 %v1657_v62, %v1653_v42 }
 0x1e3   : > { %v1479_v48 = vadd.f32 %v1478_v52, %v9198_v43  ;;  %v1567_v3 = vpop.f32.mrf.mxu3  ;;  %v1303_v24 = vpop.f32.mrf.mxu0 }
 0x1e4   : > { %v1304_v53 = vadd.f32 %v1303_v24, %v9189_v4  ;;  %v1392_v28 = vpop.f32.mrf.mxu1 }
 0x1e5   : > { %v1568_v20 = vadd.f32 %v1567_v3, %v1479_v48 }
 0x1e6   : > { %v1393_v7 = vadd.f32 %v1392_v28, %v1304_v53  ;;  %1342 = vmatmul.bf16.gmra.mxu0 %v8850_v50 }
 0x1e7   : > { %v1658_v58 = vmax.f32 %v1568_v20, 0.0  ;;  %1431 = vmatmul.bf16.gmra.mxu1 %v8855_v60  ;;  %1520 = vmatmul.bf16.gmra.mxu2 %v8850_v50 }
 0x1e8   : > { %1609 = vmatmul.bf16.gmra.mxu3 %v8855_v60  ;;  %v1661_v17 = vmax.f32 %v1393_v7, 0.0  ;;  %v6666_v7 = vld [vmem:[%s11362_s3 + $0x100] sm:$0xf] }
 0x1e9   : > { %v9285_v25 = vpack.c.bf16 %v1658_v58, %v1654_v13 }
 0x1ea   : > { %v1481_v16 = vpop.f32.mrf.mxu2 }
 0x1eb   : > { %11433 = vst [vmem:[#allocation17_spill] sm:$0xff] %v9285_v25  ;;  %v1482_v32 = vadd.f32 %v1481_v16, %v9198_v43  ;;  %v1570_v21 = vpop.f32.mrf.mxu3  ;;  %v1305_v27 = vpop.f32.mrf.mxu0 }
 0x1ec   : > { %v1306_v42 = vadd.f32 %v1305_v27, %v9189_v4  ;;  %v1394_v62 = vpop.f32.mrf.mxu1 }
 0x1ed   : > { %v1571_v34 = vadd.f32 %v1570_v21, %v1482_v32  ;;  %v7440_v32 = vld [vmem:[%s11362_s3 + $0x104] sm:$0xf0] }
 0x1ee   : > { %v1395_v52 = vadd.f32 %v1394_v62, %v1306_v42  ;;  %v6667_v21 = vor.u32 %v7440_v32, %v6666_v7  ;;  %v6538_v42 = vld [vmem:[%s11362_s3] sm:$0xf]  ;;  %v7408_v62 = vld [vmem:[%s11362_s3 + $0x4] sm:$0xf0] }
 0x1ef   : > { %v1662_v16 = vmax.f32 %v1571_v34, 0.0 }
 0x1f0   : > { %v1665_v48 = vmax.f32 %v1395_v52, 0.0  ;;  %v6539_v52 = vor.u32 %v7408_v62, %v6538_v42  ;;  %2402 = vmatpush.bf16.msra.mxu2 %v6667_v21 }
 0x1f2   : > { %v1483_v3 = vpop.f32.mrf.mxu2  ;;  %v9289_v24 = vpack.c.bf16 %v1665_v48, %v1661_v17  ;;  %v7456_v17 = vld [vmem:[%s11362_s3 + $0x184] sm:$0xf0]  ;;  %2224 = vmatpush.bf16.msra.mxu0 %v6539_v52 }
 0x1f3   : > { %v1484_v50 = vadd.f32 %v1483_v3, %v9198_v43  ;;  %v1572_v60 = vpop.f32.mrf.mxu3  ;;  %v1308_v53 = vpop.f32.mrf.mxu0 }
 0x1f4   : > { %11434 = vst [vmem:[#allocation18_spill] sm:$0xff] %v9289_v24  ;;  %v1309_v28 = vadd.f32 %v1308_v53, %v9189_v4  ;;  %v1397_v20 = vpop.f32.mrf.mxu1 }
 0x1f5   : > { %v1573_v13 = vadd.f32 %v1572_v60, %v1484_v50 }
 0x1f6   : > { %v1398_v58 = vadd.f32 %v1397_v20, %v1309_v28  ;;  %1347 = vmatmul.bf16.gmra.mxu0 %v8870_v38 }
 0x1f7   : > { %v1666_v27 = vmax.f32 %v1573_v13, 0.0  ;;  %1436 = vmatmul.bf16.gmra.mxu1 %v8875_v44  ;;  %1525 = vmatmul.bf16.gmra.mxu2 %v8870_v38  ;;  %v6730_v38 = vld [vmem:[%s11362_s3 + $0x180] sm:$0xf] }
 0x1f8   : > { %1614 = vmatmul.bf16.gmra.mxu3 %v8875_v44  ;;  %v6731_v60 = vor.u32 %v7456_v17, %v6730_v38  ;;  %v1669_v7 = vmax.f32 %v1398_v58, 0.0 }
 0x1f9   : > { %v9312_v44 = vpack.c.bf16 %v1666_v27, %v1662_v16  ;;  %v6602_v16 = vld [vmem:[%s11362_s3 + $0x80] sm:$0xf]  ;;  %v7424_v27 = vld [vmem:[%s11362_s3 + $0x84] sm:$0xf0] }
 0x1fa   : > { %v1486_v34 = vpop.f32.mrf.mxu2  ;;  %2491 = vmatpush.bf16.msra.mxu3 %v6731_v60  ;;  %v6603_v42 = vor.u32 %v7424_v27, %v6602_v16 }
 0x1fb   : > { %11435 = vst [vmem:[#allocation19_spill] sm:$0xff] %v9312_v44  ;;  %v1487_v48 = vadd.f32 %v1486_v34, %v9198_v43  ;;  %v1575_v3 = vpop.f32.mrf.mxu3  ;;  %v1310_v50 = vpop.f32.mrf.mxu0 }
 0x1fc   : > { %v1311_v53 = vadd.f32 %v1310_v50, %v9189_v4  ;;  %v1399_v28 = vpop.f32.mrf.mxu1  ;;  %2313 = vmatpush.bf16.msra.mxu1 %v6603_v42 }
 0x1fd   : > { %v1576_v20 = vadd.f32 %v1575_v3, %v1487_v48 }
 0x1fe   : > { %v1400_v13 = vadd.f32 %v1399_v28, %v1311_v53 }
 0x1ff   : > { %v1670_v60 = vmax.f32 %v1576_v20, 0.0 }
 0x200   : > { %v1673_v32 = vmax.f32 %v1400_v13, 0.0 }
 0x202   : > { %v1488_v21 = vpop.f32.mrf.mxu2  ;;  %v9325_v62 = vpack.c.bf16 %v1673_v32, %v1669_v7 }
 0x203   : > { %v1489_v38 = vadd.f32 %v1488_v21, %v9198_v43  ;;  %v1577_v34 = vpop.f32.mrf.mxu3  ;;  %v1313_v52 = vpop.f32.mrf.mxu0 }
 0x204   : > { %11436 = vst [vmem:[#allocation20_spill] sm:$0xff] %v9325_v62  ;;  %v1314_v17 = vadd.f32 %v1313_v52, %v9189_v4  ;;  %v1402_v48 = vpop.f32.mrf.mxu1 }
 0x205   : > { %v1578_v3 = vadd.f32 %v1577_v34, %v1489_v38 }
 0x206   : > { %v1403_v50 = vadd.f32 %v1402_v48, %v1314_v17  ;;  %1352 = vmatmul.bf16.gmra.mxu0 %v8914_v63 }
 0x207   : > { %v1674_v53 = vmax.f32 %v1578_v3, 0.0  ;;  %1441 = vmatmul.bf16.gmra.mxu1 %v8919_v10  ;;  %1530 = vmatmul.bf16.gmra.mxu2 %v8914_v63 }
 0x208   : > { %1619 = vmatmul.bf16.gmra.mxu3 %v8919_v10  ;;  %v1677_v20 = vmax.f32 %v1403_v50, 0.0  ;;  %v7453_v50 = vld [vmem:[%s11362_s3 + $0x174] sm:$0xf] }
 0x209   : > { %v9333_v58 = vpack.c.bf16 %v1674_v53, %v1670_v60 }
 0x20a   : > { %v1491_v28 = vpop.f32.mrf.mxu2 }
 0x20b   : > { %11437 = vst [vmem:[#allocation21_spill] sm:$0xff] %v9333_v58  ;;  %v1492_v13 = vadd.f32 %v1491_v28, %v9198_v43  ;;  %v1580_v16 = vpop.f32.mrf.mxu3  ;;  %v1315_v27 = vpop.f32.mrf.mxu0 }
 0x20c   : > { %v1316_v7 = vadd.f32 %v1315_v27, %v9189_v4  ;;  %v1404_v32 = vpop.f32.mrf.mxu1 }
 0x20d   : > { %v1581_v42 = vadd.f32 %v1580_v16, %v1492_v13  ;;  %v6724_v13 = vld [vmem:[%s11362_s3 + $0x178] sm:$0xf0] }
 0x20e   : > { %v1405_v21 = vadd.f32 %v1404_v32, %v1316_v7  ;;  %v6727_v16 = vor.u32 %v7453_v50, %v6724_v13  ;;  %v7421_v7 = vld [vmem:[%s11362_s3 + $0x74] sm:$0xf]  ;;  %v6596_v32 = vld [vmem:[%s11362_s3 + $0x78] sm:$0xf0] }
 0x20f   : > { %v1678_v28 = vmax.f32 %v1581_v42, 0.0 }
 0x210   : > { %v1681_v38 = vmax.f32 %v1405_v21, 0.0  ;;  %v6599_v21 = vor.u32 %v7421_v7, %v6596_v32  ;;  %2751 = vmatpush.bf16.msrb.mxu2 %v6727_v16 }
 0x212   : > { %v1493_v34 = vpop.f32.mrf.mxu2  ;;  %v9337_v52 = vpack.c.bf16 %v1681_v38, %v1677_v20  ;;  %v6788_v20 = vld [vmem:[%s11362_s3 + $0x1f8] sm:$0xf0]  ;;  %2573 = vmatpush.bf16.msrb.mxu0 %v6599_v21 }
 0x213   : > { %v1494_v63 = vadd.f32 %v1493_v34, %v9198_v43  ;;  %v1582_v10 = vpop.f32.mrf.mxu3  ;;  %v1318_v17 = vpop.f32.mrf.mxu0 }
 0x214   : > { %11438 = vst [vmem:[#allocation22_spill] sm:$0xff] %v9337_v52  ;;  %v1319_v48 = vadd.f32 %v1318_v17, %v9189_v4  ;;  %v1407_v3 = vpop.f32.mrf.mxu1 }
 0x215   : > { %v1583_v60 = vadd.f32 %v1582_v10, %v1494_v63 }
 0x216   : > { %v1408_v53 = vadd.f32 %v1407_v3, %v1319_v48  ;;  %1357 = vmatmul.bf16.gmra.mxu0 %v8934_v0 }
 0x217   : > { %v1682_v27 = vmax.f32 %v1583_v60, 0.0  ;;  %1446 = vmatmul.bf16.gmra.mxu1 %v8939_v56  ;;  %1535 = vmatmul.bf16.gmra.mxu2 %v8934_v0  ;;  %v7469_v0 = vld [vmem:[%s11362_s3 + $0x1f4] sm:$0xf] }
 0x218   : > { %1624 = vmatmul.bf16.gmra.mxu3 %v8939_v56  ;;  %v6791_v10 = vor.u32 %v7469_v0, %v6788_v20  ;;  %v1685_v50 = vmax.f32 %v1408_v53, 0.0 }
 0x219   : > { %v9360_v56 = vpack.c.bf16 %v1682_v27, %v1678_v28  ;;  %v7437_v28 = vld [vmem:[%s11362_s3 + $0xf4] sm:$0xf]  ;;  %v6660_v27 = vld [vmem:[%s11362_s3 + $0xf8] sm:$0xf0] }
 0x21a   : > { %v1496_v42 = vpop.f32.mrf.mxu2  ;;  %2840 = vmatpush.bf16.msrb.mxu3 %v6791_v10  ;;  %v6663_v7 = vor.u32 %v7437_v28, %v6660_v27 }
 0x21b   : > { %11439 = vst [vmem:[#allocation23_spill] sm:$0xff] %v9360_v56  ;;  %v1497_v38 = vadd.f32 %v1496_v42, %v9198_v43  ;;  %v1585_v34 = vpop.f32.mrf.mxu3  ;;  %v1320_v63 = vpop.f32.mrf.mxu0 }
 0x21c   : > { %v1321_v17 = vadd.f32 %v1320_v63, %v9189_v4  ;;  %v1409_v48 = vpop.f32.mrf.mxu1  ;;  %2662 = vmatpush.bf16.msrb.mxu1 %v6663_v7 }
 0x21d   : > { %v1586_v3 = vadd.f32 %v1585_v34, %v1497_v38 }
 0x21e   : > { %v1410_v60 = vadd.f32 %v1409_v48, %v1321_v17 }
 0x21f   : > { %v1686_v10 = vmax.f32 %v1586_v3, 0.0 }
 0x220   : > { %v1689_v13 = vmax.f32 %v1410_v60, 0.0 }
 0x222   : > { %v1498_v16 = vpop.f32.mrf.mxu2  ;;  %v9373_v32 = vpack.c.bf16 %v1689_v13, %v1685_v50 }
 0x223   : > { %v1499_v0 = vadd.f32 %v1498_v16, %v9198_v43  ;;  %v1587_v42 = vpop.f32.mrf.mxu3  ;;  %v1323_v21 = vpop.f32.mrf.mxu0 }
 0x224   : > { %11440 = vst [vmem:[#allocation24_spill] sm:$0xff] %v9373_v32  ;;  %v1324_v20 = vadd.f32 %v1323_v21, %v9189_v4  ;;  %v1412_v38 = vpop.f32.mrf.mxu1 }
 0x225   : > { %v1588_v34 = vadd.f32 %v1587_v42, %v1499_v0 }
 0x226   : > { %v1413_v63 = vadd.f32 %v1412_v38, %v1324_v20  ;;  %1362 = vmatmul.bf16.gmra.mxu0 %v8978_v46 }
 0x227   : > { %v1690_v17 = vmax.f32 %v1588_v34, 0.0  ;;  %1451 = vmatmul.bf16.gmra.mxu1 %v8983_v15  ;;  %1540 = vmatmul.bf16.gmra.mxu2 %v8978_v46 }
 0x228   : > { %1629 = vmatmul.bf16.gmra.mxu3 %v8983_v15  ;;  %v1693_v3 = vmax.f32 %v1413_v63, 0.0  ;;  %v7451_v63 = vld [vmem:[%s11362_s3 + $0x164] sm:$0xf] }
 0x229   : > { %v9381_v53 = vpack.c.bf16 %v1690_v17, %v1686_v10 }
 0x22a   : > { %v1501_v48 = vpop.f32.mrf.mxu2 }
 0x22b   : > { %11441 = vst [vmem:[#allocation25_spill] sm:$0xff] %v9381_v53  ;;  %v1502_v60 = vadd.f32 %v1501_v48, %v9198_v43  ;;  %v1590_v28 = vpop.f32.mrf.mxu3  ;;  %v1325_v27 = vpop.f32.mrf.mxu0 }
 0x22c   : > { %v1326_v50 = vadd.f32 %v1325_v27, %v9189_v4  ;;  %v1414_v13 = vpop.f32.mrf.mxu1 }
 0x22d   : > { %v1591_v7 = vadd.f32 %v1590_v28, %v1502_v60  ;;  %v6716_v60 = vld [vmem:[%s11362_s3 + $0x168] sm:$0xf0] }
 0x22e   : > { %v1415_v16 = vadd.f32 %v1414_v13, %v1326_v50  ;;  %v6719_v28 = vor.u32 %v7451_v63, %v6716_v60  ;;  %v7419_v50 = vld [vmem:[%s11362_s3 + $0x64] sm:$0xf]  ;;  %v6588_v13 = vld [vmem:[%s11362_s3 + $0x68] sm:$0xf0] }
 0x22f   : > { %v1694_v48 = vmax.f32 %v1591_v7, 0.0  ;;  %v7467_v7 = vld [vmem:[%s11362_s3 + $0x1e4] sm:$0xf]  ;;  %v6652_v60 = vld [vmem:[%s11362_s3 + $0xe8] sm:$0xf0] }
 0x230   : > { %v1697_v0 = vmax.f32 %v1415_v16, 0.0  ;;  %2752 = vmatpush.bf16.msrb.mxu2 %v6719_v28 }
 0x232   : > { %v1503_v42 = vpop.f32.mrf.mxu2  ;;  %v9385_v21 = vpack.c.bf16 %v1697_v0, %v1693_v3  ;;  %v6591_v0 = vor.u32 %v7419_v50, %v6588_v13 }
 0x233   : > { %v1504_v46 = vadd.f32 %v1503_v42, %v9198_v43  ;;  %v1592_v15 = vpop.f32.mrf.mxu3  ;;  %v1328_v20 = vpop.f32.mrf.mxu0  ;;  %v6780_v42 = vld [vmem:[%s11362_s3 + $0x1e8] sm:$0xf0] }
 0x234   : > { %v1329_v38 = vadd.f32 %v1328_v20, %v9189_v4  ;;  %v1417_v34 = vpop.f32.mrf.mxu1  ;;  %2574 = vmatpush.bf16.msrb.mxu0 %v6591_v0 }
 0x235   : > { %v1593_v10 = vadd.f32 %v1592_v15, %v1504_v46 }
 0x236   : > { %v1418_v17 = vadd.f32 %v1417_v34, %v1329_v38  ;;  %2225 = vmatmul.bf16.vlgmr.msra.gmra.mxu0 %v8786_v5  ;;  %v6783_v38 = vor.u32 %v7467_v7, %v6780_v42 }
 0x237   : > { %v1698_v27 = vmax.f32 %v1593_v10, 0.0  ;;  %2314 = vmatmul.bf16.vlgmr.msra.gmra.mxu1 %v8798_v23  ;;  %2403 = vmatmul.bf16.vlgmr.msra.gmra.mxu2 %v9229_v26 }
 0x238   : > { %2492 = vmatmul.bf16.vlgmr.msra.gmra.mxu3 %v9237_v8  ;;  %v1701_v50 = vmax.f32 %v1418_v17, 0.0 }
 0x239   : > { %v9408_v16 = vpack.c.bf16 %v1698_v27, %v1694_v48  ;;  %2841 = vmatpush.bf16.msrb.mxu3 %v6783_v38  ;;  %v7435_v27 = vld [vmem:[%s11362_s3 + $0xe4] sm:$0xf] }
 0x23a   : > { %v1506_v3 = vpop.f32.mrf.mxu2 }
 0x23b   : > { %11442 = vst [vmem:[#allocation26_spill] sm:$0xff] %v9408_v16  ;;  %v1507_v46 = vadd.f32 %v1506_v3, %v9198_v43  ;;  %v1595_v15 = vpop.f32.mrf.mxu3  ;;  %v1330_v20 = vpop.f32.mrf.mxu0  ;;  %v6655_v3 = vor.u32 %v7435_v27, %v6652_v60 }
 0x23c   : > { %v1331_v34 = vadd.f32 %v1330_v20, %v9189_v4  ;;  %v1419_v10 = vpop.f32.mrf.mxu1 }
 0x23d   : > { %v1596_v63 = vadd.f32 %v1595_v15, %v1507_v46  ;;  %2663 = vmatpush.bf16.msrb.mxu1 %v6655_v3 }
 0x23e   : > { %v1420_v48 = vadd.f32 %v1419_v10, %v1331_v34 }
 0x23f   : > { %v1702_v10 = vmax.f32 %v1596_v63, 0.0 }
 0x240   : > { %v1705_v13 = vmax.f32 %v1420_v48, 0.0 }
 0x242   : > { %v1508_v28 = vpop.f32.mrf.mxu2  ;;  %v9421_v7 = vpack.c.bf16 %v1705_v13, %v1701_v50 }
 0x243   : > { %v1509_v0 = vadd.f32 %v1508_v28, %v9198_v43  ;;  %v1597_v42 = vpop.f32.mrf.mxu3  ;;  %v1333_v46 = vpop.f32.mrf.mxu0 }
 0x244   : > { %v1334_v15 = vadd.f32 %v1333_v46, %v9189_v4  ;;  %v1422_v20 = vpop.f32.mrf.mxu1 }
 0x245   : > { %v1598_v38 = vadd.f32 %v1597_v42, %v1509_v0 }
 0x246   : > { %v1423_v34 = vadd.f32 %v1422_v20, %v1334_v15  ;;  %2230 = vmatmul.bf16.gmra.mxu0 %v8808_v49 }
 0x247   : > { %v1706_v8 = vmax.f32 %v1598_v38, 0.0  ;;  %2319 = vmatmul.bf16.gmra.mxu1 %v8833_v12  ;;  %2408 = vmatmul.bf16.gmra.mxu2 %v9241_v18 }
 0x248   : > { %2497 = vmatmul.bf16.gmra.mxu3 %v9264_v55  ;;  %v1709_v63 = vmax.f32 %v1423_v34, 0.0  ;;  %v7449_v34 = vld [vmem:[%s11362_s3 + $0x154] sm:$0xf] }
 0x249   : > { %v9429_v17 = vpack.c.bf16 %v1706_v8, %v1702_v10 }
 0x24a   : > { %v1511_v48 = vpop.f32.mrf.mxu2 }
 0x24b   : > { %v1512_v27 = vadd.f32 %v1511_v48, %v9198_v43  ;;  %v1600_v60 = vpop.f32.mrf.mxu3  ;;  %v1335_v50 = vpop.f32.mrf.mxu0 }
 0x24c   : > { %v1336_v13 = vadd.f32 %v1335_v50, %v9189_v4  ;;  %v1424_v3 = vpop.f32.mrf.mxu1 }
 0x24d   : > { %v1601_v28 = vadd.f32 %v1600_v60, %v1512_v27  ;;  %v6708_v27 = vld [vmem:[%s11362_s3 + $0x158] sm:$0xf0] }
 0x24e   : > { %v1425_v0 = vadd.f32 %v1424_v3, %v1336_v13  ;;  %v6711_v60 = vor.u32 %v7449_v34, %v6708_v27  ;;  %v6580_v13 = vld [vmem:[%s11362_s3 + $0x58] sm:$0xf0]  ;;  %v7465_v3 = vld [vmem:[%s11362_s3 + $0x1d4] sm:$0xf] }
 0x24f   : > { %v1710_v50 = vmax.f32 %v1601_v28, 0.0  ;;  %v6644_v27 = vld [vmem:[%s11362_s3 + $0xd8] sm:$0xf0] }
 0x250   : > { %v1713_v42 = vmax.f32 %v1425_v0, 0.0  ;;  %2753 = vmatpush.bf16.msrb.mxu2 %v6711_v60 }
 0x252   : > { %v1513_v46 = vpop.f32.mrf.mxu2  ;;  %v9433_v15 = vpack.c.bf16 %v1713_v42, %v1709_v63  ;;  %v6772_v42 = vld [vmem:[%s11362_s3 + $0x1d8] sm:$0xf0] }
 0x253   : > { %v1514_v20 = vadd.f32 %v1513_v46, %v9198_v43  ;;  %v1602_v38 = vpop.f32.mrf.mxu3  ;;  %v1338_v8 = vpop.f32.mrf.mxu0 }
 0x254   : > { %11443 = vst [vmem:[#allocation27_spill] sm:$0xff] %v9433_v15  ;;  %v1339_v10 = vadd.f32 %v1338_v8, %v9189_v4  ;;  %v1427_v55 = vpop.f32.mrf.mxu1  ;;  %v6775_v8 = vor.u32 %v7465_v3, %v6772_v42 }
 0x255   : > { %v1603_v48 = vadd.f32 %v1602_v38, %v1514_v20 }
 0x256   : > { %v1428_v18 = vadd.f32 %v1427_v55, %v1339_v10  ;;  %2235 = vmatmul.bf16.gmra.mxu0 %v8852_v51  ;;  %v7417_v55 = vld [vmem:[%s11362_s3 + $0x54] sm:$0xf]  ;;  %2842 = vmatpush.bf16.msrb.mxu3 %v6775_v8 }
 0x257   : > { %v1714_v12 = vmax.f32 %v1603_v48, 0.0  ;;  %2324 = vmatmul.bf16.gmra.mxu1 %v8862_v6  ;;  %2413 = vmatmul.bf16.gmra.mxu2 %v9277_v40  ;;  %v6583_v63 = vor.u32 %v7417_v55, %v6580_v13 }
 0x258   : > { %2502 = vmatmul.bf16.gmra.mxu3 %v9285_v25  ;;  %v1717_v55 = vmax.f32 %v1428_v18, 0.0 }
 0x259   : > { %v9456_v28 = vpack.c.bf16 %v1714_v12, %v1710_v50  ;;  %2575 = vmatpush.bf16.msrb.mxu0 %v6583_v63  ;;  %v7433_v50 = vld [vmem:[%s11362_s3 + $0xd4] sm:$0xf] }
 0x25a   : > { %v1516_v0 = vpop.f32.mrf.mxu2 }
 0x25b   : > { %11444 = vst [vmem:[#allocation28_spill] sm:$0xff] %v9456_v28  ;;  %v1517_v46 = vadd.f32 %v1516_v0, %v9198_v43  ;;  %v1605_v20 = vpop.f32.mrf.mxu3  ;;  %v1340_v38 = vpop.f32.mrf.mxu0  ;;  %v6647_v0 = vor.u32 %v7433_v50, %v6644_v27 }
 0x25c   : > { %v1341_v10 = vadd.f32 %v1340_v38, %v9189_v4  ;;  %v1429_v48 = vpop.f32.mrf.mxu1 }
 0x25d   : > { %v1606_v34 = vadd.f32 %v1605_v20, %v1517_v46  ;;  %2664 = vmatpush.bf16.msrb.mxu1 %v6647_v0 }
 0x25e   : > { %v1430_v12 = vadd.f32 %v1429_v48, %v1341_v10 }
 0x25f   : > { %v1718_v48 = vmax.f32 %v1606_v34, 0.0 }
 0x260   : > { %v1721_v13 = vmax.f32 %v1430_v12, 0.0 }
 0x262   : > { %v1518_v60 = vpop.f32.mrf.mxu2  ;;  %v9469_v3 = vpack.c.bf16 %v1721_v13, %v1717_v55 }
 0x263   : > { %v1519_v63 = vadd.f32 %v1518_v60, %v9198_v43  ;;  %v1607_v42 = vpop.f32.mrf.mxu3  ;;  %v1343_v46 = vpop.f32.mrf.mxu0 }
 0x264   : > { %v1344_v20 = vadd.f32 %v1343_v46, %v9189_v4  ;;  %v1432_v38 = vpop.f32.mrf.mxu1 }
 0x265   : > { %v1608_v8 = vadd.f32 %v1607_v42, %v1519_v63 }
 0x266   : > { %v1433_v10 = vadd.f32 %v1432_v38, %v1344_v20  ;;  %2240 = vmatmul.bf16.gmra.mxu0 %v8872_v39 }
 0x267   : > { %v1722_v25 = vmax.f32 %v1608_v8, 0.0  ;;  %2329 = vmatmul.bf16.gmra.mxu1 %v8897_v11  ;;  %2418 = vmatmul.bf16.gmra.mxu2 %v9289_v24 }
 0x268   : > { %2507 = vmatmul.bf16.gmra.mxu3 %v9312_v44  ;;  %v1725_v34 = vmax.f32 %v1433_v10, 0.0  ;;  %v7447_v10 = vld [vmem:[%s11362_s3 + $0x144] sm:$0xf] }
 0x269   : > { %v9477_v18 = vpack.c.bf16 %v1722_v25, %v1718_v48 }
 0x26a   : > { %v1521_v12 = vpop.f32.mrf.mxu2 }
 0x26b   : > { %v1522_v50 = vadd.f32 %v1521_v12, %v9198_v43  ;;  %v1610_v27 = vpop.f32.mrf.mxu3  ;;  %v1345_v55 = vpop.f32.mrf.mxu0 }
 0x26c   : > { %v1346_v13 = vadd.f32 %v1345_v55, %v9189_v4  ;;  %v1434_v0 = vpop.f32.mrf.mxu1 }
 0x26d   : > { %v1611_v60 = vadd.f32 %v1610_v27, %v1522_v50  ;;  %v6700_v50 = vld [vmem:[%s11362_s3 + $0x148] sm:$0xf0] }
 0x26e   : > { %v1435_v63 = vadd.f32 %v1434_v0, %v1346_v13  ;;  %v6703_v27 = vor.u32 %v7447_v10, %v6700_v50  ;;  %v6572_v13 = vld [vmem:[%s11362_s3 + $0x48] sm:$0xf0]  ;;  %v7463_v0 = vld [vmem:[%s11362_s3 + $0x1c4] sm:$0xf] }
 0x26f   : > { %v1726_v55 = vmax.f32 %v1611_v60, 0.0  ;;  %v6636_v50 = vld [vmem:[%s11362_s3 + $0xc8] sm:$0xf0] }
 0x270   : > { %v1729_v42 = vmax.f32 %v1435_v63, 0.0  ;;  %2754 = vmatpush.bf16.msrb.mxu2 %v6703_v27 }
 0x272   : > { %v1523_v46 = vpop.f32.mrf.mxu2  ;;  %v9481_v20 = vpack.c.bf16 %v1729_v42, %v1725_v34  ;;  %v6764_v42 = vld [vmem:[%s11362_s3 + $0x1c8] sm:$0xf0] }
 0x273   : > { %v1524_v38 = vadd.f32 %v1523_v46, %v9198_v43  ;;  %v1612_v8 = vpop.f32.mrf.mxu3  ;;  %v1348_v25 = vpop.f32.mrf.mxu0 }
 0x274   : > { %v1349_v48 = vadd.f32 %v1348_v25, %v9189_v4  ;;  %v1437_v44 = vpop.f32.mrf.mxu1  ;;  %v6767_v25 = vor.u32 %v7463_v0, %v6764_v42 }
 0x275   : > { %v1613_v12 = vadd.f32 %v1612_v8, %v1524_v38 }
 0x276   : > { %v1438_v24 = vadd.f32 %v1437_v44, %v1349_v48  ;;  %2245 = vmatmul.bf16.gmra.mxu0 %v8916_v61  ;;  %v7415_v44 = vld [vmem:[%s11362_s3 + $0x44] sm:$0xf]  ;;  %2843 = vmatpush.bf16.msrb.mxu3 %v6767_v25 }
 0x277   : > { %v1730_v11 = vmax.f32 %v1613_v12, 0.0  ;;  %2334 = vmatmul.bf16.gmra.mxu1 %v8926_v22  ;;  %2423 = vmatmul.bf16.gmra.mxu2 %v9325_v62  ;;  %v6575_v34 = vor.u32 %v7415_v44, %v6572_v13 }
 0x278   : > { %2512 = vmatmul.bf16.gmra.mxu3 %v9333_v58  ;;  %v1733_v44 = vmax.f32 %v1438_v24, 0.0  ;;  %v11446_v24 = vld [vmem:[#allocation10_spill] sm:$0xff] }
 0x279   : > { %v9504_v60 = vpack.c.bf16 %v1730_v11, %v1726_v55  ;;  %2576 = vmatpush.bf16.msrb.mxu0 %v6575_v34  ;;  %v7431_v55 = vld [vmem:[%s11362_s3 + $0xc4] sm:$0xf] }
 0x27a   : > { %v1526_v63 = vpop.f32.mrf.mxu2 }
 0x27b   : > { %v1527_v46 = vadd.f32 %v1526_v63, %v9198_v43  ;;  %v1615_v38 = vpop.f32.mrf.mxu3  ;;  %v1350_v8 = vpop.f32.mrf.mxu0  ;;  %v6639_v63 = vor.u32 %v7431_v55, %v6636_v50 }
 0x27c   : > { %v1351_v48 = vadd.f32 %v1350_v8, %v9189_v4  ;;  %v1439_v12 = vpop.f32.mrf.mxu1 }
 0x27d   : > { %v1616_v10 = vadd.f32 %v1615_v38, %v1527_v46  ;;  %2665 = vmatpush.bf16.msrb.mxu1 %v6639_v63 }
 0x27e   : > { %v1440_v11 = vadd.f32 %v1439_v12, %v1351_v48  ;;  %v11445_v12 = vld [vmem:[#allocation9_spill] sm:$0xff] }
 0x27f   : > { %v1734_v58 = vmax.f32 %v1616_v10, 0.0 }
 0x280   : > { %v1737_v13 = vmax.f32 %v1440_v11, 0.0 }
 0x282   : > { %v1528_v27 = vpop.f32.mrf.mxu2  ;;  %v9517_v0 = vpack.c.bf16 %v1737_v13, %v1733_v44 }
 0x283   : > { %v1529_v34 = vadd.f32 %v1528_v27, %v9198_v43  ;;  %v1617_v42 = vpop.f32.mrf.mxu3  ;;  %v1353_v46 = vpop.f32.mrf.mxu0 }
 0x284   : > { %v1354_v38 = vadd.f32 %v1353_v46, %v9189_v4  ;;  %v1442_v8 = vpop.f32.mrf.mxu1 }
 0x285   : > { %v1618_v25 = vadd.f32 %v1617_v42, %v1529_v34 }
 0x286   : > { %v1443_v48 = vadd.f32 %v1442_v8, %v1354_v38  ;;  %2250 = vmatmul.bf16.gmra.mxu0 %v11445_v12  ;;  %v11447_v12 = vld [vmem:[#allocation11_spill] sm:$0xff] }
 0x287   : > { %v1738_v62 = vmax.f32 %v1618_v25, 0.0  ;;  %2339 = vmatmul.bf16.gmra.mxu1 %v11446_v24  ;;  %2428 = vmatmul.bf16.gmra.mxu2 %v9337_v52 }
 0x288   : > { %2517 = vmatmul.bf16.gmra.mxu3 %v9360_v56  ;;  %v1741_v10 = vmax.f32 %v1443_v48, 0.0  ;;  %v7445_v48 = vld [vmem:[%s11362_s3 + $0x134] sm:$0xf] }
 0x289   : > { %v9525_v11 = vpack.c.bf16 %v1738_v62, %v1734_v58 }
 0x28a   : > { %v1531_v55 = vpop.f32.mrf.mxu2 }
 0x28b   : > { %v1532_v50 = vadd.f32 %v1531_v55, %v9198_v43  ;;  %v1620_v44 = vpop.f32.mrf.mxu3  ;;  %v1355_v13 = vpop.f32.mrf.mxu0 }
 0x28c   : > { %v1356_v63 = vadd.f32 %v1355_v13, %v9189_v4  ;;  %v1444_v27 = vpop.f32.mrf.mxu1 }
 0x28d   : > { %v1621_v34 = vadd.f32 %v1620_v44, %v1532_v50  ;;  %v11448_v50 = vld [vmem:[#allocation12_spill] sm:$0xff]  ;;  %v6692_v44 = vld [vmem:[%s11362_s3 + $0x138] sm:$0xf0] }
 0x28e   : > { %v1445_v42 = vadd.f32 %v1444_v27, %v1356_v63  ;;  %v6564_v63 = vld [vmem:[%s11362_s3 + $0x38] sm:$0xf0]  ;;  %v7461_v27 = vld [vmem:[%s11362_s3 + $0x1b4] sm:$0xf] }
 0x28f   : > { %v1742_v13 = vmax.f32 %v1621_v34, 0.0 }
 0x290   : > { %v1745_v46 = vmax.f32 %v1445_v42, 0.0 }
 0x292   : > { %v1533_v38 = vpop.f32.mrf.mxu2  ;;  %v9529_v8 = vpack.c.bf16 %v1745_v46, %v1741_v10  ;;  %v6756_v46 = vld [vmem:[%s11362_s3 + $0x1b8] sm:$0xf0] }
 0x293   : > { %v1534_v25 = vadd.f32 %v1533_v38, %v9198_v43  ;;  %v1622_v56 = vpop.f32.mrf.mxu3  ;;  %v1358_v62 = vpop.f32.mrf.mxu0 }
 0x294   : > { %v1359_v58 = vadd.f32 %v1358_v62, %v9189_v4  ;;  %v1447_v52 = vpop.f32.mrf.mxu1 }
 0x295   : > { %v1623_v55 = vadd.f32 %v1622_v56, %v1534_v25  ;;  %v6695_v56 = vor.u32 %v7445_v48, %v6692_v44 }
 0x296   : > { %v1448_v24 = vadd.f32 %v1447_v52, %v1359_v58  ;;  %2255 = vmatmul.bf16.gmra.mxu0 %v11447_v12  ;;  %v7413_v52 = vld [vmem:[%s11362_s3 + $0x34] sm:$0xf]  ;;  %v6759_v58 = vor.u32 %v7461_v27, %v6756_v46 }
 0x297   : > { %v1746_v22 = vmax.f32 %v1623_v55, 0.0  ;;  %2344 = vmatmul.bf16.gmra.mxu1 %v11448_v50  ;;  %2433 = vmatmul.bf16.gmra.mxu2 %v9373_v32  ;;  %v6567_v10 = vor.u32 %v7413_v52, %v6564_v63 }
 0x298   : > { %2522 = vmatmul.bf16.gmra.mxu3 %v9381_v53  ;;  %2755 = vmatpush.bf16.msrb.mxu2 %v6695_v56 }
 0x299   : > { %v9552_v34 = vpack.c.bf16 %v1746_v22, %v1742_v13  ;;  %2577 = vmatpush.bf16.msrb.mxu0 %v6567_v10  ;;  %2844 = vmatpush.bf16.msrb.mxu3 %v6759_v58  ;;  %v1749_v13 = vmax.f32 %v1448_v24, 0.0 }
 0x29a   : > { %v1536_v42 = vpop.f32.mrf.mxu2 }
 0x29b   : > { %v1537_v38 = vadd.f32 %v1536_v42, %v9198_v43  ;;  %v1625_v25 = vpop.f32.mrf.mxu3  ;;  %v1360_v62 = vpop.f32.mrf.mxu0 }
 0x29c   : > { %v1361_v55 = vadd.f32 %v1360_v62, %v9189_v4  ;;  %v1449_v48 = vpop.f32.mrf.mxu1 }
 0x29d   : > { %v1626_v44 = vadd.f32 %v1625_v25, %v1537_v38 }
 0x29e   : > { %v1450_v22 = vadd.f32 %v1449_v48, %v1361_v55  ;;  %v6628_v55 = vld [vmem:[%s11362_s3 + $0xb8] sm:$0xf0] }
 0x29f   : > { %v1750_v10 = vmax.f32 %v1626_v44, 0.0  ;;  %v1891_v44 = vld [vmem:[%s11363_s4] sm:$0x3] }
 0x2a0   : > { %v1753_v53 = vmax.f32 %v1450_v22, 0.0 }
 0x2a2   : > { %v1538_v52 = vpop.f32.mrf.mxu2  ;;  %v9559_v63 = vpack.c.bf16 %v1753_v53, %v1749_v13 }
 0x2a3   : > { %v1539_v32 = vadd.f32 %v1538_v52, %v9198_v43  ;;  %v1627_v50 = vpop.f32.mrf.mxu3  ;;  %v1363_v42 = vpop.f32.mrf.mxu0 }
 0x2a4   : > { %v1364_v12 = vadd.f32 %v1363_v42, %v9189_v4  ;;  %v1452_v56 = vpop.f32.mrf.mxu1 }
 0x2a5   : > { %v1628_v27 = vadd.f32 %v1627_v50, %v1539_v32  ;;  %v7429_v50 = vld [vmem:[%s11362_s3 + $0xb4] sm:$0xf] }
 0x2a6   : > { %v1453_v46 = vadd.f32 %v1452_v56, %v1364_v12  ;;  %2260 = vmatmul.bf16.gmra.mxu0 %v8994_v14  ;;  %v6631_v22 = vor.u32 %v7429_v50, %v6628_v55 }
 0x2a7   : > { %v1754_v38 = vmax.f32 %v1628_v27, 0.0  ;;  %2349 = vmatmul.bf16.gmra.mxu1 %v9017_v47  ;;  %2438 = vmatmul.bf16.gmra.mxu2 %v9385_v21 }
 0x2a8   : > { %2527 = vmatmul.bf16.gmra.mxu3 %v9408_v16  ;;  %2666 = vmatpush.bf16.msrb.mxu1 %v6631_v22  ;;  %v1757_v52 = vmax.f32 %v1453_v46, 0.0 }
 0x2a9   : > { %v9567_v53 = vpack.c.bf16 %v1754_v38, %v1750_v10 }
 0x2aa   : > { %v1541_v24 = vpop.f32.mrf.mxu2 }
 0x2ab   : > { %v1542_v25 = vadd.f32 %v1541_v24, %v9198_v43  ;;  %v1630_v62 = vpop.f32.mrf.mxu3  ;;  %v1365_v58 = vpop.f32.mrf.mxu0 }
 0x2ac   : > { %v1366_v32 = vadd.f32 %v1365_v58, %v9189_v4  ;;  %v1454_v12 = vpop.f32.mrf.mxu1  ;;  %v9580_v4 = vperm.slane %v1891_v44, 0 }
 0x2ad   : > { %v1631_v48 = vadd.f32 %v1630_v62, %v1542_v25 }
 0x2ae   : > { %v1455_v13 = vadd.f32 %v1454_v12, %v1366_v32 }
 0x2af   : > { %v1758_v32 = vmax.f32 %v1631_v48, 0.0 }
 0x2b0   : > { %v1761_v42 = vmax.f32 %v1455_v13, 0.0 }
 0x2b2   : > { %v1543_v56 = vpop.f32.mrf.mxu2  ;;  %v9582_v27 = vpack.c.bf16 %v1761_v42, %v1757_v52 }
 0x2b3   : > { %v1544_v10 = vadd.f32 %v1543_v56, %v9198_v43  ;;  %v1632_v38 = vpop.f32.mrf.mxu3  ;;  %v2226_v24 = vpop.f32.mrf.mxu0 }
 0x2b4   : > { %v2227_v25 = vadd.f32 %v2226_v24, %v9580_v4  ;;  %v2315_v62 = vpop.f32.mrf.mxu1 }
 0x2b5   : > { %v1633_v58 = vadd.f32 %v1632_v38, %v1544_v10 }
 0x2b6   : > { %v2316_v16 = vadd.f32 %v2315_v62, %v2227_v25  ;;  %2265 = vmatmul.bf16.gmra.mxu0 %v9030_v41 }
 0x2b7   : > { %v1762_v12 = vmax.f32 %v1633_v58, 0.0  ;;  %2354 = vmatmul.bf16.gmra.mxu1 %v9038_v57  ;;  %2443 = vmatmul.bf16.gmra.mxu2 %v9421_v7 }
 0x2b8   : > { %2532 = vmatmul.bf16.gmra.mxu3 %v9429_v17 }
 0x2b9   : > { %v9590_v46 = vpack.c.bf16 %v1762_v12, %v1758_v32  ;;  %v6684_v32 = vld [vmem:[%s11362_s3 + $0x128] sm:$0xf0]  ;;  %v7411_v12 = vld [vmem:[%s11362_s3 + $0x24] sm:$0xf] }
 0x2ba   : > { %v2404_v43 = vpop.f32.mrf.mxu2 }
 0x2bb   : > { %v2405_v50 = vadd.f32 %v2404_v43, %v2316_v16  ;;  %v2493_v55 = vpop.f32.mrf.mxu3  ;;  %v2228_v44 = vpop.f32.mrf.mxu0  ;;  %v7443_v16 = vld [vmem:[%s11362_s3 + $0x124] sm:$0xf] }
 0x2bc   : > { %v2229_v22 = vadd.f32 %v2228_v44, %v9580_v4  ;;  %v2317_v13 = vpop.f32.mrf.mxu1  ;;  %v7459_v44 = vld [vmem:[%s11362_s3 + $0x1a4] sm:$0xf] }
 0x2bd   : > { %v2494_v52 = vadd.f32 %v2493_v55, %v2405_v50  ;;  %v6687_v50 = vor.u32 %v7443_v16, %v6684_v32  ;;  %v6556_v55 = vld [vmem:[%s11362_s3 + $0x28] sm:$0xf0]  ;;  %v7427_v32 = vld [vmem:[%s11362_s3 + $0xa4] sm:$0xf] }
 0x2be   : > { %v2318_v42 = vadd.f32 %v2317_v13, %v2229_v22  ;;  %v6748_v22 = vld [vmem:[%s11362_s3 + $0x1a8] sm:$0xf0] }
 0x2bf   : > { %v2929_v56 = vsub.f32 0.0, %v2494_v52  ;;  %v6559_v52 = vor.u32 %v7411_v12, %v6556_v55  ;;  %2756 = vmatpush.bf16.msrb.mxu2 %v6687_v50  ;;  %v6620_v12 = vld [vmem:[%s11362_s3 + $0xa8] sm:$0xf0] }
 0x2c0   : > { %v6623_v50 = vor.u32 %v7427_v32, %v6620_v12 }
 0x2c1   : > { %v2993_v48 = vmul.f32 1.442695, %v2929_v56  ;;  %2578 = vmatpush.bf16.msrb.mxu0 %v6559_v52 }
 0x2c2   : > { %v2406_v10 = vpop.f32.mrf.mxu2  ;;  %2667 = vmatpush.bf16.msrb.mxu1 %v6623_v50 }
 0x2c3   : > { %v2407_v38 = vadd.f32 %v2406_v10, %v2318_v42  ;;  %v2495_v24 = vpop.f32.mrf.mxu3  ;;  %v2231_v25 = vpop.f32.mrf.mxu0  ;;  %7642 = vpow2.f32 %v2993_v48  ;;  %v6751_v42 = vor.u32 %v7459_v44, %v6748_v22 }
 0x2c4   : > { %v2232_v62 = vadd.f32 %v2231_v25, %v9580_v4  ;;  %v2320_v58 = vpop.f32.mrf.mxu1 }
 0x2c5   : > { %v2496_v43 = vadd.f32 %v2495_v24, %v2407_v38  ;;  %2845 = vmatpush.bf16.msrb.mxu3 %v6751_v42 }
 0x2c6   : > { %v2321_v13 = vadd.f32 %v2320_v58, %v2232_v62  ;;  %2270 = vmatmul.bf16.gmra.mxu0 %v9042_v45 }
 0x2c7   : > { %v2931_v56 = vsub.f32 0.0, %v2496_v43  ;;  %2359 = vmatmul.bf16.gmra.mxu1 %v9065_v9  ;;  %2448 = vmatmul.bf16.gmra.mxu2 %v9433_v15 }
 0x2c8   : > { %2537 = vmatmul.bf16.gmra.mxu3 %v9456_v28 }
 0x2c9   : > { %v2997_v10 = vmul.f32 1.442695, %v2931_v56  ;;  %v7643_v62 = vpop.eup %7642 }
 0x2ca   : > { %v2409_v38 = vpop.f32.mrf.mxu2  ;;  %v3121_v44 = vadd.f32 1.0, %v7643_v62 }
 0x2cb   : > { %7644 = vpow2.f32 %v2997_v10  ;;  %v2410_v24 = vadd.f32 %v2409_v38, %v2321_v13  ;;  %v2498_v48 = vpop.f32.mrf.mxu3  ;;  %v2233_v25 = vpop.f32.mrf.mxu0 }
 0x2cc   : > { %v2234_v58 = vadd.f32 %v2233_v25, %v9580_v4  ;;  %v2322_v16 = vpop.f32.mrf.mxu1  ;;  %7646 = vrcp.f32 %v3121_v44 }
 0x2cd   : > { %v2499_v43 = vadd.f32 %v2498_v48, %v2410_v24 }
 0x2ce   : > { %v2323_v55 = vadd.f32 %v2322_v16, %v2234_v58 }
 0x2cf   : > { %v2933_v22 = vsub.f32 0.0, %v2499_v43 }
 0x2d1   : > { %v7645_v13 = vpop.eup %7644  ;;  %v3001_v42 = vmul.f32 1.442695, %v2933_v22 }
 0x2d2   : > { %v3123_v52 = vadd.f32 1.0, %v7645_v13  ;;  %v2411_v56 = vpop.f32.mrf.mxu2  ;;  %v7647_v62 = vpop.eup %7646 }
 0x2d3   : > { %v2412_v10 = vadd.f32 %v2411_v56, %v2323_v55  ;;  %v2500_v38 = vpop.f32.mrf.mxu3  ;;  %v2236_v25 = vpop.f32.mrf.mxu0 }
 0x2d4   : > { %7648 = vrcp.f32 %v3123_v52  ;;  %v2237_v28 = vadd.f32 %v2236_v25, %v9580_v4  ;;  %v2325_v15 = vpop.f32.mrf.mxu1 }
 0x2d5   : > { %v2501_v9 = vadd.f32 %v2500_v38, %v2412_v10  ;;  %7650 = vpow2.f32 %v3001_v42 }
 0x2d6   : > { %v2326_v24 = vadd.f32 %v2325_v15, %v2237_v28  ;;  %2275 = vmatmul.bf16.gmra.mxu0 %v9078_v31 }
 0x2d7   : > { %v2935_v48 = vsub.f32 0.0, %v2501_v9  ;;  %2364 = vmatmul.bf16.gmra.mxu1 %v9086_v29  ;;  %2453 = vmatmul.bf16.gmra.mxu2 %v9469_v3 }
 0x2d8   : > { %2542 = vmatmul.bf16.gmra.mxu3 %v9477_v18 }
 0x2d9   : > { %v3005_v58 = vmul.f32 1.442695, %v2935_v48 }
 0x2da   : > { %v7649_v16 = vpop.eup %7648  ;;  %v2414_v32 = vpop.f32.mrf.mxu2 }
 0x2db   : > { %7652 = vpow2.f32 %v3005_v58  ;;  %v2415_v12 = vadd.f32 %v2414_v32, %v2326_v24  ;;  %v2503_v43 = vpop.f32.mrf.mxu3  ;;  %v2238_v50 = vpop.f32.mrf.mxu0  ;;  %v9628_v55 = vpack.c.bf16 %v7649_v16, %v7647_v62  ;;  %v7441_v16 = vld [vmem:[%s11362_s3 + $0x114] sm:$0xf]  ;;  %v6676_v32 = vld [vmem:[%s11362_s3 + $0x118] sm:$0xf0] }
 0x2dc   : > { %v7651_v15 = vpop.eup %7650  ;;  %v2239_v28 = vadd.f32 %v2238_v50, %v9580_v4  ;;  %v2327_v9 = vpop.f32.mrf.mxu1  ;;  %v6679_v50 = vor.u32 %v7441_v16, %v6676_v32 }
 0x2dd   : > { %11449 = vst [vmem:[#allocation29_spill] sm:$0xff] %v9628_v55  ;;  %v2504_v44 = vadd.f32 %v2503_v43, %v2415_v12  ;;  %v3125_v13 = vadd.f32 1.0, %v7651_v15  ;;  %v7409_v12 = vld [vmem:[%s11362_s3 + $0x14] sm:$0xf]  ;;  %v6548_v15 = vld [vmem:[%s11362_s3 + $0x18] sm:$0xf0] }
 0x2de   : > { %v2328_v22 = vadd.f32 %v2327_v9, %v2239_v28  ;;  %v7457_v28 = vld [vmem:[%s11362_s3 + $0x194] sm:$0xf]  ;;  %v6740_v9 = vld [vmem:[%s11362_s3 + $0x198] sm:$0xf0]  ;;  %2757 = vmatpush.bf16.msrb.mxu2 %v6679_v50 }
 0x2df   : > { %v2937_v52 = vsub.f32 0.0, %v2504_v44  ;;  %7654 = vrcp.f32 %v3125_v13  ;;  %v6743_v13 = vor.u32 %v7457_v28, %v6740_v9 }
 0x2e1   : > { %v7653_v42 = vpop.eup %7652  ;;  %v3009_v10 = vmul.f32 1.442695, %v2937_v52  ;;  %2846 = vmatpush.bf16.msrb.mxu3 %v6743_v13 }
 0x2e2   : > { %v3127_v56 = vadd.f32 1.0, %v7653_v42  ;;  %v2416_v38 = vpop.f32.mrf.mxu2 }
 0x2e3   : > { %v2417_v25 = vadd.f32 %v2416_v38, %v2328_v22  ;;  %v2505_v48 = vpop.f32.mrf.mxu3  ;;  %v2241_v24 = vpop.f32.mrf.mxu0  ;;  %v6551_v22 = vor.u32 %v7409_v12, %v6548_v15  ;;  %v7425_v12 = vld [vmem:[%s11362_s3 + $0x94] sm:$0xf] }
 0x2e4   : > { %7656 = vrcp.f32 %v3127_v56  ;;  %v2242_v62 = vadd.f32 %v2241_v24, %v9580_v4  ;;  %v2330_v58 = vpop.f32.mrf.mxu1 }
 0x2e5   : > { %v2506_v43 = vadd.f32 %v2505_v48, %v2417_v25  ;;  %7658 = vpow2.f32 %v3009_v10  ;;  %v7655_v42 = vpop.eup %7654  ;;  %2579 = vmatpush.bf16.msrb.mxu0 %v6551_v22 }
 0x2e6   : > { %v2331_v44 = vadd.f32 %v2330_v58, %v2242_v62  ;;  %2280 = vmatmul.bf16.gmra.mxu0 %v9090_v37 }
 0x2e7   : > { %v2939_v52 = vsub.f32 0.0, %v2506_v43  ;;  %2369 = vmatmul.bf16.gmra.mxu1 %v9113_v33  ;;  %2458 = vmatmul.bf16.gmra.mxu2 %v9481_v20  ;;  %v6612_v43 = vld [vmem:[%s11362_s3 + $0x98] sm:$0xf0] }
 0x2e8   : > { %2547 = vmatmul.bf16.gmra.mxu3 %v9504_v60  ;;  %v6615_v15 = vor.u32 %v7425_v12, %v6612_v43 }
 0x2e9   : > { %v3013_v56 = vmul.f32 1.442695, %v2939_v52 }
 0x2ea   : > { %v7657_v38 = vpop.eup %7656  ;;  %v2419_v25 = vpop.f32.mrf.mxu2  ;;  %2668 = vmatpush.bf16.msrb.mxu1 %v6615_v15 }
 0x2eb   : > { %7660 = vpow2.f32 %v3013_v56  ;;  %v2420_v10 = vadd.f32 %v2419_v25, %v2331_v44  ;;  %v2508_v48 = vpop.f32.mrf.mxu3  ;;  %v2243_v24 = vpop.f32.mrf.mxu0  ;;  %v9654_v62 = vpack.c.bf16 %v7657_v38, %v7655_v42 }
 0x2ec   : > { %v7659_v58 = vpop.eup %7658  ;;  %v2244_v16 = vadd.f32 %v2243_v24, %v9580_v4  ;;  %v2332_v32 = vpop.f32.mrf.mxu1 }
 0x2ed   : > { %11450 = vst [vmem:[#allocation30_spill] sm:$0xff] %v9654_v62  ;;  %v2509_v50 = vadd.f32 %v2508_v48, %v2420_v10  ;;  %v3129_v9 = vadd.f32 1.0, %v7659_v58 }
 0x2ee   : > { %v2333_v28 = vadd.f32 %v2332_v32, %v2244_v16 }
 0x2ef   : > { %v2941_v44 = vsub.f32 0.0, %v2509_v50  ;;  %7662 = vrcp.f32 %v3129_v9 }
 0x2f1   : > { %v7661_v22 = vpop.eup %7660  ;;  %v3017_v52 = vmul.f32 1.442695, %v2941_v44 }
 0x2f2   : > { %v3131_v13 = vadd.f32 1.0, %v7661_v22  ;;  %v2421_v42 = vpop.f32.mrf.mxu2 }
 0x2f3   : > { %v2422_v56 = vadd.f32 %v2421_v42, %v2333_v28  ;;  %v2510_v38 = vpop.f32.mrf.mxu3  ;;  %v2246_v25 = vpop.f32.mrf.mxu0 }
 0x2f4   : > { %7664 = vrcp.f32 %v3131_v13  ;;  %v2247_v24 = vadd.f32 %v2246_v25, %v9580_v4  ;;  %v2335_v62 = vpop.f32.mrf.mxu1 }
 0x2f5   : > { %v2511_v55 = vadd.f32 %v2510_v38, %v2422_v56  ;;  %7666 = vpow2.f32 %v3017_v52  ;;  %v7663_v58 = vpop.eup %7662 }
 0x2f6   : > { %v2336_v10 = vadd.f32 %v2335_v62, %v2247_v24  ;;  %2285 = vmatmul.bf16.gmra.mxu0 %v9126_v1 }
 0x2f7   : > { %v2943_v48 = vsub.f32 0.0, %v2511_v55  ;;  %2374 = vmatmul.bf16.gmra.mxu1 %v9134_v54  ;;  %2463 = vmatmul.bf16.gmra.mxu2 %v9517_v0 }
 0x2f8   : > { %2552 = vmatmul.bf16.gmra.mxu3 %v9525_v11 }
 0x2f9   : > { %v3021_v16 = vmul.f32 1.442695, %v2943_v48 }
 0x2fa   : > { %v7665_v32 = vpop.eup %7664  ;;  %v2424_v12 = vpop.f32.mrf.mxu2 }
 0x2fb   : > { %7668 = vpow2.f32 %v3021_v16  ;;  %v2425_v43 = vadd.f32 %v2424_v12, %v2336_v10  ;;  %v2513_v50 = vpop.f32.mrf.mxu3  ;;  %v2248_v15 = vpop.f32.mrf.mxu0  ;;  %v9668_v28 = vpack.c.bf16 %v7665_v32, %v7663_v58  ;;  %v7439_v32 = vld [vmem:[%s11362_s3 + $0x104] sm:$0xf]  ;;  %v6668_v12 = vld [vmem:[%s11362_s3 + $0x108] sm:$0xf0] }
 0x2fc   : > { %v7667_v62 = vpop.eup %7666  ;;  %v2249_v9 = vadd.f32 %v2248_v15, %v9580_v4  ;;  %v2337_v55 = vpop.f32.mrf.mxu1  ;;  %v6671_v15 = vor.u32 %v7439_v32, %v6668_v12 }
 0x2fd   : > { %11451 = vst [vmem:[#allocation31_spill] sm:$0xff] %v9668_v28  ;;  %v2514_v44 = vadd.f32 %v2513_v50, %v2425_v43  ;;  %v3133_v13 = vadd.f32 1.0, %v7667_v62  ;;  %v7407_v43 = vld [vmem:[%s11362_s3 + $0x4] sm:$0xf]  ;;  %v6540_v62 = vld [vmem:[%s11362_s3 + $0x8] sm:$0xf0] }
 0x2fe   : > { %v2338_v22 = vadd.f32 %v2337_v55, %v2249_v9  ;;  %v7455_v9 = vld [vmem:[%s11362_s3 + $0x184] sm:$0xf]  ;;  %v6732_v55 = vld [vmem:[%s11362_s3 + $0x188] sm:$0xf0]  ;;  %2758 = vmatpush.bf16.msrb.mxu2 %v6671_v15 }
 0x2ff   : > { %v2945_v52 = vsub.f32 0.0, %v2514_v44  ;;  %7670 = vrcp.f32 %v3133_v13  ;;  %v6735_v13 = vor.u32 %v7455_v9, %v6732_v55 }
 0x301   : > { %v7669_v42 = vpop.eup %7668  ;;  %v3025_v38 = vmul.f32 1.442695, %v2945_v52  ;;  %2847 = vmatpush.bf16.msrb.mxu3 %v6735_v13 }
 0x302   : > { %v3135_v56 = vadd.f32 1.0, %v7669_v42  ;;  %v2426_v25 = vpop.f32.mrf.mxu2 }
 0x303   : > { %v2427_v24 = vadd.f32 %v2426_v25, %v2338_v22  ;;  %v2515_v48 = vpop.f32.mrf.mxu3  ;;  %v2251_v10 = vpop.f32.mrf.mxu0  ;;  %v6543_v22 = vor.u32 %v7407_v43, %v6540_v62  ;;  %v7423_v43 = vld [vmem:[%s11362_s3 + $0x84] sm:$0xf] }
 0x304   : > { %7672 = vrcp.f32 %v3135_v56  ;;  %v2252_v58 = vadd.f32 %v2251_v10, %v9580_v4  ;;  %v2340_v16 = vpop.f32.mrf.mxu1 }
 0x305   : > { %v2516_v50 = vadd.f32 %v2515_v48, %v2427_v24  ;;  %7674 = vpow2.f32 %v3025_v38  ;;  %v7671_v42 = vpop.eup %7670  ;;  %2580 = vmatpush.bf16.msrb.mxu0 %v6543_v22 }
 0x306   : > { %v2341_v44 = vadd.f32 %v2340_v16, %v2252_v58  ;;  %2290 = vmatmul.bf16.gmra.mxu0 %v9138_v30 }
 0x307   : > { %v2947_v52 = vsub.f32 0.0, %v2516_v50  ;;  %2379 = vmatmul.bf16.gmra.mxu1 %v9161_v59  ;;  %2468 = vmatmul.bf16.gmra.mxu2 %v9529_v8  ;;  %v6604_v50 = vld [vmem:[%s11362_s3 + $0x88] sm:$0xf0] }
 0x308   : > { %2557 = vmatmul.bf16.gmra.mxu3 %v9552_v34  ;;  %v6607_v62 = vor.u32 %v7423_v43, %v6604_v50 }
 0x309   : > { %v3029_v56 = vmul.f32 1.442695, %v2947_v52 }
 0x30a   : > { %v7673_v25 = vpop.eup %7672  ;;  %v2429_v24 = vpop.f32.mrf.mxu2  ;;  %2669 = vmatpush.bf16.msrb.mxu1 %v6607_v62 }
 0x30b   : > { %7676 = vpow2.f32 %v3029_v56  ;;  %v2430_v38 = vadd.f32 %v2429_v24, %v2341_v44  ;;  %v2518_v48 = vpop.f32.mrf.mxu3  ;;  %v2253_v10 = vpop.f32.mrf.mxu0  ;;  %v9694_v58 = vpack.c.bf16 %v7673_v25, %v7671_v42 }
 0x30c   : > { %v7675_v16 = vpop.eup %7674  ;;  %v2254_v32 = vadd.f32 %v2253_v10, %v9580_v4  ;;  %v2342_v12 = vpop.f32.mrf.mxu1 }
 0x30d   : > { %11452 = vst [vmem:[#allocation32_spill] sm:$0xff] %v9694_v58  ;;  %v2519_v15 = vadd.f32 %v2518_v48, %v2430_v38  ;;  %v3137_v55 = vadd.f32 1.0, %v7675_v16 }
 0x30e   : > { %v2343_v9 = vadd.f32 %v2342_v12, %v2254_v32 }
 0x30f   : > { %v2949_v44 = vsub.f32 0.0, %v2519_v15  ;;  %7678 = vrcp.f32 %v3137_v55 }
 0x311   : > { %v7677_v22 = vpop.eup %7676  ;;  %v3033_v52 = vmul.f32 1.442695, %v2949_v44 }
 0x312   : > { %v3139_v13 = vadd.f32 1.0, %v7677_v22  ;;  %v2431_v42 = vpop.f32.mrf.mxu2 }
 0x313   : > { %v2432_v56 = vadd.f32 %v2431_v42, %v2343_v9  ;;  %v2520_v25 = vpop.f32.mrf.mxu3  ;;  %v2256_v24 = vpop.f32.mrf.mxu0 }
 0x314   : > { %7680 = vrcp.f32 %v3139_v13  ;;  %v2257_v10 = vadd.f32 %v2256_v24, %v9580_v4  ;;  %v2345_v58 = vpop.f32.mrf.mxu1 }
 0x315   : > { %v2521_v28 = vadd.f32 %v2520_v25, %v2432_v56  ;;  %7682 = vpow2.f32 %v3033_v52  ;;  %v7679_v16 = vpop.eup %7678 }
 0x316   : > { %v2346_v38 = vadd.f32 %v2345_v58, %v2257_v10  ;;  %2295 = vmatmul.bf16.gmra.mxu0 %v9174_v19 }
 0x317   : > { %v2951_v48 = vsub.f32 0.0, %v2521_v28  ;;  %2384 = vmatmul.bf16.gmra.mxu1 %v9182_v36  ;;  %2473 = vmatmul.bf16.gmra.mxu2 %v9559_v63 }
 0x318   : > { %2562 = vmatmul.bf16.gmra.mxu3 %v9567_v53 }
 0x319   : > { %v3037_v32 = vmul.f32 1.442695, %v2951_v48 }
 0x31a   : > { %v7681_v12 = vpop.eup %7680  ;;  %v2434_v43 = vpop.f32.mrf.mxu2 }
 0x31b   : > { %7684 = vpow2.f32 %v3037_v32  ;;  %v2435_v50 = vadd.f32 %v2434_v43, %v2346_v38  ;;  %v2523_v15 = vpop.f32.mrf.mxu3  ;;  %v2258_v62 = vpop.f32.mrf.mxu0  ;;  %v9708_v9 = vpack.c.bf16 %v7681_v12, %v7679_v16  ;;  %v7499_v12 = vld [vmem:[%s11364_s5 + $0xe4] sm:$0xf]  ;;  %v6908_v43 = vld [vmem:[%s11364_s5 + $0xf0] sm:$0xf0] }
 0x31c   : > { %v7683_v58 = vpop.eup %7682  ;;  %v2259_v55 = vadd.f32 %v2258_v62, %v9580_v4  ;;  %v2347_v28 = vpop.f32.mrf.mxu1  ;;  %v6911_v62 = vor.u32 %v7499_v12, %v6908_v43 }
 0x31d   : > { %11453 = vst [vmem:[#allocation33_spill] sm:$0xff] %v9708_v9  ;;  %v2524_v44 = vadd.f32 %v2523_v15, %v2435_v50  ;;  %v3141_v13 = vadd.f32 1.0, %v7683_v58  ;;  %v6906_v50 = vld [vmem:[%s11364_s5 + $0xe0] sm:$0xf]  ;;  %v7501_v58 = vld [vmem:[%s11364_s5 + $0xec] sm:$0xf0] }
 0x31e   : > { %v2348_v22 = vadd.f32 %v2347_v28, %v2259_v55  ;;  %v7531_v55 = vld [vmem:[%s11364_s5 + $0x1e4] sm:$0xf]  ;;  %v7036_v28 = vld [vmem:[%s11364_s5 + $0x1f0] sm:$0xf0]  ;;  %3853 = vmatpush.bf16.msra.mxu2 %v6911_v62 }
 0x31f   : > { %v2953_v52 = vsub.f32 0.0, %v2524_v44  ;;  %7686 = vrcp.f32 %v3141_v13  ;;  %v7039_v13 = vor.u32 %v7531_v55, %v7036_v28 }
 0x321   : > { %v7685_v42 = vpop.eup %7684  ;;  %v3041_v25 = vmul.f32 1.442695, %v2953_v52  ;;  %3942 = vmatpush.bf16.msra.mxu3 %v7039_v13 }
 0x322   : > { %v3143_v56 = vadd.f32 1.0, %v7685_v42  ;;  %v2436_v24 = vpop.f32.mrf.mxu2 }
 0x323   : > { %v2437_v10 = vadd.f32 %v2436_v24, %v2348_v22  ;;  %v2525_v48 = vpop.f32.mrf.mxu3  ;;  %v2261_v38 = vpop.f32.mrf.mxu0  ;;  %v6907_v22 = vor.u32 %v7501_v58, %v6906_v50  ;;  %v7034_v50 = vld [vmem:[%s11364_s5 + $0x1e0] sm:$0xf] }
 0x324   : > { %7688 = vrcp.f32 %v3143_v56  ;;  %v2262_v16 = vadd.f32 %v2261_v38, %v9580_v4  ;;  %v2350_v32 = vpop.f32.mrf.mxu1 }
 0x325   : > { %v2526_v15 = vadd.f32 %v2525_v48, %v2437_v10  ;;  %7690 = vpow2.f32 %v3041_v25  ;;  %v7687_v42 = vpop.eup %7686  ;;  %3675 = vmatpush.bf16.msra.mxu0 %v6907_v22 }
 0x326   : > { %v2351_v44 = vadd.f32 %v2350_v32, %v2262_v16  ;;  %2300 = vmatmul.bf16.gmra.mxu0 %v9191_v35 }
 0x327   : > { %v2955_v52 = vsub.f32 0.0, %v2526_v15  ;;  %2389 = vmatmul.bf16.gmra.mxu1 %v9216_v2  ;;  %2478 = vmatmul.bf16.gmra.mxu2 %v9582_v27  ;;  %v7533_v15 = vld [vmem:[%s11364_s5 + $0x1ec] sm:$0xf0] }
 0x328   : > { %2567 = vmatmul.bf16.gmra.mxu3 %v9590_v46  ;;  %v7035_v58 = vor.u32 %v7533_v15, %v7034_v50 }
 0x329   : > { %v3045_v56 = vmul.f32 1.442695, %v2955_v52 }
 0x32a   : > { %v7689_v24 = vpop.eup %7688  ;;  %v2439_v10 = vpop.f32.mrf.mxu2  ;;  %3764 = vmatpush.bf16.msra.mxu1 %v7035_v58 }
 0x32b   : > { %7692 = vpow2.f32 %v3045_v56  ;;  %v2440_v25 = vadd.f32 %v2439_v10, %v2351_v44  ;;  %v2528_v48 = vpop.f32.mrf.mxu3  ;;  %v2263_v38 = vpop.f32.mrf.mxu0  ;;  %v9734_v16 = vpack.c.bf16 %v7689_v24, %v7687_v42 }
 0x32c   : > { %v7691_v32 = vpop.eup %7690  ;;  %v2264_v12 = vadd.f32 %v2263_v38, %v9580_v4  ;;  %v2352_v43 = vpop.f32.mrf.mxu1 }
 0x32d   : > { %11454 = vst [vmem:[#allocation34_spill] sm:$0xff] %v9734_v16  ;;  %v2529_v62 = vadd.f32 %v2528_v48, %v2440_v25  ;;  %v3145_v28 = vadd.f32 1.0, %v7691_v32  ;;  %v11455_v32 = vld [vmem:[#allocation14_spill] sm:$0xff] }
 0x32e   : > { %v2353_v55 = vadd.f32 %v2352_v43, %v2264_v12 }
 0x32f   : > { %v2957_v44 = vsub.f32 0.0, %v2529_v62  ;;  %7694 = vrcp.f32 %v3145_v28 }
 0x331   : > { %v7693_v22 = vpop.eup %7692  ;;  %v3049_v52 = vmul.f32 1.442695, %v2957_v44 }
 0x332   : > { %v3147_v13 = vadd.f32 1.0, %v7693_v22  ;;  %v2441_v42 = vpop.f32.mrf.mxu2 }
 0x333   : > { %v2442_v56 = vadd.f32 %v2441_v42, %v2353_v55  ;;  %v2530_v24 = vpop.f32.mrf.mxu3  ;;  %v2266_v10 = vpop.f32.mrf.mxu0 }
 0x334   : > { %7696 = vrcp.f32 %v3147_v13  ;;  %v2267_v38 = vadd.f32 %v2266_v10, %v9580_v4  ;;  %v2355_v16 = vpop.f32.mrf.mxu1 }
 0x335   : > { %v2531_v9 = vadd.f32 %v2530_v24, %v2442_v56  ;;  %7698 = vpow2.f32 %v3049_v52  ;;  %v7695_v12 = vpop.eup %7694 }
 0x336   : > { %v2356_v25 = vadd.f32 %v2355_v16, %v2267_v38  ;;  %2581 = vmatmul.bf16.vlgmr.msrb.gmra.mxu0 %v8786_v5 }
 0x337   : > { %v2959_v48 = vsub.f32 0.0, %v2531_v9  ;;  %2670 = vmatmul.bf16.vlgmr.msrb.gmra.mxu1 %v8798_v23  ;;  %2759 = vmatmul.bf16.vlgmr.msrb.gmra.mxu2 %v9229_v26 }
 0x338   : > { %2848 = vmatmul.bf16.vlgmr.msrb.gmra.mxu3 %v11455_v32  ;;  %v7495_v32 = vld [vmem:[%s11364_s5 + $0xc4] sm:$0xf] }
 0x339   : > { %v3053_v43 = vmul.f32 1.442695, %v2959_v48 }
 0x33a   : > { %v7697_v50 = vpop.eup %7696  ;;  %v2444_v15 = vpop.f32.mrf.mxu2 }
 0x33b   : > { %7700 = vpow2.f32 %v3053_v43  ;;  %v2445_v62 = vadd.f32 %v2444_v15, %v2356_v25  ;;  %v2533_v58 = vpop.f32.mrf.mxu3  ;;  %v2268_v55 = vpop.f32.mrf.mxu0  ;;  %v9748_v28 = vpack.c.bf16 %v7697_v50, %v7695_v12  ;;  %v6892_v12 = vld [vmem:[%s11364_s5 + $0xd0] sm:$0xf0]  ;;  %v6890_v43 = vld [vmem:[%s11364_s5 + $0xc0] sm:$0xf] }
 0x33c   : > { %v7699_v16 = vpop.eup %7698  ;;  %v2269_v5 = vadd.f32 %v2268_v55, %v9580_v4  ;;  %v2357_v9 = vpop.f32.mrf.mxu1  ;;  %v6895_v15 = vor.u32 %v7495_v32, %v6892_v12  ;;  %v7020_v55 = vld [vmem:[%s11364_s5 + $0x1d0] sm:$0xf0]  ;;  %v7018_v12 = vld [vmem:[%s11364_s5 + $0x1c0] sm:$0xf] }
 0x33d   : > { %v2534_v44 = vadd.f32 %v2533_v58, %v2445_v62  ;;  %v3149_v22 = vadd.f32 1.0, %v7699_v16  ;;  %v7497_v62 = vld [vmem:[%s11364_s5 + $0xcc] sm:$0xf0]  ;;  %v7527_v58 = vld [vmem:[%s11364_s5 + $0x1c4] sm:$0xf] }
 0x33e   : > { %v2358_v23 = vadd.f32 %v2357_v9, %v2269_v5  ;;  %v6891_v5 = vor.u32 %v7497_v62, %v6890_v43  ;;  %v7023_v9 = vor.u32 %v7527_v58, %v7020_v55  ;;  %3854 = vmatpush.bf16.msra.mxu2 %v6895_v15  ;;  %v7529_v43 = vld [vmem:[%s11364_s5 + $0x1cc] sm:$0xf0] }
 0x33f   : > { %v2961_v26 = vsub.f32 0.0, %v2534_v44  ;;  %7702 = vrcp.f32 %v3149_v22  ;;  %v11457_v22 = vld [vmem:[#allocation15_spill] sm:$0xff]  ;;  %v7019_v15 = vor.u32 %v7529_v43, %v7018_v12 }
 0x340   : > { %3676 = vmatpush.bf16.msra.mxu0 %v6891_v5  ;;  %3943 = vmatpush.bf16.msra.mxu3 %v7023_v9 }
 0x341   : > { %v7701_v13 = vpop.eup %7700  ;;  %v3057_v42 = vmul.f32 1.442695, %v2961_v26  ;;  %v11458_v26 = vld [vmem:[#allocation16_spill] sm:$0xff]  ;;  %3765 = vmatpush.bf16.msra.mxu1 %v7019_v15 }
 0x342   : > { %v3151_v52 = vadd.f32 1.0, %v7701_v13  ;;  %v2446_v56 = vpop.f32.mrf.mxu2 }
 0x343   : > { %v2447_v24 = vadd.f32 %v2446_v56, %v2358_v23  ;;  %v2535_v10 = vpop.f32.mrf.mxu3  ;;  %v2271_v38 = vpop.f32.mrf.mxu0  ;;  %v11456_v23 = vld [vmem:[#allocation6_spill] sm:$0xff] }
 0x344   : > { %7704 = vrcp.f32 %v3151_v52  ;;  %v2272_v25 = vadd.f32 %v2271_v38, %v9580_v4  ;;  %v2360_v48 = vpop.f32.mrf.mxu1 }
 0x345   : > { %v2536_v50 = vadd.f32 %v2535_v10, %v2447_v24  ;;  %7706 = vpow2.f32 %v3057_v42  ;;  %v7703_v13 = vpop.eup %7702 }
 0x346   : > { %v2361_v16 = vadd.f32 %v2360_v48, %v2272_v25  ;;  %2586 = vmatmul.bf16.gmra.mxu0 %v8808_v49 }
 0x347   : > { %v2963_v44 = vsub.f32 0.0, %v2536_v50  ;;  %2675 = vmatmul.bf16.gmra.mxu1 %v11456_v23  ;;  %2764 = vmatmul.bf16.gmra.mxu2 %v11457_v22 }
 0x348   : > { %2853 = vmatmul.bf16.gmra.mxu3 %v11458_v26 }
 0x349   : > { %v3061_v52 = vmul.f32 1.442695, %v2963_v44 }
 0x34a   : > { %v7705_v56 = vpop.eup %7704  ;;  %v2449_v24 = vpop.f32.mrf.mxu2 }
 0x34b   : > { %7708 = vpow2.f32 %v3061_v52  ;;  %v2450_v42 = vadd.f32 %v2449_v24, %v2361_v16  ;;  %v2538_v10 = vpop.f32.mrf.mxu3  ;;  %v2273_v49 = vpop.f32.mrf.mxu0  ;;  %v9774_v38 = vpack.c.bf16 %v7705_v56, %v7703_v13 }
 0x34c   : > { %v7707_v25 = vpop.eup %7706  ;;  %v2274_v48 = vadd.f32 %v2273_v49, %v9580_v4  ;;  %v2362_v32 = vpop.f32.mrf.mxu1 }
 0x34d   : > { %v2539_v50 = vadd.f32 %v2538_v10, %v2450_v42  ;;  %v3153_v58 = vadd.f32 1.0, %v7707_v25  ;;  %v11459_v10 = vld [vmem:[#allocation17_spill] sm:$0xff] }
 0x34e   : > { %v2363_v62 = vadd.f32 %v2362_v32, %v2274_v48 }
 0x34f   : > { %v2965_v55 = vsub.f32 0.0, %v2539_v50  ;;  %7710 = vrcp.f32 %v3153_v58 }
 0x351   : > { %v7709_v16 = vpop.eup %7708  ;;  %v3065_v9 = vmul.f32 1.442695, %v2965_v55 }
 0x352   : > { %v3155_v5 = vadd.f32 1.0, %v7709_v16  ;;  %v2451_v44 = vpop.f32.mrf.mxu2 }
 0x353   : > { %v2452_v23 = vadd.f32 %v2451_v44, %v2363_v62  ;;  %v2540_v22 = vpop.f32.mrf.mxu3  ;;  %v2276_v26 = vpop.f32.mrf.mxu0 }
 0x354   : > { %7712 = vrcp.f32 %v3155_v5  ;;  %v2277_v13 = vadd.f32 %v2276_v26, %v9580_v4  ;;  %v2365_v52 = vpop.f32.mrf.mxu1 }
 0x355   : > { %v2541_v56 = vadd.f32 %v2540_v22, %v2452_v23  ;;  %7714 = vpow2.f32 %v3065_v9  ;;  %v7711_v49 = vpop.eup %7710 }
 0x356   : > { %v2366_v24 = vadd.f32 %v2365_v52, %v2277_v13  ;;  %2591 = vmatmul.bf16.gmra.mxu0 %v8852_v51 }
 0x357   : > { %v2967_v42 = vsub.f32 0.0, %v2541_v56  ;;  %2680 = vmatmul.bf16.gmra.mxu1 %v8862_v6  ;;  %2769 = vmatmul.bf16.gmra.mxu2 %v9277_v40 }
 0x358   : > { %2858 = vmatmul.bf16.gmra.mxu3 %v11459_v10  ;;  %v6874_v10 = vld [vmem:[%s11364_s5 + $0xa0] sm:$0xf] }
 0x359   : > { %v3069_v25 = vmul.f32 1.442695, %v2967_v42  ;;  %v6876_v42 = vld [vmem:[%s11364_s5 + $0xb0] sm:$0xf0] }
 0x35a   : > { %v7713_v48 = vpop.eup %7712  ;;  %v2454_v32 = vpop.f32.mrf.mxu2 }
 0x35b   : > { %7716 = vpow2.f32 %v3069_v25  ;;  %v2455_v12 = vadd.f32 %v2454_v32, %v2366_v24  ;;  %v2543_v43 = vpop.f32.mrf.mxu3  ;;  %v2278_v50 = vpop.f32.mrf.mxu0  ;;  %v9788_v15 = vpack.c.bf16 %v7713_v48, %v7711_v49  ;;  %v7491_v24 = vld [vmem:[%s11364_s5 + $0xa4] sm:$0xf]  ;;  %v7493_v48 = vld [vmem:[%s11364_s5 + $0xac] sm:$0xf0] }
 0x35c   : > { %v7715_v62 = vpop.eup %7714  ;;  %v2279_v51 = vadd.f32 %v2278_v50, %v9580_v4  ;;  %v2367_v58 = vpop.f32.mrf.mxu1  ;;  %v6879_v25 = vor.u32 %v7491_v24, %v6876_v42  ;;  %v7523_v32 = vld [vmem:[%s11364_s5 + $0x1a4] sm:$0xf]  ;;  %v6875_v50 = vor.u32 %v7493_v48, %v6874_v10  ;;  %v7525_v24 = vld [vmem:[%s11364_s5 + $0x1ac] sm:$0xf0] }
 0x35d   : > { %v2544_v55 = vadd.f32 %v2543_v43, %v2455_v12  ;;  %v3157_v16 = vadd.f32 1.0, %v7715_v62  ;;  %v7004_v12 = vld [vmem:[%s11364_s5 + $0x1b0] sm:$0xf0] }
 0x35e   : > { %v2368_v6 = vadd.f32 %v2367_v58, %v2279_v51  ;;  %v7007_v62 = vor.u32 %v7523_v32, %v7004_v12  ;;  %v11460_v58 = vld [vmem:[#allocation7_spill] sm:$0xff]  ;;  %3855 = vmatpush.bf16.msra.mxu2 %v6879_v25  ;;  %3677 = vmatpush.bf16.msra.mxu0 %v6875_v50 }
 0x35f   : > { %v2969_v40 = vsub.f32 0.0, %v2544_v55  ;;  %7718 = vrcp.f32 %v3157_v16  ;;  %v11461_v55 = vld [vmem:[#allocation18_spill] sm:$0xff] }
 0x360   : > { %3944 = vmatpush.bf16.msra.mxu3 %v7007_v62 }
 0x361   : > { %v7717_v5 = vpop.eup %7716  ;;  %v3073_v44 = vmul.f32 1.442695, %v2969_v40 }
 0x362   : > { %v3159_v9 = vadd.f32 1.0, %v7717_v5  ;;  %v2456_v23 = vpop.f32.mrf.mxu2 }
 0x363   : > { %v2457_v22 = vadd.f32 %v2456_v23, %v2368_v6  ;;  %v2545_v26 = vpop.f32.mrf.mxu3  ;;  %v2281_v13 = vpop.f32.mrf.mxu0  ;;  %v11462_v6 = vld [vmem:[#allocation19_spill] sm:$0xff] }
 0x364   : > { %7720 = vrcp.f32 %v3159_v9  ;;  %v2282_v52 = vadd.f32 %v2281_v13, %v9580_v4  ;;  %v2370_v56 = vpop.f32.mrf.mxu1 }
 0x365   : > { %v2546_v49 = vadd.f32 %v2545_v26, %v2457_v22  ;;  %7722 = vpow2.f32 %v3073_v44  ;;  %v7719_v16 = vpop.eup %7718 }
 0x366   : > { %v2371_v43 = vadd.f32 %v2370_v56, %v2282_v52  ;;  %2596 = vmatmul.bf16.gmra.mxu0 %v8872_v39  ;;  %v7002_v56 = vld [vmem:[%s11364_s5 + $0x1a0] sm:$0xf] }
 0x367   : > { %v2971_v51 = vsub.f32 0.0, %v2546_v49  ;;  %2685 = vmatmul.bf16.gmra.mxu1 %v11460_v58  ;;  %2774 = vmatmul.bf16.gmra.mxu2 %v11461_v55  ;;  %v7003_v10 = vor.u32 %v7525_v24, %v7002_v56 }
 0x368   : > { %2863 = vmatmul.bf16.gmra.mxu3 %v11462_v6 }
 0x369   : > { %v3077_v40 = vmul.f32 1.442695, %v2971_v51  ;;  %3766 = vmatpush.bf16.msra.mxu1 %v7003_v10 }
 0x36a   : > { %v7721_v5 = vpop.eup %7720  ;;  %v2459_v9 = vpop.f32.mrf.mxu2 }
 0x36b   : > { %7724 = vpow2.f32 %v3077_v40  ;;  %v2460_v44 = vadd.f32 %v2459_v9, %v2371_v43  ;;  %v2548_v23 = vpop.f32.mrf.mxu3  ;;  %v2283_v39 = vpop.f32.mrf.mxu0  ;;  %v9814_v22 = vpack.c.bf16 %v7721_v5, %v7719_v16  ;;  %v11463_v9 = vld [vmem:[#allocation8_spill] sm:$0xff] }
 0x36c   : > { %v7723_v26 = vpop.eup %7722  ;;  %v2284_v13 = vadd.f32 %v2283_v39, %v9580_v4  ;;  %v2372_v52 = vpop.f32.mrf.mxu1 }
 0x36d   : > { %v2549_v42 = vadd.f32 %v2548_v23, %v2460_v44  ;;  %v3161_v25 = vadd.f32 1.0, %v7723_v26  ;;  %v11464_v44 = vld [vmem:[#allocation20_spill] sm:$0xff]  ;;  %v11465_v23 = vld [vmem:[#allocation21_spill] sm:$0xff] }
 0x36e   : > { %v2373_v49 = vadd.f32 %v2372_v52, %v2284_v13 }
 0x36f   : > { %v2973_v48 = vsub.f32 0.0, %v2549_v42  ;;  %7726 = vrcp.f32 %v3161_v25 }
 0x371   : > { %v7725_v32 = vpop.eup %7724  ;;  %v3081_v43 = vmul.f32 1.442695, %v2973_v48 }
 0x372   : > { %v3163_v12 = vadd.f32 1.0, %v7725_v32  ;;  %v2461_v50 = vpop.f32.mrf.mxu2 }
 0x373   : > { %v2462_v62 = vadd.f32 %v2461_v50, %v2373_v49  ;;  %v2550_v51 = vpop.f32.mrf.mxu3  ;;  %v2286_v58 = vpop.f32.mrf.mxu0 }
 0x374   : > { %7728 = vrcp.f32 %v3163_v12  ;;  %v2287_v55 = vadd.f32 %v2286_v58, %v9580_v4  ;;  %v2375_v6 = vpop.f32.mrf.mxu1 }
 0x375   : > { %v2551_v16 = vadd.f32 %v2550_v51, %v2462_v62  ;;  %7730 = vpow2.f32 %v3081_v43  ;;  %v7727_v39 = vpop.eup %7726 }
 0x376   : > { %v2376_v40 = vadd.f32 %v2375_v6, %v2287_v55  ;;  %2601 = vmatmul.bf16.gmra.mxu0 %v8916_v61 }
 0x377   : > { %v2975_v5 = vsub.f32 0.0, %v2551_v16  ;;  %2690 = vmatmul.bf16.gmra.mxu1 %v11463_v9  ;;  %2779 = vmatmul.bf16.gmra.mxu2 %v11464_v44  ;;  %v7487_v9 = vld [vmem:[%s11364_s5 + $0x84] sm:$0xf]  ;;  %v6860_v44 = vld [vmem:[%s11364_s5 + $0x90] sm:$0xf0] }
 0x378   : > { %2868 = vmatmul.bf16.gmra.mxu3 %v11465_v23  ;;  %v6858_v23 = vld [vmem:[%s11364_s5 + $0x80] sm:$0xf] }
 0x379   : > { %v3085_v26 = vmul.f32 1.442695, %v2975_v5 }
 0x37a   : > { %v7729_v13 = vpop.eup %7728  ;;  %v2464_v52 = vpop.f32.mrf.mxu2 }
 0x37b   : > { %7732 = vpow2.f32 %v3085_v26  ;;  %v2465_v56 = vadd.f32 %v2464_v52, %v2376_v40  ;;  %v2553_v24 = vpop.f32.mrf.mxu3  ;;  %v2288_v42 = vpop.f32.mrf.mxu0  ;;  %v9828_v10 = vpack.c.bf16 %v7729_v13, %v7727_v39  ;;  %v6863_v26 = vor.u32 %v7487_v9, %v6860_v44  ;;  %v7489_v13 = vld [vmem:[%s11364_s5 + $0x8c] sm:$0xf0]  ;;  %v7519_v52 = vld [vmem:[%s11364_s5 + $0x184] sm:$0xf]  ;;  %v6986_v44 = vld [vmem:[%s11364_s5 + $0x180] sm:$0xf] }
 0x37c   : > { %v7731_v49 = vpop.eup %7730  ;;  %v2289_v61 = vadd.f32 %v2288_v42, %v9580_v4  ;;  %v2377_v25 = vpop.f32.mrf.mxu1  ;;  %v11466_v42 = vld [vmem:[#allocation9_spill] sm:$0xff] }
 0x37d   : > { %v2554_v48 = vadd.f32 %v2553_v24, %v2465_v56  ;;  %v3165_v12 = vadd.f32 1.0, %v7731_v49  ;;  %v6988_v56 = vld [vmem:[%s11364_s5 + $0x190] sm:$0xf0]  ;;  %v6859_v49 = vor.u32 %v7489_v13, %v6858_v23  ;;  %3856 = vmatpush.bf16.msra.mxu2 %v6863_v26  ;;  %v7521_v23 = vld [vmem:[%s11364_s5 + $0x18c] sm:$0xf0] }
 0x37e   : > { %v2378_v32 = vadd.f32 %v2377_v25, %v2289_v61  ;;  %v6991_v61 = vor.u32 %v7519_v52, %v6988_v56  ;;  %v6987_v26 = vor.u32 %v7521_v23, %v6986_v44 }
 0x37f   : > { %v2977_v43 = vsub.f32 0.0, %v2554_v48  ;;  %7734 = vrcp.f32 %v3165_v12  ;;  %v11467_v48 = vld [vmem:[#allocation10_spill] sm:$0xff]  ;;  %v11469_v12 = vld [vmem:[#allocation23_spill] sm:$0xff]  ;;  %3678 = vmatpush.bf16.msra.mxu0 %v6859_v49 }
 0x380   : > { %3945 = vmatpush.bf16.msra.mxu3 %v6991_v61  ;;  %3767 = vmatpush.bf16.msra.mxu1 %v6987_v26 }
 0x381   : > { %v7733_v50 = vpop.eup %7732  ;;  %v3089_v51 = vmul.f32 1.442695, %v2977_v43 }
 0x382   : > { %v3167_v62 = vadd.f32 1.0, %v7733_v50  ;;  %v2466_v58 = vpop.f32.mrf.mxu2 }
 0x383   : > { %v2467_v55 = vadd.f32 %v2466_v58, %v2378_v32  ;;  %v2555_v6 = vpop.f32.mrf.mxu3  ;;  %v2291_v16 = vpop.f32.mrf.mxu0  ;;  %v11468_v32 = vld [vmem:[#allocation22_spill] sm:$0xff] }
 0x384   : > { %7736 = vrcp.f32 %v3167_v62  ;;  %v2292_v40 = vadd.f32 %v2291_v16, %v9580_v4  ;;  %v2380_v5 = vpop.f32.mrf.mxu1 }
 0x385   : > { %v2556_v39 = vadd.f32 %v2555_v6, %v2467_v55  ;;  %7738 = vpow2.f32 %v3089_v51  ;;  %v7735_v43 = vpop.eup %7734 }
 0x386   : > { %v2381_v24 = vadd.f32 %v2380_v5, %v2292_v40  ;;  %2606 = vmatmul.bf16.gmra.mxu0 %v11466_v42 }
 0x387   : > { %v2979_v25 = vsub.f32 0.0, %v2556_v39  ;;  %2695 = vmatmul.bf16.gmra.mxu1 %v11467_v48  ;;  %2784 = vmatmul.bf16.gmra.mxu2 %v11468_v32 }
 0x388   : > { %2873 = vmatmul.bf16.gmra.mxu3 %v11469_v12 }
 0x389   : > { %v3093_v50 = vmul.f32 1.442695, %v2979_v25 }
 0x38a   : > { %v7737_v62 = vpop.eup %7736  ;;  %v2469_v58 = vpop.f32.mrf.mxu2 }
 0x38b   : > { %7740 = vpow2.f32 %v3093_v50  ;;  %v2470_v51 = vadd.f32 %v2469_v58, %v2381_v24  ;;  %v2558_v55 = vpop.f32.mrf.mxu3  ;;  %v2293_v6 = vpop.f32.mrf.mxu0  ;;  %v9854_v16 = vpack.c.bf16 %v7737_v62, %v7735_v43  ;;  %v11470_v58 = vld [vmem:[#allocation11_spill] sm:$0xff] }
 0x38c   : > { %v7739_v40 = vpop.eup %7738  ;;  %v2294_v5 = vadd.f32 %v2293_v6, %v9580_v4  ;;  %v2382_v9 = vpop.f32.mrf.mxu1  ;;  %v11472_v6 = vld [vmem:[#allocation24_spill] sm:$0xff] }
 0x38d   : > { %v2559_v39 = vadd.f32 %v2558_v55, %v2470_v51  ;;  %v3169_v52 = vadd.f32 1.0, %v7739_v40  ;;  %v11471_v55 = vld [vmem:[#allocation12_spill] sm:$0xff]  ;;  %v11473_v40 = vld [vmem:[#allocation25_spill] sm:$0xff] }
 0x38e   : > { %v2383_v13 = vadd.f32 %v2382_v9, %v2294_v5 }
 0x38f   : > { %v2981_v56 = vsub.f32 0.0, %v2559_v39  ;;  %7742 = vrcp.f32 %v3169_v52 }
 0x391   : > { %v7741_v24 = vpop.eup %7740  ;;  %v3097_v49 = vmul.f32 1.442695, %v2981_v56 }
 0x392   : > { %v3171_v42 = vadd.f32 1.0, %v7741_v24  ;;  %v2471_v61 = vpop.f32.mrf.mxu2 }
 0x393   : > { %v2472_v25 = vadd.f32 %v2471_v61, %v2383_v13  ;;  %v2560_v48 = vpop.f32.mrf.mxu3  ;;  %v2296_v32 = vpop.f32.mrf.mxu0 }
 0x394   : > { %7744 = vrcp.f32 %v3171_v42  ;;  %v2297_v12 = vadd.f32 %v2296_v32, %v9580_v4  ;;  %v2385_v43 = vpop.f32.mrf.mxu1 }
 0x395   : > { %v2561_v50 = vadd.f32 %v2560_v48, %v2472_v25  ;;  %7746 = vpow2.f32 %v3097_v49  ;;  %v7743_v5 = vpop.eup %7742 }
 0x396   : > { %v2386_v62 = vadd.f32 %v2385_v43, %v2297_v12  ;;  %2611 = vmatmul.bf16.gmra.mxu0 %v11470_v58 }
 0x397   : > { %v2983_v51 = vsub.f32 0.0, %v2561_v50  ;;  %2700 = vmatmul.bf16.gmra.mxu1 %v11471_v55  ;;  %2789 = vmatmul.bf16.gmra.mxu2 %v11472_v6 }
 0x398   : > { %2878 = vmatmul.bf16.gmra.mxu3 %v11473_v40  ;;  %v7483_v40 = vld [vmem:[%s11364_s5 + $0x64] sm:$0xf] }
 0x399   : > { %v3101_v9 = vmul.f32 1.442695, %v2983_v51 }
 0x39a   : > { %v7745_v44 = vpop.eup %7744  ;;  %v2474_v23 = vpop.f32.mrf.mxu2 }
 0x39b   : > { %7748 = vpow2.f32 %v3101_v9  ;;  %v2475_v39 = vadd.f32 %v2474_v23, %v2386_v62  ;;  %v2563_v26 = vpop.f32.mrf.mxu3  ;;  %v2298_v13 = vpop.f32.mrf.mxu0  ;;  %v9868_v52 = vpack.c.bf16 %v7745_v44, %v7743_v5  ;;  %v6844_v5 = vld [vmem:[%s11364_s5 + $0x70] sm:$0xf0]  ;;  %v6842_v9 = vld [vmem:[%s11364_s5 + $0x60] sm:$0xf] }
 0x39c   : > { %v7747_v56 = vpop.eup %7746  ;;  %v2299_v24 = vadd.f32 %v2298_v13, %v9580_v4  ;;  %v2387_v42 = vpop.f32.mrf.mxu1  ;;  %v6847_v23 = vor.u32 %v7483_v40, %v6844_v5  ;;  %v6972_v13 = vld [vmem:[%s11364_s5 + $0x170] sm:$0xf0] }
 0x39d   : > { %v2564_v49 = vadd.f32 %v2563_v26, %v2475_v39  ;;  %v3173_v25 = vadd.f32 1.0, %v7747_v56  ;;  %v7485_v39 = vld [vmem:[%s11364_s5 + $0x6c] sm:$0xf0]  ;;  %v7515_v26 = vld [vmem:[%s11364_s5 + $0x164] sm:$0xf] }
 0x39e   : > { %v2388_v61 = vadd.f32 %v2387_v42, %v2299_v24  ;;  %v6843_v24 = vor.u32 %v7485_v39, %v6842_v9  ;;  %v6975_v42 = vor.u32 %v7515_v26, %v6972_v13  ;;  %3857 = vmatpush.bf16.msra.mxu2 %v6847_v23  ;;  %v8155_v23 = vld [vmem:[%s11363_s4] sm:$0x3] }
 0x39f   : > { %v2985_v48 = vsub.f32 0.0, %v2564_v49  ;;  %7750 = vrcp.f32 %v3173_v25 }
 0x3a0   : > { %3679 = vmatpush.bf16.msra.mxu0 %v6843_v24  ;;  %3946 = vmatpush.bf16.msra.mxu3 %v6975_v42 }
 0x3a1   : > { %v7749_v32 = vpop.eup %7748  ;;  %v3105_v43 = vmul.f32 1.442695, %v2985_v48 }
 0x3a2   : > { %v3175_v12 = vadd.f32 1.0, %v7749_v32  ;;  %v2476_v50 = vpop.f32.mrf.mxu2 }
 0x3a3   : > { %v2477_v58 = vadd.f32 %v2476_v50, %v2388_v61  ;;  %v2565_v51 = vpop.f32.mrf.mxu3  ;;  %v2301_v62 = vpop.f32.mrf.mxu0  ;;  %v11474_v61 = vld [vmem:[#allocation26_spill] sm:$0xff] }
 0x3a4   : > { %7752 = vrcp.f32 %v3175_v12  ;;  %v2302_v55 = vadd.f32 %v2301_v62, %v9580_v4  ;;  %v2390_v6 = vpop.f32.mrf.mxu1 }
 0x3a5   : > { %v2566_v44 = vadd.f32 %v2565_v51, %v2477_v58  ;;  %7754 = vpow2.f32 %v3105_v43  ;;  %v7751_v25 = vpop.eup %7750 }
 0x3a6   : > { %v2391_v56 = vadd.f32 %v2390_v6, %v2302_v55  ;;  %2616 = vmatmul.bf16.gmra.mxu0 %v8994_v14  ;;  %v7517_v55 = vld [vmem:[%s11364_s5 + $0x16c] sm:$0xf0] }
 0x3a7   : > { %v2987_v49 = vsub.f32 0.0, %v2566_v44  ;;  %2705 = vmatmul.bf16.gmra.mxu1 %v9017_v47  ;;  %2794 = vmatmul.bf16.gmra.mxu2 %v9385_v21  ;;  %v6970_v21 = vld [vmem:[%s11364_s5 + $0x160] sm:$0xf] }
 0x3a8   : > { %2883 = vmatmul.bf16.gmra.mxu3 %v11474_v61  ;;  %v6971_v40 = vor.u32 %v7517_v55, %v6970_v21 }
 0x3a9   : > { %v3109_v48 = vmul.f32 1.442695, %v2987_v49 }
 0x3aa   : > { %v7753_v32 = vpop.eup %7752  ;;  %v2479_v12 = vpop.f32.mrf.mxu2  ;;  %3768 = vmatpush.bf16.msra.mxu1 %v6971_v40 }
 0x3ab   : > { %7756 = vpow2.f32 %v3109_v48  ;;  %v2480_v43 = vadd.f32 %v2479_v12, %v2391_v56  ;;  %v2568_v50 = vpop.f32.mrf.mxu3  ;;  %v2303_v14 = vpop.f32.mrf.mxu0  ;;  %v9894_v58 = vpack.c.bf16 %v7753_v32, %v7751_v25 }
 0x3ac   : > { %v7755_v51 = vpop.eup %7754  ;;  %v2304_v47 = vadd.f32 %v2303_v14, %v9580_v4  ;;  %v2392_v62 = vpop.f32.mrf.mxu1  ;;  %v9906_v4 = vperm.slane %v8155_v23, 1 }
 0x3ad   : > { %v2569_v6 = vadd.f32 %v2568_v50, %v2480_v43  ;;  %v3177_v9 = vadd.f32 1.0, %v7755_v51 }
 0x3ae   : > { %v2393_v5 = vadd.f32 %v2392_v62, %v2304_v47 }
 0x3af   : > { %v2989_v44 = vsub.f32 0.0, %v2569_v6  ;;  %7758 = vrcp.f32 %v3177_v9 }
 0x3b1   : > { %v7757_v39 = vpop.eup %7756  ;;  %v3113_v13 = vmul.f32 1.442695, %v2989_v44 }
 0x3b2   : > { %v3179_v26 = vadd.f32 1.0, %v7757_v39  ;;  %v2481_v56 = vpop.f32.mrf.mxu2 }
 0x3b3   : > { %v2482_v24 = vadd.f32 %v2481_v56, %v2393_v5  ;;  %v2570_v42 = vpop.f32.mrf.mxu3  ;;  %v2582_v49 = vpop.f32.mrf.mxu0 }
 0x3b4   : > { %7760 = vrcp.f32 %v3179_v26  ;;  %v2583_v61 = vadd.f32 %v2582_v49, %v9906_v4  ;;  %v2671_v25 = vpop.f32.mrf.mxu1  ;;  %v7479_v49 = vld [vmem:[%s11364_s5 + $0x44] sm:$0xf] }
 0x3b5   : > { %v2571_v48 = vadd.f32 %v2570_v42, %v2482_v24  ;;  %7762 = vpow2.f32 %v3113_v13  ;;  %v7759_v43 = vpop.eup %7758 }
 0x3b6   : > { %v2672_v32 = vadd.f32 %v2671_v25, %v2583_v61  ;;  %2621 = vmatmul.bf16.gmra.mxu0 %v9030_v41  ;;  %v6828_v61 = vld [vmem:[%s11364_s5 + $0x50] sm:$0xf0]  ;;  %v6826_v25 = vld [vmem:[%s11364_s5 + $0x40] sm:$0xf] }
 0x3b7   : > { %v2991_v12 = vsub.f32 0.0, %v2571_v48  ;;  %2710 = vmatmul.bf16.gmra.mxu1 %v9038_v57  ;;  %2799 = vmatmul.bf16.gmra.mxu2 %v9421_v7 }
 0x3b8   : > { %2888 = vmatmul.bf16.gmra.mxu3 %v9429_v17 }
 0x3b9   : > { %v3117_v50 = vmul.f32 1.442695, %v2991_v12  ;;  %v7481_v12 = vld [vmem:[%s11364_s5 + $0x4c] sm:$0xf0] }
 0x3ba   : > { %v7761_v14 = vpop.eup %7760  ;;  %v2760_v51 = vpop.f32.mrf.mxu2 }
 0x3bb   : > { %7764 = vpow2.f32 %v3117_v50  ;;  %v2761_v47 = vadd.f32 %v2760_v51, %v2672_v32  ;;  %v2849_v62 = vpop.f32.mrf.mxu3  ;;  %v2584_v21 = vpop.f32.mrf.mxu0  ;;  %v9913_v55 = vpack.c.bf16 %v7761_v14, %v7759_v43  ;;  %v6831_v32 = vor.u32 %v7479_v49, %v6828_v61  ;;  %v7511_v43 = vld [vmem:[%s11364_s5 + $0x144] sm:$0xf]  ;;  %v6956_v50 = vld [vmem:[%s11364_s5 + $0x150] sm:$0xf0] }
 0x3bc   : > { %v7763_v6 = vpop.eup %7762  ;;  %v2585_v41 = vadd.f32 %v2584_v21, %v9906_v4  ;;  %v2673_v40 = vpop.f32.mrf.mxu1  ;;  %v6827_v51 = vor.u32 %v7481_v12, %v6826_v25  ;;  %v11475_v21 = vld [vmem:[#allocation13_spill] sm:$0xff] }
 0x3bd   : > { %v2850_v5 = vadd.f32 %v2849_v62, %v2761_v47  ;;  %v3181_v9 = vadd.f32 1.0, %v7763_v6  ;;  %v6959_v47 = vor.u32 %v7511_v43, %v6956_v50  ;;  %v11476_v6 = vld [vmem:[#allocation27_spill] sm:$0xff]  ;;  %3858 = vmatpush.bf16.msra.mxu2 %v6831_v32 }
 0x3be   : > { %v2674_v57 = vadd.f32 %v2673_v40, %v2585_v41  ;;  %v11477_v41 = vld [vmem:[#allocation28_spill] sm:$0xff]  ;;  %3680 = vmatpush.bf16.msra.mxu0 %v6827_v51 }
 0x3bf   : > { %v2930_v7 = vsub.f32 0.0, %v2850_v5  ;;  %7766 = vrcp.f32 %v3181_v9  ;;  %3947 = vmatpush.bf16.msra.mxu3 %v6959_v47 }
 0x3c1   : > { %v7765_v44 = vpop.eup %7764  ;;  %v2995_v23 = vmul.f32 1.442695, %v2930_v7 }
 0x3c2   : > { %v3183_v17 = vadd.f32 1.0, %v7765_v44  ;;  %v2762_v39 = vpop.f32.mrf.mxu2 }
 0x3c3   : > { %v2763_v26 = vadd.f32 %v2762_v39, %v2674_v57  ;;  %v2851_v13 = vpop.f32.mrf.mxu3  ;;  %v2587_v56 = vpop.f32.mrf.mxu0 }
 0x3c4   : > { %7768 = vrcp.f32 %v3183_v17  ;;  %v2588_v24 = vadd.f32 %v2587_v56, %v9906_v4  ;;  %v2676_v42 = vpop.f32.mrf.mxu1  ;;  %v7513_v56 = vld [vmem:[%s11364_s5 + $0x14c] sm:$0xf0] }
 0x3c5   : > { %v2852_v48 = vadd.f32 %v2851_v13, %v2763_v26  ;;  %7770 = vpow2.f32 %v2995_v23  ;;  %v7767_v40 = vpop.eup %7766  ;;  %v6954_v13 = vld [vmem:[%s11364_s5 + $0x140] sm:$0xf] }
 0x3c6   : > { %v2677_v14 = vadd.f32 %v2676_v42, %v2588_v24  ;;  %2626 = vmatmul.bf16.gmra.mxu0 %v9042_v45  ;;  %v6955_v42 = vor.u32 %v7513_v56, %v6954_v13 }
 0x3c7   : > { %v2932_v62 = vsub.f32 0.0, %v2852_v48  ;;  %2715 = vmatmul.bf16.gmra.mxu1 %v11475_v21  ;;  %2804 = vmatmul.bf16.gmra.mxu2 %v11476_v6 }
 0x3c8   : > { %2893 = vmatmul.bf16.gmra.mxu3 %v11477_v41  ;;  %3769 = vmatpush.bf16.msra.mxu1 %v6955_v42 }
 0x3c9   : > { %v2999_v5 = vmul.f32 1.442695, %v2932_v62 }
 0x3ca   : > { %v7769_v57 = vpop.eup %7768  ;;  %v2765_v9 = vpop.f32.mrf.mxu2 }
 0x3cb   : > { %7772 = vpow2.f32 %v2999_v5  ;;  %v2766_v7 = vadd.f32 %v2765_v9, %v2677_v14  ;;  %v2854_v44 = vpop.f32.mrf.mxu3  ;;  %v2589_v45 = vpop.f32.mrf.mxu0  ;;  %v9939_v17 = vpack.c.bf16 %v7769_v57, %v7767_v40 }
 0x3cc   : > { %v7771_v23 = vpop.eup %7770  ;;  %v2590_v39 = vadd.f32 %v2589_v45, %v9906_v4  ;;  %v2678_v26 = vpop.f32.mrf.mxu1 }
 0x3cd   : > { %v2855_v24 = vadd.f32 %v2854_v44, %v2766_v7  ;;  %v3122_v61 = vadd.f32 1.0, %v7771_v23 }
 0x3ce   : > { %v2679_v49 = vadd.f32 %v2678_v26, %v2590_v39 }
 0x3cf   : > { %v2934_v25 = vsub.f32 0.0, %v2855_v24  ;;  %7774 = vrcp.f32 %v3122_v61 }
 0x3d1   : > { %v7773_v48 = vpop.eup %7772  ;;  %v3003_v12 = vmul.f32 1.442695, %v2934_v25 }
 0x3d2   : > { %v3124_v32 = vadd.f32 1.0, %v7773_v48  ;;  %v2767_v43 = vpop.f32.mrf.mxu2 }
 0x3d3   : > { %v2768_v50 = vadd.f32 %v2767_v43, %v2679_v49  ;;  %v2856_v14 = vpop.f32.mrf.mxu3  ;;  %v2592_v51 = vpop.f32.mrf.mxu0  ;;  %v7475_v43 = vld [vmem:[%s11364_s5 + $0x24] sm:$0xf] }
 0x3d4   : > { %7776 = vrcp.f32 %v3124_v32  ;;  %v2593_v47 = vadd.f32 %v2592_v51, %v9906_v4  ;;  %v2681_v62 = vpop.f32.mrf.mxu1 }
 0x3d5   : > { %v2857_v21 = vadd.f32 %v2856_v14, %v2768_v50  ;;  %7778 = vpow2.f32 %v3003_v12  ;;  %v7775_v40 = vpop.eup %7774  ;;  %v6812_v50 = vld [vmem:[%s11364_s5 + $0x30] sm:$0xf0]  ;;  %v6810_v14 = vld [vmem:[%s11364_s5 + $0x20] sm:$0xf] }
 0x3d6   : > { %v2682_v6 = vadd.f32 %v2681_v62, %v2593_v47  ;;  %2631 = vmatmul.bf16.gmra.mxu0 %v9078_v31  ;;  %v6815_v47 = vor.u32 %v7475_v43, %v6812_v50  ;;  %v7477_v62 = vld [vmem:[%s11364_s5 + $0x2c] sm:$0xf0] }
 0x3d7   : > { %v2936_v41 = vsub.f32 0.0, %v2857_v21  ;;  %2720 = vmatmul.bf16.gmra.mxu1 %v9086_v29  ;;  %2809 = vmatmul.bf16.gmra.mxu2 %v9469_v3  ;;  %v7507_v21 = vld [vmem:[%s11364_s5 + $0x124] sm:$0xf] }
 0x3d8   : > { %2898 = vmatmul.bf16.gmra.mxu3 %v9477_v18  ;;  %3859 = vmatpush.bf16.msra.mxu2 %v6815_v47 }
 0x3d9   : > { %v3007_v5 = vmul.f32 1.442695, %v2936_v41 }
 0x3da   : > { %v7777_v57 = vpop.eup %7776  ;;  %v2770_v9 = vpop.f32.mrf.mxu2 }
 0x3db   : > { %7780 = vpow2.f32 %v3007_v5  ;;  %v2771_v7 = vadd.f32 %v2770_v9, %v2682_v6  ;;  %v2859_v44 = vpop.f32.mrf.mxu3  ;;  %v2594_v45 = vpop.f32.mrf.mxu0  ;;  %v9953_v23 = vpack.c.bf16 %v7777_v57, %v7775_v40  ;;  %v6940_v6 = vld [vmem:[%s11364_s5 + $0x130] sm:$0xf0]  ;;  %v6811_v40 = vor.u32 %v7477_v62, %v6810_v14 }
 0x3dc   : > { %v7779_v39 = vpop.eup %7778  ;;  %v2595_v31 = vadd.f32 %v2594_v45, %v9906_v4  ;;  %v2683_v26 = vpop.f32.mrf.mxu1  ;;  %v6943_v5 = vor.u32 %v7507_v21, %v6940_v6 }
 0x3dd   : > { %v2860_v13 = vadd.f32 %v2859_v44, %v2771_v7  ;;  %v3126_v56 = vadd.f32 1.0, %v7779_v39  ;;  %3681 = vmatpush.bf16.msra.mxu0 %v6811_v40 }
 0x3de   : > { %v2684_v29 = vadd.f32 %v2683_v26, %v2595_v31  ;;  %3948 = vmatpush.bf16.msra.mxu3 %v6943_v5 }
 0x3df   : > { %v2938_v3 = vsub.f32 0.0, %v2860_v13  ;;  %7782 = vrcp.f32 %v3126_v56 }
 0x3e1   : > { %v7781_v24 = vpop.eup %7780  ;;  %v3011_v42 = vmul.f32 1.442695, %v2938_v3 }
 0x3e2   : > { %v3128_v18 = vadd.f32 1.0, %v7781_v24  ;;  %v2772_v49 = vpop.f32.mrf.mxu2 }
 0x3e3   : > { %v2773_v61 = vadd.f32 %v2772_v49, %v2684_v29  ;;  %v2861_v25 = vpop.f32.mrf.mxu3  ;;  %v2597_v48 = vpop.f32.mrf.mxu0 }
 0x3e4   : > { %7784 = vrcp.f32 %v3128_v18  ;;  %v2598_v32 = vadd.f32 %v2597_v48, %v9906_v4  ;;  %v2686_v12 = vpop.f32.mrf.mxu1 }
 0x3e5   : > { %v2862_v51 = vadd.f32 %v2861_v25, %v2773_v61  ;;  %7786 = vpow2.f32 %v3011_v42  ;;  %v7783_v9 = vpop.eup %7782 }
 0x3e6   : > { %v2687_v41 = vadd.f32 %v2686_v12, %v2598_v32  ;;  %2636 = vmatmul.bf16.gmra.mxu0 %v9090_v37 }
 0x3e7   : > { %v2940_v57 = vsub.f32 0.0, %v2862_v51  ;;  %2725 = vmatmul.bf16.gmra.mxu1 %v9113_v33  ;;  %2814 = vmatmul.bf16.gmra.mxu2 %v9481_v20  ;;  %v6938_v20 = vld [vmem:[%s11364_s5 + $0x120] sm:$0xf] }
 0x3e8   : > { %2903 = vmatmul.bf16.gmra.mxu3 %v9504_v60  ;;  %v7509_v60 = vld [vmem:[%s11364_s5 + $0x12c] sm:$0xf0] }
 0x3e9   : > { %v3015_v7 = vmul.f32 1.442695, %v2940_v57  ;;  %v6939_v3 = vor.u32 %v7509_v60, %v6938_v20 }
 0x3ea   : > { %v7785_v44 = vpop.eup %7784  ;;  %v2775_v45 = vpop.f32.mrf.mxu2 }
 0x3eb   : > { %7788 = vpow2.f32 %v3015_v7  ;;  %v2776_v39 = vadd.f32 %v2775_v45, %v2687_v41  ;;  %v2864_v31 = vpop.f32.mrf.mxu3  ;;  %v2599_v37 = vpop.f32.mrf.mxu0  ;;  %v9979_v26 = vpack.c.bf16 %v7785_v44, %v7783_v9  ;;  %3770 = vmatpush.bf16.msra.mxu1 %v6939_v3 }
 0x3ec   : > { %v7787_v13 = vpop.eup %7786  ;;  %v2600_v33 = vadd.f32 %v2599_v37, %v9906_v4  ;;  %v2688_v29 = vpop.f32.mrf.mxu1 }
 0x3ed   : > { %v2865_v56 = vadd.f32 %v2864_v31, %v2776_v39  ;;  %v3130_v18 = vadd.f32 1.0, %v7787_v13 }
 0x3ee   : > { %v2689_v24 = vadd.f32 %v2688_v29, %v2600_v33 }
 0x3ef   : > { %v2942_v42 = vsub.f32 0.0, %v2865_v56  ;;  %7790 = vrcp.f32 %v3130_v18  ;;  %v6796_v18 = vld [vmem:[%s11364_s5 + $0x10] sm:$0xf0] }
 0x3f1   : > { %v7789_v49 = vpop.eup %7788  ;;  %v3019_v25 = vmul.f32 1.442695, %v2942_v42  ;;  %v6794_v42 = vld [vmem:[%s11364_s5] sm:$0xf] }
 0x3f2   : > { %v3132_v61 = vadd.f32 1.0, %v7789_v49  ;;  %v2777_v48 = vpop.f32.mrf.mxu2 }
 0x3f3   : > { %v2778_v32 = vadd.f32 %v2777_v48, %v2689_v24  ;;  %v2866_v12 = vpop.f32.mrf.mxu3  ;;  %v2602_v43 = vpop.f32.mrf.mxu0  ;;  %v7471_v24 = vld [vmem:[%s11364_s5 + $0x4] sm:$0xf] }
 0x3f4   : > { %7792 = vrcp.f32 %v3132_v61  ;;  %v2603_v50 = vadd.f32 %v2602_v43, %v9906_v4  ;;  %v2691_v14 = vpop.f32.mrf.mxu1  ;;  %v6799_v61 = vor.u32 %v7471_v24, %v6796_v18  ;;  %v7503_v48 = vld [vmem:[%s11364_s5 + $0x104] sm:$0xf] }
 0x3f5   : > { %v2867_v51 = vadd.f32 %v2866_v12, %v2778_v32  ;;  %7794 = vpow2.f32 %v3019_v25  ;;  %v7791_v21 = vpop.eup %7790  ;;  %v7473_v25 = vld [vmem:[%s11364_s5 + $0xc] sm:$0xf0]  ;;  %v6924_v32 = vld [vmem:[%s11364_s5 + $0x110] sm:$0xf0] }
 0x3f6   : > { %v2692_v47 = vadd.f32 %v2691_v14, %v2603_v50  ;;  %2641 = vmatmul.bf16.gmra.mxu0 %v9126_v1  ;;  %v6795_v43 = vor.u32 %v7473_v25, %v6794_v42  ;;  %v6927_v50 = vor.u32 %v7503_v48, %v6924_v32  ;;  %3860 = vmatpush.bf16.msra.mxu2 %v6799_v61 }
 0x3f7   : > { %v2944_v62 = vsub.f32 0.0, %v2867_v51  ;;  %2730 = vmatmul.bf16.gmra.mxu1 %v9134_v54  ;;  %2819 = vmatmul.bf16.gmra.mxu2 %v9517_v0 }
 0x3f8   : > { %2908 = vmatmul.bf16.gmra.mxu3 %v9525_v11  ;;  %3682 = vmatpush.bf16.msra.mxu0 %v6795_v43 }
 0x3f9   : > { %v3023_v6 = vmul.f32 1.442695, %v2944_v62  ;;  %3949 = vmatpush.bf16.msra.mxu3 %v6927_v50 }
 0x3fa   : > { %v7793_v41 = vpop.eup %7792  ;;  %v2780_v40 = vpop.f32.mrf.mxu2 }
 0x3fb   : > { %7796 = vpow2.f32 %v3023_v6  ;;  %v2781_v5 = vadd.f32 %v2780_v40, %v2692_v47  ;;  %v2869_v57 = vpop.f32.mrf.mxu3  ;;  %v2604_v9 = vpop.f32.mrf.mxu0  ;;  %v9993_v7 = vpack.c.bf16 %v7793_v41, %v7791_v21 }
 0x3fc   : > { %v7795_v44 = vpop.eup %7794  ;;  %v2605_v1 = vadd.f32 %v2604_v9, %v9906_v4  ;;  %v2693_v45 = vpop.f32.mrf.mxu1 }
 0x3fd   : > { %v2870_v39 = vadd.f32 %v2869_v57, %v2781_v5  ;;  %v3134_v31 = vadd.f32 1.0, %v7795_v44 }
 0x3fe   : > { %v2694_v54 = vadd.f32 %v2693_v45, %v2605_v1 }
 0x3ff   : > { %v2946_v0 = vsub.f32 0.0, %v2870_v39  ;;  %7798 = vrcp.f32 %v3134_v31 }
 0x401   : > { %v7797_v37 = vpop.eup %7796  ;;  %v3027_v13 = vmul.f32 1.442695, %v2946_v0 }
 0x402   : > { %v3136_v11 = vadd.f32 1.0, %v7797_v37  ;;  %v2782_v33 = vpop.f32.mrf.mxu2 }
 0x403   : > { %v2783_v29 = vadd.f32 %v2782_v33, %v2694_v54  ;;  %v2871_v20 = vpop.f32.mrf.mxu3  ;;  %v2607_v60 = vpop.f32.mrf.mxu0 }
 0x404   : > { %7800 = vrcp.f32 %v3136_v11  ;;  %v2608_v56 = vadd.f32 %v2607_v60, %v9906_v4  ;;  %v2696_v3 = vpop.f32.mrf.mxu1 }
 0x405   : > { %v2872_v49 = vadd.f32 %v2871_v20, %v2783_v29  ;;  %7802 = vpow2.f32 %v3027_v13  ;;  %v7799_v51 = vpop.eup %7798 }
 0x406   : > { %v2697_v12 = vadd.f32 %v2696_v3, %v2608_v56  ;;  %2646 = vmatmul.bf16.gmra.mxu0 %v9138_v30 }
 0x407   : > { %v2948_v14 = vsub.f32 0.0, %v2872_v49  ;;  %2735 = vmatmul.bf16.gmra.mxu1 %v9161_v59  ;;  %2824 = vmatmul.bf16.gmra.mxu2 %v9529_v8  ;;  %v6922_v8 = vld [vmem:[%s11364_s5 + $0x100] sm:$0xf] }
 0x408   : > { %2913 = vmatmul.bf16.gmra.mxu3 %v9552_v34  ;;  %v7505_v34 = vld [vmem:[%s11364_s5 + $0x10c] sm:$0xf0] }
 0x409   : > { %v3031_v47 = vmul.f32 1.442695, %v2948_v14  ;;  %v6923_v44 = vor.u32 %v7505_v34, %v6922_v8  ;;  %v6914_v8 = vld [vmem:[%s11364_s5 + $0xe8] sm:$0xf] }
 0x40a   : > { %v7801_v62 = vpop.eup %7800  ;;  %v2785_v21 = vpop.f32.mrf.mxu2 }
 0x40b   : > { %7804 = vpow2.f32 %v3031_v47  ;;  %v2786_v6 = vadd.f32 %v2785_v21, %v2697_v12  ;;  %v2874_v41 = vpop.f32.mrf.mxu3  ;;  %v2609_v30 = vpop.f32.mrf.mxu0  ;;  %v10019_v40 = vpack.c.bf16 %v7801_v62, %v7799_v51  ;;  %3771 = vmatpush.bf16.msra.mxu1 %v6923_v44  ;;  %v7502_v44 = vld [vmem:[%s11364_s5 + $0xf4] sm:$0xf0] }
 0x40c   : > { %v7803_v5 = vpop.eup %7802  ;;  %v2610_v59 = vadd.f32 %v2609_v30, %v9906_v4  ;;  %v2698_v57 = vpop.f32.mrf.mxu1 }
 0x40d   : > { %v2875_v9 = vadd.f32 %v2874_v41, %v2786_v6  ;;  %v3138_v45 = vadd.f32 1.0, %v7803_v5 }
 0x40e   : > { %v2699_v1 = vadd.f32 %v2698_v57, %v2610_v59  ;;  %v7500_v59 = vld [vmem:[%s11364_s5 + $0xec] sm:$0xf]  ;;  %v6916_v57 = vld [vmem:[%s11364_s5 + $0xf8] sm:$0xf0] }
 0x40f   : > { %v2950_v39 = vsub.f32 0.0, %v2875_v9  ;;  %7806 = vrcp.f32 %v3138_v45  ;;  %v6919_v9 = vor.u32 %v7500_v59, %v6916_v57  ;;  %v7044_v45 = vld [vmem:[%s11364_s5 + $0x1f8] sm:$0xf0] }
 0x411   : > { %v7805_v54 = vpop.eup %7804  ;;  %v3035_v0 = vmul.f32 1.442695, %v2950_v39  ;;  %4209 = vmatpush.bf16.msrb.mxu2 %v6919_v9 }
 0x412   : > { %v3140_v31 = vadd.f32 1.0, %v7805_v54  ;;  %v2787_v37 = vpop.f32.mrf.mxu2  ;;  %v6915_v54 = vor.u32 %v7502_v44, %v6914_v8 }
 0x413   : > { %v2788_v11 = vadd.f32 %v2787_v37, %v2699_v1  ;;  %v2876_v13 = vpop.f32.mrf.mxu3  ;;  %v2612_v33 = vpop.f32.mrf.mxu0  ;;  %v7532_v1 = vld [vmem:[%s11364_s5 + $0x1ec] sm:$0xf] }
 0x414   : > { %7808 = vrcp.f32 %v3140_v31  ;;  %v2613_v29 = vadd.f32 %v2612_v33, %v9906_v4  ;;  %v2701_v20 = vpop.f32.mrf.mxu1  ;;  %v7047_v31 = vor.u32 %v7532_v1, %v7044_v45  ;;  %4031 = vmatpush.bf16.msrb.mxu0 %v6915_v54 }
 0x415   : > { %v2877_v60 = vadd.f32 %v2876_v13, %v2788_v11  ;;  %7810 = vpow2.f32 %v3035_v0  ;;  %v7807_v24 = vpop.eup %7806 }
 0x416   : > { %v2702_v56 = vadd.f32 %v2701_v20, %v2613_v29  ;;  %2651 = vmatmul.bf16.gmra.mxu0 %v9174_v19  ;;  %4298 = vmatpush.bf16.msrb.mxu3 %v7047_v31 }
 0x417   : > { %v2952_v3 = vsub.f32 0.0, %v2877_v60  ;;  %2740 = vmatmul.bf16.gmra.mxu1 %v9182_v36  ;;  %2829 = vmatmul.bf16.gmra.mxu2 %v9559_v63 }
 0x418   : > { %2918 = vmatmul.bf16.gmra.mxu3 %v9567_v53 }
 0x419   : > { %v3039_v18 = vmul.f32 1.442695, %v2952_v3 }
 0x41a   : > { %v7809_v42 = vpop.eup %7808  ;;  %v2790_v49 = vpop.f32.mrf.mxu2 }
 0x41b   : > { %7812 = vpow2.f32 %v3039_v18  ;;  %v2791_v61 = vadd.f32 %v2790_v49, %v2702_v56  ;;  %v2879_v25 = vpop.f32.mrf.mxu3  ;;  %v2614_v48 = vpop.f32.mrf.mxu0  ;;  %v10033_v32 = vpack.c.bf16 %v7809_v42, %v7807_v24 }
 0x41c   : > { %v7811_v12 = vpop.eup %7810  ;;  %v2615_v19 = vadd.f32 %v2614_v48, %v9906_v4  ;;  %v2703_v43 = vpop.f32.mrf.mxu1 }
 0x41d   : > { %v2880_v50 = vadd.f32 %v2879_v25, %v2791_v61  ;;  %v3142_v14 = vadd.f32 1.0, %v7811_v12 }
 0x41e   : > { %v2704_v36 = vadd.f32 %v2703_v43, %v2615_v19 }
 0x41f   : > { %v2954_v63 = vsub.f32 0.0, %v2880_v50  ;;  %7814 = vrcp.f32 %v3142_v14 }
 0x421   : > { %v7813_v51 = vpop.eup %7812  ;;  %v3043_v47 = vmul.f32 1.442695, %v2954_v63 }
 0x422   : > { %v3144_v53 = vadd.f32 1.0, %v7813_v51  ;;  %v2792_v62 = vpop.f32.mrf.mxu2 }
 0x423   : > { %v2793_v21 = vadd.f32 %v2792_v62, %v2704_v36  ;;  %v2881_v6 = vpop.f32.mrf.mxu3  ;;  %v2617_v41 = vpop.f32.mrf.mxu0 }
 0x424   : > { %7816 = vrcp.f32 %v3144_v53  ;;  %v2618_v30 = vadd.f32 %v2617_v41, %v9906_v4  ;;  %v2706_v5 = vpop.f32.mrf.mxu1 }
 0x425   : > { %v2882_v34 = vadd.f32 %v2881_v6, %v2793_v21  ;;  %7818 = vpow2.f32 %v3043_v47  ;;  %v7815_v37 = vpop.eup %7814  ;;  %v11478_v47 = vld [vmem:[#allocation29_spill] sm:$0xff] }
 0x426   : > { %v2707_v39 = vadd.f32 %v2706_v5, %v2618_v30  ;;  %2656 = vmatmul.bf16.gmra.mxu0 %v9191_v35 }
 0x427   : > { %v2956_v0 = vsub.f32 0.0, %v2882_v34  ;;  %2745 = vmatmul.bf16.gmra.mxu1 %v9216_v2  ;;  %2834 = vmatmul.bf16.gmra.mxu2 %v9582_v27  ;;  %v7042_v27 = vld [vmem:[%s11364_s5 + $0x1e8] sm:$0xf] }
 0x428   : > { %2923 = vmatmul.bf16.gmra.mxu3 %v9590_v46  ;;  %v7534_v46 = vld [vmem:[%s11364_s5 + $0x1f4] sm:$0xf0] }
 0x429   : > { %v3047_v11 = vmul.f32 1.442695, %v2956_v0  ;;  %v7043_v18 = vor.u32 %v7534_v46, %v7042_v27 }
 0x42a   : > { %v7817_v13 = vpop.eup %7816  ;;  %v2795_v33 = vpop.f32.mrf.mxu2 }
 0x42b   : > { %7820 = vpow2.f32 %v3047_v11  ;;  %v2796_v29 = vadd.f32 %v2795_v33, %v2707_v39  ;;  %v2884_v20 = vpop.f32.mrf.mxu3  ;;  %v2619_v35 = vpop.f32.mrf.mxu0  ;;  %v10059_v60 = vpack.c.bf16 %v7817_v13, %v7815_v37  ;;  %4120 = vmatpush.bf16.msrb.mxu1 %v7043_v18  ;;  %v7528_v18 = vld [vmem:[%s11364_s5 + $0x1cc] sm:$0xf] }
 0x42c   : > { %v7819_v56 = vpop.eup %7818  ;;  %v2620_v2 = vadd.f32 %v2619_v35, %v9906_v4  ;;  %v2708_v3 = vpop.f32.mrf.mxu1 }
 0x42d   : > { %v2885_v24 = vadd.f32 %v2884_v20, %v2796_v29  ;;  %v3146_v49 = vadd.f32 1.0, %v7819_v56  ;;  %v7496_v56 = vld [vmem:[%s11364_s5 + $0xcc] sm:$0xf] }
 0x42e   : > { %v2709_v42 = vadd.f32 %v2708_v3, %v2620_v2  ;;  %v6900_v2 = vld [vmem:[%s11364_s5 + $0xd8] sm:$0xf0]  ;;  %v6898_v3 = vld [vmem:[%s11364_s5 + $0xc8] sm:$0xf] }
 0x42f   : > { %v2958_v61 = vsub.f32 0.0, %v2885_v24  ;;  %7822 = vrcp.f32 %v3146_v49  ;;  %v6903_v46 = vor.u32 %v7496_v56, %v6900_v2  ;;  %v7498_v24 = vld [vmem:[%s11364_s5 + $0xd4] sm:$0xf0] }
 0x431   : > { %v7821_v25 = vpop.eup %7820  ;;  %v3051_v12 = vmul.f32 1.442695, %v2958_v61  ;;  %v11479_v61 = vld [vmem:[#allocation30_spill] sm:$0xff]  ;;  %4210 = vmatpush.bf16.msrb.mxu2 %v6903_v46 }
 0x432   : > { %v3148_v48 = vadd.f32 1.0, %v7821_v25  ;;  %v2797_v19 = vpop.f32.mrf.mxu2  ;;  %v6899_v25 = vor.u32 %v7498_v24, %v6898_v3 }
 0x433   : > { %v2798_v43 = vadd.f32 %v2797_v19, %v2709_v42  ;;  %v2886_v50 = vpop.f32.mrf.mxu3  ;;  %v2622_v36 = vpop.f32.mrf.mxu0  ;;  %v7028_v42 = vld [vmem:[%s11364_s5 + $0x1d8] sm:$0xf0] }
 0x434   : > { %7824 = vrcp.f32 %v3148_v48  ;;  %v2623_v14 = vadd.f32 %v2622_v36, %v9906_v4  ;;  %v2711_v63 = vpop.f32.mrf.mxu1  ;;  %v7031_v48 = vor.u32 %v7528_v18, %v7028_v42  ;;  %4032 = vmatpush.bf16.msrb.mxu0 %v6899_v25 }
 0x435   : > { %v2887_v51 = vadd.f32 %v2886_v50, %v2798_v43  ;;  %7826 = vpow2.f32 %v3051_v12  ;;  %v7823_v21 = vpop.eup %7822 }
 0x436   : > { %v2712_v53 = vadd.f32 %v2711_v63, %v2623_v14  ;;  %3683 = vmatmul.bf16.vlgmr.msra.gmra.mxu0 %v11478_v47  ;;  %4299 = vmatpush.bf16.msrb.mxu3 %v7031_v48 }
 0x437   : > { %v2960_v62 = vsub.f32 0.0, %v2887_v51  ;;  %3772 = vmatmul.bf16.vlgmr.msra.gmra.mxu1 %v9953_v23  ;;  %3861 = vmatmul.bf16.vlgmr.msra.gmra.mxu2 %v11478_v47 }
 0x438   : > { %3950 = vmatmul.bf16.vlgmr.msra.gmra.mxu3 %v9953_v23 }
 0x439   : > { %v3055_v6 = vmul.f32 1.442695, %v2960_v62 }
 0x43a   : > { %v7825_v41 = vpop.eup %7824  ;;  %v2800_v30 = vpop.f32.mrf.mxu2 }
 0x43b   : > { %7828 = vpow2.f32 %v3055_v6  ;;  %v2801_v5 = vadd.f32 %v2800_v30, %v2712_v53  ;;  %v2889_v59 = vpop.f32.mrf.mxu3  ;;  %v2624_v57 = vpop.f32.mrf.mxu0  ;;  %v10073_v8 = vpack.c.bf16 %v7825_v41, %v7823_v21  ;;  %v7026_v41 = vld [vmem:[%s11364_s5 + $0x1c8] sm:$0xf]  ;;  %v7530_v30 = vld [vmem:[%s11364_s5 + $0x1d4] sm:$0xf0] }
 0x43c   : > { %v7827_v34 = vpop.eup %7826  ;;  %v2625_v9 = vadd.f32 %v2624_v57, %v9906_v4  ;;  %v2713_v44 = vpop.f32.mrf.mxu1 }
 0x43d   : > { %v2890_v1 = vadd.f32 %v2889_v59, %v2801_v5  ;;  %v3150_v39 = vadd.f32 1.0, %v7827_v34  ;;  %v7027_v59 = vor.u32 %v7530_v30, %v7026_v41  ;;  %v7492_v30 = vld [vmem:[%s11364_s5 + $0xac] sm:$0xf] }
 0x43e   : > { %v2714_v45 = vadd.f32 %v2713_v44, %v2625_v9 }
 0x43f   : > { %v2962_v54 = vsub.f32 0.0, %v2890_v1  ;;  %7830 = vrcp.f32 %v3150_v39  ;;  %4121 = vmatpush.bf16.msrb.mxu1 %v7027_v59  ;;  %v6882_v59 = vld [vmem:[%s11364_s5 + $0xa8] sm:$0xf] }
 0x441   : > { %v7829_v31 = vpop.eup %7828  ;;  %v3059_v37 = vmul.f32 1.442695, %v2962_v54 }
 0x442   : > { %v3152_v0 = vadd.f32 1.0, %v7829_v31  ;;  %v2802_v11 = vpop.f32.mrf.mxu2 }
 0x443   : > { %v2803_v13 = vadd.f32 %v2802_v11, %v2714_v45  ;;  %v2891_v33 = vpop.f32.mrf.mxu3  ;;  %v2627_v29 = vpop.f32.mrf.mxu0 }
 0x444   : > { %7832 = vrcp.f32 %v3152_v0  ;;  %v2628_v20 = vadd.f32 %v2627_v29, %v9906_v4  ;;  %v2716_v35 = vpop.f32.mrf.mxu1  ;;  %v11480_v29 = vld [vmem:[#allocation31_spill] sm:$0xff] }
 0x445   : > { %v2892_v27 = vadd.f32 %v2891_v33, %v2803_v13  ;;  %7834 = vpow2.f32 %v3059_v37  ;;  %v7831_v19 = vpop.eup %7830 }
 0x446   : > { %v2717_v49 = vadd.f32 %v2716_v35, %v2628_v20  ;;  %3688 = vmatmul.bf16.gmra.mxu0 %v11479_v61 }
 0x447   : > { %v2964_v12 = vsub.f32 0.0, %v2892_v27  ;;  %3777 = vmatmul.bf16.gmra.mxu1 %v9979_v26  ;;  %3866 = vmatmul.bf16.gmra.mxu2 %v11479_v61 }
 0x448   : > { %3955 = vmatmul.bf16.gmra.mxu3 %v9979_v26 }
 0x449   : > { %v3063_v43 = vmul.f32 1.442695, %v2964_v12 }
 0x44a   : > { %v7833_v50 = vpop.eup %7832  ;;  %v2805_v36 = vpop.f32.mrf.mxu2 }
 0x44b   : > { %7836 = vpow2.f32 %v3063_v43  ;;  %v2806_v14 = vadd.f32 %v2805_v36, %v2717_v49  ;;  %v2894_v63 = vpop.f32.mrf.mxu3  ;;  %v2629_v51 = vpop.f32.mrf.mxu0  ;;  %v10099_v53 = vpack.c.bf16 %v7833_v50, %v7831_v19 }
 0x44c   : > { %v7835_v62 = vpop.eup %7834  ;;  %v2630_v21 = vadd.f32 %v2629_v51, %v9906_v4  ;;  %v2718_v6 = vpop.f32.mrf.mxu1 }
 0x44d   : > { %v2895_v5 = vadd.f32 %v2894_v63, %v2806_v14  ;;  %v3154_v34 = vadd.f32 1.0, %v7835_v62 }
 0x44e   : > { %v2719_v57 = vadd.f32 %v2718_v6, %v2630_v21 }
 0x44f   : > { %v2966_v9 = vsub.f32 0.0, %v2895_v5  ;;  %7838 = vrcp.f32 %v3154_v34  ;;  %v6884_v5 = vld [vmem:[%s11364_s5 + $0xb8] sm:$0xf0] }
 0x450   : > { %v6887_v34 = vor.u32 %v7492_v30, %v6884_v5  ;;  %v11482_v5 = vld [vmem:[#allocation33_spill] sm:$0xff] }
 0x451   : > { %v7837_v44 = vpop.eup %7836  ;;  %v3067_v45 = vmul.f32 1.442695, %v2966_v9  ;;  %v7494_v9 = vld [vmem:[%s11364_s5 + $0xb4] sm:$0xf0] }
 0x452   : > { %v3156_v1 = vadd.f32 1.0, %v7837_v44  ;;  %v2807_v39 = vpop.f32.mrf.mxu2  ;;  %v7524_v44 = vld [vmem:[%s11364_s5 + $0x1ac] sm:$0xf]  ;;  %4211 = vmatpush.bf16.msrb.mxu2 %v6887_v34 }
 0x453   : > { %v2808_v54 = vadd.f32 %v2807_v39, %v2719_v57  ;;  %v2896_v31 = vpop.f32.mrf.mxu3  ;;  %v2632_v0 = vpop.f32.mrf.mxu0  ;;  %v11481_v39 = vld [vmem:[#allocation32_spill] sm:$0xff] }
 0x454   : > { %7840 = vrcp.f32 %v3156_v1  ;;  %v2633_v37 = vadd.f32 %v2632_v0, %v9906_v4  ;;  %v2721_v11 = vpop.f32.mrf.mxu1  ;;  %v7012_v1 = vld [vmem:[%s11364_s5 + $0x1b8] sm:$0xf0] }
 0x455   : > { %v2897_v13 = vadd.f32 %v2896_v31, %v2808_v54  ;;  %7842 = vpow2.f32 %v3067_v45  ;;  %v7839_v35 = vpop.eup %7838  ;;  %v6883_v54 = vor.u32 %v7494_v9, %v6882_v59  ;;  %v7015_v31 = vor.u32 %v7524_v44, %v7012_v1 }
 0x456   : > { %v2722_v33 = vadd.f32 %v2721_v11, %v2633_v37  ;;  %3693 = vmatmul.bf16.gmra.mxu0 %v11480_v29 }
 0x457   : > { %v2968_v20 = vsub.f32 0.0, %v2897_v13  ;;  %3782 = vmatmul.bf16.gmra.mxu1 %v9993_v7  ;;  %3871 = vmatmul.bf16.gmra.mxu2 %v11480_v29 }
 0x458   : > { %3960 = vmatmul.bf16.gmra.mxu3 %v9993_v7  ;;  %4033 = vmatpush.bf16.msrb.mxu0 %v6883_v54 }
 0x459   : > { %v3071_v56 = vmul.f32 1.442695, %v2968_v20  ;;  %4300 = vmatpush.bf16.msrb.mxu3 %v7015_v31 }
 0x45a   : > { %v7841_v2 = vpop.eup %7840  ;;  %v2810_v3 = vpop.f32.mrf.mxu2 }
 0x45b   : > { %7844 = vpow2.f32 %v3071_v56  ;;  %v2811_v27 = vadd.f32 %v2810_v3, %v2722_v33  ;;  %v2899_v46 = vpop.f32.mrf.mxu3  ;;  %v2634_v24 = vpop.f32.mrf.mxu0  ;;  %v10113_v18 = vpack.c.bf16 %v7841_v2, %v7839_v35 }
 0x45c   : > { %v7843_v42 = vpop.eup %7842  ;;  %v2635_v49 = vadd.f32 %v2634_v24, %v9906_v4  ;;  %v2723_v25 = vpop.f32.mrf.mxu1  ;;  %v7010_v24 = vld [vmem:[%s11364_s5 + $0x1a8] sm:$0xf] }
 0x45d   : > { %v2900_v48 = vadd.f32 %v2899_v46, %v2811_v27  ;;  %v3158_v19 = vadd.f32 1.0, %v7843_v42  ;;  %v7526_v42 = vld [vmem:[%s11364_s5 + $0x1b4] sm:$0xf0] }
 0x45e   : > { %v2724_v12 = vadd.f32 %v2723_v25, %v2635_v49  ;;  %v7011_v25 = vor.u32 %v7526_v42, %v7010_v24 }
 0x45f   : > { %v2970_v43 = vsub.f32 0.0, %v2900_v48  ;;  %7846 = vrcp.f32 %v3158_v19 }
 0x460   : > { %4122 = vmatpush.bf16.msrb.mxu1 %v7011_v25 }
 0x461   : > { %v7845_v50 = vpop.eup %7844  ;;  %v3075_v14 = vmul.f32 1.442695, %v2970_v43 }
 0x462   : > { %v3160_v36 = vadd.f32 1.0, %v7845_v50  ;;  %v2812_v63 = vpop.f32.mrf.mxu2 }
 0x463   : > { %v2813_v51 = vadd.f32 %v2812_v63, %v2724_v12  ;;  %v2901_v62 = vpop.f32.mrf.mxu3  ;;  %v2637_v21 = vpop.f32.mrf.mxu0 }
 0x464   : > { %7848 = vrcp.f32 %v3160_v36  ;;  %v2638_v6 = vadd.f32 %v2637_v21, %v9906_v4  ;;  %v2726_v41 = vpop.f32.mrf.mxu1 }
 0x465   : > { %v2902_v57 = vadd.f32 %v2901_v62, %v2813_v51  ;;  %7850 = vpow2.f32 %v3075_v14  ;;  %v7847_v37 = vpop.eup %7846 }
 0x466   : > { %v2727_v45 = vadd.f32 %v2726_v41, %v2638_v6  ;;  %3698 = vmatmul.bf16.gmra.mxu0 %v11481_v39 }
 0x467   : > { %v2972_v0 = vsub.f32 0.0, %v2902_v57  ;;  %3787 = vmatmul.bf16.gmra.mxu1 %v10019_v40  ;;  %3876 = vmatmul.bf16.gmra.mxu2 %v11481_v39 }
 0x468   : > { %3965 = vmatmul.bf16.gmra.mxu3 %v10019_v40 }
 0x469   : > { %v3079_v11 = vmul.f32 1.442695, %v2972_v0 }
 0x46a   : > { %v7849_v13 = vpop.eup %7848  ;;  %v2815_v33 = vpop.f32.mrf.mxu2 }
 0x46b   : > { %7852 = vpow2.f32 %v3079_v11  ;;  %v2816_v20 = vadd.f32 %v2815_v33, %v2727_v45  ;;  %v2904_v35 = vpop.f32.mrf.mxu3  ;;  %v2639_v56 = vpop.f32.mrf.mxu0  ;;  %v10139_v2 = vpack.c.bf16 %v7849_v13, %v7847_v37 }
 0x46c   : > { %v7851_v3 = vpop.eup %7850  ;;  %v2640_v27 = vadd.f32 %v2639_v56, %v9906_v4  ;;  %v2728_v46 = vpop.f32.mrf.mxu1 }
 0x46d   : > { %v2905_v49 = vadd.f32 %v2904_v35, %v2816_v20  ;;  %v3162_v12 = vadd.f32 1.0, %v7851_v3 }
 0x46e   : > { %v2729_v48 = vadd.f32 %v2728_v46, %v2640_v27 }
 0x46f   : > { %v2974_v19 = vsub.f32 0.0, %v2905_v49  ;;  %7854 = vrcp.f32 %v3162_v12  ;;  %v7488_v12 = vld [vmem:[%s11364_s5 + $0x8c] sm:$0xf] }
 0x471   : > { %v7853_v43 = vpop.eup %7852  ;;  %v3083_v36 = vmul.f32 1.442695, %v2974_v19  ;;  %v6868_v19 = vld [vmem:[%s11364_s5 + $0x98] sm:$0xf0] }
 0x472   : > { %v3164_v50 = vadd.f32 1.0, %v7853_v43  ;;  %v2817_v14 = vpop.f32.mrf.mxu2  ;;  %v6866_v43 = vld [vmem:[%s11364_s5 + $0x88] sm:$0xf] }
 0x473   : > { %v2818_v63 = vadd.f32 %v2817_v14, %v2729_v48  ;;  %v2906_v51 = vpop.f32.mrf.mxu3  ;;  %v2642_v62 = vpop.f32.mrf.mxu0  ;;  %v7490_v14 = vld [vmem:[%s11364_s5 + $0x94] sm:$0xf0] }
 0x474   : > { %7856 = vrcp.f32 %v3164_v50  ;;  %v2643_v21 = vadd.f32 %v2642_v62, %v9906_v4  ;;  %v2731_v6 = vpop.f32.mrf.mxu1 }
 0x475   : > { %v2907_v41 = vadd.f32 %v2906_v51, %v2818_v63  ;;  %7858 = vpow2.f32 %v3083_v36  ;;  %v7855_v57 = vpop.eup %7854  ;;  %v6871_v36 = vor.u32 %v7488_v12, %v6868_v19  ;;  %v7520_v63 = vld [vmem:[%s11364_s5 + $0x18c] sm:$0xf]  ;;  %v6996_v51 = vld [vmem:[%s11364_s5 + $0x198] sm:$0xf0] }
 0x476   : > { %v2732_v30 = vadd.f32 %v2731_v6, %v2643_v21  ;;  %3703 = vmatmul.bf16.gmra.mxu0 %v11482_v5  ;;  %v11483_v21 = vld [vmem:[#allocation34_spill] sm:$0xff]  ;;  %v6867_v6 = vor.u32 %v7490_v14, %v6866_v43 }
 0x477   : > { %v2976_v59 = vsub.f32 0.0, %v2907_v41  ;;  %3792 = vmatmul.bf16.gmra.mxu1 %v10033_v32  ;;  %3881 = vmatmul.bf16.gmra.mxu2 %v11482_v5  ;;  %v6999_v41 = vor.u32 %v7520_v63, %v6996_v51 }
 0x478   : > { %3970 = vmatmul.bf16.gmra.mxu3 %v10033_v32  ;;  %4212 = vmatpush.bf16.msrb.mxu2 %v6871_v36 }
 0x479   : > { %v3087_v34 = vmul.f32 1.442695, %v2976_v59  ;;  %4034 = vmatpush.bf16.msrb.mxu0 %v6867_v6  ;;  %4301 = vmatpush.bf16.msrb.mxu3 %v6999_v41 }
 0x47a   : > { %v7857_v9 = vpop.eup %7856  ;;  %v2820_v44 = vpop.f32.mrf.mxu2 }
 0x47b   : > { %7860 = vpow2.f32 %v3087_v34  ;;  %v2821_v1 = vadd.f32 %v2820_v44, %v2732_v30  ;;  %v2909_v45 = vpop.f32.mrf.mxu3  ;;  %v2644_v54 = vpop.f32.mrf.mxu0  ;;  %v10153_v31 = vpack.c.bf16 %v7857_v9, %v7855_v57 }
 0x47c   : > { %v7859_v0 = vpop.eup %7858  ;;  %v2645_v37 = vadd.f32 %v2644_v54, %v9906_v4  ;;  %v2733_v11 = vpop.f32.mrf.mxu1 }
 0x47d   : > { %v2910_v13 = vadd.f32 %v2909_v45, %v2821_v1  ;;  %v3166_v20 = vadd.f32 1.0, %v7859_v0 }
 0x47e   : > { %v2734_v33 = vadd.f32 %v2733_v11, %v2645_v37 }
 0x47f   : > { %v2978_v35 = vsub.f32 0.0, %v2910_v13  ;;  %7862 = vrcp.f32 %v3166_v20  ;;  %v6994_v13 = vld [vmem:[%s11364_s5 + $0x188] sm:$0xf] }
 0x481   : > { %v7861_v56 = vpop.eup %7860  ;;  %v3091_v27 = vmul.f32 1.442695, %v2978_v35 }
 0x482   : > { %v3168_v3 = vadd.f32 1.0, %v7861_v56  ;;  %v2822_v46 = vpop.f32.mrf.mxu2 }
 0x483   : > { %v2823_v24 = vadd.f32 %v2822_v46, %v2734_v33  ;;  %v2911_v42 = vpop.f32.mrf.mxu3  ;;  %v2647_v49 = vpop.f32.mrf.mxu0  ;;  %v7522_v33 = vld [vmem:[%s11364_s5 + $0x194] sm:$0xf0] }
 0x484   : > { %7864 = vrcp.f32 %v3168_v3  ;;  %v2648_v25 = vadd.f32 %v2647_v49, %v9906_v4  ;;  %v2736_v48 = vpop.f32.mrf.mxu1  ;;  %v6995_v35 = vor.u32 %v7522_v33, %v6994_v13 }
 0x485   : > { %v2912_v50 = vadd.f32 %v2911_v42, %v2823_v24  ;;  %7866 = vpow2.f32 %v3091_v27  ;;  %v7863_v59 = vpop.eup %7862 }
 0x486   : > { %v2737_v62 = vadd.f32 %v2736_v48, %v2648_v25  ;;  %3708 = vmatmul.bf16.gmra.mxu0 %v11483_v21  ;;  %4123 = vmatpush.bf16.msrb.mxu1 %v6995_v35 }
 0x487   : > { %v2980_v30 = vsub.f32 0.0, %v2912_v50  ;;  %3797 = vmatmul.bf16.gmra.mxu1 %v10059_v60  ;;  %3886 = vmatmul.bf16.gmra.mxu2 %v11483_v21 }
 0x488   : > { %3975 = vmatmul.bf16.gmra.mxu3 %v10059_v60 }
 0x489   : > { %v3095_v57 = vmul.f32 1.442695, %v2980_v30 }
 0x48a   : > { %v7865_v34 = vpop.eup %7864  ;;  %v2825_v9 = vpop.f32.mrf.mxu2 }
 0x48b   : > { %7868 = vpow2.f32 %v3095_v57  ;;  %v2826_v44 = vadd.f32 %v2825_v9, %v2737_v62  ;;  %v2914_v1 = vpop.f32.mrf.mxu3  ;;  %v2649_v45 = vpop.f32.mrf.mxu0  ;;  %v10179_v54 = vpack.c.bf16 %v7865_v34, %v7863_v59 }
 0x48c   : > { %v7867_v0 = vpop.eup %7866  ;;  %v2650_v37 = vadd.f32 %v2649_v45, %v9906_v4  ;;  %v2738_v11 = vpop.f32.mrf.mxu1 }
 0x48d   : > { %v2915_v20 = vadd.f32 %v2914_v1, %v2826_v44  ;;  %v3170_v3 = vadd.f32 1.0, %v7867_v0 }
 0x48e   : > { %v2739_v56 = vadd.f32 %v2738_v11, %v2650_v37 }
 0x48f   : > { %v2982_v27 = vsub.f32 0.0, %v2915_v20  ;;  %7870 = vrcp.f32 %v3170_v3 }
 0x491   : > { %v7869_v46 = vpop.eup %7868  ;;  %v3099_v42 = vmul.f32 1.442695, %v2982_v27 }
 0x492   : > { %v3172_v24 = vadd.f32 1.0, %v7869_v46  ;;  %v2827_v49 = vpop.f32.mrf.mxu2 }
 0x493   : > { %v2828_v25 = vadd.f32 %v2827_v49, %v2739_v56  ;;  %v2916_v48 = vpop.f32.mrf.mxu3  ;;  %v2652_v12 = vpop.f32.mrf.mxu0  ;;  %v6850_v49 = vld [vmem:[%s11364_s5 + $0x68] sm:$0xf] }
 0x494   : > { %7872 = vrcp.f32 %v3172_v24  ;;  %v2653_v19 = vadd.f32 %v2652_v12, %v9906_v4  ;;  %v2741_v43 = vpop.f32.mrf.mxu1  ;;  %v7484_v24 = vld [vmem:[%s11364_s5 + $0x6c] sm:$0xf]  ;;  %v7486_v12 = vld [vmem:[%s11364_s5 + $0x74] sm:$0xf0] }
 0x495   : > { %v2917_v50 = vadd.f32 %v2916_v48, %v2828_v25  ;;  %7874 = vpow2.f32 %v3099_v42  ;;  %v7871_v63 = vpop.eup %7870  ;;  %v6852_v42 = vld [vmem:[%s11364_s5 + $0x78] sm:$0xf0] }
 0x496   : > { %v2742_v36 = vadd.f32 %v2741_v43, %v2653_v19  ;;  %3713 = vmatmul.bf16.gmra.mxu0 %v9748_v28  ;;  %v6855_v48 = vor.u32 %v7484_v24, %v6852_v42  ;;  %v7516_v19 = vld [vmem:[%s11364_s5 + $0x16c] sm:$0xf]  ;;  %v6980_v43 = vld [vmem:[%s11364_s5 + $0x178] sm:$0xf0] }
 0x497   : > { %v2984_v14 = vsub.f32 0.0, %v2917_v50  ;;  %3802 = vmatmul.bf16.gmra.mxu1 %v10073_v8  ;;  %3891 = vmatmul.bf16.gmra.mxu2 %v9748_v28 }
 0x498   : > { %3980 = vmatmul.bf16.gmra.mxu3 %v10073_v8  ;;  %4213 = vmatpush.bf16.msrb.mxu2 %v6855_v48 }
 0x499   : > { %v3103_v51 = vmul.f32 1.442695, %v2984_v14  ;;  %v6983_v14 = vor.u32 %v7516_v19, %v6980_v43 }
 0x49a   : > { %v7873_v62 = vpop.eup %7872  ;;  %v2830_v6 = vpop.f32.mrf.mxu2 }
 0x49b   : > { %7876 = vpow2.f32 %v3103_v51  ;;  %v2831_v41 = vadd.f32 %v2830_v6, %v2742_v36  ;;  %v2919_v30 = vpop.f32.mrf.mxu3  ;;  %v2654_v59 = vpop.f32.mrf.mxu0  ;;  %v10193_v57 = vpack.c.bf16 %v7873_v62, %v7871_v63  ;;  %v6851_v36 = vor.u32 %v7486_v12, %v6850_v49  ;;  %v6978_v63 = vld [vmem:[%s11364_s5 + $0x168] sm:$0xf]  ;;  %v7518_v51 = vld [vmem:[%s11364_s5 + $0x174] sm:$0xf0]  ;;  %4302 = vmatpush.bf16.msrb.mxu3 %v6983_v14  ;;  %v7480_v14 = vld [vmem:[%s11364_s5 + $0x4c] sm:$0xf] }
 0x49c   : > { %v7875_v34 = vpop.eup %7874  ;;  %v2655_v9 = vadd.f32 %v2654_v59, %v9906_v4  ;;  %v2743_v44 = vpop.f32.mrf.mxu1  ;;  %v6979_v6 = vor.u32 %v7518_v51, %v6978_v63  ;;  %v6836_v63 = vld [vmem:[%s11364_s5 + $0x58] sm:$0xf0] }
 0x49d   : > { %v2920_v1 = vadd.f32 %v2919_v30, %v2831_v41  ;;  %v3174_v0 = vadd.f32 1.0, %v7875_v34  ;;  %4035 = vmatpush.bf16.msrb.mxu0 %v6851_v36 }
 0x49e   : > { %v2744_v45 = vadd.f32 %v2743_v44, %v2655_v9  ;;  %4124 = vmatpush.bf16.msrb.mxu1 %v6979_v6  ;;  %v6839_v6 = vor.u32 %v7480_v14, %v6836_v63 }
 0x49f   : > { %v2986_v37 = vsub.f32 0.0, %v2920_v1  ;;  %7878 = vrcp.f32 %v3174_v0 }
 0x4a0   : > { %4214 = vmatpush.bf16.msrb.mxu2 %v6839_v6 }
 0x4a1   : > { %v7877_v11 = vpop.eup %7876  ;;  %v3107_v33 = vmul.f32 1.442695, %v2986_v37 }
 0x4a2   : > { %v3176_v13 = vadd.f32 1.0, %v7877_v11  ;;  %v2832_v20 = vpop.f32.mrf.mxu2 }
 0x4a3   : > { %v2833_v35 = vadd.f32 %v2832_v20, %v2744_v45  ;;  %v2921_v56 = vpop.f32.mrf.mxu3  ;;  %v2657_v3 = vpop.f32.mrf.mxu0 }
 0x4a4   : > { %7880 = vrcp.f32 %v3176_v13  ;;  %v2658_v27 = vadd.f32 %v2657_v3, %v9906_v4  ;;  %v2746_v46 = vpop.f32.mrf.mxu1 }
 0x4a5   : > { %v2922_v25 = vadd.f32 %v2921_v56, %v2833_v35  ;;  %7882 = vpow2.f32 %v3107_v33  ;;  %v7879_v41 = vpop.eup %7878  ;;  %v3345_v33 = vld [vmem:[%s11365_s6] sm:$0xf] }
 0x4a6   : > { %v2747_v50 = vadd.f32 %v2746_v46, %v2658_v27  ;;  %3718 = vmatmul.bf16.gmra.mxu0 %v9774_v38  ;;  %v10231_v3 = vperm.slane %v3345_v33, 0  ;;  %v10237_v36 = vperm.slane %v3345_v33, 1 }
 0x4a7   : > { %v2988_v62 = vsub.f32 0.0, %v2922_v25  ;;  %3807 = vmatmul.bf16.gmra.mxu1 %v10099_v53  ;;  %3896 = vmatmul.bf16.gmra.mxu2 %v9774_v38 }
 0x4a8   : > { %3985 = vmatmul.bf16.gmra.mxu3 %v10099_v53 }
 0x4a9   : > { %v3111_v30 = vmul.f32 1.442695, %v2988_v62 }
 0x4aa   : > { %v7881_v59 = vpop.eup %7880  ;;  %v2835_v34 = vpop.f32.mrf.mxu2 }
 0x4ab   : > { %7884 = vpow2.f32 %v3111_v30  ;;  %v2836_v9 = vadd.f32 %v2835_v34, %v2747_v50  ;;  %v2924_v44 = vpop.f32.mrf.mxu3  ;;  %v2659_v1 = vpop.f32.mrf.mxu0  ;;  %v10225_v45 = vpack.c.bf16 %v7881_v59, %v7879_v41  ;;  %v6834_v41 = vld [vmem:[%s11364_s5 + $0x48] sm:$0xf]  ;;  %v7482_v30 = vld [vmem:[%s11364_s5 + $0x54] sm:$0xf0] }
 0x4ac   : > { %v7883_v0 = vpop.eup %7882  ;;  %v2660_v37 = vadd.f32 %v2659_v1, %v9906_v4  ;;  %v2748_v11 = vpop.f32.mrf.mxu1  ;;  %v6964_v1 = vld [vmem:[%s11364_s5 + $0x158] sm:$0xf0] }
 0x4ad   : > { %v2925_v13 = vadd.f32 %v2924_v44, %v2836_v9  ;;  %v3178_v35 = vadd.f32 1.0, %v7883_v0  ;;  %v6835_v9 = vor.u32 %v7482_v30, %v6834_v41  ;;  %v7512_v44 = vld [vmem:[%s11364_s5 + $0x14c] sm:$0xf] }
 0x4ae   : > { %v2749_v20 = vadd.f32 %v2748_v11, %v2660_v37 }
 0x4af   : > { %v2990_v56 = vsub.f32 0.0, %v2925_v13  ;;  %7886 = vrcp.f32 %v3178_v35  ;;  %v6967_v13 = vor.u32 %v7512_v44, %v6964_v1  ;;  %4036 = vmatpush.bf16.msrb.mxu0 %v6835_v9 }
 0x4b1   : > { %v7885_v27 = vpop.eup %7884  ;;  %v3115_v24 = vmul.f32 1.442695, %v2990_v56  ;;  %4303 = vmatpush.bf16.msrb.mxu3 %v6967_v13 }
 0x4b2   : > { %v3180_v46 = vadd.f32 1.0, %v7885_v27  ;;  %v2837_v42 = vpop.f32.mrf.mxu2 }
 0x4b3   : > { %v2838_v49 = vadd.f32 %v2837_v42, %v2749_v20  ;;  %v2926_v25 = vpop.f32.mrf.mxu3  ;;  %v3684_v48 = vpop.f32.mrf.mxu0  ;;  %v6962_v42 = vld [vmem:[%s11364_s5 + $0x148] sm:$0xf] }
 0x4b4   : > { %7888 = vrcp.f32 %v3180_v46  ;;  %v3685_v4 = vadd.f32 %v3684_v48, %v10231_v3  ;;  %v3773_v12 = vpop.f32.mrf.mxu1 }
 0x4b5   : > { %v2927_v19 = vadd.f32 %v2926_v25, %v2838_v49  ;;  %7890 = vpow2.f32 %v3115_v24  ;;  %v7887_v51 = vpop.eup %7886  ;;  %v7514_v49 = vld [vmem:[%s11364_s5 + $0x154] sm:$0xf0] }
 0x4b6   : > { %v3774_v43 = vadd.f32 %v3773_v12, %v3685_v4  ;;  %3723 = vmatmul.bf16.gmra.mxu0 %v9788_v15  ;;  %v6963_v4 = vor.u32 %v7514_v49, %v6962_v42 }
 0x4b7   : > { %v2992_v50 = vsub.f32 0.0, %v2927_v19  ;;  %3812 = vmatmul.bf16.gmra.mxu1 %v10113_v18  ;;  %3901 = vmatmul.bf16.gmra.mxu2 %v9788_v15 }
 0x4b8   : > { %3990 = vmatmul.bf16.gmra.mxu3 %v10113_v18  ;;  %v4387_v25 = vmax.f32 %v3774_v43, 0.0  ;;  %4125 = vmatpush.bf16.msrb.mxu1 %v6963_v4 }
 0x4b9   : > { %v3119_v62 = vmul.f32 1.442695, %v2992_v50 }
 0x4ba   : > { %v7889_v59 = vpop.eup %7888  ;;  %v3862_v34 = vpop.f32.mrf.mxu2 }
 0x4bb   : > { %7892 = vpow2.f32 %v3119_v62  ;;  %v3863_v0 = vadd.f32 %v3862_v34, %v10237_v36  ;;  %v3951_v37 = vpop.f32.mrf.mxu3  ;;  %v3686_v11 = vpop.f32.mrf.mxu0  ;;  %v10259_v33 = vpack.c.bf16 %v7889_v59, %v7887_v51 }
 0x4bc   : > { %v7891_v20 = vpop.eup %7890  ;;  %v3687_v35 = vadd.f32 %v3686_v11, %v10231_v3  ;;  %v3775_v56 = vpop.f32.mrf.mxu1 }
 0x4bd   : > { %v3952_v27 = vadd.f32 %v3951_v37, %v3863_v0  ;;  %v3182_v24 = vadd.f32 1.0, %v7891_v20 }
 0x4be   : > { %v3776_v46 = vadd.f32 %v3775_v56, %v3687_v35 }
 0x4bf   : > { %7894 = vrcp.f32 %v3182_v24  ;;  %v4388_v43 = vmax.f32 %v3952_v27, 0.0 }
 0x4c0   : > { %v4391_v48 = vmax.f32 %v3776_v46, 0.0 }
 0x4c1   : > { %v7893_v12 = vpop.eup %7892 }
 0x4c2   : > { %v3184_v19 = vadd.f32 1.0, %v7893_v12  ;;  %v10268_v50 = vpack.c.bf16 %v4391_v48, %v4387_v25  ;;  %v3864_v14 = vpop.f32.mrf.mxu2 }
 0x4c3   : > { %v3865_v63 = vadd.f32 %v3864_v14, %v10237_v36  ;;  %v3953_v51 = vpop.f32.mrf.mxu3  ;;  %v3689_v62 = vpop.f32.mrf.mxu0 }
 0x4c4   : > { %7896 = vrcp.f32 %v3184_v19  ;;  %v3690_v6 = vadd.f32 %v3689_v62, %v10231_v3  ;;  %v3778_v41 = vpop.f32.mrf.mxu1 }
 0x4c5   : > { %v3954_v30 = vadd.f32 %v3953_v51, %v3865_v63  ;;  %v7895_v9 = vpop.eup %7894 }
 0x4c6   : > { %v3779_v59 = vadd.f32 %v3778_v41, %v3690_v6  ;;  %3728 = vmatmul.bf16.gmra.mxu0 %v9814_v22  ;;  %v7476_v41 = vld [vmem:[%s11364_s5 + $0x2c] sm:$0xf] }
 0x4c7   : > { %v4392_v34 = vmax.f32 %v3954_v30, 0.0  ;;  %3817 = vmatmul.bf16.gmra.mxu1 %v10139_v2  ;;  %3906 = vmatmul.bf16.gmra.mxu2 %v9814_v22  ;;  %v6820_v30 = vld [vmem:[%s11364_s5 + $0x38] sm:$0xf0] }
 0x4c8   : > { %3995 = vmatmul.bf16.gmra.mxu3 %v10139_v2  ;;  %v4395_v24 = vmax.f32 %v3779_v59, 0.0  ;;  %v6823_v59 = vor.u32 %v7476_v41, %v6820_v30 }
 0x4c9   : > { %v10276_v44 = vpack.c.bf16 %v4392_v34, %v4388_v43  ;;  %v6818_v43 = vld [vmem:[%s11364_s5 + $0x28] sm:$0xf]  ;;  %v7478_v34 = vld [vmem:[%s11364_s5 + $0x34] sm:$0xf0] }
 0x4ca   : > { %v7897_v1 = vpop.eup %7896  ;;  %v3867_v0 = vpop.f32.mrf.mxu2  ;;  %4215 = vmatpush.bf16.msrb.mxu2 %v6823_v59 }
 0x4cb   : > { %v3868_v37 = vadd.f32 %v3867_v0, %v10237_v36  ;;  %v3956_v11 = vpop.f32.mrf.mxu3  ;;  %v3691_v13 = vpop.f32.mrf.mxu0  ;;  %v10279_v20 = vpack.c.bf16 %v7897_v1, %v7895_v9  ;;  %v7508_v9 = vld [vmem:[%s11364_s5 + $0x12c] sm:$0xf] }
 0x4cc   : > { %v3692_v35 = vadd.f32 %v3691_v13, %v10231_v3  ;;  %v3780_v56 = vpop.f32.mrf.mxu1 }
 0x4cd   : > { %v3957_v27 = vadd.f32 %v3956_v11, %v3868_v37  ;;  %v6819_v37 = vor.u32 %v7478_v34, %v6818_v43  ;;  %v6948_v11 = vld [vmem:[%s11364_s5 + $0x138] sm:$0xf0] }
 0x4ce   : > { %v3781_v46 = vadd.f32 %v3780_v56, %v3692_v35 }
 0x4cf   : > { %v4396_v62 = vmax.f32 %v3957_v27, 0.0  ;;  %v6951_v27 = vor.u32 %v7508_v9, %v6948_v11  ;;  %4037 = vmatpush.bf16.msrb.mxu0 %v6819_v37 }
 0x4d0   : > { %v4399_v42 = vmax.f32 %v3781_v46, 0.0 }
 0x4d1   : > { %4304 = vmatpush.bf16.msrb.mxu3 %v6951_v27 }
 0x4d2   : > { %v3869_v49 = vpop.f32.mrf.mxu2  ;;  %v10282_v25 = vpack.c.bf16 %v4399_v42, %v4395_v24 }
 0x4d3   : > { %v3870_v48 = vadd.f32 %v3869_v49, %v10237_v36  ;;  %v3958_v4 = vpop.f32.mrf.mxu3  ;;  %v3694_v12 = vpop.f32.mrf.mxu0 }
 0x4d4   : > { %v3695_v19 = vadd.f32 %v3694_v12, %v10231_v3  ;;  %v3783_v14 = vpop.f32.mrf.mxu1 }
 0x4d5   : > { %v3959_v63 = vadd.f32 %v3958_v4, %v3870_v48  ;;  %v6946_v48 = vld [vmem:[%s11364_s5 + $0x128] sm:$0xf]  ;;  %v7510_v4 = vld [vmem:[%s11364_s5 + $0x134] sm:$0xf0] }
 0x4d6   : > { %v3784_v51 = vadd.f32 %v3783_v14, %v3695_v19  ;;  %3733 = vmatmul.bf16.gmra.mxu0 %v9828_v10  ;;  %v6947_v14 = vor.u32 %v7510_v4, %v6946_v48 }
 0x4d7   : > { %v4400_v6 = vmax.f32 %v3959_v63, 0.0  ;;  %3822 = vmatmul.bf16.gmra.mxu1 %v10153_v31  ;;  %3911 = vmatmul.bf16.gmra.mxu2 %v9828_v10 }
 0x4d8   : > { %4000 = vmatmul.bf16.gmra.mxu3 %v10153_v31  ;;  %v4403_v12 = vmax.f32 %v3784_v51, 0.0  ;;  %4126 = vmatpush.bf16.msrb.mxu1 %v6947_v14 }
 0x4d9   : > { %v10305_v1 = vpack.c.bf16 %v4400_v6, %v4396_v62 }
 0x4da   : > { %v3872_v0 = vpop.f32.mrf.mxu2 }
 0x4db   : > { %11484 = vst [vmem:[#allocation14_spill] sm:$0xff] %v10305_v1  ;;  %v3873_v13 = vadd.f32 %v3872_v0, %v10237_v36  ;;  %v3961_v35 = vpop.f32.mrf.mxu3  ;;  %v3696_v56 = vpop.f32.mrf.mxu0 }
 0x4dc   : > { %v3697_v46 = vadd.f32 %v3696_v56, %v10231_v3  ;;  %v3785_v24 = vpop.f32.mrf.mxu1 }
 0x4dd   : > { %v3962_v42 = vadd.f32 %v3961_v35, %v3873_v13 }
 0x4de   : > { %v3786_v49 = vadd.f32 %v3785_v24, %v3697_v46 }
 0x4df   : > { %v4404_v0 = vmax.f32 %v3962_v42, 0.0 }
 0x4e0   : > { %v4407_v19 = vmax.f32 %v3786_v49, 0.0 }
 0x4e2   : > { %v3874_v63 = vpop.f32.mrf.mxu2  ;;  %v10318_v62 = vpack.c.bf16 %v4407_v19, %v4403_v12 }
 0x4e3   : > { %v3875_v6 = vadd.f32 %v3874_v63, %v10237_v36  ;;  %v3963_v41 = vpop.f32.mrf.mxu3  ;;  %v3699_v30 = vpop.f32.mrf.mxu0 }
 0x4e4   : > { %v3700_v59 = vadd.f32 %v3699_v30, %v10231_v3  ;;  %v3788_v43 = vpop.f32.mrf.mxu1 }
 0x4e5   : > { %v3964_v34 = vadd.f32 %v3963_v41, %v3875_v6 }
 0x4e6   : > { %v3789_v9 = vadd.f32 %v3788_v43, %v3700_v59  ;;  %3738 = vmatmul.bf16.gmra.mxu0 %v9854_v16 }
 0x4e7   : > { %v4408_v37 = vmax.f32 %v3964_v34, 0.0  ;;  %3827 = vmatmul.bf16.gmra.mxu1 %v10179_v54  ;;  %3916 = vmatmul.bf16.gmra.mxu2 %v9854_v16 }
 0x4e8   : > { %4005 = vmatmul.bf16.gmra.mxu3 %v10179_v54  ;;  %v4411_v42 = vmax.f32 %v3789_v9, 0.0  ;;  %v7472_v9 = vld [vmem:[%s11364_s5 + $0xc] sm:$0xf] }
 0x4e9   : > { %v10326_v51 = vpack.c.bf16 %v4408_v37, %v4404_v0  ;;  %v6804_v0 = vld [vmem:[%s11364_s5 + $0x18] sm:$0xf0] }
 0x4ea   : > { %v3877_v11 = vpop.f32.mrf.mxu2  ;;  %v6807_v37 = vor.u32 %v7472_v9, %v6804_v0 }
 0x4eb   : > { %v3878_v13 = vadd.f32 %v3877_v11, %v10237_v36  ;;  %v3966_v35 = vpop.f32.mrf.mxu3  ;;  %v3701_v56 = vpop.f32.mrf.mxu0  ;;  %v6802_v11 = vld [vmem:[%s11364_s5 + $0x8] sm:$0xf] }
 0x4ec   : > { %v3702_v27 = vadd.f32 %v3701_v56, %v10231_v3  ;;  %v3790_v46 = vpop.f32.mrf.mxu1  ;;  %4216 = vmatpush.bf16.msrb.mxu2 %v6807_v37 }
 0x4ed   : > { %v3967_v24 = vadd.f32 %v3966_v35, %v3878_v13  ;;  %v7474_v13 = vld [vmem:[%s11364_s5 + $0x14] sm:$0xf0]  ;;  %v7504_v35 = vld [vmem:[%s11364_s5 + $0x10c] sm:$0xf] }
 0x4ee   : > { %v3791_v49 = vadd.f32 %v3790_v46, %v3702_v27  ;;  %v6803_v46 = vor.u32 %v7474_v13, %v6802_v11 }
 0x4ef   : > { %v4412_v43 = vmax.f32 %v3967_v24, 0.0  ;;  %v6932_v24 = vld [vmem:[%s11364_s5 + $0x118] sm:$0xf0] }
 0x4f0   : > { %v4415_v48 = vmax.f32 %v3791_v49, 0.0  ;;  %4038 = vmatpush.bf16.msrb.mxu0 %v6803_v46 }
 0x4f2   : > { %v3879_v4 = vpop.f32.mrf.mxu2  ;;  %v10330_v12 = vpack.c.bf16 %v4415_v48, %v4411_v42 }
 0x4f3   : > { %v3880_v19 = vadd.f32 %v3879_v4, %v10237_v36  ;;  %v3968_v14 = vpop.f32.mrf.mxu3  ;;  %v3704_v63 = vpop.f32.mrf.mxu0  ;;  %v6935_v4 = vor.u32 %v7504_v35, %v6932_v24 }
 0x4f4   : > { %v3705_v6 = vadd.f32 %v3704_v63, %v10231_v3  ;;  %v3793_v41 = vpop.f32.mrf.mxu1 }
 0x4f5   : > { %v3969_v30 = vadd.f32 %v3968_v14, %v3880_v19  ;;  %4305 = vmatpush.bf16.msrb.mxu3 %v6935_v4 }
 0x4f6   : > { %v3794_v59 = vadd.f32 %v3793_v41, %v3705_v6  ;;  %3743 = vmatmul.bf16.gmra.mxu0 %v9868_v52  ;;  %v6930_v41 = vld [vmem:[%s11364_s5 + $0x108] sm:$0xf] }
 0x4f7   : > { %v4416_v34 = vmax.f32 %v3969_v30, 0.0  ;;  %3832 = vmatmul.bf16.gmra.mxu1 %v10193_v57  ;;  %3921 = vmatmul.bf16.gmra.mxu2 %v9868_v52  ;;  %v7506_v30 = vld [vmem:[%s11364_s5 + $0x114] sm:$0xf0] }
 0x4f8   : > { %4010 = vmatmul.bf16.gmra.mxu3 %v10193_v57  ;;  %v6931_v9 = vor.u32 %v7506_v30, %v6930_v41 }
 0x4f9   : > { %v10353_v56 = vpack.c.bf16 %v4416_v34, %v4412_v43  ;;  %v4419_v43 = vmax.f32 %v3794_v59, 0.0 }
 0x4fa   : > { %v3882_v27 = vpop.f32.mrf.mxu2  ;;  %4127 = vmatpush.bf16.msrb.mxu1 %v6931_v9 }
 0x4fb   : > { %11485 = vst [vmem:[#allocation6_spill] sm:$0xff] %v10353_v56  ;;  %v3883_v49 = vadd.f32 %v3882_v27, %v10237_v36  ;;  %v3971_v42 = vpop.f32.mrf.mxu3  ;;  %v3706_v48 = vpop.f32.mrf.mxu0 }
 0x4fc   : > { %v3707_v19 = vadd.f32 %v3706_v48, %v10231_v3  ;;  %v3795_v14 = vpop.f32.mrf.mxu1 }
 0x4fd   : > { %v3972_v63 = vadd.f32 %v3971_v42, %v3883_v49 }
 0x4fe   : > { %v3796_v6 = vadd.f32 %v3795_v14, %v3707_v19 }
 0x4ff   : > { %v4420_v42 = vmax.f32 %v3972_v63, 0.0 }
 0x500   : > { %v4423_v34 = vmax.f32 %v3796_v6, 0.0 }
 0x502   : > { %v3884_v0 = vpop.f32.mrf.mxu2  ;;  %v10366_v37 = vpack.c.bf16 %v4423_v34, %v4419_v43 }
 0x503   : > { %v3885_v11 = vadd.f32 %v3884_v0, %v10237_v36  ;;  %v3973_v13 = vpop.f32.mrf.mxu3  ;;  %v3709_v35 = vpop.f32.mrf.mxu0 }
 0x504   : > { %v3710_v27 = vadd.f32 %v3709_v35, %v10231_v3  ;;  %v3798_v46 = vpop.f32.mrf.mxu1 }
 0x505   : > { %v3974_v24 = vadd.f32 %v3973_v13, %v3885_v11 }
 0x506   : > { %v3799_v49 = vadd.f32 %v3798_v46, %v3710_v27  ;;  %3748 = vmatmul.bf16.gmra.mxu0 %v9894_v58 }
 0x507   : > { %v4424_v48 = vmax.f32 %v3974_v24, 0.0  ;;  %3837 = vmatmul.bf16.gmra.mxu1 %v10225_v45  ;;  %3926 = vmatmul.bf16.gmra.mxu2 %v9894_v58 }
 0x508   : > { %4015 = vmatmul.bf16.gmra.mxu3 %v10225_v45  ;;  %v4427_v63 = vmax.f32 %v3799_v49, 0.0  ;;  %v7234_v49 = vld [vmem:[%s11366_s7 + $0x170] sm:$0xf] }
 0x509   : > { %v10374_v59 = vpack.c.bf16 %v4424_v48, %v4420_v42 }
 0x50a   : > { %v3887_v4 = vpop.f32.mrf.mxu2 }
 0x50b   : > { %11486 = vst [vmem:[#allocation15_spill] sm:$0xff] %v10374_v59  ;;  %v3888_v19 = vadd.f32 %v3887_v4, %v10237_v36  ;;  %v3976_v14 = vpop.f32.mrf.mxu3  ;;  %v3711_v6 = vpop.f32.mrf.mxu0 }
 0x50c   : > { %v3712_v41 = vadd.f32 %v3711_v6, %v10231_v3  ;;  %v3800_v30 = vpop.f32.mrf.mxu1 }
 0x50d   : > { %v3977_v43 = vadd.f32 %v3976_v14, %v3888_v19  ;;  %v7582_v19 = vld [vmem:[%s11366_s7 + $0x174] sm:$0xf0] }
 0x50e   : > { %v3801_v34 = vadd.f32 %v3800_v30, %v3712_v41  ;;  %v7235_v14 = vor.u32 %v7582_v19, %v7234_v49  ;;  %v7106_v41 = vld [vmem:[%s11366_s7 + $0x70] sm:$0xf]  ;;  %v7550_v30 = vld [vmem:[%s11366_s7 + $0x74] sm:$0xf0] }
 0x50f   : > { %v4428_v4 = vmax.f32 %v3977_v43, 0.0  ;;  %v7298_v43 = vld [vmem:[%s11366_s7 + $0x1f0] sm:$0xf]  ;;  %v7566_v19 = vld [vmem:[%s11366_s7 + $0xf4] sm:$0xf0] }
 0x510   : > { %v4431_v9 = vmax.f32 %v3801_v34, 0.0  ;;  %5147 = vmatpush.bf16.msra.mxu2 %v7235_v14 }
 0x512   : > { %v3889_v0 = vpop.f32.mrf.mxu2  ;;  %v10378_v11 = vpack.c.bf16 %v4431_v9, %v4427_v63  ;;  %v7107_v9 = vor.u32 %v7550_v30, %v7106_v41 }
 0x513   : > { %v3890_v13 = vadd.f32 %v3889_v0, %v10237_v36  ;;  %v3978_v35 = vpop.f32.mrf.mxu3  ;;  %v3714_v27 = vpop.f32.mrf.mxu0  ;;  %v7598_v0 = vld [vmem:[%s11366_s7 + $0x1f4] sm:$0xf0] }
 0x514   : > { %11487 = vst [vmem:[#allocation16_spill] sm:$0xff] %v10378_v11  ;;  %v3715_v46 = vadd.f32 %v3714_v27, %v10231_v3  ;;  %v3803_v24 = vpop.f32.mrf.mxu1  ;;  %4969 = vmatpush.bf16.msra.mxu0 %v7107_v9 }
 0x515   : > { %v3979_v42 = vadd.f32 %v3978_v35, %v3890_v13 }
 0x516   : > { %v3804_v48 = vadd.f32 %v3803_v24, %v3715_v46  ;;  %3753 = vmatmul.bf16.gmra.mxu0 %v9913_v55  ;;  %v7299_v46 = vor.u32 %v7598_v0, %v7298_v43 }
 0x517   : > { %v4432_v6 = vmax.f32 %v3979_v42, 0.0  ;;  %3842 = vmatmul.bf16.gmra.mxu1 %v10259_v33  ;;  %3931 = vmatmul.bf16.gmra.mxu2 %v9913_v55 }
 0x518   : > { %4020 = vmatmul.bf16.gmra.mxu3 %v10259_v33  ;;  %v4435_v41 = vmax.f32 %v3804_v48, 0.0 }
 0x519   : > { %v10401_v34 = vpack.c.bf16 %v4432_v6, %v4428_v4  ;;  %5236 = vmatpush.bf16.msra.mxu3 %v7299_v46  ;;  %v7170_v6 = vld [vmem:[%s11366_s7 + $0xf0] sm:$0xf] }
 0x51a   : > { %v3892_v63 = vpop.f32.mrf.mxu2 }
 0x51b   : > { %11488 = vst [vmem:[#allocation17_spill] sm:$0xff] %v10401_v34  ;;  %v3893_v13 = vadd.f32 %v3892_v63, %v10237_v36  ;;  %v3981_v35 = vpop.f32.mrf.mxu3  ;;  %v3716_v27 = vpop.f32.mrf.mxu0  ;;  %v7171_v63 = vor.u32 %v7566_v19, %v7170_v6 }
 0x51c   : > { %v3717_v24 = vadd.f32 %v3716_v27, %v10231_v3  ;;  %v3805_v42 = vpop.f32.mrf.mxu1 }
 0x51d   : > { %v3982_v49 = vadd.f32 %v3981_v35, %v3893_v13  ;;  %5058 = vmatpush.bf16.msra.mxu1 %v7171_v63 }
 0x51e   : > { %v3806_v4 = vadd.f32 %v3805_v42, %v3717_v24 }
 0x51f   : > { %v4436_v42 = vmax.f32 %v3982_v49, 0.0 }
 0x520   : > { %v4439_v30 = vmax.f32 %v3806_v4, 0.0 }
 0x522   : > { %v3894_v14 = vpop.f32.mrf.mxu2  ;;  %v10414_v43 = vpack.c.bf16 %v4439_v30, %v4435_v41 }
 0x523   : > { %v3895_v9 = vadd.f32 %v3894_v14, %v10237_v36  ;;  %v3983_v0 = vpop.f32.mrf.mxu3  ;;  %v3719_v13 = vpop.f32.mrf.mxu0 }
 0x524   : > { %11489 = vst [vmem:[#allocation7_spill] sm:$0xff] %v10414_v43  ;;  %v3720_v35 = vadd.f32 %v3719_v13, %v10231_v3  ;;  %v3808_v27 = vpop.f32.mrf.mxu1 }
 0x525   : > { %v3984_v46 = vadd.f32 %v3983_v0, %v3895_v9 }
 0x526   : > { %v3809_v24 = vadd.f32 %v3808_v27, %v3720_v35  ;;  %3758 = vmatmul.bf16.gmra.mxu0 %v9939_v17 }
 0x527   : > { %v4440_v34 = vmax.f32 %v3984_v46, 0.0  ;;  %3847 = vmatmul.bf16.gmra.mxu1 %v10279_v20  ;;  %3936 = vmatmul.bf16.gmra.mxu2 %v9939_v17 }
 0x528   : > { %4025 = vmatmul.bf16.gmra.mxu3 %v10279_v20  ;;  %v4443_v49 = vmax.f32 %v3809_v24, 0.0  ;;  %v7226_v24 = vld [vmem:[%s11366_s7 + $0x160] sm:$0xf] }
 0x529   : > { %v10422_v48 = vpack.c.bf16 %v4440_v34, %v4436_v42 }
 0x52a   : > { %v3897_v4 = vpop.f32.mrf.mxu2 }
 0x52b   : > { %11490 = vst [vmem:[#allocation18_spill] sm:$0xff] %v10422_v48  ;;  %v3898_v6 = vadd.f32 %v3897_v4, %v10237_v36  ;;  %v3986_v19 = vpop.f32.mrf.mxu3  ;;  %v3721_v41 = vpop.f32.mrf.mxu0 }
 0x52c   : > { %v3722_v30 = vadd.f32 %v3721_v41, %v10231_v3  ;;  %v3810_v63 = vpop.f32.mrf.mxu1 }
 0x52d   : > { %v3987_v14 = vadd.f32 %v3986_v19, %v3898_v6  ;;  %v7580_v6 = vld [vmem:[%s11366_s7 + $0x164] sm:$0xf0] }
 0x52e   : > { %v3811_v9 = vadd.f32 %v3810_v63, %v3722_v30  ;;  %v7227_v19 = vor.u32 %v7580_v6, %v7226_v24  ;;  %v7548_v30 = vld [vmem:[%s11366_s7 + $0x64] sm:$0xf0] }
 0x52f   : > { %v4444_v41 = vmax.f32 %v3987_v14, 0.0 }
 0x530   : > { %v4447_v0 = vmax.f32 %v3811_v9, 0.0  ;;  %v7596_v9 = vld [vmem:[%s11366_s7 + $0x1e4] sm:$0xf0]  ;;  %5148 = vmatpush.bf16.msra.mxu2 %v7227_v19 }
 0x532   : > { %v3899_v13 = vpop.f32.mrf.mxu2  ;;  %v10426_v35 = vpack.c.bf16 %v4447_v0, %v4443_v49 }
 0x533   : > { %v3900_v27 = vadd.f32 %v3899_v13, %v10237_v36  ;;  %v3988_v46 = vpop.f32.mrf.mxu3  ;;  %v3724_v34 = vpop.f32.mrf.mxu0 }
 0x534   : > { %v3725_v42 = vadd.f32 %v3724_v34, %v10231_v3  ;;  %v3813_v48 = vpop.f32.mrf.mxu1 }
 0x535   : > { %v3989_v4 = vadd.f32 %v3988_v46, %v3900_v27 }
 0x536   : > { %v3814_v43 = vadd.f32 %v3813_v48, %v3725_v42  ;;  %4039 = vmatmul.bf16.vlgmr.msrb.gmra.mxu0 %v11478_v47  ;;  %v7098_v48 = vld [vmem:[%s11366_s7 + $0x60] sm:$0xf] }
 0x537   : > { %v4448_v11 = vmax.f32 %v3989_v4, 0.0  ;;  %4128 = vmatmul.bf16.vlgmr.msrb.gmra.mxu1 %v9953_v23  ;;  %4217 = vmatmul.bf16.vlgmr.msrb.gmra.mxu2 %v11478_v47  ;;  %v7099_v14 = vor.u32 %v7548_v30, %v7098_v48  ;;  %v7162_v4 = vld [vmem:[%s11366_s7 + $0xe0] sm:$0xf] }
 0x538   : > { %4306 = vmatmul.bf16.vlgmr.msrb.gmra.mxu3 %v9953_v23  ;;  %v7290_v23 = vld [vmem:[%s11366_s7 + $0x1e0] sm:$0xf]  ;;  %v4451_v24 = vmax.f32 %v3814_v43, 0.0 }
 0x539   : > { %v10449_v47 = vpack.c.bf16 %v4448_v11, %v4444_v41  ;;  %v7291_v27 = vor.u32 %v7596_v9, %v7290_v23  ;;  %4970 = vmatpush.bf16.msra.mxu0 %v7099_v14  ;;  %v7564_v41 = vld [vmem:[%s11366_s7 + $0xe4] sm:$0xf0] }
 0x53a   : > { %v3902_v63 = vpop.f32.mrf.mxu2  ;;  %v7163_v48 = vor.u32 %v7564_v41, %v7162_v4 }
 0x53b   : > { %v3903_v49 = vadd.f32 %v3902_v63, %v10237_v36  ;;  %v3991_v0 = vpop.f32.mrf.mxu3  ;;  %v3726_v13 = vpop.f32.mrf.mxu0  ;;  %5237 = vmatpush.bf16.msra.mxu3 %v7291_v27 }
 0x53c   : > { %v3727_v46 = vadd.f32 %v3726_v13, %v10231_v3  ;;  %v3815_v34 = vpop.f32.mrf.mxu1  ;;  %5059 = vmatpush.bf16.msra.mxu1 %v7163_v48 }
 0x53d   : > { %v3992_v42 = vadd.f32 %v3991_v0, %v3903_v49 }
 0x53e   : > { %v3816_v11 = vadd.f32 %v3815_v34, %v3727_v46 }
 0x53f   : > { %v4452_v27 = vmax.f32 %v3992_v42, 0.0 }
 0x540   : > { %v4455_v6 = vmax.f32 %v3816_v11, 0.0 }
 0x542   : > { %v3904_v19 = vpop.f32.mrf.mxu2  ;;  %v10462_v30 = vpack.c.bf16 %v4455_v6, %v4451_v24 }
 0x543   : > { %v3905_v23 = vadd.f32 %v3904_v19, %v10237_v36  ;;  %v3993_v63 = vpop.f32.mrf.mxu3  ;;  %v3729_v14 = vpop.f32.mrf.mxu0 }
 0x544   : > { %v3730_v9 = vadd.f32 %v3729_v14, %v10231_v3  ;;  %v3818_v49 = vpop.f32.mrf.mxu1 }
 0x545   : > { %v3994_v0 = vadd.f32 %v3993_v63, %v3905_v23 }
 0x546   : > { %v3819_v13 = vadd.f32 %v3818_v49, %v3730_v9  ;;  %4044 = vmatmul.bf16.gmra.mxu0 %v11479_v61 }
 0x547   : > { %v4456_v46 = vmax.f32 %v3994_v0, 0.0  ;;  %4133 = vmatmul.bf16.gmra.mxu1 %v9979_v26  ;;  %4222 = vmatmul.bf16.gmra.mxu2 %v11479_v61 }
 0x548   : > { %4311 = vmatmul.bf16.gmra.mxu3 %v9979_v26  ;;  %v4459_v42 = vmax.f32 %v3819_v13, 0.0  ;;  %v7218_v13 = vld [vmem:[%s11366_s7 + $0x150] sm:$0xf] }
 0x549   : > { %v10470_v43 = vpack.c.bf16 %v4456_v46, %v4452_v27 }
 0x54a   : > { %v3907_v34 = vpop.f32.mrf.mxu2 }
 0x54b   : > { %v3908_v11 = vadd.f32 %v3907_v34, %v10237_v36  ;;  %v3996_v4 = vpop.f32.mrf.mxu3  ;;  %v3731_v41 = vpop.f32.mrf.mxu0 }
 0x54c   : > { %v3732_v24 = vadd.f32 %v3731_v41, %v10231_v3  ;;  %v3820_v6 = vpop.f32.mrf.mxu1 }
 0x54d   : > { %v3997_v48 = vadd.f32 %v3996_v4, %v3908_v11  ;;  %v7578_v11 = vld [vmem:[%s11366_s7 + $0x154] sm:$0xf0] }
 0x54e   : > { %v3821_v19 = vadd.f32 %v3820_v6, %v3732_v24  ;;  %v7219_v4 = vor.u32 %v7578_v11, %v7218_v13  ;;  %v7090_v24 = vld [vmem:[%s11366_s7 + $0x50] sm:$0xf]  ;;  %v7546_v6 = vld [vmem:[%s11366_s7 + $0x54] sm:$0xf0] }
 0x54f   : > { %v4460_v34 = vmax.f32 %v3997_v48, 0.0 }
 0x550   : > { %v4463_v23 = vmax.f32 %v3821_v19, 0.0  ;;  %v7091_v19 = vor.u32 %v7546_v6, %v7090_v24  ;;  %5149 = vmatpush.bf16.msra.mxu2 %v7219_v4 }
 0x552   : > { %v3909_v63 = vpop.f32.mrf.mxu2  ;;  %v10474_v14 = vpack.c.bf16 %v4463_v23, %v4459_v42  ;;  %v7594_v42 = vld [vmem:[%s11366_s7 + $0x1d4] sm:$0xf0]  ;;  %4971 = vmatpush.bf16.msra.mxu0 %v7091_v19 }
 0x553   : > { %v3910_v61 = vadd.f32 %v3909_v63, %v10237_v36  ;;  %v3998_v26 = vpop.f32.mrf.mxu3  ;;  %v3734_v9 = vpop.f32.mrf.mxu0 }
 0x554   : > { %v3735_v49 = vadd.f32 %v3734_v9, %v10231_v3  ;;  %v3823_v0 = vpop.f32.mrf.mxu1 }
 0x555   : > { %v3999_v27 = vadd.f32 %v3998_v26, %v3910_v61 }
 0x556   : > { %v3824_v46 = vadd.f32 %v3823_v0, %v3735_v49  ;;  %4049 = vmatmul.bf16.gmra.mxu0 %v11480_v29 }
 0x557   : > { %v4464_v41 = vmax.f32 %v3999_v27, 0.0  ;;  %4138 = vmatmul.bf16.gmra.mxu1 %v9993_v7  ;;  %4227 = vmatmul.bf16.gmra.mxu2 %v11480_v29 }
 0x558   : > { %4316 = vmatmul.bf16.gmra.mxu3 %v9993_v7  ;;  %v7282_v7 = vld [vmem:[%s11366_s7 + $0x1d0] sm:$0xf]  ;;  %v4467_v13 = vmax.f32 %v3824_v46, 0.0 }
 0x559   : > { %v10497_v29 = vpack.c.bf16 %v4464_v41, %v4460_v34  ;;  %v7283_v26 = vor.u32 %v7594_v42, %v7282_v7  ;;  %v7154_v34 = vld [vmem:[%s11366_s7 + $0xd0] sm:$0xf]  ;;  %v7562_v41 = vld [vmem:[%s11366_s7 + $0xd4] sm:$0xf0] }
 0x55a   : > { %v3912_v48 = vpop.f32.mrf.mxu2  ;;  %v7155_v24 = vor.u32 %v7562_v41, %v7154_v34 }
 0x55b   : > { %v3913_v23 = vadd.f32 %v3912_v48, %v10237_v36  ;;  %v4001_v63 = vpop.f32.mrf.mxu3  ;;  %v3736_v61 = vpop.f32.mrf.mxu0  ;;  %5238 = vmatpush.bf16.msra.mxu3 %v7283_v26 }
 0x55c   : > { %v3737_v9 = vadd.f32 %v3736_v61, %v10231_v3  ;;  %v3825_v49 = vpop.f32.mrf.mxu1  ;;  %5060 = vmatpush.bf16.msra.mxu1 %v7155_v24 }
 0x55d   : > { %v4002_v0 = vadd.f32 %v4001_v63, %v3913_v23 }
 0x55e   : > { %v3826_v27 = vadd.f32 %v3825_v49, %v3737_v9 }
 0x55f   : > { %v4468_v26 = vmax.f32 %v4002_v0, 0.0 }
 0x560   : > { %v4471_v11 = vmax.f32 %v3826_v27, 0.0 }
 0x562   : > { %v3914_v4 = vpop.f32.mrf.mxu2  ;;  %v10510_v6 = vpack.c.bf16 %v4471_v11, %v4467_v13 }
 0x563   : > { %v3915_v7 = vadd.f32 %v3914_v4, %v10237_v36  ;;  %v4003_v48 = vpop.f32.mrf.mxu3  ;;  %v3739_v19 = vpop.f32.mrf.mxu0 }
 0x564   : > { %v3740_v42 = vadd.f32 %v3739_v19, %v10231_v3  ;;  %v3828_v23 = vpop.f32.mrf.mxu1 }
 0x565   : > { %v4004_v63 = vadd.f32 %v4003_v48, %v3915_v7 }
 0x566   : > { %v3829_v61 = vadd.f32 %v3828_v23, %v3740_v42  ;;  %4054 = vmatmul.bf16.gmra.mxu0 %v11481_v39 }
 0x567   : > { %v4472_v9 = vmax.f32 %v4004_v63, 0.0  ;;  %4143 = vmatmul.bf16.gmra.mxu1 %v10019_v40  ;;  %4232 = vmatmul.bf16.gmra.mxu2 %v11481_v39 }
 0x568   : > { %4321 = vmatmul.bf16.gmra.mxu3 %v10019_v40  ;;  %v4475_v0 = vmax.f32 %v3829_v61, 0.0  ;;  %v7210_v61 = vld [vmem:[%s11366_s7 + $0x140] sm:$0xf] }
 0x569   : > { %v10518_v46 = vpack.c.bf16 %v4472_v9, %v4468_v26 }
 0x56a   : > { %v3917_v49 = vpop.f32.mrf.mxu2 }
 0x56b   : > { %v3918_v27 = vadd.f32 %v3917_v49, %v10237_v36  ;;  %v4006_v34 = vpop.f32.mrf.mxu3  ;;  %v3741_v41 = vpop.f32.mrf.mxu0 }
 0x56c   : > { %v3742_v13 = vadd.f32 %v3741_v41, %v10231_v3  ;;  %v3830_v11 = vpop.f32.mrf.mxu1 }
 0x56d   : > { %v4007_v24 = vadd.f32 %v4006_v34, %v3918_v27  ;;  %v7576_v27 = vld [vmem:[%s11366_s7 + $0x144] sm:$0xf0] }
 0x56e   : > { %v3831_v4 = vadd.f32 %v3830_v11, %v3742_v13  ;;  %v7211_v34 = vor.u32 %v7576_v27, %v7210_v61  ;;  %v7082_v13 = vld [vmem:[%s11366_s7 + $0x40] sm:$0xf]  ;;  %v7544_v11 = vld [vmem:[%s11366_s7 + $0x44] sm:$0xf0] }
 0x56f   : > { %v4476_v49 = vmax.f32 %v4007_v24, 0.0 }
 0x570   : > { %v4479_v7 = vmax.f32 %v3831_v4, 0.0  ;;  %v7083_v4 = vor.u32 %v7544_v11, %v7082_v13  ;;  %5150 = vmatpush.bf16.msra.mxu2 %v7211_v34 }
 0x572   : > { %v3919_v48 = vpop.f32.mrf.mxu2  ;;  %v10522_v19 = vpack.c.bf16 %v4479_v7, %v4475_v0  ;;  %v7592_v0 = vld [vmem:[%s11366_s7 + $0x1c4] sm:$0xf0]  ;;  %4972 = vmatpush.bf16.msra.mxu0 %v7083_v4 }
 0x573   : > { %v3920_v39 = vadd.f32 %v3919_v48, %v10237_v36  ;;  %v4008_v40 = vpop.f32.mrf.mxu3  ;;  %v3744_v42 = vpop.f32.mrf.mxu0 }
 0x574   : > { %v3745_v23 = vadd.f32 %v3744_v42, %v10231_v3  ;;  %v3833_v63 = vpop.f32.mrf.mxu1 }
 0x575   : > { %v4009_v26 = vadd.f32 %v4008_v40, %v3920_v39 }
 0x576   : > { %v3834_v9 = vadd.f32 %v3833_v63, %v3745_v23  ;;  %4059 = vmatmul.bf16.gmra.mxu0 %v11482_v5 }
 0x577   : > { %v4480_v41 = vmax.f32 %v4009_v26, 0.0  ;;  %4148 = vmatmul.bf16.gmra.mxu1 %v10033_v32  ;;  %4237 = vmatmul.bf16.gmra.mxu2 %v11482_v5 }
 0x578   : > { %4326 = vmatmul.bf16.gmra.mxu3 %v10033_v32  ;;  %v7274_v32 = vld [vmem:[%s11366_s7 + $0x1c0] sm:$0xf]  ;;  %v4483_v61 = vmax.f32 %v3834_v9, 0.0 }
 0x579   : > { %v10545_v5 = vpack.c.bf16 %v4480_v41, %v4476_v49  ;;  %v7275_v40 = vor.u32 %v7592_v0, %v7274_v32  ;;  %v7146_v49 = vld [vmem:[%s11366_s7 + $0xc0] sm:$0xf]  ;;  %v7560_v41 = vld [vmem:[%s11366_s7 + $0xc4] sm:$0xf0] }
 0x57a   : > { %v3922_v24 = vpop.f32.mrf.mxu2  ;;  %v7147_v13 = vor.u32 %v7560_v41, %v7146_v49 }
 0x57b   : > { %v3923_v7 = vadd.f32 %v3922_v24, %v10237_v36  ;;  %v4011_v48 = vpop.f32.mrf.mxu3  ;;  %v3746_v39 = vpop.f32.mrf.mxu0  ;;  %5239 = vmatpush.bf16.msra.mxu3 %v7275_v40 }
 0x57c   : > { %v3747_v42 = vadd.f32 %v3746_v39, %v10231_v3  ;;  %v3835_v23 = vpop.f32.mrf.mxu1  ;;  %5061 = vmatpush.bf16.msra.mxu1 %v7147_v13 }
 0x57d   : > { %v4012_v63 = vadd.f32 %v4011_v48, %v3923_v7 }
 0x57e   : > { %v3836_v26 = vadd.f32 %v3835_v23, %v3747_v42 }
 0x57f   : > { %v4484_v40 = vmax.f32 %v4012_v63, 0.0 }
 0x580   : > { %v4487_v27 = vmax.f32 %v3836_v26, 0.0 }
 0x582   : > { %v3924_v34 = vpop.f32.mrf.mxu2  ;;  %v10558_v11 = vpack.c.bf16 %v4487_v27, %v4483_v61 }
 0x583   : > { %v3925_v32 = vadd.f32 %v3924_v34, %v10237_v36  ;;  %v4013_v24 = vpop.f32.mrf.mxu3  ;;  %v3749_v4 = vpop.f32.mrf.mxu0 }
 0x584   : > { %v3750_v0 = vadd.f32 %v3749_v4, %v10231_v3  ;;  %v3838_v7 = vpop.f32.mrf.mxu1 }
 0x585   : > { %v4014_v48 = vadd.f32 %v4013_v24, %v3925_v32 }
 0x586   : > { %v3839_v39 = vadd.f32 %v3838_v7, %v3750_v0  ;;  %4064 = vmatmul.bf16.gmra.mxu0 %v11483_v21 }
 0x587   : > { %v4488_v42 = vmax.f32 %v4014_v48, 0.0  ;;  %4153 = vmatmul.bf16.gmra.mxu1 %v10059_v60  ;;  %4242 = vmatmul.bf16.gmra.mxu2 %v11483_v21 }
 0x588   : > { %4331 = vmatmul.bf16.gmra.mxu3 %v10059_v60  ;;  %v4491_v63 = vmax.f32 %v3839_v39, 0.0  ;;  %v7202_v39 = vld [vmem:[%s11366_s7 + $0x130] sm:$0xf] }
 0x589   : > { %v10566_v9 = vpack.c.bf16 %v4488_v42, %v4484_v40 }
 0x58a   : > { %v3927_v23 = vpop.f32.mrf.mxu2 }
 0x58b   : > { %v3928_v26 = vadd.f32 %v3927_v23, %v10237_v36  ;;  %v4016_v49 = vpop.f32.mrf.mxu3  ;;  %v3751_v41 = vpop.f32.mrf.mxu0 }
 0x58c   : > { %v3752_v61 = vadd.f32 %v3751_v41, %v10231_v3  ;;  %v3840_v27 = vpop.f32.mrf.mxu1 }
 0x58d   : > { %v4017_v13 = vadd.f32 %v4016_v49, %v3928_v26  ;;  %v7574_v26 = vld [vmem:[%s11366_s7 + $0x134] sm:$0xf0] }
 0x58e   : > { %v3841_v34 = vadd.f32 %v3840_v27, %v3752_v61  ;;  %v7203_v49 = vor.u32 %v7574_v26, %v7202_v39  ;;  %v7074_v61 = vld [vmem:[%s11366_s7 + $0x30] sm:$0xf]  ;;  %v7542_v27 = vld [vmem:[%s11366_s7 + $0x34] sm:$0xf0] }
 0x58f   : > { %v4492_v23 = vmax.f32 %v4017_v13, 0.0 }
 0x590   : > { %v4495_v32 = vmax.f32 %v3841_v34, 0.0  ;;  %v7075_v34 = vor.u32 %v7542_v27, %v7074_v61  ;;  %5151 = vmatpush.bf16.msra.mxu2 %v7203_v49 }
 0x592   : > { %v3929_v24 = vpop.f32.mrf.mxu2  ;;  %v10570_v4 = vpack.c.bf16 %v4495_v32, %v4491_v63  ;;  %v7590_v63 = vld [vmem:[%s11366_s7 + $0x1b4] sm:$0xf0]  ;;  %4973 = vmatpush.bf16.msra.mxu0 %v7075_v34 }
 0x593   : > { %v3930_v21 = vadd.f32 %v3929_v24, %v10237_v36  ;;  %v4018_v60 = vpop.f32.mrf.mxu3  ;;  %v3754_v0 = vpop.f32.mrf.mxu0 }
 0x594   : > { %v3755_v7 = vadd.f32 %v3754_v0, %v10231_v3  ;;  %v3843_v48 = vpop.f32.mrf.mxu1 }
 0x595   : > { %v4019_v40 = vadd.f32 %v4018_v60, %v3930_v21 }
 0x596   : > { %v3844_v42 = vadd.f32 %v3843_v48, %v3755_v7  ;;  %4069 = vmatmul.bf16.gmra.mxu0 %v9748_v28 }
 0x597   : > { %v4496_v41 = vmax.f32 %v4019_v40, 0.0  ;;  %4158 = vmatmul.bf16.gmra.mxu1 %v10073_v8  ;;  %4247 = vmatmul.bf16.gmra.mxu2 %v9748_v28  ;;  %v7266_v28 = vld [vmem:[%s11366_s7 + $0x1b0] sm:$0xf] }
 0x598   : > { %4336 = vmatmul.bf16.gmra.mxu3 %v10073_v8  ;;  %v7267_v60 = vor.u32 %v7590_v63, %v7266_v28  ;;  %v4499_v39 = vmax.f32 %v3844_v42, 0.0 }
 0x599   : > { %v10593_v8 = vpack.c.bf16 %v4496_v41, %v4492_v23  ;;  %v7138_v23 = vld [vmem:[%s11366_s7 + $0xb0] sm:$0xf]  ;;  %v7558_v41 = vld [vmem:[%s11366_s7 + $0xb4] sm:$0xf0] }
 0x59a   : > { %v3932_v13 = vpop.f32.mrf.mxu2  ;;  %5240 = vmatpush.bf16.msra.mxu3 %v7267_v60  ;;  %v7139_v61 = vor.u32 %v7558_v41, %v7138_v23 }
 0x59b   : > { %v3933_v32 = vadd.f32 %v3932_v13, %v10237_v36  ;;  %v4021_v24 = vpop.f32.mrf.mxu3  ;;  %v3756_v21 = vpop.f32.mrf.mxu0 }
 0x59c   : > { %v3757_v0 = vadd.f32 %v3756_v21, %v10231_v3  ;;  %v3845_v7 = vpop.f32.mrf.mxu1  ;;  %5062 = vmatpush.bf16.msra.mxu1 %v7139_v61 }
 0x59d   : > { %v4022_v48 = vadd.f32 %v4021_v24, %v3933_v32 }
 0x59e   : > { %v3846_v40 = vadd.f32 %v3845_v7, %v3757_v0 }
 0x59f   : > { %v4500_v60 = vmax.f32 %v4022_v48, 0.0 }
 0x5a0   : > { %v4503_v26 = vmax.f32 %v3846_v40, 0.0 }
 0x5a2   : > { %v3934_v49 = vpop.f32.mrf.mxu2  ;;  %v10606_v27 = vpack.c.bf16 %v4503_v26, %v4499_v39 }
 0x5a3   : > { %v3935_v28 = vadd.f32 %v3934_v49, %v10237_v36  ;;  %v4023_v13 = vpop.f32.mrf.mxu3  ;;  %v3759_v34 = vpop.f32.mrf.mxu0 }
 0x5a4   : > { %v3760_v63 = vadd.f32 %v3759_v34, %v10231_v3  ;;  %v3848_v32 = vpop.f32.mrf.mxu1 }
 0x5a5   : > { %v4024_v24 = vadd.f32 %v4023_v13, %v3935_v28 }
 0x5a6   : > { %v3849_v21 = vadd.f32 %v3848_v32, %v3760_v63  ;;  %4074 = vmatmul.bf16.gmra.mxu0 %v9774_v38 }
 0x5a7   : > { %v4504_v0 = vmax.f32 %v4024_v24, 0.0  ;;  %4163 = vmatmul.bf16.gmra.mxu1 %v10099_v53  ;;  %4252 = vmatmul.bf16.gmra.mxu2 %v9774_v38  ;;  %v8156_v38 = vld [vmem:[%s11365_s6] sm:$0xf] }
 0x5a8   : > { %4341 = vmatmul.bf16.gmra.mxu3 %v10099_v53  ;;  %v4507_v48 = vmax.f32 %v3849_v21, 0.0  ;;  %v10621_v13 = vperm.slane %v8156_v38, 2 }
 0x5a9   : > { %v10614_v42 = vpack.c.bf16 %v4504_v0, %v4500_v60 }
 0x5aa   : > { %v3937_v7 = vpop.f32.mrf.mxu2 }
 0x5ab   : > { %v3938_v40 = vadd.f32 %v3937_v7, %v10237_v36  ;;  %v4026_v23 = vpop.f32.mrf.mxu3  ;;  %v3761_v41 = vpop.f32.mrf.mxu0 }
 0x5ac   : > { %v3762_v39 = vadd.f32 %v3761_v41, %v10231_v3  ;;  %v3850_v26 = vpop.f32.mrf.mxu1  ;;  %v7572_v41 = vld [vmem:[%s11366_s7 + $0x124] sm:$0xf0] }
 0x5ad   : > { %v4027_v61 = vadd.f32 %v4026_v23, %v3938_v40  ;;  %v10630_v23 = vperm.slane %v8156_v38, 3 }
 0x5ae   : > { %v3851_v49 = vadd.f32 %v3850_v26, %v3762_v39  ;;  %v7066_v26 = vld [vmem:[%s11366_s7 + $0x20] sm:$0xf] }
 0x5af   : > { %v4508_v21 = vmax.f32 %v4027_v61, 0.0 }
 0x5b0   : > { %v4511_v28 = vmax.f32 %v3851_v49, 0.0 }
 0x5b2   : > { %v3939_v53 = vpop.f32.mrf.mxu2  ;;  %v10623_v34 = vpack.c.bf16 %v4511_v28, %v4507_v48  ;;  %v7588_v28 = vld [vmem:[%s11366_s7 + $0x1a4] sm:$0xf0] }
 0x5b3   : > { %v3940_v63 = vadd.f32 %v3939_v53, %v10237_v36  ;;  %v4028_v32 = vpop.f32.mrf.mxu3  ;;  %v4040_v24 = vpop.f32.mrf.mxu0  ;;  %v7194_v36 = vld [vmem:[%s11366_s7 + $0x120] sm:$0xf] }
 0x5b4   : > { %v4041_v3 = vadd.f32 %v4040_v24, %v10621_v13  ;;  %v4129_v60 = vpop.f32.mrf.mxu1  ;;  %v7195_v39 = vor.u32 %v7572_v41, %v7194_v36 }
 0x5b5   : > { %v4029_v0 = vadd.f32 %v4028_v32, %v3940_v63 }
 0x5b6   : > { %v4130_v7 = vadd.f32 %v4129_v60, %v4041_v3  ;;  %4079 = vmatmul.bf16.gmra.mxu0 %v9788_v15  ;;  %5152 = vmatpush.bf16.msra.mxu2 %v7195_v39 }
 0x5b7   : > { %v4512_v40 = vmax.f32 %v4029_v0, 0.0  ;;  %4168 = vmatmul.bf16.gmra.mxu1 %v10113_v18  ;;  %4257 = vmatmul.bf16.gmra.mxu2 %v9788_v15  ;;  %v7540_v15 = vld [vmem:[%s11366_s7 + $0x24] sm:$0xf0] }
 0x5b8   : > { %4346 = vmatmul.bf16.gmra.mxu3 %v10113_v18  ;;  %v7258_v18 = vld [vmem:[%s11366_s7 + $0x1a0] sm:$0xf]  ;;  %v7067_v48 = vor.u32 %v7540_v15, %v7066_v26  ;;  %v4389_v36 = vmax.f32 %v4130_v7, 0.0 }
 0x5b9   : > { %v10648_v61 = vpack.c.bf16 %v4512_v40, %v4508_v21  ;;  %v7259_v32 = vor.u32 %v7588_v28, %v7258_v18  ;;  %v7130_v21 = vld [vmem:[%s11366_s7 + $0xa0] sm:$0xf]  ;;  %v7556_v40 = vld [vmem:[%s11366_s7 + $0xa4] sm:$0xf0] }
 0x5ba   : > { %v4218_v49 = vpop.f32.mrf.mxu2  ;;  %4974 = vmatpush.bf16.msra.mxu0 %v7067_v48  ;;  %v7131_v26 = vor.u32 %v7556_v40, %v7130_v21 }
 0x5bb   : > { %v4219_v38 = vadd.f32 %v4218_v49, %v10630_v23  ;;  %v4307_v53 = vpop.f32.mrf.mxu3  ;;  %v4042_v63 = vpop.f32.mrf.mxu0  ;;  %5241 = vmatpush.bf16.msra.mxu3 %v7259_v32 }
 0x5bc   : > { %v4043_v24 = vadd.f32 %v4042_v63, %v10621_v13  ;;  %v4131_v3 = vpop.f32.mrf.mxu1  ;;  %5063 = vmatpush.bf16.msra.mxu1 %v7131_v26 }
 0x5bd   : > { %v4308_v60 = vadd.f32 %v4307_v53, %v4219_v38 }
 0x5be   : > { %v4132_v0 = vadd.f32 %v4131_v3, %v4043_v24 }
 0x5bf   : > { %v4390_v32 = vmax.f32 %v4308_v60, 0.0 }
 0x5c0   : > { %v4393_v41 = vmax.f32 %v4132_v0, 0.0 }
 0x5c2   : > { %v10661_v39 = vpack.c.bf16 %v4393_v41, %v4389_v36  ;;  %v4220_v15 = vpop.f32.mrf.mxu2 }
 0x5c3   : > { %v4221_v18 = vadd.f32 %v4220_v15, %v10630_v23  ;;  %v4309_v49 = vpop.f32.mrf.mxu3  ;;  %v4045_v48 = vpop.f32.mrf.mxu0 }
 0x5c4   : > { %v4046_v28 = vadd.f32 %v4045_v48, %v10621_v13  ;;  %v4134_v38 = vpop.f32.mrf.mxu1 }
 0x5c5   : > { %v4310_v53 = vadd.f32 %v4309_v49, %v4221_v18 }
 0x5c6   : > { %v4135_v63 = vadd.f32 %v4134_v38, %v4046_v28  ;;  %4084 = vmatmul.bf16.gmra.mxu0 %v9814_v22 }
 0x5c7   : > { %v4394_v24 = vmax.f32 %v4310_v53, 0.0  ;;  %4173 = vmatmul.bf16.gmra.mxu1 %v10139_v2  ;;  %4262 = vmatmul.bf16.gmra.mxu2 %v9814_v22 }
 0x5c8   : > { %4351 = vmatmul.bf16.gmra.mxu3 %v10139_v2  ;;  %v4397_v60 = vmax.f32 %v4135_v63, 0.0  ;;  %v7186_v63 = vld [vmem:[%s11366_s7 + $0x110] sm:$0xf] }
 0x5c9   : > { %v10669_v7 = vpack.c.bf16 %v4394_v24, %v4390_v32 }
 0x5ca   : > { %v4223_v3 = vpop.f32.mrf.mxu2 }
 0x5cb   : > { %11491 = vst [vmem:[#allocation19_spill] sm:$0xff] %v10669_v7  ;;  %v4224_v0 = vadd.f32 %v4223_v3, %v10630_v23  ;;  %v4312_v21 = vpop.f32.mrf.mxu3  ;;  %v4047_v40 = vpop.f32.mrf.mxu0 }
 0x5cc   : > { %v4048_v36 = vadd.f32 %v4047_v40, %v10621_v13  ;;  %v4136_v41 = vpop.f32.mrf.mxu1 }
 0x5cd   : > { %v4313_v26 = vadd.f32 %v4312_v21, %v4224_v0  ;;  %v7570_v0 = vld [vmem:[%s11366_s7 + $0x114] sm:$0xf0] }
 0x5ce   : > { %v4137_v15 = vadd.f32 %v4136_v41, %v4048_v36  ;;  %v7187_v21 = vor.u32 %v7570_v0, %v7186_v63  ;;  %v7058_v36 = vld [vmem:[%s11366_s7 + $0x10] sm:$0xf]  ;;  %v7538_v41 = vld [vmem:[%s11366_s7 + $0x14] sm:$0xf0] }
 0x5cf   : > { %v4398_v3 = vmax.f32 %v4313_v26, 0.0 }
 0x5d0   : > { %v4401_v18 = vmax.f32 %v4137_v15, 0.0  ;;  %v7059_v15 = vor.u32 %v7538_v41, %v7058_v36  ;;  %5153 = vmatpush.bf16.msra.mxu2 %v7187_v21 }
 0x5d2   : > { %v4225_v49 = vpop.f32.mrf.mxu2  ;;  %v10673_v48 = vpack.c.bf16 %v4401_v18, %v4397_v60  ;;  %v7586_v60 = vld [vmem:[%s11366_s7 + $0x194] sm:$0xf0]  ;;  %4975 = vmatpush.bf16.msra.mxu0 %v7059_v15 }
 0x5d3   : > { %v4226_v22 = vadd.f32 %v4225_v49, %v10630_v23  ;;  %v4314_v2 = vpop.f32.mrf.mxu3  ;;  %v4050_v28 = vpop.f32.mrf.mxu0 }
 0x5d4   : > { %11492 = vst [vmem:[#allocation8_spill] sm:$0xff] %v10673_v48  ;;  %v4051_v38 = vadd.f32 %v4050_v28, %v10621_v13  ;;  %v4139_v53 = vpop.f32.mrf.mxu1 }
 0x5d5   : > { %v4315_v32 = vadd.f32 %v4314_v2, %v4226_v22 }
 0x5d6   : > { %v4140_v24 = vadd.f32 %v4139_v53, %v4051_v38  ;;  %4089 = vmatmul.bf16.gmra.mxu0 %v9828_v10 }
 0x5d7   : > { %v4402_v40 = vmax.f32 %v4315_v32, 0.0  ;;  %4178 = vmatmul.bf16.gmra.mxu1 %v10153_v31  ;;  %4267 = vmatmul.bf16.gmra.mxu2 %v9828_v10  ;;  %v7250_v10 = vld [vmem:[%s11366_s7 + $0x190] sm:$0xf] }
 0x5d8   : > { %4356 = vmatmul.bf16.gmra.mxu3 %v10153_v31  ;;  %v7251_v2 = vor.u32 %v7586_v60, %v7250_v10  ;;  %v4405_v63 = vmax.f32 %v4140_v24, 0.0 }
 0x5d9   : > { %v10696_v31 = vpack.c.bf16 %v4402_v40, %v4398_v3  ;;  %v7122_v3 = vld [vmem:[%s11366_s7 + $0x90] sm:$0xf]  ;;  %v7554_v40 = vld [vmem:[%s11366_s7 + $0x94] sm:$0xf0] }
 0x5da   : > { %v4228_v26 = vpop.f32.mrf.mxu2  ;;  %5242 = vmatpush.bf16.msra.mxu3 %v7251_v2  ;;  %v7123_v36 = vor.u32 %v7554_v40, %v7122_v3 }
 0x5db   : > { %11493 = vst [vmem:[#allocation20_spill] sm:$0xff] %v10696_v31  ;;  %v4229_v18 = vadd.f32 %v4228_v26, %v10630_v23  ;;  %v4317_v49 = vpop.f32.mrf.mxu3  ;;  %v4052_v22 = vpop.f32.mrf.mxu0 }
 0x5dc   : > { %v4053_v28 = vadd.f32 %v4052_v22, %v10621_v13  ;;  %v4141_v38 = vpop.f32.mrf.mxu1  ;;  %5064 = vmatpush.bf16.msra.mxu1 %v7123_v36 }
 0x5dd   : > { %v4318_v53 = vadd.f32 %v4317_v49, %v4229_v18 }
 0x5de   : > { %v4142_v32 = vadd.f32 %v4141_v38, %v4053_v28 }
 0x5df   : > { %v4406_v2 = vmax.f32 %v4318_v53, 0.0 }
 0x5e0   : > { %v4409_v0 = vmax.f32 %v4142_v32, 0.0 }
 0x5e2   : > { %v4230_v21 = vpop.f32.mrf.mxu2  ;;  %v10709_v41 = vpack.c.bf16 %v4409_v0, %v4405_v63 }
 0x5e3   : > { %v4231_v10 = vadd.f32 %v4230_v21, %v10630_v23  ;;  %v4319_v26 = vpop.f32.mrf.mxu3  ;;  %v4055_v15 = vpop.f32.mrf.mxu0 }
 0x5e4   : > { %v4056_v60 = vadd.f32 %v4055_v15, %v10621_v13  ;;  %v4144_v18 = vpop.f32.mrf.mxu1 }
 0x5e5   : > { %v4320_v49 = vadd.f32 %v4319_v26, %v4231_v10 }
 0x5e6   : > { %v4145_v22 = vadd.f32 %v4144_v18, %v4056_v60  ;;  %4094 = vmatmul.bf16.gmra.mxu0 %v9854_v16 }
 0x5e7   : > { %v4410_v28 = vmax.f32 %v4320_v49, 0.0  ;;  %4183 = vmatmul.bf16.gmra.mxu1 %v10179_v54  ;;  %4272 = vmatmul.bf16.gmra.mxu2 %v9854_v16 }
 0x5e8   : > { %4361 = vmatmul.bf16.gmra.mxu3 %v10179_v54  ;;  %v4413_v53 = vmax.f32 %v4145_v22, 0.0  ;;  %v7178_v22 = vld [vmem:[%s11366_s7 + $0x100] sm:$0xf] }
 0x5e9   : > { %v10717_v24 = vpack.c.bf16 %v4410_v28, %v4406_v2 }
 0x5ea   : > { %v4233_v38 = vpop.f32.mrf.mxu2 }
 0x5eb   : > { %11494 = vst [vmem:[#allocation21_spill] sm:$0xff] %v10717_v24  ;;  %v4234_v32 = vadd.f32 %v4233_v38, %v10630_v23  ;;  %v4322_v3 = vpop.f32.mrf.mxu3  ;;  %v4057_v40 = vpop.f32.mrf.mxu0 }
 0x5ec   : > { %v4058_v63 = vadd.f32 %v4057_v40, %v10621_v13  ;;  %v4146_v0 = vpop.f32.mrf.mxu1 }
 0x5ed   : > { %v4323_v36 = vadd.f32 %v4322_v3, %v4234_v32  ;;  %v7568_v32 = vld [vmem:[%s11366_s7 + $0x104] sm:$0xf0] }
 0x5ee   : > { %v4147_v21 = vadd.f32 %v4146_v0, %v4058_v63  ;;  %v7179_v3 = vor.u32 %v7568_v32, %v7178_v22  ;;  %v7050_v63 = vld [vmem:[%s11366_s7] sm:$0xf]  ;;  %v7536_v0 = vld [vmem:[%s11366_s7 + $0x4] sm:$0xf0] }
 0x5ef   : > { %v4414_v38 = vmax.f32 %v4323_v36, 0.0 }
 0x5f0   : > { %v4417_v10 = vmax.f32 %v4147_v21, 0.0  ;;  %v7051_v21 = vor.u32 %v7536_v0, %v7050_v63  ;;  %5154 = vmatpush.bf16.msra.mxu2 %v7179_v3 }
 0x5f2   : > { %v4235_v26 = vpop.f32.mrf.mxu2  ;;  %v10721_v15 = vpack.c.bf16 %v4417_v10, %v4413_v53  ;;  %v7584_v53 = vld [vmem:[%s11366_s7 + $0x184] sm:$0xf0]  ;;  %4976 = vmatpush.bf16.msra.mxu0 %v7051_v21 }
 0x5f3   : > { %v4236_v16 = vadd.f32 %v4235_v26, %v10630_v23  ;;  %v4324_v54 = vpop.f32.mrf.mxu3  ;;  %v4060_v60 = vpop.f32.mrf.mxu0 }
 0x5f4   : > { %11495 = vst [vmem:[#allocation9_spill] sm:$0xff] %v10721_v15  ;;  %v4061_v18 = vadd.f32 %v4060_v60, %v10621_v13  ;;  %v4149_v49 = vpop.f32.mrf.mxu1 }
 0x5f5   : > { %v4325_v2 = vadd.f32 %v4324_v54, %v4236_v16 }
 0x5f6   : > { %v4150_v28 = vadd.f32 %v4149_v49, %v4061_v18  ;;  %4099 = vmatmul.bf16.gmra.mxu0 %v9868_v52 }
 0x5f7   : > { %v4418_v40 = vmax.f32 %v4325_v2, 0.0  ;;  %4188 = vmatmul.bf16.gmra.mxu1 %v10193_v57  ;;  %4277 = vmatmul.bf16.gmra.mxu2 %v9868_v52  ;;  %v7242_v52 = vld [vmem:[%s11366_s7 + $0x180] sm:$0xf] }
 0x5f8   : > { %4366 = vmatmul.bf16.gmra.mxu3 %v10193_v57  ;;  %v7243_v54 = vor.u32 %v7584_v53, %v7242_v52  ;;  %v4421_v22 = vmax.f32 %v4150_v28, 0.0 }
 0x5f9   : > { %v10744_v57 = vpack.c.bf16 %v4418_v40, %v4414_v38  ;;  %v7114_v38 = vld [vmem:[%s11366_s7 + $0x80] sm:$0xf]  ;;  %v7552_v40 = vld [vmem:[%s11366_s7 + $0x84] sm:$0xf0] }
 0x5fa   : > { %v4238_v36 = vpop.f32.mrf.mxu2  ;;  %5243 = vmatpush.bf16.msra.mxu3 %v7243_v54  ;;  %v7115_v63 = vor.u32 %v7552_v40, %v7114_v38 }
 0x5fb   : > { %11496 = vst [vmem:[#allocation10_spill] sm:$0xff] %v10744_v57  ;;  %v4239_v10 = vadd.f32 %v4238_v36, %v10630_v23  ;;  %v4327_v26 = vpop.f32.mrf.mxu3  ;;  %v4062_v16 = vpop.f32.mrf.mxu0 }
 0x5fc   : > { %v4063_v60 = vadd.f32 %v4062_v16, %v10621_v13  ;;  %v4151_v18 = vpop.f32.mrf.mxu1  ;;  %5065 = vmatpush.bf16.msra.mxu1 %v7115_v63 }
 0x5fd   : > { %v4328_v49 = vadd.f32 %v4327_v26, %v4239_v10 }
 0x5fe   : > { %v4152_v2 = vadd.f32 %v4151_v18, %v4063_v60 }
 0x5ff   : > { %v4422_v54 = vmax.f32 %v4328_v49, 0.0 }
 0x600   : > { %v4425_v32 = vmax.f32 %v4152_v2, 0.0 }
 0x602   : > { %v4240_v3 = vpop.f32.mrf.mxu2  ;;  %v10757_v0 = vpack.c.bf16 %v4425_v32, %v4421_v22 }
 0x603   : > { %v4241_v52 = vadd.f32 %v4240_v3, %v10630_v23  ;;  %v4329_v36 = vpop.f32.mrf.mxu3  ;;  %v4065_v21 = vpop.f32.mrf.mxu0 }
 0x604   : > { %11497 = vst [vmem:[#allocation22_spill] sm:$0xff] %v10757_v0  ;;  %v4066_v53 = vadd.f32 %v4065_v21, %v10621_v13  ;;  %v4154_v10 = vpop.f32.mrf.mxu1 }
 0x605   : > { %v4330_v26 = vadd.f32 %v4329_v36, %v4241_v52 }
 0x606   : > { %v4155_v16 = vadd.f32 %v4154_v10, %v4066_v53  ;;  %4104 = vmatmul.bf16.gmra.mxu0 %v9894_v58 }
 0x607   : > { %v4426_v60 = vmax.f32 %v4330_v26, 0.0  ;;  %4193 = vmatmul.bf16.gmra.mxu1 %v10225_v45  ;;  %4282 = vmatmul.bf16.gmra.mxu2 %v9894_v58 }
 0x608   : > { %4371 = vmatmul.bf16.gmra.mxu3 %v10225_v45  ;;  %v4429_v49 = vmax.f32 %v4155_v16, 0.0  ;;  %v7581_v16 = vld [vmem:[%s11366_s7 + $0x174] sm:$0xf] }
 0x609   : > { %v10765_v28 = vpack.c.bf16 %v4426_v60, %v4422_v54 }
 0x60a   : > { %v4243_v18 = vpop.f32.mrf.mxu2 }
 0x60b   : > { %11498 = vst [vmem:[#allocation23_spill] sm:$0xff] %v10765_v28  ;;  %v4244_v2 = vadd.f32 %v4243_v18, %v10630_v23  ;;  %v4332_v38 = vpop.f32.mrf.mxu3  ;;  %v4067_v40 = vpop.f32.mrf.mxu0 }
 0x60c   : > { %v4068_v22 = vadd.f32 %v4067_v40, %v10621_v13  ;;  %v4156_v32 = vpop.f32.mrf.mxu1 }
 0x60d   : > { %v4333_v63 = vadd.f32 %v4332_v38, %v4244_v2  ;;  %v7236_v2 = vld [vmem:[%s11366_s7 + $0x178] sm:$0xf0] }
 0x60e   : > { %v4157_v3 = vadd.f32 %v4156_v32, %v4068_v22  ;;  %v7239_v38 = vor.u32 %v7581_v16, %v7236_v2  ;;  %v7549_v22 = vld [vmem:[%s11366_s7 + $0x74] sm:$0xf]  ;;  %v7108_v32 = vld [vmem:[%s11366_s7 + $0x78] sm:$0xf0] }
 0x60f   : > { %v4430_v18 = vmax.f32 %v4333_v63, 0.0 }
 0x610   : > { %v4433_v52 = vmax.f32 %v4157_v3, 0.0  ;;  %v7111_v3 = vor.u32 %v7549_v22, %v7108_v32  ;;  %5503 = vmatpush.bf16.msrb.mxu2 %v7239_v38 }
 0x612   : > { %v4245_v36 = vpop.f32.mrf.mxu2  ;;  %v10769_v21 = vpack.c.bf16 %v4433_v52, %v4429_v49  ;;  %v7300_v49 = vld [vmem:[%s11366_s7 + $0x1f8] sm:$0xf0]  ;;  %5325 = vmatpush.bf16.msrb.mxu0 %v7111_v3 }
 0x613   : > { %v4246_v58 = vadd.f32 %v4245_v36, %v10630_v23  ;;  %v4334_v45 = vpop.f32.mrf.mxu3  ;;  %v4070_v53 = vpop.f32.mrf.mxu0 }
 0x614   : > { %11499 = vst [vmem:[#allocation11_spill] sm:$0xff] %v10769_v21  ;;  %v4071_v10 = vadd.f32 %v4070_v53, %v10621_v13  ;;  %v4159_v26 = vpop.f32.mrf.mxu1 }
 0x615   : > { %v4335_v54 = vadd.f32 %v4334_v45, %v4246_v58 }
 0x616   : > { %v4160_v60 = vadd.f32 %v4159_v26, %v4071_v10  ;;  %4109 = vmatmul.bf16.gmra.mxu0 %v9913_v55 }
 0x617   : > { %v4434_v40 = vmax.f32 %v4335_v54, 0.0  ;;  %4198 = vmatmul.bf16.gmra.mxu1 %v10259_v33  ;;  %4287 = vmatmul.bf16.gmra.mxu2 %v9913_v55  ;;  %v7597_v55 = vld [vmem:[%s11366_s7 + $0x1f4] sm:$0xf] }
 0x618   : > { %4376 = vmatmul.bf16.gmra.mxu3 %v10259_v33  ;;  %v7303_v45 = vor.u32 %v7597_v55, %v7300_v49  ;;  %v4437_v16 = vmax.f32 %v4160_v60, 0.0 }
 0x619   : > { %v10792_v33 = vpack.c.bf16 %v4434_v40, %v4430_v18  ;;  %v7565_v18 = vld [vmem:[%s11366_s7 + $0xf4] sm:$0xf]  ;;  %v7172_v40 = vld [vmem:[%s11366_s7 + $0xf8] sm:$0xf0] }
 0x61a   : > { %v4248_v63 = vpop.f32.mrf.mxu2  ;;  %5592 = vmatpush.bf16.msrb.mxu3 %v7303_v45  ;;  %v7175_v22 = vor.u32 %v7565_v18, %v7172_v40 }
 0x61b   : > { %11500 = vst [vmem:[#allocation12_spill] sm:$0xff] %v10792_v33  ;;  %v4249_v52 = vadd.f32 %v4248_v63, %v10630_v23  ;;  %v4337_v36 = vpop.f32.mrf.mxu3  ;;  %v4072_v58 = vpop.f32.mrf.mxu0 }
 0x61c   : > { %v4073_v53 = vadd.f32 %v4072_v58, %v10621_v13  ;;  %v4161_v10 = vpop.f32.mrf.mxu1  ;;  %5414 = vmatpush.bf16.msrb.mxu1 %v7175_v22 }
 0x61d   : > { %v4338_v26 = vadd.f32 %v4337_v36, %v4249_v52 }
 0x61e   : > { %v4162_v54 = vadd.f32 %v4161_v10, %v4073_v53 }
 0x61f   : > { %v4438_v45 = vmax.f32 %v4338_v26, 0.0 }
 0x620   : > { %v4441_v2 = vmax.f32 %v4162_v54, 0.0 }
 0x622   : > { %v4250_v38 = vpop.f32.mrf.mxu2  ;;  %v10805_v32 = vpack.c.bf16 %v4441_v2, %v4437_v16 }
 0x623   : > { %v4251_v55 = vadd.f32 %v4250_v38, %v10630_v23  ;;  %v4339_v63 = vpop.f32.mrf.mxu3  ;;  %v4075_v3 = vpop.f32.mrf.mxu0 }
 0x624   : > { %11501 = vst [vmem:[#allocation24_spill] sm:$0xff] %v10805_v32  ;;  %v4076_v49 = vadd.f32 %v4075_v3, %v10621_v13  ;;  %v4164_v52 = vpop.f32.mrf.mxu1 }
 0x625   : > { %v4340_v36 = vadd.f32 %v4339_v63, %v4251_v55 }
 0x626   : > { %v4165_v58 = vadd.f32 %v4164_v52, %v4076_v49  ;;  %4114 = vmatmul.bf16.gmra.mxu0 %v9939_v17 }
 0x627   : > { %v4442_v53 = vmax.f32 %v4340_v36, 0.0  ;;  %4203 = vmatmul.bf16.gmra.mxu1 %v10279_v20  ;;  %4292 = vmatmul.bf16.gmra.mxu2 %v9939_v17 }
 0x628   : > { %4381 = vmatmul.bf16.gmra.mxu3 %v10279_v20  ;;  %v4445_v26 = vmax.f32 %v4165_v58, 0.0  ;;  %v7579_v58 = vld [vmem:[%s11366_s7 + $0x164] sm:$0xf] }
 0x629   : > { %v10813_v60 = vpack.c.bf16 %v4442_v53, %v4438_v45 }
 0x62a   : > { %v4253_v10 = vpop.f32.mrf.mxu2 }
 0x62b   : > { %11502 = vst [vmem:[#allocation25_spill] sm:$0xff] %v10813_v60  ;;  %v4254_v54 = vadd.f32 %v4253_v10, %v10630_v23  ;;  %v4342_v18 = vpop.f32.mrf.mxu3  ;;  %v4077_v40 = vpop.f32.mrf.mxu0 }
 0x62c   : > { %v4078_v16 = vadd.f32 %v4077_v40, %v10621_v13  ;;  %v4166_v2 = vpop.f32.mrf.mxu1 }
 0x62d   : > { %v4343_v22 = vadd.f32 %v4342_v18, %v4254_v54  ;;  %v7228_v54 = vld [vmem:[%s11366_s7 + $0x168] sm:$0xf0] }
 0x62e   : > { %v4167_v38 = vadd.f32 %v4166_v2, %v4078_v16  ;;  %v7231_v18 = vor.u32 %v7579_v58, %v7228_v54  ;;  %v7547_v16 = vld [vmem:[%s11366_s7 + $0x64] sm:$0xf]  ;;  %v7100_v2 = vld [vmem:[%s11366_s7 + $0x68] sm:$0xf0] }
 0x62f   : > { %v4446_v10 = vmax.f32 %v4343_v22, 0.0  ;;  %v7595_v22 = vld [vmem:[%s11366_s7 + $0x1e4] sm:$0xf]  ;;  %v7164_v54 = vld [vmem:[%s11366_s7 + $0xe8] sm:$0xf0] }
 0x630   : > { %v4449_v55 = vmax.f32 %v4167_v38, 0.0  ;;  %5504 = vmatpush.bf16.msrb.mxu2 %v7231_v18 }
 0x632   : > { %v4255_v63 = vpop.f32.mrf.mxu2  ;;  %v10817_v3 = vpack.c.bf16 %v4449_v55, %v4445_v26  ;;  %v7103_v55 = vor.u32 %v7547_v16, %v7100_v2 }
 0x633   : > { %v4256_v17 = vadd.f32 %v4255_v63, %v10630_v23  ;;  %v4344_v20 = vpop.f32.mrf.mxu3  ;;  %v4080_v49 = vpop.f32.mrf.mxu0  ;;  %v7292_v63 = vld [vmem:[%s11366_s7 + $0x1e8] sm:$0xf0] }
 0x634   : > { %v4081_v52 = vadd.f32 %v4080_v49, %v10621_v13  ;;  %v4169_v36 = vpop.f32.mrf.mxu1  ;;  %5326 = vmatpush.bf16.msrb.mxu0 %v7103_v55 }
 0x635   : > { %v4345_v45 = vadd.f32 %v4344_v20, %v4256_v17 }
 0x636   : > { %v4170_v53 = vadd.f32 %v4169_v36, %v4081_v52  ;;  %4977 = vmatmul.bf16.vlgmr.msra.gmra.mxu0 %v10268_v50  ;;  %v7295_v52 = vor.u32 %v7595_v22, %v7292_v63 }
 0x637   : > { %v4450_v40 = vmax.f32 %v4345_v45, 0.0  ;;  %5066 = vmatmul.bf16.vlgmr.msra.gmra.mxu1 %v10276_v44  ;;  %5155 = vmatmul.bf16.vlgmr.msra.gmra.mxu2 %v10661_v39 }
 0x638   : > { %5244 = vmatmul.bf16.vlgmr.msra.gmra.mxu3 %v10669_v7  ;;  %v4453_v16 = vmax.f32 %v4170_v53, 0.0 }
 0x639   : > { %v10840_v38 = vpack.c.bf16 %v4450_v40, %v4446_v10  ;;  %5593 = vmatpush.bf16.msrb.mxu3 %v7295_v52  ;;  %v7563_v40 = vld [vmem:[%s11366_s7 + $0xe4] sm:$0xf] }
 0x63a   : > { %v4258_v26 = vpop.f32.mrf.mxu2 }
 0x63b   : > { %v4259_v17 = vadd.f32 %v4258_v26, %v10630_v23  ;;  %v4347_v20 = vpop.f32.mrf.mxu3  ;;  %v4082_v49 = vpop.f32.mrf.mxu0  ;;  %v7167_v26 = vor.u32 %v7563_v40, %v7164_v54 }
 0x63c   : > { %v4083_v36 = vadd.f32 %v4082_v49, %v10621_v13  ;;  %v4171_v45 = vpop.f32.mrf.mxu1 }
 0x63d   : > { %v4348_v58 = vadd.f32 %v4347_v20, %v4259_v17  ;;  %5415 = vmatpush.bf16.msrb.mxu1 %v7167_v26 }
 0x63e   : > { %v4172_v10 = vadd.f32 %v4171_v45, %v4083_v36 }
 0x63f   : > { %v4454_v45 = vmax.f32 %v4348_v58, 0.0 }
 0x640   : > { %v4457_v2 = vmax.f32 %v4172_v10, 0.0 }
 0x642   : > { %v4260_v18 = vpop.f32.mrf.mxu2  ;;  %v10853_v22 = vpack.c.bf16 %v4457_v2, %v4453_v16 }
 0x643   : > { %v4261_v55 = vadd.f32 %v4260_v18, %v10630_v23  ;;  %v4349_v63 = vpop.f32.mrf.mxu3  ;;  %v4085_v17 = vpop.f32.mrf.mxu0 }
 0x644   : > { %v4086_v20 = vadd.f32 %v4085_v17, %v10621_v13  ;;  %v4174_v49 = vpop.f32.mrf.mxu1 }
 0x645   : > { %v4350_v52 = vadd.f32 %v4349_v63, %v4261_v55 }
 0x646   : > { %v4175_v36 = vadd.f32 %v4174_v49, %v4086_v20  ;;  %4982 = vmatmul.bf16.gmra.mxu0 %v10282_v25 }
 0x647   : > { %v4458_v7 = vmax.f32 %v4350_v52, 0.0  ;;  %5071 = vmatmul.bf16.gmra.mxu1 %v10305_v1  ;;  %5160 = vmatmul.bf16.gmra.mxu2 %v10673_v48 }
 0x648   : > { %5249 = vmatmul.bf16.gmra.mxu3 %v10696_v31  ;;  %v4461_v58 = vmax.f32 %v4175_v36, 0.0  ;;  %v7577_v36 = vld [vmem:[%s11366_s7 + $0x154] sm:$0xf] }
 0x649   : > { %v10861_v53 = vpack.c.bf16 %v4458_v7, %v4454_v45 }
 0x64a   : > { %v4263_v10 = vpop.f32.mrf.mxu2 }
 0x64b   : > { %11503 = vst [vmem:[#allocation26_spill] sm:$0xff] %v10861_v53  ;;  %v4264_v40 = vadd.f32 %v4263_v10, %v10630_v23  ;;  %v4352_v54 = vpop.f32.mrf.mxu3  ;;  %v4087_v16 = vpop.f32.mrf.mxu0 }
 0x64c   : > { %v4088_v2 = vadd.f32 %v4087_v16, %v10621_v13  ;;  %v4176_v26 = vpop.f32.mrf.mxu1 }
 0x64d   : > { %v4353_v18 = vadd.f32 %v4352_v54, %v4264_v40  ;;  %v7220_v40 = vld [vmem:[%s11366_s7 + $0x158] sm:$0xf0] }
 0x64e   : > { %v4177_v55 = vadd.f32 %v4176_v26, %v4088_v2  ;;  %v7223_v54 = vor.u32 %v7577_v36, %v7220_v40  ;;  %v7092_v2 = vld [vmem:[%s11366_s7 + $0x58] sm:$0xf0]  ;;  %v7593_v26 = vld [vmem:[%s11366_s7 + $0x1d4] sm:$0xf] }
 0x64f   : > { %v4462_v16 = vmax.f32 %v4353_v18, 0.0  ;;  %v7156_v40 = vld [vmem:[%s11366_s7 + $0xd8] sm:$0xf0] }
 0x650   : > { %v4465_v63 = vmax.f32 %v4177_v55, 0.0  ;;  %5505 = vmatpush.bf16.msrb.mxu2 %v7223_v54 }
 0x652   : > { %v4265_v17 = vpop.f32.mrf.mxu2  ;;  %v10865_v20 = vpack.c.bf16 %v4465_v63, %v4461_v58  ;;  %v7284_v63 = vld [vmem:[%s11366_s7 + $0x1d8] sm:$0xf0] }
 0x653   : > { %v4266_v49 = vadd.f32 %v4265_v17, %v10630_v23  ;;  %v4354_v52 = vpop.f32.mrf.mxu3  ;;  %v4090_v7 = vpop.f32.mrf.mxu0 }
 0x654   : > { %v4091_v45 = vadd.f32 %v4090_v7, %v10621_v13  ;;  %v4179_v31 = vpop.f32.mrf.mxu1  ;;  %v7287_v7 = vor.u32 %v7593_v26, %v7284_v63 }
 0x655   : > { %v4355_v10 = vadd.f32 %v4354_v52, %v4266_v49 }
 0x656   : > { %v4180_v48 = vadd.f32 %v4179_v31, %v4091_v45  ;;  %4987 = vmatmul.bf16.gmra.mxu0 %v10318_v62  ;;  %v7545_v31 = vld [vmem:[%s11366_s7 + $0x54] sm:$0xf]  ;;  %5594 = vmatpush.bf16.msrb.mxu3 %v7287_v7 }
 0x657   : > { %v4466_v1 = vmax.f32 %v4355_v10, 0.0  ;;  %5076 = vmatmul.bf16.gmra.mxu1 %v10326_v51  ;;  %5165 = vmatmul.bf16.gmra.mxu2 %v10709_v41  ;;  %v7095_v58 = vor.u32 %v7545_v31, %v7092_v2 }
 0x658   : > { %5254 = vmatmul.bf16.gmra.mxu3 %v10717_v24  ;;  %v4469_v31 = vmax.f32 %v4180_v48, 0.0 }
 0x659   : > { %v10888_v18 = vpack.c.bf16 %v4466_v1, %v4462_v16  ;;  %5327 = vmatpush.bf16.msrb.mxu0 %v7095_v58  ;;  %v7561_v16 = vld [vmem:[%s11366_s7 + $0xd4] sm:$0xf] }
 0x65a   : > { %v4268_v55 = vpop.f32.mrf.mxu2 }
 0x65b   : > { %11504 = vst [vmem:[#allocation13_spill] sm:$0xff] %v10888_v18  ;;  %v4269_v17 = vadd.f32 %v4268_v55, %v10630_v23  ;;  %v4357_v49 = vpop.f32.mrf.mxu3  ;;  %v4092_v52 = vpop.f32.mrf.mxu0  ;;  %v7159_v55 = vor.u32 %v7561_v16, %v7156_v40 }
 0x65c   : > { %v4093_v45 = vadd.f32 %v4092_v52, %v10621_v13  ;;  %v4181_v10 = vpop.f32.mrf.mxu1 }
 0x65d   : > { %v4358_v36 = vadd.f32 %v4357_v49, %v4269_v17  ;;  %5416 = vmatpush.bf16.msrb.mxu1 %v7159_v55 }
 0x65e   : > { %v4182_v1 = vadd.f32 %v4181_v10, %v4093_v45 }
 0x65f   : > { %v4470_v10 = vmax.f32 %v4358_v36, 0.0 }
 0x660   : > { %v4473_v2 = vmax.f32 %v4182_v1, 0.0 }
 0x662   : > { %v4270_v54 = vpop.f32.mrf.mxu2  ;;  %v10901_v26 = vpack.c.bf16 %v4473_v2, %v4469_v31 }
 0x663   : > { %v4271_v58 = vadd.f32 %v4270_v54, %v10630_v23  ;;  %v4359_v63 = vpop.f32.mrf.mxu3  ;;  %v4095_v17 = vpop.f32.mrf.mxu0 }
 0x664   : > { %v4096_v49 = vadd.f32 %v4095_v17, %v10621_v13  ;;  %v4184_v52 = vpop.f32.mrf.mxu1 }
 0x665   : > { %v4360_v7 = vadd.f32 %v4359_v63, %v4271_v58 }
 0x666   : > { %v4185_v45 = vadd.f32 %v4184_v52, %v4096_v49  ;;  %4992 = vmatmul.bf16.gmra.mxu0 %v10330_v12 }
 0x667   : > { %v4474_v24 = vmax.f32 %v4360_v7, 0.0  ;;  %5081 = vmatmul.bf16.gmra.mxu1 %v10353_v56  ;;  %5170 = vmatmul.bf16.gmra.mxu2 %v10721_v15 }
 0x668   : > { %5259 = vmatmul.bf16.gmra.mxu3 %v10744_v57  ;;  %v4477_v36 = vmax.f32 %v4185_v45, 0.0  ;;  %v7575_v45 = vld [vmem:[%s11366_s7 + $0x144] sm:$0xf] }
 0x669   : > { %v10909_v48 = vpack.c.bf16 %v4474_v24, %v4470_v10 }
 0x66a   : > { %v4273_v1 = vpop.f32.mrf.mxu2 }
 0x66b   : > { %v4274_v16 = vadd.f32 %v4273_v1, %v10630_v23  ;;  %v4362_v40 = vpop.f32.mrf.mxu3  ;;  %v4097_v31 = vpop.f32.mrf.mxu0 }
 0x66c   : > { %v4098_v2 = vadd.f32 %v4097_v31, %v10621_v13  ;;  %v4186_v55 = vpop.f32.mrf.mxu1 }
 0x66d   : > { %v4363_v54 = vadd.f32 %v4362_v40, %v4274_v16  ;;  %v7212_v16 = vld [vmem:[%s11366_s7 + $0x148] sm:$0xf0] }
 0x66e   : > { %v4187_v58 = vadd.f32 %v4186_v55, %v4098_v2  ;;  %v7215_v40 = vor.u32 %v7575_v45, %v7212_v16  ;;  %v7084_v2 = vld [vmem:[%s11366_s7 + $0x48] sm:$0xf0]  ;;  %v7591_v55 = vld [vmem:[%s11366_s7 + $0x1c4] sm:$0xf] }
 0x66f   : > { %v4478_v31 = vmax.f32 %v4363_v54, 0.0  ;;  %v7148_v16 = vld [vmem:[%s11366_s7 + $0xc8] sm:$0xf0] }
 0x670   : > { %v4481_v63 = vmax.f32 %v4187_v58, 0.0  ;;  %5506 = vmatpush.bf16.msrb.mxu2 %v7215_v40 }
 0x672   : > { %v4275_v17 = vpop.f32.mrf.mxu2  ;;  %v10913_v49 = vpack.c.bf16 %v4481_v63, %v4477_v36  ;;  %v7276_v63 = vld [vmem:[%s11366_s7 + $0x1c8] sm:$0xf0] }
 0x673   : > { %v4276_v52 = vadd.f32 %v4275_v17, %v10630_v23  ;;  %v4364_v7 = vpop.f32.mrf.mxu3  ;;  %v4100_v24 = vpop.f32.mrf.mxu0 }
 0x674   : > { %v4101_v10 = vadd.f32 %v4100_v24, %v10621_v13  ;;  %v4189_v57 = vpop.f32.mrf.mxu1  ;;  %v7279_v24 = vor.u32 %v7591_v55, %v7276_v63 }
 0x675   : > { %v4365_v1 = vadd.f32 %v4364_v7, %v4276_v52 }
 0x676   : > { %v4190_v15 = vadd.f32 %v4189_v57, %v4101_v10  ;;  %4997 = vmatmul.bf16.gmra.mxu0 %v10366_v37  ;;  %v7543_v57 = vld [vmem:[%s11366_s7 + $0x44] sm:$0xf]  ;;  %5595 = vmatpush.bf16.msrb.mxu3 %v7279_v24 }
 0x677   : > { %v4482_v56 = vmax.f32 %v4365_v1, 0.0  ;;  %5086 = vmatmul.bf16.gmra.mxu1 %v10374_v59  ;;  %5175 = vmatmul.bf16.gmra.mxu2 %v10757_v0  ;;  %v7087_v36 = vor.u32 %v7543_v57, %v7084_v2 }
 0x678   : > { %5264 = vmatmul.bf16.gmra.mxu3 %v10765_v28  ;;  %v4485_v57 = vmax.f32 %v4190_v15, 0.0  ;;  %v11506_v15 = vld [vmem:[#allocation17_spill] sm:$0xff] }
 0x679   : > { %v10936_v54 = vpack.c.bf16 %v4482_v56, %v4478_v31  ;;  %5328 = vmatpush.bf16.msrb.mxu0 %v7087_v36  ;;  %v7559_v31 = vld [vmem:[%s11366_s7 + $0xc4] sm:$0xf] }
 0x67a   : > { %v4278_v58 = vpop.f32.mrf.mxu2 }
 0x67b   : > { %v4279_v17 = vadd.f32 %v4278_v58, %v10630_v23  ;;  %v4367_v52 = vpop.f32.mrf.mxu3  ;;  %v4102_v7 = vpop.f32.mrf.mxu0  ;;  %v7151_v58 = vor.u32 %v7559_v31, %v7148_v16 }
 0x67c   : > { %v4103_v10 = vadd.f32 %v4102_v7, %v10621_v13  ;;  %v4191_v1 = vpop.f32.mrf.mxu1 }
 0x67d   : > { %v4368_v45 = vadd.f32 %v4367_v52, %v4279_v17  ;;  %5417 = vmatpush.bf16.msrb.mxu1 %v7151_v58 }
 0x67e   : > { %v4192_v56 = vadd.f32 %v4191_v1, %v4103_v10  ;;  %v11505_v1 = vld [vmem:[#allocation16_spill] sm:$0xff] }
 0x67f   : > { %v4486_v28 = vmax.f32 %v4368_v45, 0.0 }
 0x680   : > { %v4489_v2 = vmax.f32 %v4192_v56, 0.0 }
 0x682   : > { %v4280_v40 = vpop.f32.mrf.mxu2  ;;  %v10949_v55 = vpack.c.bf16 %v4489_v2, %v4485_v57 }
 0x683   : > { %v4281_v36 = vadd.f32 %v4280_v40, %v10630_v23  ;;  %v4369_v63 = vpop.f32.mrf.mxu3  ;;  %v4105_v17 = vpop.f32.mrf.mxu0 }
 0x684   : > { %v4106_v52 = vadd.f32 %v4105_v17, %v10621_v13  ;;  %v4194_v7 = vpop.f32.mrf.mxu1 }
 0x685   : > { %v4370_v24 = vadd.f32 %v4369_v63, %v4281_v36 }
 0x686   : > { %v4195_v10 = vadd.f32 %v4194_v7, %v4106_v52  ;;  %5002 = vmatmul.bf16.gmra.mxu0 %v11505_v1  ;;  %v11507_v1 = vld [vmem:[#allocation7_spill] sm:$0xff] }
 0x687   : > { %v4490_v0 = vmax.f32 %v4370_v24, 0.0  ;;  %5091 = vmatmul.bf16.gmra.mxu1 %v11506_v15  ;;  %5180 = vmatmul.bf16.gmra.mxu2 %v10769_v21 }
 0x688   : > { %5269 = vmatmul.bf16.gmra.mxu3 %v10792_v33  ;;  %v4493_v45 = vmax.f32 %v4195_v10, 0.0  ;;  %v7573_v10 = vld [vmem:[%s11366_s7 + $0x134] sm:$0xf] }
 0x689   : > { %v10957_v56 = vpack.c.bf16 %v4490_v0, %v4486_v28 }
 0x68a   : > { %v4283_v31 = vpop.f32.mrf.mxu2 }
 0x68b   : > { %v4284_v16 = vadd.f32 %v4283_v31, %v10630_v23  ;;  %v4372_v57 = vpop.f32.mrf.mxu3  ;;  %v4107_v2 = vpop.f32.mrf.mxu0 }
 0x68c   : > { %v4108_v58 = vadd.f32 %v4107_v2, %v10621_v13  ;;  %v4196_v40 = vpop.f32.mrf.mxu1 }
 0x68d   : > { %v4373_v36 = vadd.f32 %v4372_v57, %v4284_v16  ;;  %v11508_v16 = vld [vmem:[#allocation18_spill] sm:$0xff]  ;;  %v7204_v57 = vld [vmem:[%s11366_s7 + $0x138] sm:$0xf0] }
 0x68e   : > { %v4197_v63 = vadd.f32 %v4196_v40, %v4108_v58  ;;  %v7076_v58 = vld [vmem:[%s11366_s7 + $0x38] sm:$0xf0]  ;;  %v7589_v40 = vld [vmem:[%s11366_s7 + $0x1b4] sm:$0xf] }
 0x68f   : > { %v4494_v2 = vmax.f32 %v4373_v36, 0.0 }
 0x690   : > { %v4497_v17 = vmax.f32 %v4197_v63, 0.0 }
 0x692   : > { %v4285_v52 = vpop.f32.mrf.mxu2  ;;  %v10961_v7 = vpack.c.bf16 %v4497_v17, %v4493_v45  ;;  %v7268_v17 = vld [vmem:[%s11366_s7 + $0x1b8] sm:$0xf0] }
 0x693   : > { %v4286_v24 = vadd.f32 %v4285_v52, %v10630_v23  ;;  %v4374_v33 = vpop.f32.mrf.mxu3  ;;  %v4110_v0 = vpop.f32.mrf.mxu0 }
 0x694   : > { %v4111_v28 = vadd.f32 %v4110_v0, %v10621_v13  ;;  %v4199_v21 = vpop.f32.mrf.mxu1 }
 0x695   : > { %v4375_v31 = vadd.f32 %v4374_v33, %v4286_v24  ;;  %v7207_v33 = vor.u32 %v7573_v10, %v7204_v57 }
 0x696   : > { %v4200_v15 = vadd.f32 %v4199_v21, %v4111_v28  ;;  %5007 = vmatmul.bf16.gmra.mxu0 %v11507_v1  ;;  %v7541_v21 = vld [vmem:[%s11366_s7 + $0x34] sm:$0xf]  ;;  %v7271_v28 = vor.u32 %v7589_v40, %v7268_v17 }
 0x697   : > { %v4498_v59 = vmax.f32 %v4375_v31, 0.0  ;;  %5096 = vmatmul.bf16.gmra.mxu1 %v11508_v16  ;;  %5185 = vmatmul.bf16.gmra.mxu2 %v10805_v32  ;;  %v7079_v45 = vor.u32 %v7541_v21, %v7076_v58 }
 0x698   : > { %5274 = vmatmul.bf16.gmra.mxu3 %v10813_v60  ;;  %5507 = vmatpush.bf16.msrb.mxu2 %v7207_v33 }
 0x699   : > { %v10984_v36 = vpack.c.bf16 %v4498_v59, %v4494_v2  ;;  %5329 = vmatpush.bf16.msrb.mxu0 %v7079_v45  ;;  %5596 = vmatpush.bf16.msrb.mxu3 %v7271_v28  ;;  %v4501_v2 = vmax.f32 %v4200_v15, 0.0 }
 0x69a   : > { %v4288_v63 = vpop.f32.mrf.mxu2 }
 0x69b   : > { %v4289_v52 = vadd.f32 %v4288_v63, %v10630_v23  ;;  %v4377_v24 = vpop.f32.mrf.mxu3  ;;  %v4112_v0 = vpop.f32.mrf.mxu0 }
 0x69c   : > { %v4113_v31 = vadd.f32 %v4112_v0, %v10621_v13  ;;  %v4201_v10 = vpop.f32.mrf.mxu1 }
 0x69d   : > { %v4378_v57 = vadd.f32 %v4377_v24, %v4289_v52 }
 0x69e   : > { %v4202_v59 = vadd.f32 %v4201_v10, %v4113_v31  ;;  %v4643_v10 = vld [vmem:[%s11367_s8] sm:$0x3] }
 0x69f   : > { %v4502_v45 = vmax.f32 %v4378_v57, 0.0 }
 0x6a0   : > { %v4505_v60 = vmax.f32 %v4202_v59, 0.0 }
 0x6a2   : > { %v4290_v21 = vpop.f32.mrf.mxu2  ;;  %v10991_v58 = vpack.c.bf16 %v4505_v60, %v4501_v2  ;;  %v11006_v2 = vperm.slane %v4643_v10, 0 }
 0x6a3   : > { %v4291_v32 = vadd.f32 %v4290_v21, %v10630_v23  ;;  %v4379_v16 = vpop.f32.mrf.mxu3  ;;  %v4115_v63 = vpop.f32.mrf.mxu0 }
 0x6a4   : > { %v4116_v1 = vadd.f32 %v4115_v63, %v10621_v13  ;;  %v4204_v33 = vpop.f32.mrf.mxu1 }
 0x6a5   : > { %v4380_v40 = vadd.f32 %v4379_v16, %v4291_v32 }
 0x6a6   : > { %v4205_v17 = vadd.f32 %v4204_v33, %v4116_v1  ;;  %5012 = vmatmul.bf16.gmra.mxu0 %v10426_v35 }
 0x6a7   : > { %v4506_v52 = vmax.f32 %v4380_v40, 0.0  ;;  %5101 = vmatmul.bf16.gmra.mxu1 %v10449_v47  ;;  %5190 = vmatmul.bf16.gmra.mxu2 %v10817_v3 }
 0x6a8   : > { %5279 = vmatmul.bf16.gmra.mxu3 %v10840_v38  ;;  %v4509_v57 = vmax.f32 %v4205_v17, 0.0 }
 0x6a9   : > { %v10999_v60 = vpack.c.bf16 %v4506_v52, %v4502_v45  ;;  %v7140_v52 = vld [vmem:[%s11366_s7 + $0xb8] sm:$0xf0] }
 0x6aa   : > { %v4293_v15 = vpop.f32.mrf.mxu2 }
 0x6ab   : > { %v4294_v24 = vadd.f32 %v4293_v15, %v10630_v23  ;;  %v4382_v0 = vpop.f32.mrf.mxu3  ;;  %v4117_v28 = vpop.f32.mrf.mxu0 }
 0x6ac   : > { %v4118_v32 = vadd.f32 %v4117_v28, %v10621_v13  ;;  %v4206_v1 = vpop.f32.mrf.mxu1  ;;  %v7557_v13 = vld [vmem:[%s11366_s7 + $0xb4] sm:$0xf] }
 0x6ad   : > { %v4383_v16 = vadd.f32 %v4382_v0, %v4294_v24  ;;  %v7143_v17 = vor.u32 %v7557_v13, %v7140_v52 }
 0x6ae   : > { %v4207_v31 = vadd.f32 %v4206_v1, %v4118_v32 }
 0x6af   : > { %5418 = vmatpush.bf16.msrb.mxu1 %v7143_v17  ;;  %v4510_v28 = vmax.f32 %v4383_v16, 0.0 }
 0x6b0   : > { %v4513_v59 = vmax.f32 %v4207_v31, 0.0 }
 0x6b2   : > { %v4295_v21 = vpop.f32.mrf.mxu2  ;;  %v11008_v63 = vpack.c.bf16 %v4513_v59, %v4509_v57 }
 0x6b3   : > { %v4296_v33 = vadd.f32 %v4295_v21, %v10630_v23  ;;  %v4384_v40 = vpop.f32.mrf.mxu3  ;;  %v4978_v45 = vpop.f32.mrf.mxu0 }
 0x6b4   : > { %v5067_v15 = vpop.f32.mrf.mxu1  ;;  %v4979_v0 = vadd.f32 %v4978_v45, %v11006_v2 }
 0x6b5   : > { %v4385_v24 = vadd.f32 %v4384_v40, %v4296_v33 }
 0x6b6   : > { %5017 = vmatmul.bf16.gmra.mxu0 %v10462_v30  ;;  %v5068_v32 = vadd.f32 %v5067_v15, %v4979_v0 }
 0x6b7   : > { %v4514_v23 = vmax.f32 %v4385_v24, 0.0  ;;  %5106 = vmatmul.bf16.gmra.mxu1 %v10470_v43  ;;  %5195 = vmatmul.bf16.gmra.mxu2 %v10853_v22 }
 0x6b8   : > { %5284 = vmatmul.bf16.gmra.mxu3 %v10861_v53 }
 0x6b9   : > { %v11022_v1 = vpack.c.bf16 %v4514_v23, %v4510_v28 }
 0x6ba   : > { %v5156_v31 = vpop.f32.mrf.mxu2 }
 0x6bb   : > { %v5157_v10 = vadd.f32 %v5156_v31, %v5068_v32  ;;  %v5245_v57 = vpop.f32.mrf.mxu3  ;;  %v4980_v59 = vpop.f32.mrf.mxu0 }
 0x6bc   : > { %v5069_v21 = vpop.f32.mrf.mxu1  ;;  %v4981_v40 = vadd.f32 %v4980_v59, %v11006_v2 }
 0x6bd   : > { %v5246_v33 = vadd.f32 %v5245_v57, %v5157_v10 }
 0x6be   : > { %v5070_v13 = vadd.f32 %v5069_v21, %v4981_v40  ;;  %v7571_v40 = vld [vmem:[%s11366_s7 + $0x124] sm:$0xf] }
 0x6bf   : > { %v5681_v45 = vsub.f32 0.0, %v5246_v33 }
 0x6c1   : > { %v5745_v16 = vmul.f32 1.442695, %v5681_v45  ;;  %v7196_v45 = vld [vmem:[%s11366_s7 + $0x128] sm:$0xf0] }
 0x6c2   : > { %v5158_v52 = vpop.f32.mrf.mxu2 }
 0x6c3   : > { %7898 = vpow2.f32 %v5745_v16  ;;  %v5159_v17 = vadd.f32 %v5158_v52, %v5070_v13  ;;  %v5247_v24 = vpop.f32.mrf.mxu3  ;;  %v4983_v53 = vpop.f32.mrf.mxu0  ;;  %v7539_v16 = vld [vmem:[%s11366_s7 + $0x24] sm:$0xf]  ;;  %v7199_v52 = vor.u32 %v7571_v40, %v7196_v45 }
 0x6c4   : > { %v5072_v15 = vpop.f32.mrf.mxu1  ;;  %v4984_v28 = vadd.f32 %v4983_v53, %v11006_v2 }
 0x6c5   : > { %v5248_v0 = vadd.f32 %v5247_v24, %v5159_v17  ;;  %v7068_v17 = vld [vmem:[%s11366_s7 + $0x28] sm:$0xf0]  ;;  %v7587_v24 = vld [vmem:[%s11366_s7 + $0x1a4] sm:$0xf]  ;;  %5508 = vmatpush.bf16.msrb.mxu2 %v7199_v52 }
 0x6c6   : > { %5022 = vmatmul.bf16.gmra.mxu0 %v10474_v14  ;;  %v5073_v10 = vadd.f32 %v5072_v15, %v4984_v28  ;;  %v7260_v15 = vld [vmem:[%s11366_s7 + $0x1a8] sm:$0xf0] }
 0x6c7   : > { %v5683_v23 = vsub.f32 0.0, %v5248_v0  ;;  %5111 = vmatmul.bf16.gmra.mxu1 %v10497_v29  ;;  %5200 = vmatmul.bf16.gmra.mxu2 %v10865_v20  ;;  %v7132_v52 = vld [vmem:[%s11366_s7 + $0xa8] sm:$0xf0] }
 0x6c8   : > { %5289 = vmatmul.bf16.gmra.mxu3 %v10888_v18 }
 0x6c9   : > { %v7899_v32 = vpop.eup %7898  ;;  %v5749_v31 = vmul.f32 1.442695, %v5683_v23  ;;  %v7071_v23 = vor.u32 %v7539_v16, %v7068_v17  ;;  %v7555_v16 = vld [vmem:[%s11366_s7 + $0xa4] sm:$0xf] }
 0x6ca   : > { %v5873_v57 = vadd.f32 1.0, %v7899_v32  ;;  %v5161_v59 = vpop.f32.mrf.mxu2  ;;  %v7263_v32 = vor.u32 %v7587_v24, %v7260_v15  ;;  %v7135_v17 = vor.u32 %v7555_v16, %v7132_v52 }
 0x6cb   : > { %7900 = vpow2.f32 %v5749_v31  ;;  %v5162_v21 = vadd.f32 %v5161_v59, %v5073_v10  ;;  %v5250_v33 = vpop.f32.mrf.mxu3  ;;  %v4985_v53 = vpop.f32.mrf.mxu0  ;;  %5330 = vmatpush.bf16.msrb.mxu0 %v7071_v23 }
 0x6cc   : > { %7902 = vrcp.f32 %v5873_v57  ;;  %v5074_v13 = vpop.f32.mrf.mxu1  ;;  %v4986_v28 = vadd.f32 %v4985_v53, %v11006_v2  ;;  %5597 = vmatpush.bf16.msrb.mxu3 %v7263_v32  ;;  %5419 = vmatpush.bf16.msrb.mxu1 %v7135_v17 }
 0x6cd   : > { %v5251_v0 = vadd.f32 %v5250_v33, %v5162_v21 }
 0x6ce   : > { %v5075_v59 = vadd.f32 %v5074_v13, %v4986_v28 }
 0x6cf   : > { %v5685_v31 = vsub.f32 0.0, %v5251_v0 }
 0x6d1   : > { %v7901_v10 = vpop.eup %7900  ;;  %v5753_v57 = vmul.f32 1.442695, %v5685_v31 }
 0x6d2   : > { %v7903_v40 = vpop.eup %7902  ;;  %v5875_v45 = vadd.f32 1.0, %v7901_v10  ;;  %v5163_v18 = vpop.f32.mrf.mxu2 }
 0x6d3   : > { %6001 = vst [vmem:[%s11052_s26] sm:$0xff] %v7903_v40  ;;  %7904 = vpow2.f32 %v5753_v57  ;;  %v5164_v21 = vadd.f32 %v5163_v18, %v5075_v59  ;;  %v5252_v33 = vpop.f32.mrf.mxu3  ;;  %v4988_v53 = vpop.f32.mrf.mxu0 }
 0x6d4   : > { %7906 = vrcp.f32 %v5875_v45  ;;  %v5077_v13 = vpop.f32.mrf.mxu1  ;;  %v4989_v15 = vadd.f32 %v4988_v53, %v11006_v2 }
 0x6d5   : > { %v5253_v24 = vadd.f32 %v5252_v33, %v5164_v21 }
 0x6d6   : > { %5027 = vmatmul.bf16.gmra.mxu0 %v10510_v6  ;;  %v5078_v23 = vadd.f32 %v5077_v13, %v4989_v15 }
 0x6d7   : > { %v5687_v18 = vsub.f32 0.0, %v5253_v24  ;;  %5116 = vmatmul.bf16.gmra.mxu1 %v10518_v46  ;;  %5205 = vmatmul.bf16.gmra.mxu2 %v10901_v26 }
 0x6d8   : > { %5294 = vmatmul.bf16.gmra.mxu3 %v10909_v48 }
 0x6d9   : > { %v7905_v0 = vpop.eup %7904  ;;  %v5757_v28 = vmul.f32 1.442695, %v5687_v18 }
 0x6da   : > { %v7907_v32 = vpop.eup %7906  ;;  %v5877_v31 = vadd.f32 1.0, %v7905_v0  ;;  %v5166_v10 = vpop.f32.mrf.mxu2 }
 0x6db   : > { %6003 = vst [vmem:[%s11052_s26 + $0x10] sm:$0xff] %v7907_v32  ;;  %7908 = vpow2.f32 %v5757_v28  ;;  %v5167_v57 = vadd.f32 %v5166_v10, %v5078_v23  ;;  %v5255_v59 = vpop.f32.mrf.mxu3  ;;  %v4990_v40 = vpop.f32.mrf.mxu0 }
 0x6dc   : > { %7910 = vrcp.f32 %v5877_v31  ;;  %v5079_v45 = vpop.f32.mrf.mxu1  ;;  %v4991_v33 = vadd.f32 %v4990_v40, %v11006_v2 }
 0x6dd   : > { %v5256_v21 = vadd.f32 %v5255_v59, %v5167_v57 }
 0x6de   : > { %v5080_v17 = vadd.f32 %v5079_v45, %v4991_v33 }
 0x6df   : > { %v5689_v53 = vsub.f32 0.0, %v5256_v21 }
 0x6e1   : > { %v7909_v16 = vpop.eup %7908  ;;  %v5761_v52 = vmul.f32 1.442695, %v5689_v53 }
 0x6e2   : > { %v7911_v24 = vpop.eup %7910  ;;  %v5879_v13 = vadd.f32 1.0, %v7909_v16  ;;  %v5168_v15 = vpop.f32.mrf.mxu2 }
 0x6e3   : > { %6005 = vst [vmem:[%s11052_s26 + $0x20] sm:$0xff] %v7911_v24  ;;  %7912 = vpow2.f32 %v5761_v52  ;;  %v5169_v18 = vadd.f32 %v5168_v15, %v5080_v17  ;;  %v5257_v0 = vpop.f32.mrf.mxu3  ;;  %v4993_v28 = vpop.f32.mrf.mxu0  ;;  %v7569_v17 = vld [vmem:[%s11366_s7 + $0x114] sm:$0xf]  ;;  %v7188_v24 = vld [vmem:[%s11366_s7 + $0x118] sm:$0xf0] }
 0x6e4   : > { %7914 = vrcp.f32 %v5879_v13  ;;  %v5082_v23 = vpop.f32.mrf.mxu1  ;;  %v4994_v31 = vadd.f32 %v4993_v28, %v11006_v2  ;;  %v7191_v15 = vor.u32 %v7569_v17, %v7188_v24  ;;  %v7585_v28 = vld [vmem:[%s11366_s7 + $0x194] sm:$0xf] }
 0x6e5   : > { %v5258_v32 = vadd.f32 %v5257_v0, %v5169_v18  ;;  %v7537_v18 = vld [vmem:[%s11366_s7 + $0x14] sm:$0xf]  ;;  %v7060_v0 = vld [vmem:[%s11366_s7 + $0x18] sm:$0xf0] }
 0x6e6   : > { %5032 = vmatmul.bf16.gmra.mxu0 %v10522_v19  ;;  %v5083_v40 = vadd.f32 %v5082_v23, %v4994_v31  ;;  %v7063_v31 = vor.u32 %v7537_v18, %v7060_v0  ;;  %5509 = vmatpush.bf16.msrb.mxu2 %v7191_v15  ;;  %v7553_v18 = vld [vmem:[%s11366_s7 + $0x94] sm:$0xf]  ;;  %v7124_v15 = vld [vmem:[%s11366_s7 + $0x98] sm:$0xf0] }
 0x6e7   : > { %v5691_v10 = vsub.f32 0.0, %v5258_v32  ;;  %5121 = vmatmul.bf16.gmra.mxu1 %v10545_v5  ;;  %5210 = vmatmul.bf16.gmra.mxu2 %v10913_v49 }
 0x6e8   : > { %5299 = vmatmul.bf16.gmra.mxu3 %v10936_v54  ;;  %5331 = vmatpush.bf16.msrb.mxu0 %v7063_v31 }
 0x6e9   : > { %v7913_v57 = vpop.eup %7912  ;;  %v5765_v59 = vmul.f32 1.442695, %v5691_v10  ;;  %v7252_v10 = vld [vmem:[%s11366_s7 + $0x198] sm:$0xf0] }
 0x6ea   : > { %v7915_v45 = vpop.eup %7914  ;;  %v5881_v21 = vadd.f32 1.0, %v7913_v57  ;;  %v5171_v33 = vpop.f32.mrf.mxu2  ;;  %v7255_v57 = vor.u32 %v7585_v28, %v7252_v10 }
 0x6eb   : > { %6007 = vst [vmem:[%s11052_s26 + $0x30] sm:$0xff] %v7915_v45  ;;  %7916 = vpow2.f32 %v5765_v59  ;;  %v5172_v53 = vadd.f32 %v5171_v33, %v5083_v40  ;;  %v5260_v16 = vpop.f32.mrf.mxu3  ;;  %v4995_v52 = vpop.f32.mrf.mxu0 }
 0x6ec   : > { %7918 = vrcp.f32 %v5881_v21  ;;  %v5084_v13 = vpop.f32.mrf.mxu1  ;;  %v4996_v32 = vadd.f32 %v4995_v52, %v11006_v2  ;;  %5598 = vmatpush.bf16.msrb.mxu3 %v7255_v57 }
 0x6ed   : > { %v5261_v23 = vadd.f32 %v5260_v16, %v5172_v53 }
 0x6ee   : > { %v5085_v21 = vadd.f32 %v5084_v13, %v4996_v32  ;;  %v7127_v13 = vor.u32 %v7553_v18, %v7124_v15 }
 0x6ef   : > { %v5693_v59 = vsub.f32 0.0, %v5261_v23 }
 0x6f0   : > { %5420 = vmatpush.bf16.msrb.mxu1 %v7127_v13 }
 0x6f1   : > { %v7917_v40 = vpop.eup %7916  ;;  %v5769_v45 = vmul.f32 1.442695, %v5693_v59 }
 0x6f2   : > { %v7919_v33 = vpop.eup %7918  ;;  %v5883_v17 = vadd.f32 1.0, %v7917_v40  ;;  %v5173_v24 = vpop.f32.mrf.mxu2 }
 0x6f3   : > { %6009 = vst [vmem:[%s11052_s26 + $0x40] sm:$0xff] %v7919_v33  ;;  %7920 = vpow2.f32 %v5769_v45  ;;  %v5174_v53 = vadd.f32 %v5173_v24, %v5085_v21  ;;  %v5262_v16 = vpop.f32.mrf.mxu3  ;;  %v4998_v52 = vpop.f32.mrf.mxu0 }
 0x6f4   : > { %7922 = vrcp.f32 %v5883_v17  ;;  %v5087_v0 = vpop.f32.mrf.mxu1  ;;  %v4999_v23 = vadd.f32 %v4998_v52, %v11006_v2 }
 0x6f5   : > { %v5263_v28 = vadd.f32 %v5262_v16, %v5174_v53 }
 0x6f6   : > { %5037 = vmatmul.bf16.gmra.mxu0 %v10558_v11  ;;  %v5088_v57 = vadd.f32 %v5087_v0, %v4999_v23 }
 0x6f7   : > { %v5695_v32 = vsub.f32 0.0, %v5263_v28  ;;  %5126 = vmatmul.bf16.gmra.mxu1 %v10566_v9  ;;  %5215 = vmatmul.bf16.gmra.mxu2 %v10949_v55 }
 0x6f8   : > { %5304 = vmatmul.bf16.gmra.mxu3 %v10957_v56 }
 0x6f9   : > { %v7921_v31 = vpop.eup %7920  ;;  %v5773_v10 = vmul.f32 1.442695, %v5695_v32 }
 0x6fa   : > { %v7923_v59 = vpop.eup %7922  ;;  %v5885_v40 = vadd.f32 1.0, %v7921_v31  ;;  %v5176_v45 = vpop.f32.mrf.mxu2 }
 0x6fb   : > { %6011 = vst [vmem:[%s11052_s26 + $0x50] sm:$0xff] %v7923_v59  ;;  %7924 = vpow2.f32 %v5773_v10  ;;  %v5177_v21 = vadd.f32 %v5176_v45, %v5088_v57  ;;  %v5265_v33 = vpop.f32.mrf.mxu3  ;;  %v5000_v17 = vpop.f32.mrf.mxu0 }
 0x6fc   : > { %7926 = vrcp.f32 %v5885_v40  ;;  %v5089_v24 = vpop.f32.mrf.mxu1  ;;  %v5001_v16 = vadd.f32 %v5000_v17, %v11006_v2 }
 0x6fd   : > { %v5266_v53 = vadd.f32 %v5265_v33, %v5177_v21 }
 0x6fe   : > { %v5090_v13 = vadd.f32 %v5089_v24, %v5001_v16 }
 0x6ff   : > { %v5697_v52 = vsub.f32 0.0, %v5266_v53 }
 0x701   : > { %v7925_v18 = vpop.eup %7924  ;;  %v5777_v15 = vmul.f32 1.442695, %v5697_v52 }
 0x702   : > { %v7927_v28 = vpop.eup %7926  ;;  %v5887_v0 = vadd.f32 1.0, %v7925_v18  ;;  %v5178_v23 = vpop.f32.mrf.mxu2 }
 0x703   : > { %6013 = vst [vmem:[%s11052_s26 + $0x60] sm:$0xff] %v7927_v28  ;;  %7928 = vpow2.f32 %v5777_v15  ;;  %v5179_v32 = vadd.f32 %v5178_v23, %v5090_v13  ;;  %v5267_v31 = vpop.f32.mrf.mxu3  ;;  %v5003_v10 = vpop.f32.mrf.mxu0  ;;  %v7567_v13 = vld [vmem:[%s11366_s7 + $0x104] sm:$0xf]  ;;  %v7180_v28 = vld [vmem:[%s11366_s7 + $0x108] sm:$0xf0] }
 0x704   : > { %7930 = vrcp.f32 %v5887_v0  ;;  %v5092_v57 = vpop.f32.mrf.mxu1  ;;  %v5004_v40 = vadd.f32 %v5003_v10, %v11006_v2  ;;  %v7183_v23 = vor.u32 %v7567_v13, %v7180_v28  ;;  %v7583_v10 = vld [vmem:[%s11366_s7 + $0x184] sm:$0xf] }
 0x705   : > { %v5268_v59 = vadd.f32 %v5267_v31, %v5179_v32  ;;  %v7535_v32 = vld [vmem:[%s11366_s7 + $0x4] sm:$0xf]  ;;  %v7052_v31 = vld [vmem:[%s11366_s7 + $0x8] sm:$0xf0] }
 0x706   : > { %5042 = vmatmul.bf16.gmra.mxu0 %v10570_v4  ;;  %v5093_v17 = vadd.f32 %v5092_v57, %v5004_v40  ;;  %v7055_v40 = vor.u32 %v7535_v32, %v7052_v31  ;;  %5510 = vmatpush.bf16.msrb.mxu2 %v7183_v23 }
 0x707   : > { %v5699_v45 = vsub.f32 0.0, %v5268_v59  ;;  %5131 = vmatmul.bf16.gmra.mxu1 %v10593_v8  ;;  %5220 = vmatmul.bf16.gmra.mxu2 %v10961_v7 }
 0x708   : > { %5309 = vmatmul.bf16.gmra.mxu3 %v10984_v36  ;;  %5332 = vmatpush.bf16.msrb.mxu0 %v7055_v40 }
 0x709   : > { %v7929_v21 = vpop.eup %7928  ;;  %v5781_v33 = vmul.f32 1.442695, %v5699_v45  ;;  %v7244_v45 = vld [vmem:[%s11366_s7 + $0x188] sm:$0xf0] }
 0x70a   : > { %v7931_v24 = vpop.eup %7930  ;;  %v5889_v53 = vadd.f32 1.0, %v7929_v21  ;;  %v5181_v16 = vpop.f32.mrf.mxu2  ;;  %v7247_v21 = vor.u32 %v7583_v10, %v7244_v45 }
 0x70b   : > { %6015 = vst [vmem:[%s11052_s26 + $0x70] sm:$0xff] %v7931_v24  ;;  %7932 = vpow2.f32 %v5781_v33  ;;  %v5182_v52 = vadd.f32 %v5181_v16, %v5093_v17  ;;  %v5270_v18 = vpop.f32.mrf.mxu3  ;;  %v5005_v15 = vpop.f32.mrf.mxu0 }
 0x70c   : > { %7934 = vrcp.f32 %v5889_v53  ;;  %v5094_v0 = vpop.f32.mrf.mxu1  ;;  %v5006_v59 = vadd.f32 %v5005_v15, %v11006_v2  ;;  %5599 = vmatpush.bf16.msrb.mxu3 %v7247_v21 }
 0x70d   : > { %v5271_v57 = vadd.f32 %v5270_v18, %v5182_v52  ;;  %v7551_v52 = vld [vmem:[%s11366_s7 + $0x84] sm:$0xf]  ;;  %v7116_v18 = vld [vmem:[%s11366_s7 + $0x88] sm:$0xf0] }
 0x70e   : > { %v5095_v53 = vadd.f32 %v5094_v0, %v5006_v59  ;;  %v7119_v31 = vor.u32 %v7551_v52, %v7116_v18 }
 0x70f   : > { %v5701_v33 = vsub.f32 0.0, %v5271_v57 }
 0x710   : > { %5421 = vmatpush.bf16.msrb.mxu1 %v7119_v31 }
 0x711   : > { %v7933_v17 = vpop.eup %7932  ;;  %v5785_v24 = vmul.f32 1.442695, %v5701_v33 }
 0x712   : > { %v7935_v16 = vpop.eup %7934  ;;  %v5891_v13 = vadd.f32 1.0, %v7933_v17  ;;  %v5183_v28 = vpop.f32.mrf.mxu2 }
 0x713   : > { %6017 = vst [vmem:[%s11052_s26 + $0x80] sm:$0xff] %v7935_v16  ;;  %7936 = vpow2.f32 %v5785_v24  ;;  %v5184_v15 = vadd.f32 %v5183_v28, %v5095_v53  ;;  %v5272_v23 = vpop.f32.mrf.mxu3  ;;  %v5008_v32 = vpop.f32.mrf.mxu0 }
 0x714   : > { %7938 = vrcp.f32 %v5891_v13  ;;  %v5097_v0 = vpop.f32.mrf.mxu1  ;;  %v5009_v57 = vadd.f32 %v5008_v32, %v11006_v2 }
 0x715   : > { %v5273_v10 = vadd.f32 %v5272_v23, %v5184_v15 }
 0x716   : > { %5047 = vmatmul.bf16.gmra.mxu0 %v10606_v27  ;;  %v5098_v21 = vadd.f32 %v5097_v0, %v5009_v57 }
 0x717   : > { %v5703_v59 = vsub.f32 0.0, %v5273_v10  ;;  %5136 = vmatmul.bf16.gmra.mxu1 %v10614_v42  ;;  %5225 = vmatmul.bf16.gmra.mxu2 %v10991_v58 }
 0x718   : > { %5314 = vmatmul.bf16.gmra.mxu3 %v10999_v60 }
 0x719   : > { %v7937_v40 = vpop.eup %7936  ;;  %v5789_v45 = vmul.f32 1.442695, %v5703_v59 }
 0x71a   : > { %v7939_v33 = vpop.eup %7938  ;;  %v5893_v17 = vadd.f32 1.0, %v7937_v40  ;;  %v5186_v24 = vpop.f32.mrf.mxu2 }
 0x71b   : > { %6019 = vst [vmem:[%s11052_s26 + $0x90] sm:$0xff] %v7939_v33  ;;  %7940 = vpow2.f32 %v5789_v45  ;;  %v5187_v53 = vadd.f32 %v5186_v24, %v5098_v21  ;;  %v5275_v16 = vpop.f32.mrf.mxu3  ;;  %v5010_v13 = vpop.f32.mrf.mxu0 }
 0x71c   : > { %7942 = vrcp.f32 %v5893_v17  ;;  %v5099_v28 = vpop.f32.mrf.mxu1  ;;  %v5011_v18 = vadd.f32 %v5010_v13, %v11006_v2 }
 0x71d   : > { %v5276_v52 = vadd.f32 %v5275_v16, %v5187_v53 }
 0x71e   : > { %v5100_v31 = vadd.f32 %v5099_v28, %v5011_v18 }
 0x71f   : > { %v5705_v15 = vsub.f32 0.0, %v5276_v52 }
 0x721   : > { %v7941_v23 = vpop.eup %7940  ;;  %v5793_v32 = vmul.f32 1.442695, %v5705_v15 }
 0x722   : > { %v7943_v10 = vpop.eup %7942  ;;  %v5895_v0 = vadd.f32 1.0, %v7941_v23  ;;  %v5188_v57 = vpop.f32.mrf.mxu2 }
 0x723   : > { %6021 = vst [vmem:[%s11052_s26 + $0xa0] sm:$0xff] %v7943_v10  ;;  %7944 = vpow2.f32 %v5793_v32  ;;  %v5189_v59 = vadd.f32 %v5188_v57, %v5100_v31  ;;  %v5277_v40 = vpop.f32.mrf.mxu3  ;;  %v5013_v45 = vpop.f32.mrf.mxu0 }
 0x724   : > { %7946 = vrcp.f32 %v5895_v0  ;;  %v5102_v21 = vpop.f32.mrf.mxu1  ;;  %v5014_v17 = vadd.f32 %v5013_v45, %v11006_v2 }
 0x725   : > { %v5278_v33 = vadd.f32 %v5277_v40, %v5189_v59 }
 0x726   : > { %5052 = vmatmul.bf16.gmra.mxu0 %v10623_v34  ;;  %v5103_v13 = vadd.f32 %v5102_v21, %v5014_v17 }
 0x727   : > { %v5707_v24 = vsub.f32 0.0, %v5278_v33  ;;  %5141 = vmatmul.bf16.gmra.mxu1 %v10648_v61  ;;  %5230 = vmatmul.bf16.gmra.mxu2 %v11008_v63 }
 0x728   : > { %5319 = vmatmul.bf16.gmra.mxu3 %v11022_v1 }
 0x729   : > { %v7945_v53 = vpop.eup %7944  ;;  %v5797_v16 = vmul.f32 1.442695, %v5707_v24 }
 0x72a   : > { %v7947_v28 = vpop.eup %7946  ;;  %v5897_v52 = vadd.f32 1.0, %v7945_v53  ;;  %v5191_v18 = vpop.f32.mrf.mxu2 }
 0x72b   : > { %6023 = vst [vmem:[%s11052_s26 + $0xb0] sm:$0xff] %v7947_v28  ;;  %7948 = vpow2.f32 %v5797_v16  ;;  %v5192_v15 = vadd.f32 %v5191_v18, %v5103_v13  ;;  %v5280_v23 = vpop.f32.mrf.mxu3  ;;  %v5015_v32 = vpop.f32.mrf.mxu0 }
 0x72c   : > { %7950 = vrcp.f32 %v5897_v52  ;;  %v5104_v31 = vpop.f32.mrf.mxu1  ;;  %v5016_v0 = vadd.f32 %v5015_v32, %v11006_v2 }
 0x72d   : > { %v5281_v10 = vadd.f32 %v5280_v23, %v5192_v15  ;;  %v11509_v15 = vld [vmem:[#allocation19_spill] sm:$0xff] }
 0x72e   : > { %v5105_v45 = vadd.f32 %v5104_v31, %v5016_v0 }
 0x72f   : > { %v5709_v57 = vsub.f32 0.0, %v5281_v10 }
 0x731   : > { %v7949_v59 = vpop.eup %7948  ;;  %v5801_v40 = vmul.f32 1.442695, %v5709_v57 }
 0x732   : > { %v7951_v33 = vpop.eup %7950  ;;  %v5899_v21 = vadd.f32 1.0, %v7949_v59  ;;  %v5193_v17 = vpop.f32.mrf.mxu2 }
 0x733   : > { %6025 = vst [vmem:[%s11052_s26 + $0xc0] sm:$0xff] %v7951_v33  ;;  %7952 = vpow2.f32 %v5801_v40  ;;  %v5194_v24 = vadd.f32 %v5193_v17, %v5105_v45  ;;  %v5282_v53 = vpop.f32.mrf.mxu3  ;;  %v5018_v16 = vpop.f32.mrf.mxu0 }
 0x734   : > { %7954 = vrcp.f32 %v5899_v21  ;;  %v5107_v13 = vpop.f32.mrf.mxu1  ;;  %v5019_v52 = vadd.f32 %v5018_v16, %v11006_v2 }
 0x735   : > { %v5283_v28 = vadd.f32 %v5282_v53, %v5194_v24 }
 0x736   : > { %5333 = vmatmul.bf16.vlgmr.msrb.gmra.mxu0 %v10268_v50  ;;  %v5108_v31 = vadd.f32 %v5107_v13, %v5019_v52 }
 0x737   : > { %v5711_v18 = vsub.f32 0.0, %v5283_v28  ;;  %5422 = vmatmul.bf16.vlgmr.msrb.gmra.mxu1 %v10276_v44  ;;  %5511 = vmatmul.bf16.vlgmr.msrb.gmra.mxu2 %v10661_v39 }
 0x738   : > { %5600 = vmatmul.bf16.vlgmr.msrb.gmra.mxu3 %v11509_v15 }
 0x739   : > { %v7953_v23 = vpop.eup %7952  ;;  %v5805_v32 = vmul.f32 1.442695, %v5711_v18 }
 0x73a   : > { %v7955_v10 = vpop.eup %7954  ;;  %v5901_v0 = vadd.f32 1.0, %v7953_v23  ;;  %v5196_v57 = vpop.f32.mrf.mxu2 }
 0x73b   : > { %6027 = vst [vmem:[%s11052_s26 + $0xd0] sm:$0xff] %v7955_v10  ;;  %7956 = vpow2.f32 %v5805_v32  ;;  %v5197_v59 = vadd.f32 %v5196_v57, %v5108_v31  ;;  %v5285_v40 = vpop.f32.mrf.mxu3  ;;  %v5020_v45 = vpop.f32.mrf.mxu0  ;;  %v11510_v10 = vld [vmem:[#allocation14_spill] sm:$0xff]  ;;  %v11512_v57 = vld [vmem:[#allocation20_spill] sm:$0xff] }
 0x73c   : > { %7958 = vrcp.f32 %v5901_v0  ;;  %v5109_v50 = vpop.f32.mrf.mxu1  ;;  %v5021_v44 = vadd.f32 %v5020_v45, %v11006_v2  ;;  %v11511_v0 = vld [vmem:[#allocation8_spill] sm:$0xff] }
 0x73d   : > { %v5286_v33 = vadd.f32 %v5285_v40, %v5197_v59 }
 0x73e   : > { %v5110_v24 = vadd.f32 %v5109_v50, %v5021_v44 }
 0x73f   : > { %v5713_v39 = vsub.f32 0.0, %v5286_v33 }
 0x741   : > { %v7957_v21 = vpop.eup %7956  ;;  %v5809_v17 = vmul.f32 1.442695, %v5713_v39 }
 0x742   : > { %v7959_v53 = vpop.eup %7958  ;;  %v5903_v16 = vadd.f32 1.0, %v7957_v21  ;;  %v5198_v13 = vpop.f32.mrf.mxu2 }
 0x743   : > { %6029 = vst [vmem:[%s11052_s26 + $0xe0] sm:$0xff] %v7959_v53  ;;  %7960 = vpow2.f32 %v5809_v17  ;;  %v5199_v28 = vadd.f32 %v5198_v13, %v5110_v24  ;;  %v5287_v52 = vpop.f32.mrf.mxu3  ;;  %v5023_v18 = vpop.f32.mrf.mxu0 }
 0x744   : > { %7962 = vrcp.f32 %v5903_v16  ;;  %v5112_v15 = vpop.f32.mrf.mxu1  ;;  %v5024_v32 = vadd.f32 %v5023_v18, %v11006_v2 }
 0x745   : > { %v5288_v23 = vadd.f32 %v5287_v52, %v5199_v28 }
 0x746   : > { %5338 = vmatmul.bf16.gmra.mxu0 %v10282_v25  ;;  %v5113_v45 = vadd.f32 %v5112_v15, %v5024_v32 }
 0x747   : > { %v5715_v31 = vsub.f32 0.0, %v5288_v23  ;;  %5427 = vmatmul.bf16.gmra.mxu1 %v11510_v10  ;;  %5516 = vmatmul.bf16.gmra.mxu2 %v11511_v0 }
 0x748   : > { %5605 = vmatmul.bf16.gmra.mxu3 %v11512_v57 }
 0x749   : > { %v7961_v59 = vpop.eup %7960  ;;  %v5813_v40 = vmul.f32 1.442695, %v5715_v31 }
 0x74a   : > { %v7963_v50 = vpop.eup %7962  ;;  %v5905_v33 = vadd.f32 1.0, %v7961_v59  ;;  %v5201_v44 = vpop.f32.mrf.mxu2 }
 0x74b   : > { %6031 = vst [vmem:[%s11052_s26 + $0xf0] sm:$0xff] %v7963_v50  ;;  %7964 = vpow2.f32 %v5813_v40  ;;  %v5202_v39 = vadd.f32 %v5201_v44, %v5113_v45  ;;  %v5290_v21 = vpop.f32.mrf.mxu3  ;;  %v5025_v17 = vpop.f32.mrf.mxu0  ;;  %v11513_v45 = vld [vmem:[#allocation21_spill] sm:$0xff] }
 0x74c   : > { %7966 = vrcp.f32 %v5905_v33  ;;  %v5114_v25 = vpop.f32.mrf.mxu1  ;;  %v5026_v53 = vadd.f32 %v5025_v17, %v11006_v2 }
 0x74d   : > { %v5291_v24 = vadd.f32 %v5290_v21, %v5202_v39 }
 0x74e   : > { %v5115_v52 = vadd.f32 %v5114_v25, %v5026_v53 }
 0x74f   : > { %v5717_v16 = vsub.f32 0.0, %v5291_v24 }
 0x751   : > { %v7965_v13 = vpop.eup %7964  ;;  %v5817_v28 = vmul.f32 1.442695, %v5717_v16 }
 0x752   : > { %v7967_v18 = vpop.eup %7966  ;;  %v5907_v15 = vadd.f32 1.0, %v7965_v13  ;;  %v5203_v23 = vpop.f32.mrf.mxu2 }
 0x753   : > { %6033 = vst [vmem:[%s11052_s26 + $0x100] sm:$0xff] %v7967_v18  ;;  %7968 = vpow2.f32 %v5817_v28  ;;  %v5204_v32 = vadd.f32 %v5203_v23, %v5115_v52  ;;  %v5292_v31 = vpop.f32.mrf.mxu3  ;;  %v5028_v10 = vpop.f32.mrf.mxu0 }
 0x754   : > { %7970 = vrcp.f32 %v5907_v15  ;;  %v5117_v0 = vpop.f32.mrf.mxu1  ;;  %v5029_v59 = vadd.f32 %v5028_v10, %v11006_v2 }
 0x755   : > { %v5293_v57 = vadd.f32 %v5292_v31, %v5204_v32 }
 0x756   : > { %5343 = vmatmul.bf16.gmra.mxu0 %v10318_v62  ;;  %v5118_v44 = vadd.f32 %v5117_v0, %v5029_v59 }
 0x757   : > { %v5719_v40 = vsub.f32 0.0, %v5293_v57  ;;  %5432 = vmatmul.bf16.gmra.mxu1 %v10326_v51  ;;  %5521 = vmatmul.bf16.gmra.mxu2 %v10709_v41 }
 0x758   : > { %5610 = vmatmul.bf16.gmra.mxu3 %v11513_v45  ;;  %v11514_v45 = vld [vmem:[#allocation6_spill] sm:$0xff] }
 0x759   : > { %v7969_v50 = vpop.eup %7968  ;;  %v5821_v33 = vmul.f32 1.442695, %v5719_v40 }
 0x75a   : > { %v7971_v39 = vpop.eup %7970  ;;  %v5909_v21 = vadd.f32 1.0, %v7969_v50  ;;  %v5206_v17 = vpop.f32.mrf.mxu2  ;;  %v11515_v50 = vld [vmem:[#allocation9_spill] sm:$0xff] }
 0x75b   : > { %6035 = vst [vmem:[%s11052_s26 + $0x110] sm:$0xff] %v7971_v39  ;;  %7972 = vpow2.f32 %v5821_v33  ;;  %v5207_v25 = vadd.f32 %v5206_v17, %v5118_v44  ;;  %v5295_v24 = vpop.f32.mrf.mxu3  ;;  %v5030_v53 = vpop.f32.mrf.mxu0  ;;  %v11516_v33 = vld [vmem:[#allocation10_spill] sm:$0xff] }
 0x75c   : > { %7974 = vrcp.f32 %v5909_v21  ;;  %v5119_v62 = vpop.f32.mrf.mxu1  ;;  %v5031_v51 = vadd.f32 %v5030_v53, %v11006_v2 }
 0x75d   : > { %v5296_v16 = vadd.f32 %v5295_v24, %v5207_v25 }
 0x75e   : > { %v5120_v52 = vadd.f32 %v5119_v62, %v5031_v51 }
 0x75f   : > { %v5721_v41 = vsub.f32 0.0, %v5296_v16 }
 0x761   : > { %v7973_v13 = vpop.eup %7972  ;;  %v5825_v28 = vmul.f32 1.442695, %v5721_v41 }
 0x762   : > { %v7975_v18 = vpop.eup %7974  ;;  %v5911_v15 = vadd.f32 1.0, %v7973_v13  ;;  %v5208_v23 = vpop.f32.mrf.mxu2 }
 0x763   : > { %6037 = vst [vmem:[%s11052_s26 + $0x120] sm:$0xff] %v7975_v18  ;;  %7976 = vpow2.f32 %v5825_v28  ;;  %v5209_v32 = vadd.f32 %v5208_v23, %v5120_v52  ;;  %v5297_v31 = vpop.f32.mrf.mxu3  ;;  %v5033_v10 = vpop.f32.mrf.mxu0 }
 0x764   : > { %7978 = vrcp.f32 %v5911_v15  ;;  %v5122_v0 = vpop.f32.mrf.mxu1  ;;  %v5034_v59 = vadd.f32 %v5033_v10, %v11006_v2 }
 0x765   : > { %v5298_v57 = vadd.f32 %v5297_v31, %v5209_v32 }
 0x766   : > { %5348 = vmatmul.bf16.gmra.mxu0 %v10330_v12  ;;  %v5123_v21 = vadd.f32 %v5122_v0, %v5034_v59 }
 0x767   : > { %v5723_v40 = vsub.f32 0.0, %v5298_v57  ;;  %5437 = vmatmul.bf16.gmra.mxu1 %v11514_v45  ;;  %5526 = vmatmul.bf16.gmra.mxu2 %v11515_v50  ;;  %v11517_v50 = vld [vmem:[#allocation15_spill] sm:$0xff] }
 0x768   : > { %5615 = vmatmul.bf16.gmra.mxu3 %v11516_v33  ;;  %v11518_v33 = vld [vmem:[#allocation22_spill] sm:$0xff] }
 0x769   : > { %v7977_v44 = vpop.eup %7976  ;;  %v5829_v39 = vmul.f32 1.442695, %v5723_v40 }
 0x76a   : > { %v7979_v17 = vpop.eup %7978  ;;  %v5913_v25 = vadd.f32 1.0, %v7977_v44  ;;  %v5211_v24 = vpop.f32.mrf.mxu2  ;;  %v11519_v44 = vld [vmem:[#allocation23_spill] sm:$0xff] }
 0x76b   : > { %6039 = vst [vmem:[%s11052_s26 + $0x130] sm:$0xff] %v7979_v17  ;;  %7980 = vpow2.f32 %v5829_v39  ;;  %v5212_v53 = vadd.f32 %v5211_v24, %v5123_v21  ;;  %v5300_v62 = vpop.f32.mrf.mxu3  ;;  %v5035_v16 = vpop.f32.mrf.mxu0 }
 0x76c   : > { %7982 = vrcp.f32 %v5913_v25  ;;  %v5124_v12 = vpop.f32.mrf.mxu1  ;;  %v5036_v41 = vadd.f32 %v5035_v16, %v11006_v2 }
 0x76d   : > { %v5301_v51 = vadd.f32 %v5300_v62, %v5212_v53 }
 0x76e   : > { %v5125_v18 = vadd.f32 %v5124_v12, %v5036_v41 }
 0x76f   : > { %v5725_v13 = vsub.f32 0.0, %v5301_v51 }
 0x771   : > { %v7981_v28 = vpop.eup %7980  ;;  %v5833_v52 = vmul.f32 1.442695, %v5725_v13 }
 0x772   : > { %v7983_v15 = vpop.eup %7982  ;;  %v5915_v23 = vadd.f32 1.0, %v7981_v28  ;;  %v5213_v32 = vpop.f32.mrf.mxu2 }
 0x773   : > { %6041 = vst [vmem:[%s11052_s26 + $0x140] sm:$0xff] %v7983_v15  ;;  %7984 = vpow2.f32 %v5833_v52  ;;  %v5214_v31 = vadd.f32 %v5213_v32, %v5125_v18  ;;  %v5302_v10 = vpop.f32.mrf.mxu3  ;;  %v5038_v0 = vpop.f32.mrf.mxu0 }
 0x774   : > { %7986 = vrcp.f32 %v5915_v23  ;;  %v5127_v57 = vpop.f32.mrf.mxu1  ;;  %v5039_v40 = vadd.f32 %v5038_v0, %v11006_v2 }
 0x775   : > { %v5303_v59 = vadd.f32 %v5302_v10, %v5214_v31 }
 0x776   : > { %5353 = vmatmul.bf16.gmra.mxu0 %v10366_v37  ;;  %v5128_v17 = vadd.f32 %v5127_v57, %v5039_v40 }
 0x777   : > { %v5727_v45 = vsub.f32 0.0, %v5303_v59  ;;  %5442 = vmatmul.bf16.gmra.mxu1 %v11517_v50  ;;  %5531 = vmatmul.bf16.gmra.mxu2 %v11518_v33  ;;  %v11521_v33 = vld [vmem:[#allocation17_spill] sm:$0xff] }
 0x778   : > { %5620 = vmatmul.bf16.gmra.mxu3 %v11519_v44  ;;  %v11522_v44 = vld [vmem:[#allocation11_spill] sm:$0xff] }
 0x779   : > { %v7985_v39 = vpop.eup %7984  ;;  %v5837_v21 = vmul.f32 1.442695, %v5727_v45  ;;  %v11520_v45 = vld [vmem:[#allocation16_spill] sm:$0xff] }
 0x77a   : > { %v7987_v25 = vpop.eup %7986  ;;  %v5917_v24 = vadd.f32 1.0, %v7985_v39  ;;  %v5216_v53 = vpop.f32.mrf.mxu2  ;;  %v11523_v39 = vld [vmem:[#allocation12_spill] sm:$0xff] }
 0x77b   : > { %6043 = vst [vmem:[%s11052_s26 + $0x150] sm:$0xff] %v7987_v25  ;;  %7988 = vpow2.f32 %v5837_v21  ;;  %v5217_v62 = vadd.f32 %v5216_v53, %v5128_v17  ;;  %v5305_v16 = vpop.f32.mrf.mxu3  ;;  %v5040_v12 = vpop.f32.mrf.mxu0 }
 0x77c   : > { %7990 = vrcp.f32 %v5917_v24  ;;  %v5129_v37 = vpop.f32.mrf.mxu1  ;;  %v5041_v41 = vadd.f32 %v5040_v12, %v11006_v2 }
 0x77d   : > { %v5306_v51 = vadd.f32 %v5305_v16, %v5217_v62 }
 0x77e   : > { %v5130_v18 = vadd.f32 %v5129_v37, %v5041_v41 }
 0x77f   : > { %v5729_v13 = vsub.f32 0.0, %v5306_v51 }
 0x781   : > { %v7989_v28 = vpop.eup %7988  ;;  %v5841_v52 = vmul.f32 1.442695, %v5729_v13 }
 0x782   : > { %v7991_v15 = vpop.eup %7990  ;;  %v5919_v23 = vadd.f32 1.0, %v7989_v28  ;;  %v5218_v32 = vpop.f32.mrf.mxu2 }
 0x783   : > { %6045 = vst [vmem:[%s11052_s26 + $0x160] sm:$0xff] %v7991_v15  ;;  %7992 = vpow2.f32 %v5841_v52  ;;  %v5219_v31 = vadd.f32 %v5218_v32, %v5130_v18  ;;  %v5307_v10 = vpop.f32.mrf.mxu3  ;;  %v5043_v0 = vpop.f32.mrf.mxu0 }
 0x784   : > { %7994 = vrcp.f32 %v5919_v23  ;;  %v5132_v57 = vpop.f32.mrf.mxu1  ;;  %v5044_v40 = vadd.f32 %v5043_v0, %v11006_v2 }
 0x785   : > { %v5308_v59 = vadd.f32 %v5307_v10, %v5219_v31 }
 0x786   : > { %5358 = vmatmul.bf16.gmra.mxu0 %v11520_v45  ;;  %v5133_v25 = vadd.f32 %v5132_v57, %v5044_v40 }
 0x787   : > { %v5731_v50 = vsub.f32 0.0, %v5308_v59  ;;  %5447 = vmatmul.bf16.gmra.mxu1 %v11521_v33  ;;  %5536 = vmatmul.bf16.gmra.mxu2 %v11522_v44  ;;  %v11525_v44 = vld [vmem:[#allocation18_spill] sm:$0xff] }
 0x788   : > { %5625 = vmatmul.bf16.gmra.mxu3 %v11523_v39  ;;  %v11526_v39 = vld [vmem:[#allocation24_spill] sm:$0xff] }
 0x789   : > { %v7993_v21 = vpop.eup %7992  ;;  %v5845_v17 = vmul.f32 1.442695, %v5731_v50  ;;  %v11524_v50 = vld [vmem:[#allocation7_spill] sm:$0xff] }
 0x78a   : > { %v7995_v24 = vpop.eup %7994  ;;  %v5921_v53 = vadd.f32 1.0, %v7993_v21  ;;  %v5221_v62 = vpop.f32.mrf.mxu2  ;;  %v11527_v21 = vld [vmem:[#allocation25_spill] sm:$0xff] }
 0x78b   : > { %6047 = vst [vmem:[%s11052_s26 + $0x170] sm:$0xff] %v7995_v24  ;;  %7996 = vpow2.f32 %v5845_v17  ;;  %v5222_v16 = vadd.f32 %v5221_v62, %v5133_v25  ;;  %v5310_v12 = vpop.f32.mrf.mxu3  ;;  %v5045_v37 = vpop.f32.mrf.mxu0 }
 0x78c   : > { %7998 = vrcp.f32 %v5921_v53  ;;  %v5134_v51 = vpop.f32.mrf.mxu1  ;;  %v5046_v13 = vadd.f32 %v5045_v37, %v11006_v2 }
 0x78d   : > { %v5311_v41 = vadd.f32 %v5310_v12, %v5222_v16 }
 0x78e   : > { %v5135_v15 = vadd.f32 %v5134_v51, %v5046_v13 }
 0x78f   : > { %v5733_v28 = vsub.f32 0.0, %v5311_v41 }
 0x791   : > { %v7997_v52 = vpop.eup %7996  ;;  %v5849_v18 = vmul.f32 1.442695, %v5733_v28 }
 0x792   : > { %v7999_v23 = vpop.eup %7998  ;;  %v5923_v32 = vadd.f32 1.0, %v7997_v52  ;;  %v5223_v31 = vpop.f32.mrf.mxu2 }
 0x793   : > { %6049 = vst [vmem:[%s11052_s26 + $0x180] sm:$0xff] %v7999_v23  ;;  %8000 = vpow2.f32 %v5849_v18  ;;  %v5224_v10 = vadd.f32 %v5223_v31, %v5135_v15  ;;  %v5312_v0 = vpop.f32.mrf.mxu3  ;;  %v5048_v57 = vpop.f32.mrf.mxu0 }
 0x794   : > { %8002 = vrcp.f32 %v5923_v32  ;;  %v5137_v59 = vpop.f32.mrf.mxu1  ;;  %v5049_v45 = vadd.f32 %v5048_v57, %v11006_v2 }
 0x795   : > { %v5313_v40 = vadd.f32 %v5312_v0, %v5224_v10 }
 0x796   : > { %5363 = vmatmul.bf16.gmra.mxu0 %v11524_v50  ;;  %v5138_v24 = vadd.f32 %v5137_v59, %v5049_v45 }
 0x797   : > { %v5735_v33 = vsub.f32 0.0, %v5313_v40  ;;  %5452 = vmatmul.bf16.gmra.mxu1 %v11525_v44  ;;  %5541 = vmatmul.bf16.gmra.mxu2 %v11526_v39 }
 0x798   : > { %5630 = vmatmul.bf16.gmra.mxu3 %v11527_v21 }
 0x799   : > { %v8001_v17 = vpop.eup %8000  ;;  %v5853_v25 = vmul.f32 1.442695, %v5735_v33 }
 0x79a   : > { %v8003_v53 = vpop.eup %8002  ;;  %v5925_v62 = vadd.f32 1.0, %v8001_v17  ;;  %v5226_v16 = vpop.f32.mrf.mxu2 }
 0x79b   : > { %6051 = vst [vmem:[%s11052_s26 + $0x190] sm:$0xff] %v8003_v53  ;;  %8004 = vpow2.f32 %v5853_v25  ;;  %v5227_v12 = vadd.f32 %v5226_v16, %v5138_v24  ;;  %v5315_v37 = vpop.f32.mrf.mxu3  ;;  %v5050_v51 = vpop.f32.mrf.mxu0 }
 0x79c   : > { %8006 = vrcp.f32 %v5925_v62  ;;  %v5139_v41 = vpop.f32.mrf.mxu1  ;;  %v5051_v28 = vadd.f32 %v5050_v51, %v11006_v2 }
 0x79d   : > { %v5316_v13 = vadd.f32 %v5315_v37, %v5227_v12 }
 0x79e   : > { %v5140_v23 = vadd.f32 %v5139_v41, %v5051_v28  ;;  %v8157_v41 = vld [vmem:[%s11367_s8] sm:$0x3] }
 0x79f   : > { %v5737_v52 = vsub.f32 0.0, %v5316_v13  ;;  %v11223_v13 = vperm.slane %v8157_v41, 1 }
 0x7a1   : > { %v8005_v18 = vpop.eup %8004  ;;  %v5857_v15 = vmul.f32 1.442695, %v5737_v52 }
 0x7a2   : > { %v8007_v32 = vpop.eup %8006  ;;  %v5927_v31 = vadd.f32 1.0, %v8005_v18  ;;  %v5228_v10 = vpop.f32.mrf.mxu2 }
 0x7a3   : > { %6053 = vst [vmem:[%s11052_s26 + $0x1a0] sm:$0xff] %v8007_v32  ;;  %8008 = vpow2.f32 %v5857_v15  ;;  %v5229_v0 = vadd.f32 %v5228_v10, %v5140_v23  ;;  %v5317_v57 = vpop.f32.mrf.mxu3  ;;  %v5053_v59 = vpop.f32.mrf.mxu0 }
 0x7a4   : > { %8010 = vrcp.f32 %v5927_v31  ;;  %v5142_v40 = vpop.f32.mrf.mxu1  ;;  %v5054_v50 = vadd.f32 %v5053_v59, %v11006_v2 }
 0x7a5   : > { %v5318_v45 = vadd.f32 %v5317_v57, %v5229_v0  ;;  %v11528_v57 = vld [vmem:[#allocation26_spill] sm:$0xff] }
 0x7a6   : > { %5368 = vmatmul.bf16.gmra.mxu0 %v10426_v35  ;;  %v5143_v21 = vadd.f32 %v5142_v40, %v5054_v50 }
 0x7a7   : > { %v5739_v33 = vsub.f32 0.0, %v5318_v45  ;;  %5457 = vmatmul.bf16.gmra.mxu1 %v10449_v47  ;;  %5546 = vmatmul.bf16.gmra.mxu2 %v10817_v3 }
 0x7a8   : > { %5635 = vmatmul.bf16.gmra.mxu3 %v10840_v38 }
 0x7a9   : > { %v8009_v44 = vpop.eup %8008  ;;  %v5861_v39 = vmul.f32 1.442695, %v5739_v33 }
 0x7aa   : > { %v8011_v17 = vpop.eup %8010  ;;  %v5929_v25 = vadd.f32 1.0, %v8009_v44  ;;  %v5231_v24 = vpop.f32.mrf.mxu2 }
 0x7ab   : > { %6055 = vst [vmem:[%s11052_s26 + $0x1b0] sm:$0xff] %v8011_v17  ;;  %8012 = vpow2.f32 %v5861_v39  ;;  %v5232_v53 = vadd.f32 %v5231_v24, %v5143_v21  ;;  %v5320_v62 = vpop.f32.mrf.mxu3  ;;  %v5055_v16 = vpop.f32.mrf.mxu0 }
 0x7ac   : > { %8014 = vrcp.f32 %v5929_v25  ;;  %v5144_v35 = vpop.f32.mrf.mxu1  ;;  %v5056_v47 = vadd.f32 %v5055_v16, %v11006_v2 }
 0x7ad   : > { %v5321_v12 = vadd.f32 %v5320_v62, %v5232_v53 }
 0x7ae   : > { %v5145_v51 = vadd.f32 %v5144_v35, %v5056_v47 }
 0x7af   : > { %v5741_v3 = vsub.f32 0.0, %v5321_v12 }
 0x7b1   : > { %v8013_v37 = vpop.eup %8012  ;;  %v5865_v38 = vmul.f32 1.442695, %v5741_v3 }
 0x7b2   : > { %v8015_v28 = vpop.eup %8014  ;;  %v5931_v52 = vadd.f32 1.0, %v8013_v37  ;;  %v5233_v18 = vpop.f32.mrf.mxu2 }
 0x7b3   : > { %6057 = vst [vmem:[%s11052_s26 + $0x1c0] sm:$0xff] %v8015_v28  ;;  %8016 = vpow2.f32 %v5865_v38  ;;  %v5234_v15 = vadd.f32 %v5233_v18, %v5145_v51  ;;  %v5322_v23 = vpop.f32.mrf.mxu3  ;;  %v5334_v32 = vpop.f32.mrf.mxu0 }
 0x7b4   : > { %8018 = vrcp.f32 %v5931_v52  ;;  %v5423_v2 = vpop.f32.mrf.mxu1  ;;  %v5335_v10 = vadd.f32 %v5334_v32, %v11223_v13  ;;  %v11529_v52 = vld [vmem:[#allocation13_spill] sm:$0xff] }
 0x7b5   : > { %v5323_v31 = vadd.f32 %v5322_v23, %v5234_v15 }
 0x7b6   : > { %5373 = vmatmul.bf16.gmra.mxu0 %v10462_v30  ;;  %v5424_v45 = vadd.f32 %v5423_v2, %v5335_v10 }
 0x7b7   : > { %v5743_v0 = vsub.f32 0.0, %v5323_v31  ;;  %5462 = vmatmul.bf16.gmra.mxu1 %v10470_v43  ;;  %5551 = vmatmul.bf16.gmra.mxu2 %v10853_v22 }
 0x7b8   : > { %5640 = vmatmul.bf16.gmra.mxu3 %v11528_v57 }
 0x7b9   : > { %v8017_v59 = vpop.eup %8016  ;;  %v5869_v40 = vmul.f32 1.442695, %v5743_v0 }
 0x7ba   : > { %v8019_v50 = vpop.eup %8018  ;;  %v5933_v33 = vadd.f32 1.0, %v8017_v59  ;;  %v5512_v44 = vpop.f32.mrf.mxu2 }
 0x7bb   : > { %6059 = vst [vmem:[%s11052_s26 + $0x1d0] sm:$0xff] %v8019_v50  ;;  %8020 = vpow2.f32 %v5869_v40  ;;  %v5513_v39 = vadd.f32 %v5512_v44, %v5424_v45  ;;  %v5601_v21 = vpop.f32.mrf.mxu3  ;;  %v5336_v17 = vpop.f32.mrf.mxu0 }
 0x7bc   : > { %8022 = vrcp.f32 %v5933_v33  ;;  %v5425_v30 = vpop.f32.mrf.mxu1  ;;  %v5337_v43 = vadd.f32 %v5336_v17, %v11223_v13 }
 0x7bd   : > { %v5602_v25 = vadd.f32 %v5601_v21, %v5513_v39 }
 0x7be   : > { %v5426_v62 = vadd.f32 %v5425_v30, %v5337_v43 }
 0x7bf   : > { %v5682_v22 = vsub.f32 0.0, %v5602_v25 }
 0x7c1   : > { %v8021_v24 = vpop.eup %8020  ;;  %v5747_v53 = vmul.f32 1.442695, %v5682_v22 }
 0x7c2   : > { %v8023_v16 = vpop.eup %8022  ;;  %v5935_v35 = vadd.f32 1.0, %v8021_v24  ;;  %v5514_v12 = vpop.f32.mrf.mxu2 }
 0x7c3   : > { %6061 = vst [vmem:[%s11052_s26 + $0x1e0] sm:$0xff] %v8023_v16  ;;  %8024 = vpow2.f32 %v5747_v53  ;;  %v5515_v47 = vadd.f32 %v5514_v12, %v5426_v62  ;;  %v5603_v3 = vpop.f32.mrf.mxu3  ;;  %v5339_v37 = vpop.f32.mrf.mxu0 }
 0x7c4   : > { %8026 = vrcp.f32 %v5935_v35  ;;  %v5428_v38 = vpop.f32.mrf.mxu1  ;;  %v5340_v41 = vadd.f32 %v5339_v37, %v11223_v13 }
 0x7c5   : > { %v5604_v51 = vadd.f32 %v5603_v3, %v5515_v47 }
 0x7c6   : > { %5378 = vmatmul.bf16.gmra.mxu0 %v10474_v14  ;;  %v5429_v23 = vadd.f32 %v5428_v38, %v5340_v41 }
 0x7c7   : > { %v5684_v28 = vsub.f32 0.0, %v5604_v51  ;;  %5467 = vmatmul.bf16.gmra.mxu1 %v10497_v29  ;;  %5556 = vmatmul.bf16.gmra.mxu2 %v10865_v20 }
 0x7c8   : > { %5645 = vmatmul.bf16.gmra.mxu3 %v11529_v52 }
 0x7c9   : > { %v8025_v18 = vpop.eup %8024  ;;  %v5751_v15 = vmul.f32 1.442695, %v5684_v28 }
 0x7ca   : > { %v8027_v32 = vpop.eup %8026  ;;  %v5874_v2 = vadd.f32 1.0, %v8025_v18  ;;  %v5517_v31 = vpop.f32.mrf.mxu2 }
 0x7cb   : > { %6063 = vst [vmem:[%s11052_s26 + $0x1f0] sm:$0xff] %v8027_v32  ;;  %8028 = vpow2.f32 %v5751_v15  ;;  %v5518_v10 = vadd.f32 %v5517_v31, %v5429_v23  ;;  %v5606_v0 = vpop.f32.mrf.mxu3  ;;  %v5341_v57 = vpop.f32.mrf.mxu0 }
 0x7cc   : > { %8030 = vrcp.f32 %v5874_v2  ;;  %v5430_v14 = vpop.f32.mrf.mxu1  ;;  %v5342_v29 = vadd.f32 %v5341_v57, %v11223_v13 }
 0x7cd   : > { %v5607_v59 = vadd.f32 %v5606_v0, %v5518_v10 }
 0x7ce   : > { %v5431_v50 = vadd.f32 %v5430_v14, %v5342_v29 }
 0x7cf   : > { %v5686_v20 = vsub.f32 0.0, %v5607_v59 }
 0x7d1   : > { %v8029_v40 = vpop.eup %8028  ;;  %v5755_v45 = vmul.f32 1.442695, %v5686_v20 }
 0x7d2   : > { %v8031_v33 = vpop.eup %8030  ;;  %v5876_v44 = vadd.f32 1.0, %v8029_v40  ;;  %v5519_v39 = vpop.f32.mrf.mxu2 }
 0x7d3   : > { %6002 = vst [vmem:[%s11052_s26 + $0x8] sm:$0xff] %v8031_v33  ;;  %8032 = vpow2.f32 %v5755_v45  ;;  %v5520_v21 = vadd.f32 %v5519_v39, %v5431_v50  ;;  %v5608_v17 = vpop.f32.mrf.mxu3  ;;  %v5344_v30 = vpop.f32.mrf.mxu0 }
 0x7d4   : > { %8034 = vrcp.f32 %v5876_v44  ;;  %v5433_v25 = vpop.f32.mrf.mxu1  ;;  %v5345_v22 = vadd.f32 %v5344_v30, %v11223_v13 }
 0x7d5   : > { %v5609_v43 = vadd.f32 %v5608_v17, %v5520_v21 }
 0x7d6   : > { %5383 = vmatmul.bf16.gmra.mxu0 %v10510_v6  ;;  %v5434_v16 = vadd.f32 %v5433_v25, %v5345_v22 }
 0x7d7   : > { %v5688_v24 = vsub.f32 0.0, %v5609_v43  ;;  %5472 = vmatmul.bf16.gmra.mxu1 %v10518_v46  ;;  %5561 = vmatmul.bf16.gmra.mxu2 %v10901_v26 }
 0x7d8   : > { %5650 = vmatmul.bf16.gmra.mxu3 %v10909_v48 }
 0x7d9   : > { %v8033_v53 = vpop.eup %8032  ;;  %v5759_v62 = vmul.f32 1.442695, %v5688_v24 }
 0x7da   : > { %v8035_v35 = vpop.eup %8034  ;;  %v5878_v12 = vadd.f32 1.0, %v8033_v53  ;;  %v5522_v47 = vpop.f32.mrf.mxu2 }
 0x7db   : > { %6004 = vst [vmem:[%s11052_s26 + $0x18] sm:$0xff] %v8035_v35  ;;  %8036 = vpow2.f32 %v5759_v62  ;;  %v5523_v3 = vadd.f32 %v5522_v47, %v5434_v16  ;;  %v5611_v37 = vpop.f32.mrf.mxu3  ;;  %v5346_v38 = vpop.f32.mrf.mxu0 }
 0x7dc   : > { %8038 = vrcp.f32 %v5878_v12  ;;  %v5435_v6 = vpop.f32.mrf.mxu1  ;;  %v5347_v46 = vadd.f32 %v5346_v38, %v11223_v13 }
 0x7dd   : > { %v5612_v51 = vadd.f32 %v5611_v37, %v5523_v3 }
 0x7de   : > { %v5436_v28 = vadd.f32 %v5435_v6, %v5347_v46 }
 0x7df   : > { %v5690_v26 = vsub.f32 0.0, %v5612_v51 }
 0x7e1   : > { %v8037_v41 = vpop.eup %8036  ;;  %v5763_v48 = vmul.f32 1.442695, %v5690_v26 }
 0x7e2   : > { %v8039_v52 = vpop.eup %8038  ;;  %v5880_v18 = vadd.f32 1.0, %v8037_v41  ;;  %v5524_v15 = vpop.f32.mrf.mxu2 }
 0x7e3   : > { %6006 = vst [vmem:[%s11052_s26 + $0x28] sm:$0xff] %v8039_v52  ;;  %8040 = vpow2.f32 %v5763_v48  ;;  %v5525_v23 = vadd.f32 %v5524_v15, %v5436_v28  ;;  %v5613_v32 = vpop.f32.mrf.mxu3  ;;  %v5349_v2 = vpop.f32.mrf.mxu0 }
 0x7e4   : > { %8042 = vrcp.f32 %v5880_v18  ;;  %v5438_v31 = vpop.f32.mrf.mxu1  ;;  %v5350_v0 = vadd.f32 %v5349_v2, %v11223_v13 }
 0x7e5   : > { %v5614_v10 = vadd.f32 %v5613_v32, %v5525_v23 }
 0x7e6   : > { %5388 = vmatmul.bf16.gmra.mxu0 %v10522_v19  ;;  %v5439_v29 = vadd.f32 %v5438_v31, %v5350_v0 }
 0x7e7   : > { %v5692_v57 = vsub.f32 0.0, %v5614_v10  ;;  %5477 = vmatmul.bf16.gmra.mxu1 %v10545_v5  ;;  %5566 = vmatmul.bf16.gmra.mxu2 %v10913_v49 }
 0x7e8   : > { %5655 = vmatmul.bf16.gmra.mxu3 %v10936_v54 }
 0x7e9   : > { %v8041_v14 = vpop.eup %8040  ;;  %v5767_v59 = vmul.f32 1.442695, %v5692_v57 }
 0x7ea   : > { %v8043_v20 = vpop.eup %8042  ;;  %v5882_v40 = vadd.f32 1.0, %v8041_v14  ;;  %v5527_v45 = vpop.f32.mrf.mxu2 }
 0x7eb   : > { %6008 = vst [vmem:[%s11052_s26 + $0x38] sm:$0xff] %v8043_v20  ;;  %8044 = vpow2.f32 %v5767_v59  ;;  %v5528_v50 = vadd.f32 %v5527_v45, %v5439_v29  ;;  %v5616_v33 = vpop.f32.mrf.mxu3  ;;  %v5351_v44 = vpop.f32.mrf.mxu0 }
 0x7ec   : > { %8046 = vrcp.f32 %v5882_v40  ;;  %v5440_v19 = vpop.f32.mrf.mxu1  ;;  %v5352_v5 = vadd.f32 %v5351_v44, %v11223_v13 }
 0x7ed   : > { %v5617_v39 = vadd.f32 %v5616_v33, %v5528_v50 }
 0x7ee   : > { %v5441_v17 = vadd.f32 %v5440_v19, %v5352_v5 }
 0x7ef   : > { %v5694_v49 = vsub.f32 0.0, %v5617_v39 }
 0x7f1   : > { %v8045_v21 = vpop.eup %8044  ;;  %v5771_v54 = vmul.f32 1.442695, %v5694_v49 }
 0x7f2   : > { %v8047_v30 = vpop.eup %8046  ;;  %v5884_v25 = vadd.f32 1.0, %v8045_v21  ;;  %v5529_v43 = vpop.f32.mrf.mxu2 }
 0x7f3   : > { %6010 = vst [vmem:[%s11052_s26 + $0x48] sm:$0xff] %v8047_v30  ;;  %8048 = vpow2.f32 %v5771_v54  ;;  %v5530_v22 = vadd.f32 %v5529_v43, %v5441_v17  ;;  %v5618_v24 = vpop.f32.mrf.mxu3  ;;  %v5354_v53 = vpop.f32.mrf.mxu0 }
 0x7f4   : > { %8050 = vrcp.f32 %v5884_v25  ;;  %v5443_v62 = vpop.f32.mrf.mxu1  ;;  %v5355_v35 = vadd.f32 %v5354_v53, %v11223_v13 }
 0x7f5   : > { %v5619_v16 = vadd.f32 %v5618_v24, %v5530_v22 }
 0x7f6   : > { %5393 = vmatmul.bf16.gmra.mxu0 %v10558_v11  ;;  %v5444_v37 = vadd.f32 %v5443_v62, %v5355_v35 }
 0x7f7   : > { %v5696_v12 = vsub.f32 0.0, %v5619_v16  ;;  %5482 = vmatmul.bf16.gmra.mxu1 %v10566_v9  ;;  %5571 = vmatmul.bf16.gmra.mxu2 %v10949_v55 }
 0x7f8   : > { %5660 = vmatmul.bf16.gmra.mxu3 %v10957_v56 }
 0x7f9   : > { %v8049_v47 = vpop.eup %8048  ;;  %v5775_v3 = vmul.f32 1.442695, %v5696_v12 }
 0x7fa   : > { %v8051_v38 = vpop.eup %8050  ;;  %v5886_v6 = vadd.f32 1.0, %v8049_v47  ;;  %v5532_v51 = vpop.f32.mrf.mxu2 }
 0x7fb   : > { %6012 = vst [vmem:[%s11052_s26 + $0x58] sm:$0xff] %v8051_v38  ;;  %8052 = vpow2.f32 %v5775_v3  ;;  %v5533_v46 = vadd.f32 %v5532_v51, %v5444_v37  ;;  %v5621_v26 = vpop.f32.mrf.mxu3  ;;  %v5356_v41 = vpop.f32.mrf.mxu0 }
 0x7fc   : > { %8054 = vrcp.f32 %v5886_v6  ;;  %v5445_v11 = vpop.f32.mrf.mxu1  ;;  %v5357_v9 = vadd.f32 %v5356_v41, %v11223_v13 }
 0x7fd   : > { %v5622_v48 = vadd.f32 %v5621_v26, %v5533_v46 }
 0x7fe   : > { %v5446_v52 = vadd.f32 %v5445_v11, %v5357_v9 }
 0x7ff   : > { %v5698_v55 = vsub.f32 0.0, %v5622_v48 }
 0x801   : > { %v8053_v28 = vpop.eup %8052  ;;  %v5779_v56 = vmul.f32 1.442695, %v5698_v55 }
 0x802   : > { %v8055_v18 = vpop.eup %8054  ;;  %v5888_v15 = vadd.f32 1.0, %v8053_v28  ;;  %v5534_v23 = vpop.f32.mrf.mxu2 }
 0x803   : > { %6014 = vst [vmem:[%s11052_s26 + $0x68] sm:$0xff] %v8055_v18  ;;  %8056 = vpow2.f32 %v5779_v56  ;;  %v5535_v32 = vadd.f32 %v5534_v23, %v5446_v52  ;;  %v5623_v2 = vpop.f32.mrf.mxu3  ;;  %v5359_v31 = vpop.f32.mrf.mxu0 }
 0x804   : > { %8058 = vrcp.f32 %v5888_v15  ;;  %v5448_v10 = vpop.f32.mrf.mxu1  ;;  %v5360_v57 = vadd.f32 %v5359_v31, %v11223_v13 }
 0x805   : > { %v5624_v0 = vadd.f32 %v5623_v2, %v5535_v32 }
 0x806   : > { %5398 = vmatmul.bf16.gmra.mxu0 %v10570_v4  ;;  %v5449_v20 = vadd.f32 %v5448_v10, %v5360_v57 }
 0x807   : > { %v5700_v14 = vsub.f32 0.0, %v5624_v0  ;;  %5487 = vmatmul.bf16.gmra.mxu1 %v10593_v8  ;;  %5576 = vmatmul.bf16.gmra.mxu2 %v10961_v7 }
 0x808   : > { %5665 = vmatmul.bf16.gmra.mxu3 %v10984_v36 }
 0x809   : > { %v8057_v59 = vpop.eup %8056  ;;  %v5783_v29 = vmul.f32 1.442695, %v5700_v14 }
 0x80a   : > { %v8059_v40 = vpop.eup %8058  ;;  %v5890_v45 = vadd.f32 1.0, %v8057_v59  ;;  %v5537_v50 = vpop.f32.mrf.mxu2 }
 0x80b   : > { %6016 = vst [vmem:[%s11052_s26 + $0x78] sm:$0xff] %v8059_v40  ;;  %8060 = vpow2.f32 %v5783_v29  ;;  %v5538_v33 = vadd.f32 %v5537_v50, %v5449_v20  ;;  %v5626_v44 = vpop.f32.mrf.mxu3  ;;  %v5361_v19 = vpop.f32.mrf.mxu0 }
 0x80c   : > { %8062 = vrcp.f32 %v5890_v45  ;;  %v5450_v4 = vpop.f32.mrf.mxu1  ;;  %v5362_v8 = vadd.f32 %v5361_v19, %v11223_v13 }
 0x80d   : > { %v5627_v39 = vadd.f32 %v5626_v44, %v5538_v33 }
 0x80e   : > { %v5451_v49 = vadd.f32 %v5450_v4, %v5362_v8 }
 0x80f   : > { %v5702_v7 = vsub.f32 0.0, %v5627_v39 }
 0x811   : > { %v8061_v5 = vpop.eup %8060  ;;  %v5787_v36 = vmul.f32 1.442695, %v5702_v7 }
 0x812   : > { %v8063_v21 = vpop.eup %8062  ;;  %v5892_v54 = vadd.f32 1.0, %v8061_v5  ;;  %v5539_v17 = vpop.f32.mrf.mxu2 }
 0x813   : > { %6018 = vst [vmem:[%s11052_s26 + $0x88] sm:$0xff] %v8063_v21  ;;  %8064 = vpow2.f32 %v5787_v36  ;;  %v5540_v30 = vadd.f32 %v5539_v17, %v5451_v49  ;;  %v5628_v25 = vpop.f32.mrf.mxu3  ;;  %v5364_v43 = vpop.f32.mrf.mxu0 }
 0x814   : > { %8066 = vrcp.f32 %v5892_v54  ;;  %v5453_v22 = vpop.f32.mrf.mxu1  ;;  %v5365_v53 = vadd.f32 %v5364_v43, %v11223_v13 }
 0x815   : > { %v5629_v24 = vadd.f32 %v5628_v25, %v5540_v30 }
 0x816   : > { %5403 = vmatmul.bf16.gmra.mxu0 %v10606_v27  ;;  %v5454_v12 = vadd.f32 %v5453_v22, %v5365_v53 }
 0x817   : > { %v5704_v62 = vsub.f32 0.0, %v5629_v24  ;;  %5492 = vmatmul.bf16.gmra.mxu1 %v10614_v42  ;;  %5581 = vmatmul.bf16.gmra.mxu2 %v10991_v58 }
 0x818   : > { %5670 = vmatmul.bf16.gmra.mxu3 %v10999_v60 }
 0x819   : > { %v8065_v16 = vpop.eup %8064  ;;  %v5791_v35 = vmul.f32 1.442695, %v5704_v62 }
 0x81a   : > { %v8067_v47 = vpop.eup %8066  ;;  %v5894_v3 = vadd.f32 1.0, %v8065_v16  ;;  %v5542_v37 = vpop.f32.mrf.mxu2 }
 0x81b   : > { %6020 = vst [vmem:[%s11052_s26 + $0x98] sm:$0xff] %v8067_v47  ;;  %8068 = vpow2.f32 %v5791_v35  ;;  %v5543_v38 = vadd.f32 %v5542_v37, %v5454_v12  ;;  %v5631_v6 = vpop.f32.mrf.mxu3  ;;  %v5366_v51 = vpop.f32.mrf.mxu0 }
 0x81c   : > { %8070 = vrcp.f32 %v5894_v3  ;;  %v5455_v27 = vpop.f32.mrf.mxu1  ;;  %v5367_v42 = vadd.f32 %v5366_v51, %v11223_v13 }
 0x81d   : > { %v5632_v46 = vadd.f32 %v5631_v6, %v5543_v38 }
 0x81e   : > { %v5456_v41 = vadd.f32 %v5455_v27, %v5367_v42 }
 0x81f   : > { %v5706_v58 = vsub.f32 0.0, %v5632_v46 }
 0x821   : > { %v8069_v26 = vpop.eup %8068  ;;  %v5795_v60 = vmul.f32 1.442695, %v5706_v58 }
 0x822   : > { %v8071_v11 = vpop.eup %8070  ;;  %v5896_v48 = vadd.f32 1.0, %v8069_v26  ;;  %v5544_v9 = vpop.f32.mrf.mxu2 }
 0x823   : > { %6022 = vst [vmem:[%s11052_s26 + $0xa8] sm:$0xff] %v8071_v11  ;;  %8072 = vpow2.f32 %v5795_v60  ;;  %v5545_v55 = vadd.f32 %v5544_v9, %v5456_v41  ;;  %v5633_v28 = vpop.f32.mrf.mxu3  ;;  %v5369_v56 = vpop.f32.mrf.mxu0 }
 0x824   : > { %8074 = vrcp.f32 %v5896_v48  ;;  %v5458_v52 = vpop.f32.mrf.mxu1  ;;  %v5370_v15 = vadd.f32 %v5369_v56, %v11223_v13 }
 0x825   : > { %v5634_v18 = vadd.f32 %v5633_v28, %v5545_v55 }
 0x826   : > { %5408 = vmatmul.bf16.gmra.mxu0 %v10623_v34  ;;  %v5459_v31 = vadd.f32 %v5458_v52, %v5370_v15 }
 0x827   : > { %v5708_v23 = vsub.f32 0.0, %v5634_v18  ;;  %5497 = vmatmul.bf16.gmra.mxu1 %v10648_v61  ;;  %5586 = vmatmul.bf16.gmra.mxu2 %v11008_v63 }
 0x828   : > { %5675 = vmatmul.bf16.gmra.mxu3 %v11022_v1 }
 0x829   : > { %v8073_v32 = vpop.eup %8072  ;;  %v5799_v2 = vmul.f32 1.442695, %v5708_v23 }
 0x82a   : > { %v8075_v10 = vpop.eup %8074  ;;  %v5898_v0 = vadd.f32 1.0, %v8073_v32  ;;  %v5547_v57 = vpop.f32.mrf.mxu2 }
 0x82b   : > { %6024 = vst [vmem:[%s11052_s26 + $0xb8] sm:$0xff] %v8075_v10  ;;  %8076 = vpow2.f32 %v5799_v2  ;;  %v5548_v14 = vadd.f32 %v5547_v57, %v5459_v31  ;;  %v5636_v59 = vpop.f32.mrf.mxu3  ;;  %v5371_v29 = vpop.f32.mrf.mxu0 }
 0x82c   : > { %8078 = vrcp.f32 %v5898_v0  ;;  %v5460_v34 = vpop.f32.mrf.mxu1  ;;  %v5372_v61 = vadd.f32 %v5371_v29, %v11223_v13 }
 0x82d   : > { %v5637_v20 = vadd.f32 %v5636_v59, %v5548_v14 }
 0x82e   : > { %v5461_v45 = vadd.f32 %v5460_v34, %v5372_v61 }
 0x82f   : > { %v5710_v63 = vsub.f32 0.0, %v5637_v20 }
 0x831   : > { %v8077_v40 = vpop.eup %8076  ;;  %v5803_v1 = vmul.f32 1.442695, %v5710_v63 }
 0x832   : > { %v8079_v50 = vpop.eup %8078  ;;  %v5900_v33 = vadd.f32 1.0, %v8077_v40  ;;  %v5549_v44 = vpop.f32.mrf.mxu2 }
 0x833   : > { %6026 = vst [vmem:[%s11052_s26 + $0xc8] sm:$0xff] %v8079_v50  ;;  %8080 = vpow2.f32 %v5803_v1  ;;  %v5550_v19 = vadd.f32 %v5549_v44, %v5461_v45  ;;  %v5638_v4 = vpop.f32.mrf.mxu3  ;;  %v5374_v39 = vpop.f32.mrf.mxu0 }
 0x834   : > { %8082 = vrcp.f32 %v5900_v33  ;;  %v5463_v8 = vpop.f32.mrf.mxu1  ;;  %v5375_v5 = vadd.f32 %v5374_v39, %v11223_v13 }
 0x835   : > { %v5639_v7 = vadd.f32 %v5638_v4, %v5550_v19 }
 0x836   : > { %v5464_v54 = vadd.f32 %v5463_v8, %v5375_v5 }
 0x837   : > { %v5712_v36 = vsub.f32 0.0, %v5639_v7 }
 0x839   : > { %v8081_v49 = vpop.eup %8080  ;;  %v5807_v21 = vmul.f32 1.442695, %v5712_v36 }
 0x83a   : > { %v8083_v17 = vpop.eup %8082  ;;  %v5902_v30 = vadd.f32 1.0, %v8081_v49  ;;  %v5552_v25 = vpop.f32.mrf.mxu2 }
 0x83b   : > { %6028 = vst [vmem:[%s11052_s26 + $0xd8] sm:$0xff] %v8083_v17  ;;  %8084 = vpow2.f32 %v5807_v21  ;;  %v5553_v43 = vadd.f32 %v5552_v25, %v5464_v54  ;;  %v5641_v22 = vpop.f32.mrf.mxu3  ;;  %v5376_v24 = vpop.f32.mrf.mxu0 }
 0x83c   : > { %8086 = vrcp.f32 %v5902_v30  ;;  %v5465_v53 = vpop.f32.mrf.mxu1  ;;  %v5377_v16 = vadd.f32 %v5376_v24, %v11223_v13 }
 0x83d   : > { %v5642_v62 = vadd.f32 %v5641_v22, %v5553_v43 }
 0x83e   : > { %v5466_v3 = vadd.f32 %v5465_v53, %v5377_v16 }
 0x83f   : > { %v5714_v35 = vsub.f32 0.0, %v5642_v62 }
 0x841   : > { %v8085_v12 = vpop.eup %8084  ;;  %v5811_v47 = vmul.f32 1.442695, %v5714_v35 }
 0x842   : > { %v8087_v37 = vpop.eup %8086  ;;  %v5904_v38 = vadd.f32 1.0, %v8085_v12  ;;  %v5554_v6 = vpop.f32.mrf.mxu2 }
 0x843   : > { %6030 = vst [vmem:[%s11052_s26 + $0xe8] sm:$0xff] %v8087_v37  ;;  %8088 = vpow2.f32 %v5811_v47  ;;  %v5555_v51 = vadd.f32 %v5554_v6, %v5466_v3  ;;  %v5643_v27 = vpop.f32.mrf.mxu3  ;;  %v5379_v46 = vpop.f32.mrf.mxu0 }
 0x844   : > { %8090 = vrcp.f32 %v5904_v38  ;;  %v5468_v42 = vpop.f32.mrf.mxu1  ;;  %v5380_v26 = vadd.f32 %v5379_v46, %v11223_v13 }
 0x845   : > { %v5644_v58 = vadd.f32 %v5643_v27, %v5555_v51 }
 0x846   : > { %v5469_v48 = vadd.f32 %v5468_v42, %v5380_v26 }
 0x847   : > { %v5716_v60 = vsub.f32 0.0, %v5644_v58 }
 0x849   : > { %v8089_v41 = vpop.eup %8088  ;;  %v5815_v11 = vmul.f32 1.442695, %v5716_v60 }
 0x84a   : > { %v8091_v9 = vpop.eup %8090  ;;  %v5906_v55 = vadd.f32 1.0, %v8089_v41  ;;  %v5557_v28 = vpop.f32.mrf.mxu2 }
 0x84b   : > { %6032 = vst [vmem:[%s11052_s26 + $0xf8] sm:$0xff] %v8091_v9  ;;  %8092 = vpow2.f32 %v5815_v11  ;;  %v5558_v56 = vadd.f32 %v5557_v28, %v5469_v48  ;;  %v5646_v52 = vpop.f32.mrf.mxu3  ;;  %v5381_v18 = vpop.f32.mrf.mxu0 }
 0x84c   : > { %8094 = vrcp.f32 %v5906_v55  ;;  %v5470_v15 = vpop.f32.mrf.mxu1  ;;  %v5382_v32 = vadd.f32 %v5381_v18, %v11223_v13 }
 0x84d   : > { %v5647_v23 = vadd.f32 %v5646_v52, %v5558_v56 }
 0x84e   : > { %v5471_v0 = vadd.f32 %v5470_v15, %v5382_v32 }
 0x84f   : > { %v5718_v2 = vsub.f32 0.0, %v5647_v23 }
 0x851   : > { %v8093_v31 = vpop.eup %8092  ;;  %v5819_v10 = vmul.f32 1.442695, %v5718_v2 }
 0x852   : > { %v8095_v57 = vpop.eup %8094  ;;  %v5908_v14 = vadd.f32 1.0, %v8093_v31  ;;  %v5559_v59 = vpop.f32.mrf.mxu2 }
 0x853   : > { %6034 = vst [vmem:[%s11052_s26 + $0x108] sm:$0xff] %v8095_v57  ;;  %8096 = vpow2.f32 %v5819_v10  ;;  %v5560_v29 = vadd.f32 %v5559_v59, %v5471_v0  ;;  %v5648_v34 = vpop.f32.mrf.mxu3  ;;  %v5384_v20 = vpop.f32.mrf.mxu0 }
 0x854   : > { %8098 = vrcp.f32 %v5908_v14  ;;  %v5473_v61 = vpop.f32.mrf.mxu1  ;;  %v5385_v40 = vadd.f32 %v5384_v20, %v11223_v13 }
 0x855   : > { %v5649_v63 = vadd.f32 %v5648_v34, %v5560_v29 }
 0x856   : > { %v5474_v33 = vadd.f32 %v5473_v61, %v5385_v40 }
 0x857   : > { %v5720_v1 = vsub.f32 0.0, %v5649_v63 }
 0x859   : > { %v8097_v45 = vpop.eup %8096  ;;  %v5823_v50 = vmul.f32 1.442695, %v5720_v1 }
 0x85a   : > { %v8099_v44 = vpop.eup %8098  ;;  %v5910_v19 = vadd.f32 1.0, %v8097_v45  ;;  %v5562_v4 = vpop.f32.mrf.mxu2 }
 0x85b   : > { %6036 = vst [vmem:[%s11052_s26 + $0x118] sm:$0xff] %v8099_v44  ;;  %8100 = vpow2.f32 %v5823_v50  ;;  %v5563_v39 = vadd.f32 %v5562_v4, %v5474_v33  ;;  %v5651_v8 = vpop.f32.mrf.mxu3  ;;  %v5386_v7 = vpop.f32.mrf.mxu0 }
 0x85c   : > { %8102 = vrcp.f32 %v5910_v19  ;;  %v5475_v5 = vpop.f32.mrf.mxu1  ;;  %v5387_v49 = vadd.f32 %v5386_v7, %v11223_v13 }
 0x85d   : > { %v5652_v36 = vadd.f32 %v5651_v8, %v5563_v39 }
 0x85e   : > { %v5476_v30 = vadd.f32 %v5475_v5, %v5387_v49 }
 0x85f   : > { %v5722_v21 = vsub.f32 0.0, %v5652_v36 }
 0x861   : > { %v8101_v54 = vpop.eup %8100  ;;  %v5827_v17 = vmul.f32 1.442695, %v5722_v21 }
 0x862   : > { %v8103_v25 = vpop.eup %8102  ;;  %v5912_v43 = vadd.f32 1.0, %v8101_v54  ;;  %v5564_v22 = vpop.f32.mrf.mxu2 }
 0x863   : > { %6038 = vst [vmem:[%s11052_s26 + $0x128] sm:$0xff] %v8103_v25  ;;  %8104 = vpow2.f32 %v5827_v17  ;;  %v5565_v24 = vadd.f32 %v5564_v22, %v5476_v30  ;;  %v5653_v53 = vpop.f32.mrf.mxu3  ;;  %v5389_v62 = vpop.f32.mrf.mxu0 }
 0x864   : > { %8106 = vrcp.f32 %v5912_v43  ;;  %v5478_v16 = vpop.f32.mrf.mxu1  ;;  %v5390_v12 = vadd.f32 %v5389_v62, %v11223_v13 }
 0x865   : > { %v5654_v35 = vadd.f32 %v5653_v53, %v5565_v24 }
 0x866   : > { %v5479_v38 = vadd.f32 %v5478_v16, %v5390_v12 }
 0x867   : > { %v5724_v47 = vsub.f32 0.0, %v5654_v35 }
 0x869   : > { %v8105_v3 = vpop.eup %8104  ;;  %v5831_v37 = vmul.f32 1.442695, %v5724_v47 }
 0x86a   : > { %v8107_v6 = vpop.eup %8106  ;;  %v5914_v51 = vadd.f32 1.0, %v8105_v3  ;;  %v5567_v27 = vpop.f32.mrf.mxu2 }
 0x86b   : > { %6040 = vst [vmem:[%s11052_s26 + $0x138] sm:$0xff] %v8107_v6  ;;  %8108 = vpow2.f32 %v5831_v37  ;;  %v5568_v46 = vadd.f32 %v5567_v27, %v5479_v38  ;;  %v5656_v42 = vpop.f32.mrf.mxu3  ;;  %v5391_v58 = vpop.f32.mrf.mxu0 }
 0x86c   : > { %8110 = vrcp.f32 %v5914_v51  ;;  %v5480_v26 = vpop.f32.mrf.mxu1  ;;  %v5392_v41 = vadd.f32 %v5391_v58, %v11223_v13 }
 0x86d   : > { %v5657_v60 = vadd.f32 %v5656_v42, %v5568_v46 }
 0x86e   : > { %v5481_v55 = vadd.f32 %v5480_v26, %v5392_v41 }
 0x86f   : > { %v5726_v11 = vsub.f32 0.0, %v5657_v60 }
 0x871   : > { %v8109_v48 = vpop.eup %8108  ;;  %v5835_v9 = vmul.f32 1.442695, %v5726_v11 }
 0x872   : > { %v8111_v28 = vpop.eup %8110  ;;  %v5916_v56 = vadd.f32 1.0, %v8109_v48  ;;  %v5569_v52 = vpop.f32.mrf.mxu2 }
 0x873   : > { %6042 = vst [vmem:[%s11052_s26 + $0x148] sm:$0xff] %v8111_v28  ;;  %8112 = vpow2.f32 %v5835_v9  ;;  %v5570_v18 = vadd.f32 %v5569_v52, %v5481_v55  ;;  %v5658_v15 = vpop.f32.mrf.mxu3  ;;  %v5394_v23 = vpop.f32.mrf.mxu0 }
 0x874   : > { %8114 = vrcp.f32 %v5916_v56  ;;  %v5483_v32 = vpop.f32.mrf.mxu1  ;;  %v5395_v31 = vadd.f32 %v5394_v23, %v11223_v13 }
 0x875   : > { %v5659_v2 = vadd.f32 %v5658_v15, %v5570_v18 }
 0x876   : > { %v5484_v14 = vadd.f32 %v5483_v32, %v5395_v31 }
 0x877   : > { %v5728_v10 = vsub.f32 0.0, %v5659_v2 }
 0x879   : > { %v8113_v0 = vpop.eup %8112  ;;  %v5839_v57 = vmul.f32 1.442695, %v5728_v10 }
 0x87a   : > { %v8115_v59 = vpop.eup %8114  ;;  %v5918_v29 = vadd.f32 1.0, %v8113_v0  ;;  %v5572_v34 = vpop.f32.mrf.mxu2 }
 0x87b   : > { %6044 = vst [vmem:[%s11052_s26 + $0x158] sm:$0xff] %v8115_v59  ;;  %8116 = vpow2.f32 %v5839_v57  ;;  %v5573_v20 = vadd.f32 %v5572_v34, %v5484_v14  ;;  %v5661_v61 = vpop.f32.mrf.mxu3  ;;  %v5396_v63 = vpop.f32.mrf.mxu0 }
 0x87c   : > { %8118 = vrcp.f32 %v5918_v29  ;;  %v5485_v40 = vpop.f32.mrf.mxu1  ;;  %v5397_v45 = vadd.f32 %v5396_v63, %v11223_v13 }
 0x87d   : > { %v5662_v1 = vadd.f32 %v5661_v61, %v5573_v20 }
 0x87e   : > { %v5486_v19 = vadd.f32 %v5485_v40, %v5397_v45 }
 0x87f   : > { %v5730_v50 = vsub.f32 0.0, %v5662_v1 }
 0x881   : > { %v8117_v33 = vpop.eup %8116  ;;  %v5843_v44 = vmul.f32 1.442695, %v5730_v50 }
 0x882   : > { %v8119_v4 = vpop.eup %8118  ;;  %v5920_v39 = vadd.f32 1.0, %v8117_v33  ;;  %v5574_v8 = vpop.f32.mrf.mxu2 }
 0x883   : > { %6046 = vst [vmem:[%s11052_s26 + $0x168] sm:$0xff] %v8119_v4  ;;  %8120 = vpow2.f32 %v5843_v44  ;;  %v5575_v7 = vadd.f32 %v5574_v8, %v5486_v19  ;;  %v5663_v5 = vpop.f32.mrf.mxu3  ;;  %v5399_v36 = vpop.f32.mrf.mxu0 }
 0x884   : > { %8122 = vrcp.f32 %v5920_v39  ;;  %v5488_v49 = vpop.f32.mrf.mxu1  ;;  %v5400_v54 = vadd.f32 %v5399_v36, %v11223_v13 }
 0x885   : > { %v5664_v21 = vadd.f32 %v5663_v5, %v5575_v7 }
 0x886   : > { %v5489_v43 = vadd.f32 %v5488_v49, %v5400_v54 }
 0x887   : > { %v5732_v17 = vsub.f32 0.0, %v5664_v21 }
 0x889   : > { %v8121_v30 = vpop.eup %8120  ;;  %v5847_v25 = vmul.f32 1.442695, %v5732_v17 }
 0x88a   : > { %v8123_v22 = vpop.eup %8122  ;;  %v5922_v24 = vadd.f32 1.0, %v8121_v30  ;;  %v5577_v53 = vpop.f32.mrf.mxu2 }
 0x88b   : > { %6048 = vst [vmem:[%s11052_s26 + $0x178] sm:$0xff] %v8123_v22  ;;  %8124 = vpow2.f32 %v5847_v25  ;;  %v5578_v62 = vadd.f32 %v5577_v53, %v5489_v43  ;;  %v5666_v16 = vpop.f32.mrf.mxu3  ;;  %v5401_v35 = vpop.f32.mrf.mxu0 }
 0x88c   : > { %8126 = vrcp.f32 %v5922_v24  ;;  %v5490_v12 = vpop.f32.mrf.mxu1  ;;  %v5402_v3 = vadd.f32 %v5401_v35, %v11223_v13 }
 0x88d   : > { %v5667_v47 = vadd.f32 %v5666_v16, %v5578_v62 }
 0x88e   : > { %v5491_v51 = vadd.f32 %v5490_v12, %v5402_v3 }
 0x88f   : > { %v5734_v37 = vsub.f32 0.0, %v5667_v47 }
 0x891   : > { %v8125_v38 = vpop.eup %8124  ;;  %v5851_v6 = vmul.f32 1.442695, %v5734_v37 }
 0x892   : > { %v8127_v27 = vpop.eup %8126  ;;  %v5924_v46 = vadd.f32 1.0, %v8125_v38  ;;  %v5579_v42 = vpop.f32.mrf.mxu2 }
 0x893   : > { %6050 = vst [vmem:[%s11052_s26 + $0x188] sm:$0xff] %v8127_v27  ;;  %8128 = vpow2.f32 %v5851_v6  ;;  %v5580_v58 = vadd.f32 %v5579_v42, %v5491_v51  ;;  %v5668_v26 = vpop.f32.mrf.mxu3  ;;  %v5404_v60 = vpop.f32.mrf.mxu0 }
 0x894   : > { %8130 = vrcp.f32 %v5924_v46  ;;  %v5493_v41 = vpop.f32.mrf.mxu1  ;;  %v5405_v48 = vadd.f32 %v5404_v60, %v11223_v13 }
 0x895   : > { %v5669_v11 = vadd.f32 %v5668_v26, %v5580_v58 }
 0x896   : > { %v5494_v56 = vadd.f32 %v5493_v41, %v5405_v48 }
 0x897   : > { %v5736_v9 = vsub.f32 0.0, %v5669_v11 }
 0x899   : > { %v8129_v55 = vpop.eup %8128  ;;  %v5855_v28 = vmul.f32 1.442695, %v5736_v9 }
 0x89a   : > { %v8131_v52 = vpop.eup %8130  ;;  %v5926_v18 = vadd.f32 1.0, %v8129_v55  ;;  %v5582_v15 = vpop.f32.mrf.mxu2 }
 0x89b   : > { %6052 = vst [vmem:[%s11052_s26 + $0x198] sm:$0xff] %v8131_v52  ;;  %8132 = vpow2.f32 %v5855_v28  ;;  %v5583_v23 = vadd.f32 %v5582_v15, %v5494_v56  ;;  %v5671_v32 = vpop.f32.mrf.mxu3  ;;  %v5406_v2 = vpop.f32.mrf.mxu0 }
 0x89c   : > { %8134 = vrcp.f32 %v5926_v18  ;;  %v5495_v31 = vpop.f32.mrf.mxu1  ;;  %v5407_v0 = vadd.f32 %v5406_v2, %v11223_v13 }
 0x89d   : > { %v5672_v10 = vadd.f32 %v5671_v32, %v5583_v23 }
 0x89e   : > { %v5496_v29 = vadd.f32 %v5495_v31, %v5407_v0 }
 0x89f   : > { %v5738_v57 = vsub.f32 0.0, %v5672_v10 }
 0x8a1   : > { %v8133_v14 = vpop.eup %8132  ;;  %v5859_v59 = vmul.f32 1.442695, %v5738_v57 }
 0x8a2   : > { %v8135_v34 = vpop.eup %8134  ;;  %v5928_v20 = vadd.f32 1.0, %v8133_v14  ;;  %v5584_v61 = vpop.f32.mrf.mxu2 }
 0x8a3   : > { %6054 = vst [vmem:[%s11052_s26 + $0x1a8] sm:$0xff] %v8135_v34  ;;  %8136 = vpow2.f32 %v5859_v59  ;;  %v5585_v63 = vadd.f32 %v5584_v61, %v5496_v29  ;;  %v5673_v40 = vpop.f32.mrf.mxu3  ;;  %v5409_v1 = vpop.f32.mrf.mxu0 }
 0x8a4   : > { %8138 = vrcp.f32 %v5928_v20  ;;  %v5410_v50 = vadd.f32 %v5409_v1, %v11223_v13  ;;  %v5498_v33 = vpop.f32.mrf.mxu1 }
 0x8a5   : > { %v5674_v45 = vadd.f32 %v5673_v40, %v5585_v63 }
 0x8a6   : > { %v5499_v39 = vadd.f32 %v5498_v33, %v5410_v50 }
 0x8a7   : > { %v5740_v44 = vsub.f32 0.0, %v5674_v45 }
 0x8a9   : > { %v8137_v19 = vpop.eup %8136  ;;  %v5863_v4 = vmul.f32 1.442695, %v5740_v44 }
 0x8aa   : > { %v8139_v8 = vpop.eup %8138  ;;  %v5930_v7 = vadd.f32 1.0, %v8137_v19  ;;  %v5587_v5 = vpop.f32.mrf.mxu2 }
 0x8ab   : > { %6056 = vst [vmem:[%s11052_s26 + $0x1b8] sm:$0xff] %v8139_v8  ;;  %8140 = vpow2.f32 %v5863_v4  ;;  %v5588_v36 = vadd.f32 %v5587_v5, %v5499_v39  ;;  %v5676_v49 = vpop.f32.mrf.mxu3  ;;  %v5411_v21 = vpop.f32.mrf.mxu0 }
 0x8ac   : > { %8142 = vrcp.f32 %v5930_v7  ;;  %v5412_v17 = vadd.f32 %v5411_v21, %v11223_v13  ;;  %v5500_v25 = vpop.f32.mrf.mxu1 }
 0x8ad   : > { %v5677_v54 = vadd.f32 %v5676_v49, %v5588_v36 }
 0x8ae   : > { %v5501_v24 = vadd.f32 %v5500_v25, %v5412_v17 }
 0x8af   : > { %v5742_v30 = vsub.f32 0.0, %v5677_v54 }
 0x8b1   : > { %v8141_v43 = vpop.eup %8140  ;;  %v5867_v22 = vmul.f32 1.442695, %v5742_v30 }
 0x8b2   : > { %v8143_v53 = vpop.eup %8142  ;;  %v5932_v62 = vadd.f32 1.0, %v8141_v43  ;;  %v5589_v16 = vpop.f32.mrf.mxu2 }
 0x8b3   : > { %6058 = vst [vmem:[%s11052_s26 + $0x1c8] sm:$0xff] %v8143_v53  ;;  %8144 = vpow2.f32 %v5867_v22  ;;  %v5590_v35 = vadd.f32 %v5589_v16, %v5501_v24  ;;  %v5678_v12 = vpop.f32.mrf.mxu3 }
 0x8b4   : > { %8146 = vrcp.f32 %v5932_v62 }
 0x8b5   : > { %v5679_v47 = vadd.f32 %v5678_v12, %v5590_v35 }
 0x8b7   : > { %v5744_v3 = vsub.f32 0.0, %v5679_v47 }
 0x8b9   : > { %v8145_v13 = vpop.eup %8144  ;;  %v5871_v37 = vmul.f32 1.442695, %v5744_v3 }
 0x8ba   : > { %v8147_v38 = vpop.eup %8146  ;;  %v5934_v6 = vadd.f32 1.0, %v8145_v13 }
 0x8bb   : > { %6060 = vst [vmem:[%s11052_s26 + $0x1d8] sm:$0xff] %v8147_v38  ;;  %8148 = vpow2.f32 %v5871_v37 }
 0x8bc   : > { %8150 = vrcp.f32 %v5934_v6 }
 0x8c1   : > { %v8149_v51 = vpop.eup %8148 }
 0x8c2   : > { %v8151_v27 = vpop.eup %8150  ;;  %v5936_v46 = vadd.f32 1.0, %v8149_v51 }
 0x8c3   : > { %6062 = vst [vmem:[%s11052_s26 + $0x1e8] sm:$0xff] %v8151_v27 }
 0x8c4   : > { %8152 = vrcp.f32 %v5936_v46 }
 0x8ca   : > { %v8153_v42 = vpop.eup %8152 }
 0x8cb   : > { %6064 = vst [vmem:[%s11052_s26 + $0x1f8] sm:$0xff] %v8153_v42 }
 0x8cc   : > { %8185 = shalt.err (!%p8182_p3)
}
 0x8cd   : > { %s8222_s24 = smov 256   ;;  %s8223_s26 = smov 16  }
 0x8ce   : > { %7601 = dma.vmem_to_hbm [thread:$0]  (%p8312_p5), %s6080_s27, 8192, %s6082_s25, %s6066_s28, %s8222_s24, %s8222_s24, %s8223_s26  }
 0x8cf PF: > { %p7607_p4 = scmp.ge.s32.totalorder %s8220_s12, 2  ;;  %s6096_s22 = sand.u32 1, %s8208_s30  }
 0x8d0   : > { %s6097_s23 = scalar_lea.sflag [#allocation3], %s6096_s22 }
 0x8d1   : > { %p7604_p7 = pnand %p7607_p4, %p8316_p6 }
 0x8d3   : > { %p7605_p8 = pneg %p7604_p7 }
 0x8d5   : > { %8203 = dma.done.wait (%p7605_p8), %s6097_s23, 8192  }
 0x8d6   : > { %8205 = vsyncadd (%p7605_p8), %s6097_s23, 4294959104  ;;  %s11530_s21 = sld [smem:[#allocation5_spill]]  ;;  %p19_p9 = scmp.ge.s32.totalorder %s8299_s15, 4  }
 0x8d7   : > { %s11531_s30 = smov %s8212_s10  ;;  %s11532_s10 = smov %s8216_s11 }
 0x8d8   : > { %s11534_s12 = smov %s8299_s15  ;;  %21 = sbr.rel (!%p19_p9) target bundleno = 3 (0x3), region = 91 }
 0x8dc   : > { %s11533_s11 = smov %s11530_s21 }
 0x8dd   :  { %6103 = vsyncpa [#allocation3], 1 }
 0x8de   :  { %6105 = vsyncpa [#allocation3 + $0x1], 1 }

</bundles_post_ra>
